<compile_context>
chip_gen: v7x
topology: tpu7x:2x2x1
jax: 0.10.0
libtpu: 0.0.40
codegen_flags: <defaults>
</compile_context>

<pallas_src>
import functools

import jax
import jax.numpy as jnp
import numpy as np
from jax.experimental import pallas as pl
from jax.experimental.pallas import tpu as pltpu


# --------------------------------------------------------------------------
# Fused kernel: full my_aggregation forward for ONE image per grid step
# --------------------------------------------------------------------------
def _fused_agg_kernel(cat1_ref, cat2_ref, cat3_ref, att1_ref,
                      s1_ref, s2_ref, u1_ref, u2_ref, t_ref,
                      ml_ref, mr_ref, mt_ref, mb_ref,
                      w1_ref, b1_ref, w2_ref, b2_ref, w3_ref, b3_ref,
                      ow1_ref, ob1_ref, ow2_ref, ob2_ref,
                      o_ref,
                      *, H, W, C):
    HW = H * W
    C4 = 4 * C

    tile4 = t_ref[...]                    # (C, 4C): 0/1 channel-group tiling
    ml = ml_ref[...]                      # (HW, 1): 0 where col == 0
    mr = mr_ref[...]                      # (HW, 1): 0 where col == W-1
    mt = mt_ref[...]                      # (HW, 1): 0 where row == 0
    mb = mb_ref[...]                      # (HW, 1): 0 where row == H-1

    def modulate(att, cat):
        # cat * sigmoid(mask), sigmoid tiled over the 4 channel groups
        # (EUP sigmoid + one exact 0/1 MXU tiling dot).
        s = jax.nn.sigmoid(att)                                      # (hw, C)
        s4 = jnp.dot(s, tile4, preferred_element_type=jnp.float32)   # (hw, 4C)
        return cat * s4

    def small_stage(att, cat, s_ref, wcat_ref, b_ref):
        # 3x3 "same" conv at tiny resolution: ONE wide (hw, C4) x (C4, 9C)
        # MXU dot against the pre-concatenated per-tap weights, then 9 tiny
        # exact 0/1 shift-matrix dots (N widened per perf review).
        mod = modulate(att, cat)                                     # (hw, 4C)
        hw = mod.shape[0]
        big = jnp.dot(mod, wcat_ref[...],
                      preferred_element_type=jnp.float32)            # (hw, 9C)
        acc = jnp.zeros((hw, C), jnp.float32)
        for t in range(9):
            acc = acc + jnp.dot(s_ref[t], big[:, t * C:(t + 1) * C],
                                preferred_element_type=jnp.float32)
        return jnp.clip(acc + b_ref[...], 0.0, 6.0)                  # (hw, C)

    def conv3x3_same(x, w_ref):
        # 3x3 "same" conv on the flattened (HW, Cin) image.  Taps are built
        # with XLU sublane rolls + 0/1 border masks (no halo buffer, no
        # im2col, no misaligned slices); each tap feeds its accumulating
        # MXU dot immediately.
        acc = jnp.zeros((HW, C), jnp.float32)
        for dy in range(3):
            if dy == 0:
                base = pltpu.roll(x, W, axis=0) * mt       # input row y-1
            elif dy == 1:
                base = x                                   # input row y
            else:
                base = pltpu.roll(x, HW - W, axis=0) * mb  # input row y+1
            left = pltpu.roll(base, 1, axis=0) * ml        # input col x-1
            right = pltpu.roll(base, HW - 1, axis=0) * mr  # input col x+1
            acc = acc + jnp.dot(left, w_ref[dy, 0],
                                preferred_element_type=jnp.float32)
            acc = acc + jnp.dot(base, w_ref[dy, 1],
                                preferred_element_type=jnp.float32)
            acc = acc + jnp.dot(right, w_ref[dy, 2],
                                preferred_element_type=jnp.float32)
        return acc

    # ---- stage 1: center = x4 (H/4 x W/4), mask = x5 ----------------------
    m1 = small_stage(att1_ref[0], cat1_ref[0], s1_ref, w1_ref, b1_ref)

    # ---- stage 2: center = x3 (H/2 x W/2), mask = nearest_up(m1, 2) -------
    att2 = jnp.dot(u1_ref[...], m1, preferred_element_type=jnp.float32)
    m2 = small_stage(att2, cat2_ref[0], s2_ref, w2_ref, b2_ref)

    # ---- stage 3: center = x2 (H x W), mask = nearest_up(m2, 2) -----------
    att3 = jnp.dot(u2_ref[...], m2, preferred_element_type=jnp.float32)
    mod3 = modulate(att3, cat3_ref[0])                               # (HW, 4C)
    m3 = jnp.clip(conv3x3_same(mod3, w3_ref) + b3_ref[...], 0.0, 6.0)

    # ---- outConv: 3x3 (C->C) + ReLU6 + 1x1 (C->1) --------------------------
    hid = jnp.clip(conv3x3_same(m3, ow1_ref) + ob1_ref[...], 0.0, 6.0)
    # 1x1 conv computed transposed so the result is a lane-dense (1, HW) row.
    # (ow2 is zero-padded to 8 rows at trace time; only row 0 is real.)
    res = jax.lax.dot_general(ow2_ref[...], hid, (((1,), (1,)), ((), ())),
                              preferred_element_type=jnp.float32)    # (8, HW)
    out = res[0:1, :] + ob2_ref[...]                                 # (1, HW)
    o_ref[...] = out.reshape(1, 1, HW).astype(o_ref.dtype)


# --------------------------------------------------------------------------
# Trace-time helpers (plain JAX / numpy; input-only preprocessing + constants)
# --------------------------------------------------------------------------
def _nearest_up(x, k):
    if k == 1:
        return x
    return jnp.repeat(jnp.repeat(x, k, axis=1), k, axis=2)


def _avg_down(x, k):
    if k == 1:
        return x
    n, h, w, c = x.shape
    return x.reshape(n, h // k, k, w // k, k, c).mean(axis=(2, 4))


def _shift_matrices(h, w):
    """(9, h*w, h*w) 0/1 matrices: S[t] @ x_flat == zero-padded 3x3 tap t."""
    hw = h * w
    s = np.zeros((9, hw, hw), np.float32)
    for t in range(9):
        oy, ox = t // 3 - 1, t % 3 - 1
        for y in range(h):
            for x in range(w):
                yy, xx = y + oy, x + ox
                if 0 <= yy < h and 0 <= xx < w:
                    s[t, y * w + x, yy * w + xx] = 1.0
    return s


def _up2_matrix(h, w):
    """(4hw, hw) 0/1 matrix: nearest-neighbour 2x upsample on flattened HW."""
    hh, ww = 2 * h, 2 * w
    u = np.zeros((hh * ww, h * w), np.float32)
    for y in range(hh):
        for x in range(ww):
            u[y * ww + x, (y // 2) * w + (x // 2)] = 1.0
    return u


# --------------------------------------------------------------------------
# Module forward
# --------------------------------------------------------------------------
def my_aggregation_fwd(params, x2, x3, x4, x5):
    """Inputs NCHW (like PyTorch); returns NCHW (N, 1, H2, W2)."""
    x2, x3, x4, x5 = (jnp.transpose(t, (0, 2, 3, 1)) for t in (x2, x3, x4, x5))
    N, H2, W2, C = x2.shape
    H3, W3 = x3.shape[1:3]
    H4, W4 = x4.shape[1:3]
    H5, W5 = x5.shape[1:3]
    C4 = 4 * C
    HW2, HW3, HW4 = H2 * W2, H3 * W3, H4 * W4

    # Input-only pyramid resampling + 4-feature channel concat (depends only on
    # the network inputs => cheap XLA work; everything that depends on kernel
    # intermediates happens inside the fused kernel).
    cat1 = jnp.concatenate([_avg_down(x2, H2 // H4), _avg_down(x3, H3 // H4),
                            x4, _nearest_up(x5, H4 // H5)], axis=-1)
    cat2 = jnp.concatenate([_avg_down(x2, H2 // H3), x3,
                            _nearest_up(x4, H3 // H4),
                            _nearest_up(x5, H3 // H5)], axis=-1)
    cat3 = jnp.concatenate([x2, _nearest_up(x3, H2 // H3),
                            _nearest_up(x4, H2 // H4),
                            _nearest_up(x5, H2 // H5)], axis=-1)
    att1 = _nearest_up(x5, H4 // H5)

    cat1 = cat1.reshape(N, HW4, C4)
    cat2 = cat2.reshape(N, HW3, C4)
    cat3 = cat3.reshape(N, HW2, C4)
    att1 = att1.reshape(N, HW4, C)

    # Constant geometry matrices (built once at trace time).
    S1 = jnp.asarray(_shift_matrices(H4, W4))              # (9, HW4, HW4)
    S2 = jnp.asarray(_shift_matrices(H3, W3))              # (9, HW3, HW3)
    U1 = jnp.asarray(_up2_matrix(H4, W4))                  # (HW3, HW4)
    U2 = jnp.asarray(_up2_matrix(H3, W3))                  # (HW2, HW3)
    T = jnp.asarray(np.tile(np.eye(C, dtype=np.float32), (1, 4)))   # (C, 4C)

    # 0/1 border masks for the flattened full-resolution 3x3 convs.
    col = np.arange(HW2, dtype=np.int64) % W2
    row = np.arange(HW2, dtype=np.int64) // W2
    ml = jnp.asarray((col != 0).astype(np.float32).reshape(HW2, 1))
    mr = jnp.asarray((col != W2 - 1).astype(np.float32).reshape(HW2, 1))
    mt = jnp.asarray((row != 0).astype(np.float32).reshape(HW2, 1))
    mb = jnp.asarray((row != H2 - 1).astype(np.float32).reshape(HW2, 1))

    def wcat(w):
        # (3,3,Cin,C) -> (Cin, 9*C) with column block t == tap kh*3+kw.
        k = w.reshape(9, w.shape[2], C)
        return jnp.transpose(k, (1, 0, 2)).reshape(w.shape[2], 9 * C)

    w1 = wcat(params["agg1"]["w"]); b1 = params["agg1"]["b"]
    w2 = wcat(params["agg2"]["w"]); b2 = params["agg2"]["b"]
    w3 = params["agg3"]["w"]; b3 = params["agg3"]["b"]          # (3,3,4C,C)
    ow1, ob1 = params["out_w1"], params["out_b1"]               # (3,3,C,C),(1,C)
    ow2 = jnp.zeros((8, C), jnp.float32).at[0].set(params["out_w2"][:, 0])
    ob2 = params["out_b2"]                                      # (1, 1)

    kernel = functools.partial(_fused_agg_kernel, H=H2, W=W2, C=C)

    in_specs = [
        pl.BlockSpec((1, HW4, C4), lambda n: (n, 0, 0)),        # cat1
        pl.BlockSpec((1, HW3, C4), lambda n: (n, 0, 0)),        # cat2
        pl.BlockSpec((1, HW2, C4), lambda n: (n, 0, 0)),        # cat3
        pl.BlockSpec((1, HW4, C), lambda n: (n, 0, 0)),         # att1
        pl.BlockSpec((9, HW4, HW4), lambda n: (0, 0, 0)),       # S1
        pl.BlockSpec((9, HW3, HW3), lambda n: (0, 0, 0)),       # S2
        pl.BlockSpec((HW3, HW4), lambda n: (0, 0)),             # U1
        pl.BlockSpec((HW2, HW3), lambda n: (0, 0)),             # U2
        pl.BlockSpec((C, C4), lambda n: (0, 0)),                # T
        pl.BlockSpec((HW2, 1), lambda n: (0, 0)),               # mask left
        pl.BlockSpec((HW2, 1), lambda n: (0, 0)),               # mask right
        pl.BlockSpec((HW2, 1), lambda n: (0, 0)),               # mask top
        pl.BlockSpec((HW2, 1), lambda n: (0, 0)),               # mask bottom
        pl.BlockSpec((C4, 9 * C), lambda n: (0, 0)),            # W1cat
        pl.BlockSpec((1, C), lambda n: (0, 0)),                 # b1
        pl.BlockSpec((C4, 9 * C), lambda n: (0, 0)),            # W2cat
        pl.BlockSpec((1, C), lambda n: (0, 0)),                 # b2
        pl.BlockSpec((3, 3, C4, C), lambda n: (0, 0, 0, 0)),    # w3
        pl.BlockSpec((1, C), lambda n: (0, 0)),                 # b3
        pl.BlockSpec((3, 3, C, C), lambda n: (0, 0, 0, 0)),     # out w1
        pl.BlockSpec((1, C), lambda n: (0, 0)),                 # out b1
        pl.BlockSpec((8, C), lambda n: (0, 0)),                 # out w2 (padded)
        pl.BlockSpec((1, 1), lambda n: (0, 0)),                 # out b2
    ]
    out_specs = pl.BlockSpec((1, 1, HW2), lambda n: (n, 0, 0))

    out = pl.pallas_call(
        kernel,
        out_shape=jax.ShapeDtypeStruct((N, 1, HW2), x2.dtype),
        grid=(N,),
        in_specs=in_specs,
        out_specs=out_specs,
        compiler_params=pltpu.CompilerParams(
            dimension_semantics=("parallel",)),
    )(cat1, cat2, cat3, att1, S1, S2, U1, U2, T, ml, mr, mt, mb,
      w1, b1, w2, b2, w3, b3, ow1, ob1, ow2, ob2)

    # (N, 1, HW) -> (N, 1, H, W): identical memory order, free reshape.
    return out.reshape(N, 1, H2, W2)


# --------------------------------------------------------------------------
# Deterministic parameter init (PyTorch-conv-like uniform fan-in init)
# --------------------------------------------------------------------------
def _init_conv(key, kh, kw, cin, cout):
    k1, k2 = jax.random.split(key)
    scale = 1.0 / np.sqrt(cin * kh * kw)
    w = jax.random.uniform(k1, (kh, kw, cin, cout), jnp.float32, -scale, scale)
    b = jax.random.uniform(k2, (1, cout), jnp.float32, -scale, scale)
    return w, b


def init_params(key, inchannels=32, feature_num=4):
    keys = jax.random.split(key, 5)
    params = {}
    for i in range(3):
        w, b = _init_conv(keys[i], 3, 3, inchannels * feature_num, inchannels)
        params[f"agg{i + 1}"] = {"w": w, "b": b}
    w1, b1 = _init_conv(keys[3], 3, 3, inchannels, inchannels)
    w2, b2 = _init_conv(keys[4], 1, 1, inchannels, 1)
    params["out_w1"], params["out_b1"] = w1, b1
    params["out_w2"], params["out_b2"] = w2.reshape(inchannels, 1), b2
    return params


# --------------------------------------------------------------------------
if __name__ == "__main__":
    C = 32          # inchannels (module default)
    N = 2
    key = jax.random.PRNGKey(0)
    kp, k2, k3, k4, k5 = jax.random.split(key, 5)

    params = init_params(kp, inchannels=C)

    # Pyramid features (NCHW like PyTorch): x2 highest res ... x5 lowest res.
    x2 = jax.random.normal(k2, (N, C, 16, 16), jnp.float32)
    x3 = jax.random.normal(k3, (N, C, 8, 8), jnp.float32)
    x4 = jax.random.normal(k4, (N, C, 4, 4), jnp.float32)
    x5 = jax.random.normal(k5, (N, C, 2, 2), jnp.float32)

    fwd = jax.jit(my_aggregation_fwd)
    out = jax.block_until_ready(fwd(params, x2, x3, x4, x5))

    assert out.shape == (N, 1, 16, 16), out.shape
    assert jnp.all(jnp.isfinite(out))
    print("KERNEL_OK")
</pallas_src>

<mosaic_0001>
module attributes {stable_mosaic.version = 11 : i64} {
  func.func @_fused_agg_kernel(%arg0: i32, %arg1: memref<1x16x128xf32, #tpu.memory_space<vmem>>, %arg2: memref<1x64x128xf32, #tpu.memory_space<vmem>>, %arg3: memref<1x256x128xf32, #tpu.memory_space<vmem>>, %arg4: memref<1x16x32xf32, #tpu.memory_space<vmem>>, %arg5: memref<9x16x16xf32, #tpu.memory_space<vmem>>, %arg6: memref<9x64x64xf32, #tpu.memory_space<vmem>>, %arg7: memref<64x16xf32, #tpu.memory_space<vmem>>, %arg8: memref<256x64xf32, #tpu.memory_space<vmem>>, %arg9: memref<32x128xf32, #tpu.memory_space<vmem>>, %arg10: memref<256x1xf32, #tpu.memory_space<vmem>>, %arg11: memref<256x1xf32, #tpu.memory_space<vmem>>, %arg12: memref<256x1xf32, #tpu.memory_space<vmem>>, %arg13: memref<256x1xf32, #tpu.memory_space<vmem>>, %arg14: memref<128x288xf32, #tpu.memory_space<vmem>>, %arg15: memref<1x32xf32, #tpu.memory_space<vmem>>, %arg16: memref<128x288xf32, #tpu.memory_space<vmem>>, %arg17: memref<1x32xf32, #tpu.memory_space<vmem>>, %arg18: memref<3x3x128x32xf32, #tpu.memory_space<vmem>>, %arg19: memref<1x32xf32, #tpu.memory_space<vmem>>, %arg20: memref<3x3x32x32xf32, #tpu.memory_space<vmem>>, %arg21: memref<1x32xf32, #tpu.memory_space<vmem>>, %arg22: memref<8x32xf32, #tpu.memory_space<vmem>>, %arg23: memref<1x1xf32, #tpu.memory_space<vmem>>, %arg24: memref<1x1x256xf32, #tpu.memory_space<vmem>>) attributes {dimension_semantics = [#tpu.dimension_semantics<parallel>], iteration_bounds = array<i64: 2>, scalar_prefetch = 0 : i64, scratch_operands = 0 : i64, tpu.core_type = #tpu.core_type<tc>, window_params = [{transform_indices = @transform_0, window_bounds = array<i64: 1, 16, 128>}, {transform_indices = @transform_1, window_bounds = array<i64: 1, 64, 128>}, {transform_indices = @transform_2, window_bounds = array<i64: 1, 256, 128>}, {transform_indices = @transform_3, window_bounds = array<i64: 1, 16, 32>}, {pipeline_mode = #tpu.pipeline_mode<synchronous>, transform_indices = @transform_4, window_bounds = array<i64: 9, 16, 16>}, {pipeline_mode = #tpu.pipeline_mode<synchronous>, transform_indices = @transform_5, window_bounds = array<i64: 9, 64, 64>}, {pipeline_mode = #tpu.pipeline_mode<synchronous>, transform_indices = @transform_6, window_bounds = array<i64: 64, 16>}, {pipeline_mode = #tpu.pipeline_mode<synchronous>, transform_indices = @transform_7, window_bounds = array<i64: 256, 64>}, {pipeline_mode = #tpu.pipeline_mode<synchronous>, transform_indices = @transform_8, window_bounds = array<i64: 32, 128>}, {pipeline_mode = #tpu.pipeline_mode<synchronous>, transform_indices = @transform_9, window_bounds = array<i64: 256, 1>}, {pipeline_mode = #tpu.pipeline_mode<synchronous>, transform_indices = @transform_10, window_bounds = array<i64: 256, 1>}, {pipeline_mode = #tpu.pipeline_mode<synchronous>, transform_indices = @transform_11, window_bounds = array<i64: 256, 1>}, {pipeline_mode = #tpu.pipeline_mode<synchronous>, transform_indices = @transform_12, window_bounds = array<i64: 256, 1>}, {pipeline_mode = #tpu.pipeline_mode<synchronous>, transform_indices = @transform_13, window_bounds = array<i64: 128, 288>}, {pipeline_mode = #tpu.pipeline_mode<synchronous>, transform_indices = @transform_14, window_bounds = array<i64: 1, 32>}, {pipeline_mode = #tpu.pipeline_mode<synchronous>, transform_indices = @transform_15, window_bounds = array<i64: 128, 288>}, {pipeline_mode = #tpu.pipeline_mode<synchronous>, transform_indices = @transform_16, window_bounds = array<i64: 1, 32>}, {pipeline_mode = #tpu.pipeline_mode<synchronous>, transform_indices = @transform_17, window_bounds = array<i64: 3, 3, 128, 32>}, {pipeline_mode = #tpu.pipeline_mode<synchronous>, transform_indices = @transform_18, window_bounds = array<i64: 1, 32>}, {pipeline_mode = #tpu.pipeline_mode<synchronous>, transform_indices = @transform_19, window_bounds = array<i64: 3, 3, 32, 32>}, {pipeline_mode = #tpu.pipeline_mode<synchronous>, transform_indices = @transform_20, window_bounds = array<i64: 1, 32>}, {pipeline_mode = #tpu.pipeline_mode<synchronous>, transform_indices = @transform_21, window_bounds = array<i64: 8, 32>}, {pipeline_mode = #tpu.pipeline_mode<synchronous>, transform_indices = @transform_22, window_bounds = array<i64: 1, 1>}, {transform_indices = @transform_23, window_bounds = array<i64: 1, 1, 256>}]} {
    %c0 = arith.constant 0 : index
    %c0_0 = arith.constant 0 : index
    %0 = vector.load %arg9[%c0, %c0_0] : memref<32x128xf32, #tpu.memory_space<vmem>>, vector<32x128xf32>
    %c0_1 = arith.constant 0 : index
    %c0_2 = arith.constant 0 : index
    %1 = vector.load %arg10[%c0_1, %c0_2] : memref<256x1xf32, #tpu.memory_space<vmem>>, vector<256x1xf32>
    %c0_3 = arith.constant 0 : index
    %c0_4 = arith.constant 0 : index
    %2 = vector.load %arg11[%c0_3, %c0_4] : memref<256x1xf32, #tpu.memory_space<vmem>>, vector<256x1xf32>
    %c0_5 = arith.constant 0 : index
    %c0_6 = arith.constant 0 : index
    %3 = vector.load %arg12[%c0_5, %c0_6] : memref<256x1xf32, #tpu.memory_space<vmem>>, vector<256x1xf32>
    %c0_7 = arith.constant 0 : index
    %c0_8 = arith.constant 0 : index
    %4 = vector.load %arg13[%c0_7, %c0_8] : memref<256x1xf32, #tpu.memory_space<vmem>>, vector<256x1xf32>
    %c0_9 = arith.constant 0 : index
    %c0_10 = arith.constant 0 : index
    %c0_11 = arith.constant 0 : index
    %5 = vector.load %arg4[%c0_9, %c0_10, %c0_11] : memref<1x16x32xf32, #tpu.memory_space<vmem>>, vector<1x16x32xf32>
    %6 = vector.shape_cast %5 : vector<1x16x32xf32> to vector<16x32xf32>
    %c0_12 = arith.constant 0 : index
    %c0_13 = arith.constant 0 : index
    %c0_14 = arith.constant 0 : index
    %7 = vector.load %arg1[%c0_12, %c0_13, %c0_14] : memref<1x16x128xf32, #tpu.memory_space<vmem>>, vector<1x16x128xf32>
    %8 = vector.shape_cast %7 : vector<1x16x128xf32> to vector<16x128xf32>
    %9 = arith.negf %6 : vector<16x32xf32>
    %10 = math.exp %9 : vector<16x32xf32>
    %cst = arith.constant 1.000000e+00 : f32
    %11 = vector.broadcast %cst : f32 to vector<16x32xf32>
    %12 = arith.addf %11, %10 : vector<16x32xf32>
    %13 = arith.divf %11, %12 : vector<16x32xf32>
    %cst_15 = arith.constant dense<0.000000e+00> : vector<16x128xf32>
    %14 = tpu.matmul %13, %0, %cst_15 {dimension_numbers = #tpu.dot_dimension_numbers<[1], [0], [0], [1], [0, 0, 1, 1], [], []>} : vector<16x32xf32>, vector<32x128xf32>, vector<16x128xf32> -> vector<16x128xf32>
    %15 = arith.mulf %8, %14 : vector<16x128xf32>
    %c0_16 = arith.constant 0 : index
    %c0_17 = arith.constant 0 : index
    %16 = vector.load %arg14[%c0_16, %c0_17] : memref<128x288xf32, #tpu.memory_space<vmem>>, vector<128x288xf32>
    %cst_18 = arith.constant dense<0.000000e+00> : vector<16x288xf32>
    %17 = tpu.matmul %15, %16, %cst_18 {dimension_numbers = #tpu.dot_dimension_numbers<[1], [0], [0], [1], [0, 0, 1, 1], [], []>} : vector<16x128xf32>, vector<128x288xf32>, vector<16x288xf32> -> vector<16x288xf32>
    %cst_19 = arith.constant 0.000000e+00 : f32
    %18 = vector.broadcast %cst_19 : f32 to vector<16x32xf32>
    %c0_20 = arith.constant 0 : index
    %c0_21 = arith.constant 0 : index
    %c0_22 = arith.constant 0 : index
    %19 = vector.load %arg5[%c0_20, %c0_21, %c0_22] : memref<9x16x16xf32, #tpu.memory_space<vmem>>, vector<1x16x16xf32>
    %20 = vector.shape_cast %19 : vector<1x16x16xf32> to vector<16x16xf32>
    %21 = vector.extract_strided_slice %17 {offsets = [0, 0], sizes = [16, 32], strides = [1, 1]} : vector<16x288xf32> to vector<16x32xf32>
    %cst_23 = arith.constant dense<0.000000e+00> : vector<16x32xf32>
    %22 = tpu.matmul %20, %21, %cst_23 {dimension_numbers = #tpu.dot_dimension_numbers<[1], [0], [0], [1], [0, 0, 1, 1], [], []>} : vector<16x16xf32>, vector<16x32xf32>, vector<16x32xf32> -> vector<16x32xf32>
    %23 = arith.addf %18, %22 : vector<16x32xf32>
    %c1 = arith.constant 1 : index
    %c0_24 = arith.constant 0 : index
    %c0_25 = arith.constant 0 : index
    %24 = vector.load %arg5[%c1, %c0_24, %c0_25] : memref<9x16x16xf32, #tpu.memory_space<vmem>>, vector<1x16x16xf32>
    %25 = vector.shape_cast %24 : vector<1x16x16xf32> to vector<16x16xf32>
    %26 = vector.extract_strided_slice %17 {offsets = [0, 32], sizes = [16, 32], strides = [1, 1]} : vector<16x288xf32> to vector<16x32xf32>
    %cst_26 = arith.constant dense<0.000000e+00> : vector<16x32xf32>
    %27 = tpu.matmul %25, %26, %cst_26 {dimension_numbers = #tpu.dot_dimension_numbers<[1], [0], [0], [1], [0, 0, 1, 1], [], []>} : vector<16x16xf32>, vector<16x32xf32>, vector<16x32xf32> -> vector<16x32xf32>
    %28 = arith.addf %23, %27 : vector<16x32xf32>
    %c2 = arith.constant 2 : index
    %c0_27 = arith.constant 0 : index
    %c0_28 = arith.constant 0 : index
    %29 = vector.load %arg5[%c2, %c0_27, %c0_28] : memref<9x16x16xf32, #tpu.memory_space<vmem>>, vector<1x16x16xf32>
    %30 = vector.shape_cast %29 : vector<1x16x16xf32> to vector<16x16xf32>
    %31 = vector.extract_strided_slice %17 {offsets = [0, 64], sizes = [16, 32], strides = [1, 1]} : vector<16x288xf32> to vector<16x32xf32>
    %cst_29 = arith.constant dense<0.000000e+00> : vector<16x32xf32>
    %32 = tpu.matmul %30, %31, %cst_29 {dimension_numbers = #tpu.dot_dimension_numbers<[1], [0], [0], [1], [0, 0, 1, 1], [], []>} : vector<16x16xf32>, vector<16x32xf32>, vector<16x32xf32> -> vector<16x32xf32>
    %33 = arith.addf %28, %32 : vector<16x32xf32>
    %c3 = arith.constant 3 : index
    %c0_30 = arith.constant 0 : index
    %c0_31 = arith.constant 0 : index
    %34 = vector.load %arg5[%c3, %c0_30, %c0_31] : memref<9x16x16xf32, #tpu.memory_space<vmem>>, vector<1x16x16xf32>
    %35 = vector.shape_cast %34 : vector<1x16x16xf32> to vector<16x16xf32>
    %36 = vector.extract_strided_slice %17 {offsets = [0, 96], sizes = [16, 32], strides = [1, 1]} : vector<16x288xf32> to vector<16x32xf32>
    %cst_32 = arith.constant dense<0.000000e+00> : vector<16x32xf32>
    %37 = tpu.matmul %35, %36, %cst_32 {dimension_numbers = #tpu.dot_dimension_numbers<[1], [0], [0], [1], [0, 0, 1, 1], [], []>} : vector<16x16xf32>, vector<16x32xf32>, vector<16x32xf32> -> vector<16x32xf32>
    %38 = arith.addf %33, %37 : vector<16x32xf32>
    %c4 = arith.constant 4 : index
    %c0_33 = arith.constant 0 : index
    %c0_34 = arith.constant 0 : index
    %39 = vector.load %arg5[%c4, %c0_33, %c0_34] : memref<9x16x16xf32, #tpu.memory_space<vmem>>, vector<1x16x16xf32>
    %40 = vector.shape_cast %39 : vector<1x16x16xf32> to vector<16x16xf32>
    %41 = vector.extract_strided_slice %17 {offsets = [0, 128], sizes = [16, 32], strides = [1, 1]} : vector<16x288xf32> to vector<16x32xf32>
    %cst_35 = arith.constant dense<0.000000e+00> : vector<16x32xf32>
    %42 = tpu.matmul %40, %41, %cst_35 {dimension_numbers = #tpu.dot_dimension_numbers<[1], [0], [0], [1], [0, 0, 1, 1], [], []>} : vector<16x16xf32>, vector<16x32xf32>, vector<16x32xf32> -> vector<16x32xf32>
    %43 = arith.addf %38, %42 : vector<16x32xf32>
    %c5 = arith.constant 5 : index
    %c0_36 = arith.constant 0 : index
    %c0_37 = arith.constant 0 : index
    %44 = vector.load %arg5[%c5, %c0_36, %c0_37] : memref<9x16x16xf32, #tpu.memory_space<vmem>>, vector<1x16x16xf32>
    %45 = vector.shape_cast %44 : vector<1x16x16xf32> to vector<16x16xf32>
    %46 = vector.extract_strided_slice %17 {offsets = [0, 160], sizes = [16, 32], strides = [1, 1]} : vector<16x288xf32> to vector<16x32xf32>
    %cst_38 = arith.constant dense<0.000000e+00> : vector<16x32xf32>
    %47 = tpu.matmul %45, %46, %cst_38 {dimension_numbers = #tpu.dot_dimension_numbers<[1], [0], [0], [1], [0, 0, 1, 1], [], []>} : vector<16x16xf32>, vector<16x32xf32>, vector<16x32xf32> -> vector<16x32xf32>
    %48 = arith.addf %43, %47 : vector<16x32xf32>
    %c6 = arith.constant 6 : index
    %c0_39 = arith.constant 0 : index
    %c0_40 = arith.constant 0 : index
    %49 = vector.load %arg5[%c6, %c0_39, %c0_40] : memref<9x16x16xf32, #tpu.memory_space<vmem>>, vector<1x16x16xf32>
    %50 = vector.shape_cast %49 : vector<1x16x16xf32> to vector<16x16xf32>
    %51 = vector.extract_strided_slice %17 {offsets = [0, 192], sizes = [16, 32], strides = [1, 1]} : vector<16x288xf32> to vector<16x32xf32>
    %cst_41 = arith.constant dense<0.000000e+00> : vector<16x32xf32>
    %52 = tpu.matmul %50, %51, %cst_41 {dimension_numbers = #tpu.dot_dimension_numbers<[1], [0], [0], [1], [0, 0, 1, 1], [], []>} : vector<16x16xf32>, vector<16x32xf32>, vector<16x32xf32> -> vector<16x32xf32>
    %53 = arith.addf %48, %52 : vector<16x32xf32>
    %c7 = arith.constant 7 : index
    %c0_42 = arith.constant 0 : index
    %c0_43 = arith.constant 0 : index
    %54 = vector.load %arg5[%c7, %c0_42, %c0_43] : memref<9x16x16xf32, #tpu.memory_space<vmem>>, vector<1x16x16xf32>
    %55 = vector.shape_cast %54 : vector<1x16x16xf32> to vector<16x16xf32>
    %56 = vector.extract_strided_slice %17 {offsets = [0, 224], sizes = [16, 32], strides = [1, 1]} : vector<16x288xf32> to vector<16x32xf32>
    %cst_44 = arith.constant dense<0.000000e+00> : vector<16x32xf32>
    %57 = tpu.matmul %55, %56, %cst_44 {dimension_numbers = #tpu.dot_dimension_numbers<[1], [0], [0], [1], [0, 0, 1, 1], [], []>} : vector<16x16xf32>, vector<16x32xf32>, vector<16x32xf32> -> vector<16x32xf32>
    %58 = arith.addf %53, %57 : vector<16x32xf32>
    %c8 = arith.constant 8 : index
    %c0_45 = arith.constant 0 : index
    %c0_46 = arith.constant 0 : index
    %59 = vector.load %arg5[%c8, %c0_45, %c0_46] : memref<9x16x16xf32, #tpu.memory_space<vmem>>, vector<1x16x16xf32>
    %60 = vector.shape_cast %59 : vector<1x16x16xf32> to vector<16x16xf32>
    %61 = vector.extract_strided_slice %17 {offsets = [0, 256], sizes = [16, 32], strides = [1, 1]} : vector<16x288xf32> to vector<16x32xf32>
    %cst_47 = arith.constant dense<0.000000e+00> : vector<16x32xf32>
    %62 = tpu.matmul %60, %61, %cst_47 {dimension_numbers = #tpu.dot_dimension_numbers<[1], [0], [0], [1], [0, 0, 1, 1], [], []>} : vector<16x16xf32>, vector<16x32xf32>, vector<16x32xf32> -> vector<16x32xf32>
    %63 = arith.addf %58, %62 : vector<16x32xf32>
    %c0_48 = arith.constant 0 : index
    %c0_49 = arith.constant 0 : index
    %64 = vector.load %arg15[%c0_48, %c0_49] : memref<1x32xf32, #tpu.memory_space<vmem>>, vector<1x32xf32>
    %65 = vector.broadcast %64 : vector<1x32xf32> to vector<16x32xf32>
    %66 = arith.addf %63, %65 : vector<16x32xf32>
    %cst_50 = arith.constant 0.000000e+00 : f32
    %cst_51 = arith.constant 6.000000e+00 : f32
    %67 = vector.broadcast %cst_50 : f32 to vector<16x32xf32>
    %68 = arith.maximumf %67, %66 : vector<16x32xf32>
    %69 = vector.broadcast %cst_51 : f32 to vector<16x32xf32>
    %70 = arith.minimumf %69, %68 : vector<16x32xf32>
    %c0_52 = arith.constant 0 : index
    %c0_53 = arith.constant 0 : index
    %71 = vector.load %arg7[%c0_52, %c0_53] : memref<64x16xf32, #tpu.memory_space<vmem>>, vector<64x16xf32>
    %cst_54 = arith.constant dense<0.000000e+00> : vector<64x32xf32>
    %72 = tpu.matmul %71, %70, %cst_54 {dimension_numbers = #tpu.dot_dimension_numbers<[1], [0], [0], [1], [0, 0, 1, 1], [], []>} : vector<64x16xf32>, vector<16x32xf32>, vector<64x32xf32> -> vector<64x32xf32>
    %c0_55 = arith.constant 0 : index
    %c0_56 = arith.constant 0 : index
    %c0_57 = arith.constant 0 : index
    %73 = vector.load %arg2[%c0_55, %c0_56, %c0_57] : memref<1x64x128xf32, #tpu.memory_space<vmem>>, vector<1x64x128xf32>
    %74 = vector.shape_cast %73 : vector<1x64x128xf32> to vector<64x128xf32>
    %75 = arith.negf %72 : vector<64x32xf32>
    %76 = math.exp %75 : vector<64x32xf32>
    %cst_58 = arith.constant 1.000000e+00 : f32
    %77 = vector.broadcast %cst_58 : f32 to vector<64x32xf32>
    %78 = arith.addf %77, %76 : vector<64x32xf32>
    %79 = arith.divf %77, %78 : vector<64x32xf32>
    %cst_59 = arith.constant dense<0.000000e+00> : vector<64x128xf32>
    %80 = tpu.matmul %79, %0, %cst_59 {dimension_numbers = #tpu.dot_dimension_numbers<[1], [0], [0], [1], [0, 0, 1, 1], [], []>} : vector<64x32xf32>, vector<32x128xf32>, vector<64x128xf32> -> vector<64x128xf32>
    %81 = arith.mulf %74, %80 : vector<64x128xf32>
    %c0_60 = arith.constant 0 : index
    %c0_61 = arith.constant 0 : index
    %82 = vector.load %arg16[%c0_60, %c0_61] : memref<128x288xf32, #tpu.memory_space<vmem>>, vector<128x288xf32>
    %cst_62 = arith.constant dense<0.000000e+00> : vector<64x288xf32>
    %83 = tpu.matmul %81, %82, %cst_62 {dimension_numbers = #tpu.dot_dimension_numbers<[1], [0], [0], [1], [0, 0, 1, 1], [], []>} : vector<64x128xf32>, vector<128x288xf32>, vector<64x288xf32> -> vector<64x288xf32>
    %cst_63 = arith.constant 0.000000e+00 : f32
    %84 = vector.broadcast %cst_63 : f32 to vector<64x32xf32>
    %c0_64 = arith.constant 0 : index
    %c0_65 = arith.constant 0 : index
    %c0_66 = arith.constant 0 : index
    %85 = vector.load %arg6[%c0_64, %c0_65, %c0_66] : memref<9x64x64xf32, #tpu.memory_space<vmem>>, vector<1x64x64xf32>
    %86 = vector.shape_cast %85 : vector<1x64x64xf32> to vector<64x64xf32>
    %87 = vector.extract_strided_slice %83 {offsets = [0, 0], sizes = [64, 32], strides = [1, 1]} : vector<64x288xf32> to vector<64x32xf32>
    %cst_67 = arith.constant dense<0.000000e+00> : vector<64x32xf32>
    %88 = tpu.matmul %86, %87, %cst_67 {dimension_numbers = #tpu.dot_dimension_numbers<[1], [0], [0], [1], [0, 0, 1, 1], [], []>} : vector<64x64xf32>, vector<64x32xf32>, vector<64x32xf32> -> vector<64x32xf32>
    %89 = arith.addf %84, %88 : vector<64x32xf32>
    %c1_68 = arith.constant 1 : index
    %c0_69 = arith.constant 0 : index
    %c0_70 = arith.constant 0 : index
    %90 = vector.load %arg6[%c1_68, %c0_69, %c0_70] : memref<9x64x64xf32, #tpu.memory_space<vmem>>, vector<1x64x64xf32>
    %91 = vector.shape_cast %90 : vector<1x64x64xf32> to vector<64x64xf32>
    %92 = vector.extract_strided_slice %83 {offsets = [0, 32], sizes = [64, 32], strides = [1, 1]} : vector<64x288xf32> to vector<64x32xf32>
    %cst_71 = arith.constant dense<0.000000e+00> : vector<64x32xf32>
    %93 = tpu.matmul %91, %92, %cst_71 {dimension_numbers = #tpu.dot_dimension_numbers<[1], [0], [0], [1], [0, 0, 1, 1], [], []>} : vector<64x64xf32>, vector<64x32xf32>, vector<64x32xf32> -> vector<64x32xf32>
    %94 = arith.addf %89, %93 : vector<64x32xf32>
    %c2_72 = arith.constant 2 : index
    %c0_73 = arith.constant 0 : index
    %c0_74 = arith.constant 0 : index
    %95 = vector.load %arg6[%c2_72, %c0_73, %c0_74] : memref<9x64x64xf32, #tpu.memory_space<vmem>>, vector<1x64x64xf32>
    %96 = vector.shape_cast %95 : vector<1x64x64xf32> to vector<64x64xf32>
    %97 = vector.extract_strided_slice %83 {offsets = [0, 64], sizes = [64, 32], strides = [1, 1]} : vector<64x288xf32> to vector<64x32xf32>
    %cst_75 = arith.constant dense<0.000000e+00> : vector<64x32xf32>
    %98 = tpu.matmul %96, %97, %cst_75 {dimension_numbers = #tpu.dot_dimension_numbers<[1], [0], [0], [1], [0, 0, 1, 1], [], []>} : vector<64x64xf32>, vector<64x32xf32>, vector<64x32xf32> -> vector<64x32xf32>
    %99 = arith.addf %94, %98 : vector<64x32xf32>
    %c3_76 = arith.constant 3 : index
    %c0_77 = arith.constant 0 : index
    %c0_78 = arith.constant 0 : index
    %100 = vector.load %arg6[%c3_76, %c0_77, %c0_78] : memref<9x64x64xf32, #tpu.memory_space<vmem>>, vector<1x64x64xf32>
    %101 = vector.shape_cast %100 : vector<1x64x64xf32> to vector<64x64xf32>
    %102 = vector.extract_strided_slice %83 {offsets = [0, 96], sizes = [64, 32], strides = [1, 1]} : vector<64x288xf32> to vector<64x32xf32>
    %cst_79 = arith.constant dense<0.000000e+00> : vector<64x32xf32>
    %103 = tpu.matmul %101, %102, %cst_79 {dimension_numbers = #tpu.dot_dimension_numbers<[1], [0], [0], [1], [0, 0, 1, 1], [], []>} : vector<64x64xf32>, vector<64x32xf32>, vector<64x32xf32> -> vector<64x32xf32>
    %104 = arith.addf %99, %103 : vector<64x32xf32>
    %c4_80 = arith.constant 4 : index
    %c0_81 = arith.constant 0 : index
    %c0_82 = arith.constant 0 : index
    %105 = vector.load %arg6[%c4_80, %c0_81, %c0_82] : memref<9x64x64xf32, #tpu.memory_space<vmem>>, vector<1x64x64xf32>
    %106 = vector.shape_cast %105 : vector<1x64x64xf32> to vector<64x64xf32>
    %107 = vector.extract_strided_slice %83 {offsets = [0, 128], sizes = [64, 32], strides = [1, 1]} : vector<64x288xf32> to vector<64x32xf32>
    %cst_83 = arith.constant dense<0.000000e+00> : vector<64x32xf32>
    %108 = tpu.matmul %106, %107, %cst_83 {dimension_numbers = #tpu.dot_dimension_numbers<[1], [0], [0], [1], [0, 0, 1, 1], [], []>} : vector<64x64xf32>, vector<64x32xf32>, vector<64x32xf32> -> vector<64x32xf32>
    %109 = arith.addf %104, %108 : vector<64x32xf32>
    %c5_84 = arith.constant 5 : index
    %c0_85 = arith.constant 0 : index
    %c0_86 = arith.constant 0 : index
    %110 = vector.load %arg6[%c5_84, %c0_85, %c0_86] : memref<9x64x64xf32, #tpu.memory_space<vmem>>, vector<1x64x64xf32>
    %111 = vector.shape_cast %110 : vector<1x64x64xf32> to vector<64x64xf32>
    %112 = vector.extract_strided_slice %83 {offsets = [0, 160], sizes = [64, 32], strides = [1, 1]} : vector<64x288xf32> to vector<64x32xf32>
    %cst_87 = arith.constant dense<0.000000e+00> : vector<64x32xf32>
    %113 = tpu.matmul %111, %112, %cst_87 {dimension_numbers = #tpu.dot_dimension_numbers<[1], [0], [0], [1], [0, 0, 1, 1], [], []>} : vector<64x64xf32>, vector<64x32xf32>, vector<64x32xf32> -> vector<64x32xf32>
    %114 = arith.addf %109, %113 : vector<64x32xf32>
    %c6_88 = arith.constant 6 : index
    %c0_89 = arith.constant 0 : index
    %c0_90 = arith.constant 0 : index
    %115 = vector.load %arg6[%c6_88, %c0_89, %c0_90] : memref<9x64x64xf32, #tpu.memory_space<vmem>>, vector<1x64x64xf32>
    %116 = vector.shape_cast %115 : vector<1x64x64xf32> to vector<64x64xf32>
    %117 = vector.extract_strided_slice %83 {offsets = [0, 192], sizes = [64, 32], strides = [1, 1]} : vector<64x288xf32> to vector<64x32xf32>
    %cst_91 = arith.constant dense<0.000000e+00> : vector<64x32xf32>
    %118 = tpu.matmul %116, %117, %cst_91 {dimension_numbers = #tpu.dot_dimension_numbers<[1], [0], [0], [1], [0, 0, 1, 1], [], []>} : vector<64x64xf32>, vector<64x32xf32>, vector<64x32xf32> -> vector<64x32xf32>
    %119 = arith.addf %114, %118 : vector<64x32xf32>
    %c7_92 = arith.constant 7 : index
    %c0_93 = arith.constant 0 : index
    %c0_94 = arith.constant 0 : index
    %120 = vector.load %arg6[%c7_92, %c0_93, %c0_94] : memref<9x64x64xf32, #tpu.memory_space<vmem>>, vector<1x64x64xf32>
    %121 = vector.shape_cast %120 : vector<1x64x64xf32> to vector<64x64xf32>
    %122 = vector.extract_strided_slice %83 {offsets = [0, 224], sizes = [64, 32], strides = [1, 1]} : vector<64x288xf32> to vector<64x32xf32>
    %cst_95 = arith.constant dense<0.000000e+00> : vector<64x32xf32>
    %123 = tpu.matmul %121, %122, %cst_95 {dimension_numbers = #tpu.dot_dimension_numbers<[1], [0], [0], [1], [0, 0, 1, 1], [], []>} : vector<64x64xf32>, vector<64x32xf32>, vector<64x32xf32> -> vector<64x32xf32>
    %124 = arith.addf %119, %123 : vector<64x32xf32>
    %c8_96 = arith.constant 8 : index
    %c0_97 = arith.constant 0 : index
    %c0_98 = arith.constant 0 : index
    %125 = vector.load %arg6[%c8_96, %c0_97, %c0_98] : memref<9x64x64xf32, #tpu.memory_space<vmem>>, vector<1x64x64xf32>
    %126 = vector.shape_cast %125 : vector<1x64x64xf32> to vector<64x64xf32>
    %127 = vector.extract_strided_slice %83 {offsets = [0, 256], sizes = [64, 32], strides = [1, 1]} : vector<64x288xf32> to vector<64x32xf32>
    %cst_99 = arith.constant dense<0.000000e+00> : vector<64x32xf32>
    %128 = tpu.matmul %126, %127, %cst_99 {dimension_numbers = #tpu.dot_dimension_numbers<[1], [0], [0], [1], [0, 0, 1, 1], [], []>} : vector<64x64xf32>, vector<64x32xf32>, vector<64x32xf32> -> vector<64x32xf32>
    %129 = arith.addf %124, %128 : vector<64x32xf32>
    %c0_100 = arith.constant 0 : index
    %c0_101 = arith.constant 0 : index
    %130 = vector.load %arg17[%c0_100, %c0_101] : memref<1x32xf32, #tpu.memory_space<vmem>>, vector<1x32xf32>
    %131 = vector.broadcast %130 : vector<1x32xf32> to vector<64x32xf32>
    %132 = arith.addf %129, %131 : vector<64x32xf32>
    %cst_102 = arith.constant 0.000000e+00 : f32
    %cst_103 = arith.constant 6.000000e+00 : f32
    %133 = vector.broadcast %cst_102 : f32 to vector<64x32xf32>
    %134 = arith.maximumf %133, %132 : vector<64x32xf32>
    %135 = vector.broadcast %cst_103 : f32 to vector<64x32xf32>
    %136 = arith.minimumf %135, %134 : vector<64x32xf32>
    %c0_104 = arith.constant 0 : index
    %c0_105 = arith.constant 0 : index
    %137 = vector.load %arg8[%c0_104, %c0_105] : memref<256x64xf32, #tpu.memory_space<vmem>>, vector<256x64xf32>
    %cst_106 = arith.constant dense<0.000000e+00> : vector<256x32xf32>
    %138 = tpu.matmul %137, %136, %cst_106 {dimension_numbers = #tpu.dot_dimension_numbers<[1], [0], [0], [1], [0, 0, 1, 1], [], []>} : vector<256x64xf32>, vector<64x32xf32>, vector<256x32xf32> -> vector<256x32xf32>
    %c0_107 = arith.constant 0 : index
    %c0_108 = arith.constant 0 : index
    %c0_109 = arith.constant 0 : index
    %139 = vector.load %arg3[%c0_107, %c0_108, %c0_109] : memref<1x256x128xf32, #tpu.memory_space<vmem>>, vector<1x256x128xf32>
    %140 = vector.shape_cast %139 : vector<1x256x128xf32> to vector<256x128xf32>
    %141 = arith.negf %138 : vector<256x32xf32>
    %142 = math.exp %141 : vector<256x32xf32>
    %cst_110 = arith.constant 1.000000e+00 : f32
    %143 = vector.broadcast %cst_110 : f32 to vector<256x32xf32>
    %144 = arith.addf %143, %142 : vector<256x32xf32>
    %145 = arith.divf %143, %144 : vector<256x32xf32>
    %cst_111 = arith.constant dense<0.000000e+00> : vector<256x128xf32>
    %146 = tpu.matmul %145, %0, %cst_111 {dimension_numbers = #tpu.dot_dimension_numbers<[1], [0], [0], [1], [0, 0, 1, 1], [], []>} : vector<256x32xf32>, vector<32x128xf32>, vector<256x128xf32> -> vector<256x128xf32>
    %147 = arith.mulf %140, %146 : vector<256x128xf32>
    %cst_112 = arith.constant 0.000000e+00 : f32
    %148 = vector.broadcast %cst_112 : f32 to vector<256x32xf32>
    %c16_i32 = arith.constant 16 : i32
    %149 = tpu.dynamic_rotate %147 by %c16_i32 dim 0 : vector<256x128xf32>, i32 -> vector<256x128xf32>
    %150 = vector.broadcast %3 : vector<256x1xf32> to vector<256x128xf32>
    %151 = arith.mulf %149, %150 : vector<256x128xf32>
    %c1_i32 = arith.constant 1 : i32
    %152 = tpu.dynamic_rotate %151 by %c1_i32 dim 0 : vector<256x128xf32>, i32 -> vector<256x128xf32>
    %153 = vector.broadcast %1 : vector<256x1xf32> to vector<256x128xf32>
    %154 = arith.mulf %152, %153 : vector<256x128xf32>
    %c255_i32 = arith.constant 255 : i32
    %155 = tpu.dynamic_rotate %151 by %c255_i32 dim 0 : vector<256x128xf32>, i32 -> vector<256x128xf32>
    %156 = vector.broadcast %2 : vector<256x1xf32> to vector<256x128xf32>
    %157 = arith.mulf %155, %156 : vector<256x128xf32>
    %c0_113 = arith.constant 0 : index
    %c0_114 = arith.constant 0 : index
    %c0_115 = arith.constant 0 : index
    %c0_116 = arith.constant 0 : index
    %158 = vector.load %arg18[%c0_113, %c0_114, %c0_115, %c0_116] : memref<3x3x128x32xf32, #tpu.memory_space<vmem>>, vector<1x1x128x32xf32>
    %159 = vector.shape_cast %158 : vector<1x1x128x32xf32> to vector<128x32xf32>
    %cst_117 = arith.constant dense<0.000000e+00> : vector<256x32xf32>
    %160 = tpu.matmul %154, %159, %cst_117 {dimension_numbers = #tpu.dot_dimension_numbers<[1], [0], [0], [1], [0, 0, 1, 1], [], []>} : vector<256x128xf32>, vector<128x32xf32>, vector<256x32xf32> -> vector<256x32xf32>
    %161 = arith.addf %148, %160 : vector<256x32xf32>
    %c0_118 = arith.constant 0 : index
    %c1_119 = arith.constant 1 : index
    %c0_120 = arith.constant 0 : index
    %c0_121 = arith.constant 0 : index
    %162 = vector.load %arg18[%c0_118, %c1_119, %c0_120, %c0_121] : memref<3x3x128x32xf32, #tpu.memory_space<vmem>>, vector<1x1x128x32xf32>
    %163 = vector.shape_cast %162 : vector<1x1x128x32xf32> to vector<128x32xf32>
    %cst_122 = arith.constant dense<0.000000e+00> : vector<256x32xf32>
    %164 = tpu.matmul %151, %163, %cst_122 {dimension_numbers = #tpu.dot_dimension_numbers<[1], [0], [0], [1], [0, 0, 1, 1], [], []>} : vector<256x128xf32>, vector<128x32xf32>, vector<256x32xf32> -> vector<256x32xf32>
    %165 = arith.addf %161, %164 : vector<256x32xf32>
    %c0_123 = arith.constant 0 : index
    %c2_124 = arith.constant 2 : index
    %c0_125 = arith.constant 0 : index
    %c0_126 = arith.constant 0 : index
    %166 = vector.load %arg18[%c0_123, %c2_124, %c0_125, %c0_126] : memref<3x3x128x32xf32, #tpu.memory_space<vmem>>, vector<1x1x128x32xf32>
    %167 = vector.shape_cast %166 : vector<1x1x128x32xf32> to vector<128x32xf32>
    %cst_127 = arith.constant dense<0.000000e+00> : vector<256x32xf32>
    %168 = tpu.matmul %157, %167, %cst_127 {dimension_numbers = #tpu.dot_dimension_numbers<[1], [0], [0], [1], [0, 0, 1, 1], [], []>} : vector<256x128xf32>, vector<128x32xf32>, vector<256x32xf32> -> vector<256x32xf32>
    %169 = arith.addf %165, %168 : vector<256x32xf32>
    %c1_i32_128 = arith.constant 1 : i32
    %170 = tpu.dynamic_rotate %147 by %c1_i32_128 dim 0 : vector<256x128xf32>, i32 -> vector<256x128xf32>
    %171 = vector.broadcast %1 : vector<256x1xf32> to vector<256x128xf32>
    %172 = arith.mulf %170, %171 : vector<256x128xf32>
    %c255_i32_129 = arith.constant 255 : i32
    %173 = tpu.dynamic_rotate %147 by %c255_i32_129 dim 0 : vector<256x128xf32>, i32 -> vector<256x128xf32>
    %174 = vector.broadcast %2 : vector<256x1xf32> to vector<256x128xf32>
    %175 = arith.mulf %173, %174 : vector<256x128xf32>
    %c1_130 = arith.constant 1 : index
    %c0_131 = arith.constant 0 : index
    %c0_132 = arith.constant 0 : index
    %c0_133 = arith.constant 0 : index
    %176 = vector.load %arg18[%c1_130, %c0_131, %c0_132, %c0_133] : memref<3x3x128x32xf32, #tpu.memory_space<vmem>>, vector<1x1x128x32xf32>
    %177 = vector.shape_cast %176 : vector<1x1x128x32xf32> to vector<128x32xf32>
    %cst_134 = arith.constant dense<0.000000e+00> : vector<256x32xf32>
    %178 = tpu.matmul %172, %177, %cst_134 {dimension_numbers = #tpu.dot_dimension_numbers<[1], [0], [0], [1], [0, 0, 1, 1], [], []>} : vector<256x128xf32>, vector<128x32xf32>, vector<256x32xf32> -> vector<256x32xf32>
    %179 = arith.addf %169, %178 : vector<256x32xf32>
    %c1_135 = arith.constant 1 : index
    %c1_136 = arith.constant 1 : index
    %c0_137 = arith.constant 0 : index
    %c0_138 = arith.constant 0 : index
    %180 = vector.load %arg18[%c1_135, %c1_136, %c0_137, %c0_138] : memref<3x3x128x32xf32, #tpu.memory_space<vmem>>, vector<1x1x128x32xf32>
    %181 = vector.shape_cast %180 : vector<1x1x128x32xf32> to vector<128x32xf32>
    %cst_139 = arith.constant dense<0.000000e+00> : vector<256x32xf32>
    %182 = tpu.matmul %147, %181, %cst_139 {dimension_numbers = #tpu.dot_dimension_numbers<[1], [0], [0], [1], [0, 0, 1, 1], [], []>} : vector<256x128xf32>, vector<128x32xf32>, vector<256x32xf32> -> vector<256x32xf32>
    %183 = arith.addf %179, %182 : vector<256x32xf32>
    %c1_140 = arith.constant 1 : index
    %c2_141 = arith.constant 2 : index
    %c0_142 = arith.constant 0 : index
    %c0_143 = arith.constant 0 : index
    %184 = vector.load %arg18[%c1_140, %c2_141, %c0_142, %c0_143] : memref<3x3x128x32xf32, #tpu.memory_space<vmem>>, vector<1x1x128x32xf32>
    %185 = vector.shape_cast %184 : vector<1x1x128x32xf32> to vector<128x32xf32>
    %cst_144 = arith.constant dense<0.000000e+00> : vector<256x32xf32>
    %186 = tpu.matmul %175, %185, %cst_144 {dimension_numbers = #tpu.dot_dimension_numbers<[1], [0], [0], [1], [0, 0, 1, 1], [], []>} : vector<256x128xf32>, vector<128x32xf32>, vector<256x32xf32> -> vector<256x32xf32>
    %187 = arith.addf %183, %186 : vector<256x32xf32>
    %c240_i32 = arith.constant 240 : i32
    %188 = tpu.dynamic_rotate %147 by %c240_i32 dim 0 : vector<256x128xf32>, i32 -> vector<256x128xf32>
    %189 = vector.broadcast %4 : vector<256x1xf32> to vector<256x128xf32>
    %190 = arith.mulf %188, %189 : vector<256x128xf32>
    %c1_i32_145 = arith.constant 1 : i32
    %191 = tpu.dynamic_rotate %190 by %c1_i32_145 dim 0 : vector<256x128xf32>, i32 -> vector<256x128xf32>
    %192 = vector.broadcast %1 : vector<256x1xf32> to vector<256x128xf32>
    %193 = arith.mulf %191, %192 : vector<256x128xf32>
    %c255_i32_146 = arith.constant 255 : i32
    %194 = tpu.dynamic_rotate %190 by %c255_i32_146 dim 0 : vector<256x128xf32>, i32 -> vector<256x128xf32>
    %195 = vector.broadcast %2 : vector<256x1xf32> to vector<256x128xf32>
    %196 = arith.mulf %194, %195 : vector<256x128xf32>
    %c2_147 = arith.constant 2 : index
    %c0_148 = arith.constant 0 : index
    %c0_149 = arith.constant 0 : index
    %c0_150 = arith.constant 0 : index
    %197 = vector.load %arg18[%c2_147, %c0_148, %c0_149, %c0_150] : memref<3x3x128x32xf32, #tpu.memory_space<vmem>>, vector<1x1x128x32xf32>
    %198 = vector.shape_cast %197 : vector<1x1x128x32xf32> to vector<128x32xf32>
    %cst_151 = arith.constant dense<0.000000e+00> : vector<256x32xf32>
    %199 = tpu.matmul %193, %198, %cst_151 {dimension_numbers = #tpu.dot_dimension_numbers<[1], [0], [0], [1], [0, 0, 1, 1], [], []>} : vector<256x128xf32>, vector<128x32xf32>, vector<256x32xf32> -> vector<256x32xf32>
    %200 = arith.addf %187, %199 : vector<256x32xf32>
    %c2_152 = arith.constant 2 : index
    %c1_153 = arith.constant 1 : index
    %c0_154 = arith.constant 0 : index
    %c0_155 = arith.constant 0 : index
    %201 = vector.load %arg18[%c2_152, %c1_153, %c0_154, %c0_155] : memref<3x3x128x32xf32, #tpu.memory_space<vmem>>, vector<1x1x128x32xf32>
    %202 = vector.shape_cast %201 : vector<1x1x128x32xf32> to vector<128x32xf32>
    %cst_156 = arith.constant dense<0.000000e+00> : vector<256x32xf32>
    %203 = tpu.matmul %190, %202, %cst_156 {dimension_numbers = #tpu.dot_dimension_numbers<[1], [0], [0], [1], [0, 0, 1, 1], [], []>} : vector<256x128xf32>, vector<128x32xf32>, vector<256x32xf32> -> vector<256x32xf32>
    %204 = arith.addf %200, %203 : vector<256x32xf32>
    %c2_157 = arith.constant 2 : index
    %c2_158 = arith.constant 2 : index
    %c0_159 = arith.constant 0 : index
    %c0_160 = arith.constant 0 : index
    %205 = vector.load %arg18[%c2_157, %c2_158, %c0_159, %c0_160] : memref<3x3x128x32xf32, #tpu.memory_space<vmem>>, vector<1x1x128x32xf32>
    %206 = vector.shape_cast %205 : vector<1x1x128x32xf32> to vector<128x32xf32>
    %cst_161 = arith.constant dense<0.000000e+00> : vector<256x32xf32>
    %207 = tpu.matmul %196, %206, %cst_161 {dimension_numbers = #tpu.dot_dimension_numbers<[1], [0], [0], [1], [0, 0, 1, 1], [], []>} : vector<256x128xf32>, vector<128x32xf32>, vector<256x32xf32> -> vector<256x32xf32>
    %208 = arith.addf %204, %207 : vector<256x32xf32>
    %c0_162 = arith.constant 0 : index
    %c0_163 = arith.constant 0 : index
    %209 = vector.load %arg19[%c0_162, %c0_163] : memref<1x32xf32, #tpu.memory_space<vmem>>, vector<1x32xf32>
    %210 = vector.broadcast %209 : vector<1x32xf32> to vector<256x32xf32>
    %211 = arith.addf %208, %210 : vector<256x32xf32>
    %cst_164 = arith.constant 0.000000e+00 : f32
    %cst_165 = arith.constant 6.000000e+00 : f32
    %212 = vector.broadcast %cst_164 : f32 to vector<256x32xf32>
    %213 = arith.maximumf %212, %211 : vector<256x32xf32>
    %214 = vector.broadcast %cst_165 : f32 to vector<256x32xf32>
    %215 = arith.minimumf %214, %213 : vector<256x32xf32>
    %cst_166 = arith.constant 0.000000e+00 : f32
    %216 = vector.broadcast %cst_166 : f32 to vector<256x32xf32>
    %c16_i32_167 = arith.constant 16 : i32
    %217 = tpu.dynamic_rotate %215 by %c16_i32_167 dim 0 : vector<256x32xf32>, i32 -> vector<256x32xf32>
    %218 = vector.broadcast %3 : vector<256x1xf32> to vector<256x32xf32>
    %219 = arith.mulf %217, %218 : vector<256x32xf32>
    %c1_i32_168 = arith.constant 1 : i32
    %220 = tpu.dynamic_rotate %219 by %c1_i32_168 dim 0 : vector<256x32xf32>, i32 -> vector<256x32xf32>
    %221 = vector.broadcast %1 : vector<256x1xf32> to vector<256x32xf32>
    %222 = arith.mulf %220, %221 : vector<256x32xf32>
    %c255_i32_169 = arith.constant 255 : i32
    %223 = tpu.dynamic_rotate %219 by %c255_i32_169 dim 0 : vector<256x32xf32>, i32 -> vector<256x32xf32>
    %224 = vector.broadcast %2 : vector<256x1xf32> to vector<256x32xf32>
    %225 = arith.mulf %223, %224 : vector<256x32xf32>
    %c0_170 = arith.constant 0 : index
    %c0_171 = arith.constant 0 : index
    %c0_172 = arith.constant 0 : index
    %c0_173 = arith.constant 0 : index
    %226 = vector.load %arg20[%c0_170, %c0_171, %c0_172, %c0_173] : memref<3x3x32x32xf32, #tpu.memory_space<vmem>>, vector<1x1x32x32xf32>
    %227 = vector.shape_cast %226 : vector<1x1x32x32xf32> to vector<32x32xf32>
    %cst_174 = arith.constant dense<0.000000e+00> : vector<256x32xf32>
    %228 = tpu.matmul %222, %227, %cst_174 {dimension_numbers = #tpu.dot_dimension_numbers<[1], [0], [0], [1], [0, 0, 1, 1], [], []>} : vector<256x32xf32>, vector<32x32xf32>, vector<256x32xf32> -> vector<256x32xf32>
    %229 = arith.addf %216, %228 : vector<256x32xf32>
    %c0_175 = arith.constant 0 : index
    %c1_176 = arith.constant 1 : index
    %c0_177 = arith.constant 0 : index
    %c0_178 = arith.constant 0 : index
    %230 = vector.load %arg20[%c0_175, %c1_176, %c0_177, %c0_178] : memref<3x3x32x32xf32, #tpu.memory_space<vmem>>, vector<1x1x32x32xf32>
    %231 = vector.shape_cast %230 : vector<1x1x32x32xf32> to vector<32x32xf32>
    %cst_179 = arith.constant dense<0.000000e+00> : vector<256x32xf32>
    %232 = tpu.matmul %219, %231, %cst_179 {dimension_numbers = #tpu.dot_dimension_numbers<[1], [0], [0], [1], [0, 0, 1, 1], [], []>} : vector<256x32xf32>, vector<32x32xf32>, vector<256x32xf32> -> vector<256x32xf32>
    %233 = arith.addf %229, %232 : vector<256x32xf32>
    %c0_180 = arith.constant 0 : index
    %c2_181 = arith.constant 2 : index
    %c0_182 = arith.constant 0 : index
    %c0_183 = arith.constant 0 : index
    %234 = vector.load %arg20[%c0_180, %c2_181, %c0_182, %c0_183] : memref<3x3x32x32xf32, #tpu.memory_space<vmem>>, vector<1x1x32x32xf32>
    %235 = vector.shape_cast %234 : vector<1x1x32x32xf32> to vector<32x32xf32>
    %cst_184 = arith.constant dense<0.000000e+00> : vector<256x32xf32>
    %236 = tpu.matmul %225, %235, %cst_184 {dimension_numbers = #tpu.dot_dimension_numbers<[1], [0], [0], [1], [0, 0, 1, 1], [], []>} : vector<256x32xf32>, vector<32x32xf32>, vector<256x32xf32> -> vector<256x32xf32>
    %237 = arith.addf %233, %236 : vector<256x32xf32>
    %c1_i32_185 = arith.constant 1 : i32
    %238 = tpu.dynamic_rotate %215 by %c1_i32_185 dim 0 : vector<256x32xf32>, i32 -> vector<256x32xf32>
    %239 = vector.broadcast %1 : vector<256x1xf32> to vector<256x32xf32>
    %240 = arith.mulf %238, %239 : vector<256x32xf32>
    %c255_i32_186 = arith.constant 255 : i32
    %241 = tpu.dynamic_rotate %215 by %c255_i32_186 dim 0 : vector<256x32xf32>, i32 -> vector<256x32xf32>
    %242 = vector.broadcast %2 : vector<256x1xf32> to vector<256x32xf32>
    %243 = arith.mulf %241, %242 : vector<256x32xf32>
    %c1_187 = arith.constant 1 : index
    %c0_188 = arith.constant 0 : index
    %c0_189 = arith.constant 0 : index
    %c0_190 = arith.constant 0 : index
    %244 = vector.load %arg20[%c1_187, %c0_188, %c0_189, %c0_190] : memref<3x3x32x32xf32, #tpu.memory_space<vmem>>, vector<1x1x32x32xf32>
    %245 = vector.shape_cast %244 : vector<1x1x32x32xf32> to vector<32x32xf32>
    %cst_191 = arith.constant dense<0.000000e+00> : vector<256x32xf32>
    %246 = tpu.matmul %240, %245, %cst_191 {dimension_numbers = #tpu.dot_dimension_numbers<[1], [0], [0], [1], [0, 0, 1, 1], [], []>} : vector<256x32xf32>, vector<32x32xf32>, vector<256x32xf32> -> vector<256x32xf32>
    %247 = arith.addf %237, %246 : vector<256x32xf32>
    %c1_192 = arith.constant 1 : index
    %c1_193 = arith.constant 1 : index
    %c0_194 = arith.constant 0 : index
    %c0_195 = arith.constant 0 : index
    %248 = vector.load %arg20[%c1_192, %c1_193, %c0_194, %c0_195] : memref<3x3x32x32xf32, #tpu.memory_space<vmem>>, vector<1x1x32x32xf32>
    %249 = vector.shape_cast %248 : vector<1x1x32x32xf32> to vector<32x32xf32>
    %cst_196 = arith.constant dense<0.000000e+00> : vector<256x32xf32>
    %250 = tpu.matmul %215, %249, %cst_196 {dimension_numbers = #tpu.dot_dimension_numbers<[1], [0], [0], [1], [0, 0, 1, 1], [], []>} : vector<256x32xf32>, vector<32x32xf32>, vector<256x32xf32> -> vector<256x32xf32>
    %251 = arith.addf %247, %250 : vector<256x32xf32>
    %c1_197 = arith.constant 1 : index
    %c2_198 = arith.constant 2 : index
    %c0_199 = arith.constant 0 : index
    %c0_200 = arith.constant 0 : index
    %252 = vector.load %arg20[%c1_197, %c2_198, %c0_199, %c0_200] : memref<3x3x32x32xf32, #tpu.memory_space<vmem>>, vector<1x1x32x32xf32>
    %253 = vector.shape_cast %252 : vector<1x1x32x32xf32> to vector<32x32xf32>
    %cst_201 = arith.constant dense<0.000000e+00> : vector<256x32xf32>
    %254 = tpu.matmul %243, %253, %cst_201 {dimension_numbers = #tpu.dot_dimension_numbers<[1], [0], [0], [1], [0, 0, 1, 1], [], []>} : vector<256x32xf32>, vector<32x32xf32>, vector<256x32xf32> -> vector<256x32xf32>
    %255 = arith.addf %251, %254 : vector<256x32xf32>
    %c240_i32_202 = arith.constant 240 : i32
    %256 = tpu.dynamic_rotate %215 by %c240_i32_202 dim 0 : vector<256x32xf32>, i32 -> vector<256x32xf32>
    %257 = vector.broadcast %4 : vector<256x1xf32> to vector<256x32xf32>
    %258 = arith.mulf %256, %257 : vector<256x32xf32>
    %c1_i32_203 = arith.constant 1 : i32
    %259 = tpu.dynamic_rotate %258 by %c1_i32_203 dim 0 : vector<256x32xf32>, i32 -> vector<256x32xf32>
    %260 = vector.broadcast %1 : vector<256x1xf32> to vector<256x32xf32>
    %261 = arith.mulf %259, %260 : vector<256x32xf32>
    %c255_i32_204 = arith.constant 255 : i32
    %262 = tpu.dynamic_rotate %258 by %c255_i32_204 dim 0 : vector<256x32xf32>, i32 -> vector<256x32xf32>
    %263 = vector.broadcast %2 : vector<256x1xf32> to vector<256x32xf32>
    %264 = arith.mulf %262, %263 : vector<256x32xf32>
    %c2_205 = arith.constant 2 : index
    %c0_206 = arith.constant 0 : index
    %c0_207 = arith.constant 0 : index
    %c0_208 = arith.constant 0 : index
    %265 = vector.load %arg20[%c2_205, %c0_206, %c0_207, %c0_208] : memref<3x3x32x32xf32, #tpu.memory_space<vmem>>, vector<1x1x32x32xf32>
    %266 = vector.shape_cast %265 : vector<1x1x32x32xf32> to vector<32x32xf32>
    %cst_209 = arith.constant dense<0.000000e+00> : vector<256x32xf32>
    %267 = tpu.matmul %261, %266, %cst_209 {dimension_numbers = #tpu.dot_dimension_numbers<[1], [0], [0], [1], [0, 0, 1, 1], [], []>} : vector<256x32xf32>, vector<32x32xf32>, vector<256x32xf32> -> vector<256x32xf32>
    %268 = arith.addf %255, %267 : vector<256x32xf32>
    %c2_210 = arith.constant 2 : index
    %c1_211 = arith.constant 1 : index
    %c0_212 = arith.constant 0 : index
    %c0_213 = arith.constant 0 : index
    %269 = vector.load %arg20[%c2_210, %c1_211, %c0_212, %c0_213] : memref<3x3x32x32xf32, #tpu.memory_space<vmem>>, vector<1x1x32x32xf32>
    %270 = vector.shape_cast %269 : vector<1x1x32x32xf32> to vector<32x32xf32>
    %cst_214 = arith.constant dense<0.000000e+00> : vector<256x32xf32>
    %271 = tpu.matmul %258, %270, %cst_214 {dimension_numbers = #tpu.dot_dimension_numbers<[1], [0], [0], [1], [0, 0, 1, 1], [], []>} : vector<256x32xf32>, vector<32x32xf32>, vector<256x32xf32> -> vector<256x32xf32>
    %272 = arith.addf %268, %271 : vector<256x32xf32>
    %c2_215 = arith.constant 2 : index
    %c2_216 = arith.constant 2 : index
    %c0_217 = arith.constant 0 : index
    %c0_218 = arith.constant 0 : index
    %273 = vector.load %arg20[%c2_215, %c2_216, %c0_217, %c0_218] : memref<3x3x32x32xf32, #tpu.memory_space<vmem>>, vector<1x1x32x32xf32>
    %274 = vector.shape_cast %273 : vector<1x1x32x32xf32> to vector<32x32xf32>
    %cst_219 = arith.constant dense<0.000000e+00> : vector<256x32xf32>
    %275 = tpu.matmul %264, %274, %cst_219 {dimension_numbers = #tpu.dot_dimension_numbers<[1], [0], [0], [1], [0, 0, 1, 1], [], []>} : vector<256x32xf32>, vector<32x32xf32>, vector<256x32xf32> -> vector<256x32xf32>
    %276 = arith.addf %272, %275 : vector<256x32xf32>
    %c0_220 = arith.constant 0 : index
    %c0_221 = arith.constant 0 : index
    %277 = vector.load %arg21[%c0_220, %c0_221] : memref<1x32xf32, #tpu.memory_space<vmem>>, vector<1x32xf32>
    %278 = vector.broadcast %277 : vector<1x32xf32> to vector<256x32xf32>
    %279 = arith.addf %276, %278 : vector<256x32xf32>
    %cst_222 = arith.constant 0.000000e+00 : f32
    %cst_223 = arith.constant 6.000000e+00 : f32
    %280 = vector.broadcast %cst_222 : f32 to vector<256x32xf32>
    %281 = arith.maximumf %280, %279 : vector<256x32xf32>
    %282 = vector.broadcast %cst_223 : f32 to vector<256x32xf32>
    %283 = arith.minimumf %282, %281 : vector<256x32xf32>
    %c0_224 = arith.constant 0 : index
    %c0_225 = arith.constant 0 : index
    %284 = vector.load %arg22[%c0_224, %c0_225] : memref<8x32xf32, #tpu.memory_space<vmem>>, vector<8x32xf32>
    %cst_226 = arith.constant dense<0.000000e+00> : vector<8x256xf32>
    %285 = tpu.matmul %284, %283, %cst_226 {dimension_numbers = #tpu.dot_dimension_numbers<[1], [1], [0], [0], [0, 0, 1, 0], [], []>} : vector<8x32xf32>, vector<256x32xf32>, vector<8x256xf32> -> vector<8x256xf32>
    %286 = vector.extract_strided_slice %285 {offsets = [0, 0], sizes = [1, 256], strides = [1, 1]} : vector<8x256xf32> to vector<1x256xf32>
    %c0_227 = arith.constant 0 : index
    %c0_228 = arith.constant 0 : index
    %287 = vector.load %arg23[%c0_227, %c0_228] : memref<1x1xf32, #tpu.memory_space<vmem>>, vector<1x1xf32>
    %288 = vector.broadcast %287 : vector<1x1xf32> to vector<1x256xf32>
    %289 = arith.addf %286, %288 : vector<1x256xf32>
    %290 = vector.shape_cast %289 : vector<1x256xf32> to vector<1x1x256xf32>
    %c0_229 = arith.constant 0 : index
    %c0_230 = arith.constant 0 : index
    %c0_231 = arith.constant 0 : index
    %291 = vector.load %arg24[%c0_229, %c0_230, %c0_231] : memref<1x1x256xf32, #tpu.memory_space<vmem>>, vector<1x1x256xf32>
    tpu.vector_store %arg24[%c0_229, %c0_230, %c0_231], %290 {strides = array<i32>} : memref<1x1x256xf32, #tpu.memory_space<vmem>>, vector<1x1x256xf32>,
    return
  }
  func.func @transform_0(%arg0: i32) -> (i32, i32, i32) {
    %c0_i32 = arith.constant 0 : i32
    %c0_i32_0 = arith.constant 0 : i32
    %c0_i32_1 = arith.constant 0 : i32
    return %arg0, %c0_i32, %c0_i32_0 : i32, i32, i32
  }
  func.func @transform_1(%arg0: i32) -> (i32, i32, i32) {
    %c0_i32 = arith.constant 0 : i32
    %c0_i32_0 = arith.constant 0 : i32
    %c0_i32_1 = arith.constant 0 : i32
    return %arg0, %c0_i32, %c0_i32_0 : i32, i32, i32
  }
  func.func @transform_2(%arg0: i32) -> (i32, i32, i32) {
    %c0_i32 = arith.constant 0 : i32
    %c0_i32_0 = arith.constant 0 : i32
    %c0_i32_1 = arith.constant 0 : i32
    return %arg0, %c0_i32, %c0_i32_0 : i32, i32, i32
  }
  func.func @transform_3(%arg0: i32) -> (i32, i32, i32) {
    %c0_i32 = arith.constant 0 : i32
    %c0_i32_0 = arith.constant 0 : i32
    %c0_i32_1 = arith.constant 0 : i32
    return %arg0, %c0_i32, %c0_i32_0 : i32, i32, i32
  }
  func.func @transform_4(%arg0: i32) -> (i32, i32, i32) {
    %c0_i32 = arith.constant 0 : i32
    %c0_i32_0 = arith.constant 0 : i32
    %c0_i32_1 = arith.constant 0 : i32
    %c0_i32_2 = arith.constant 0 : i32
    return %c0_i32, %c0_i32_0, %c0_i32_1 : i32, i32, i32
  }
  func.func @transform_5(%arg0: i32) -> (i32, i32, i32) {
    %c0_i32 = arith.constant 0 : i32
    %c0_i32_0 = arith.constant 0 : i32
    %c0_i32_1 = arith.constant 0 : i32
    %c0_i32_2 = arith.constant 0 : i32
    return %c0_i32, %c0_i32_0, %c0_i32_1 : i32, i32, i32
  }
  func.func @transform_6(%arg0: i32) -> (i32, i32) {
    %c0_i32 = arith.constant 0 : i32
    %c0_i32_0 = arith.constant 0 : i32
    %c0_i32_1 = arith.constant 0 : i32
    return %c0_i32, %c0_i32_0 : i32, i32
  }
  func.func @transform_7(%arg0: i32) -> (i32, i32) {
    %c0_i32 = arith.constant 0 : i32
    %c0_i32_0 = arith.constant 0 : i32
    %c0_i32_1 = arith.constant 0 : i32
    return %c0_i32, %c0_i32_0 : i32, i32
  }
  func.func @transform_8(%arg0: i32) -> (i32, i32) {
    %c0_i32 = arith.constant 0 : i32
    %c0_i32_0 = arith.constant 0 : i32
    %c0_i32_1 = arith.constant 0 : i32
    return %c0_i32, %c0_i32_0 : i32, i32
  }
  func.func @transform_9(%arg0: i32) -> (i32, i32) {
    %c0_i32 = arith.constant 0 : i32
    %c0_i32_0 = arith.constant 0 : i32
    %c0_i32_1 = arith.constant 0 : i32
    return %c0_i32, %c0_i32_0 : i32, i32
  }
  func.func @transform_10(%arg0: i32) -> (i32, i32) {
    %c0_i32 = arith.constant 0 : i32
    %c0_i32_0 = arith.constant 0 : i32
    %c0_i32_1 = arith.constant 0 : i32
    return %c0_i32, %c0_i32_0 : i32, i32
  }
  func.func @transform_11(%arg0: i32) -> (i32, i32) {
    %c0_i32 = arith.constant 0 : i32
    %c0_i32_0 = arith.constant 0 : i32
    %c0_i32_1 = arith.constant 0 : i32
    return %c0_i32, %c0_i32_0 : i32, i32
  }
  func.func @transform_12(%arg0: i32) -> (i32, i32) {
    %c0_i32 = arith.constant 0 : i32
    %c0_i32_0 = arith.constant 0 : i32
    %c0_i32_1 = arith.constant 0 : i32
    return %c0_i32, %c0_i32_0 : i32, i32
  }
  func.func @transform_13(%arg0: i32) -> (i32, i32) {
    %c0_i32 = arith.constant 0 : i32
    %c0_i32_0 = arith.constant 0 : i32
    %c0_i32_1 = arith.constant 0 : i32
    return %c0_i32, %c0_i32_0 : i32, i32
  }
  func.func @transform_14(%arg0: i32) -> (i32, i32) {
    %c0_i32 = arith.constant 0 : i32
    %c0_i32_0 = arith.constant 0 : i32
    %c0_i32_1 = arith.constant 0 : i32
    return %c0_i32, %c0_i32_0 : i32, i32
  }
  func.func @transform_15(%arg0: i32) -> (i32, i32) {
    %c0_i32 = arith.constant 0 : i32
    %c0_i32_0 = arith.constant 0 : i32
    %c0_i32_1 = arith.constant 0 : i32
    return %c0_i32, %c0_i32_0 : i32, i32
  }
  func.func @transform_16(%arg0: i32) -> (i32, i32) {
    %c0_i32 = arith.constant 0 : i32
    %c0_i32_0 = arith.constant 0 : i32
    %c0_i32_1 = arith.constant 0 : i32
    return %c0_i32, %c0_i32_0 : i32, i32
  }
  func.func @transform_17(%arg0: i32) -> (i32, i32, i32, i32) {
    %c0_i32 = arith.constant 0 : i32
    %c0_i32_0 = arith.constant 0 : i32
    %c0_i32_1 = arith.constant 0 : i32
    %c0_i32_2 = arith.constant 0 : i32
    %c0_i32_3 = arith.constant 0 : i32
    return %c0_i32, %c0_i32_0, %c0_i32_1, %c0_i32_2 : i32, i32, i32, i32
  }
  func.func @transform_18(%arg0: i32) -> (i32, i32) {
    %c0_i32 = arith.constant 0 : i32
    %c0_i32_0 = arith.constant 0 : i32
    %c0_i32_1 = arith.constant 0 : i32
    return %c0_i32, %c0_i32_0 : i32, i32
  }
  func.func @transform_19(%arg0: i32) -> (i32, i32, i32, i32) {
    %c0_i32 = arith.constant 0 : i32
    %c0_i32_0 = arith.constant 0 : i32
    %c0_i32_1 = arith.constant 0 : i32
    %c0_i32_2 = arith.constant 0 : i32
    %c0_i32_3 = arith.constant 0 : i32
    return %c0_i32, %c0_i32_0, %c0_i32_1, %c0_i32_2 : i32, i32, i32, i32
  }
  func.func @transform_20(%arg0: i32) -> (i32, i32) {
    %c0_i32 = arith.constant 0 : i32
    %c0_i32_0 = arith.constant 0 : i32
    %c0_i32_1 = arith.constant 0 : i32
    return %c0_i32, %c0_i32_0 : i32, i32
  }
  func.func @transform_21(%arg0: i32) -> (i32, i32) {
    %c0_i32 = arith.constant 0 : i32
    %c0_i32_0 = arith.constant 0 : i32
    %c0_i32_1 = arith.constant 0 : i32
    return %c0_i32, %c0_i32_0 : i32, i32
  }
  func.func @transform_22(%arg0: i32) -> (i32, i32) {
    %c0_i32 = arith.constant 0 : i32
    %c0_i32_0 = arith.constant 0 : i32
    %c0_i32_1 = arith.constant 0 : i32
    return %c0_i32, %c0_i32_0 : i32, i32
  }
  func.func @transform_23(%arg0: i32) -> (i32, i32, i32) {
    %c0_i32 = arith.constant 0 : i32
    %c0_i32_0 = arith.constant 0 : i32
    %c0_i32_1 = arith.constant 0 : i32
    return %arg0, %c0_i32, %c0_i32_0 : i32, i32, i32
  }
}

</mosaic_0001>

<bundles_post_ra>
// kernel: my_aggregation_fwd.1
= control target key start
LH: loop header
LB: loop body
LE: loop exit
PB: predicated region body
PF: predicated region fallthrough
CT: control target
= control target key end

     0   :  { %s18547_s24 = smov 0   ;;  %s23915_s0 = inlined_call_operand.vmem [shape: f32[2,16,128], index: 0, kind: input, shape index: {}]   ;;  %s23916_s1 = inlined_call_operand.vmem [shape: f32[2,64,128], index: 1, kind: input, shape index: {}]   ;;  %s23917_s2 = inlined_call_operand.vmem [shape: f32[2,256,128], index: 2, kind: input, shape index: {}]   ;;  %s23918_s3 = inlined_call_operand.vmem [shape: f32[2,16,32], index: 3, kind: input, shape index: {}]   ;;  %s23919_s4 = inlined_call_operand.vmem [shape: f32[9,16,16], index: 4, kind: input, shape index: {}]   ;;  %s23920_s5 = inlined_call_operand.vmem [shape: f32[9,64,64], index: 5, kind: input, shape index: {}]   ;;  %s23921_s6 = inlined_call_operand.vmem [shape: f32[64,16], index: 6, kind: input, shape index: {}]   ;;  %s23922_s7 = inlined_call_operand.vmem [shape: f32[256,64], index: 7, kind: input, shape index: {}]   ;;  %s23923_s8 = inlined_call_operand.vmem [shape: f32[32,128], index: 8, kind: input, shape index: {}]   ;;  %s23924_s9 = inlined_call_operand.vmem [shape: f32[256,1], index: 9, kind: input, shape index: {}]   ;;  %s23925_s10 = inlined_call_operand.vmem [shape: f32[256,1], index: 10, kind: input, shape index: {}]   ;;  %s23926_s11 = inlined_call_operand.vmem [shape: f32[256,1], index: 11, kind: input, shape index: {}]   ;;  %s23927_s12 = inlined_call_operand.vmem [shape: f32[256,1], index: 12, kind: input, shape index: {}]   ;;  %s23928_s13 = inlined_call_operand.vmem [shape: f32[128,288], index: 13, kind: input, shape index: {}]   ;;  %s23929_s14 = inlined_call_operand.vmem [shape: f32[1,32], index: 14, kind: input, shape index: {}]   ;;  %s23930_s15 = inlined_call_operand.vmem [shape: f32[128,288], index: 15, kind: input, shape index: {}]   ;;  %s23931_s16 = inlined_call_operand.vmem [shape: f32[1,32], index: 16, kind: input, shape index: {}]   ;;  %s23932_s17 = inlined_call_operand.vmem [shape: f32[3,3,128,32], index: 17, kind: input, shape index: {}]   ;;  %s23933_s18 = inlined_call_operand.vmem [shape: f32[1,32], index: 18, kind: input, shape index: {}]   ;;  %s23934_s19 = inlined_call_operand.vmem [shape: f32[3,3,32,32], index: 19, kind: input, shape index: {}]   ;;  %s23935_s20 = inlined_call_operand.vmem [shape: f32[1,32], index: 20, kind: input, shape index: {}]   ;;  %s23936_s21 = inlined_call_operand.vmem [shape: f32[8,32], index: 21, kind: input, shape index: {}]   ;;  %s23937_s22 = inlined_call_operand.<no memory space> [shape: f32[1,1], index: 22, kind: input, shape index: {}]   ;;  %s23938_s23 = inlined_call_operand.vmem [shape: f32[2,1,256], index: 23, kind: output, shape index: {}]  }
   0x1   :  { %24317 = sst [smem:[#allocation138_spill]] %s23915_s0  ;;  %v28_v0 = vstv %s23937_s22 }
   0x2   :  { %24318 = sst [smem:[#allocation139_spill]] %s23916_s1  ;;  %29 = vst [vmem:[#allocation2] sm:$0x1] %v28_v0 }
   0x3   :  { %24319 = sst [smem:[#allocation140_spill]] %s23917_s2 }
   0x4   :  { %24320 = sst [smem:[#allocation141_spill]] %s23918_s3 }
   0x5   :  { %24321 = sst [smem:[#allocation142_spill]] %s23919_s4 }
   0x6   :  { %24322 = sst [smem:[#allocation143_spill]] %s23920_s5 }
   0x7   :  { %24323 = sst [smem:[#allocation144_spill]] %s23921_s6 }
   0x8   :  { %24324 = sst [smem:[#allocation145_spill]] %s23922_s7 }
   0x9 LB: > { %s13024_s25 = sadd.s32 4294967295, %s18416_s24   ;;  %p13028_p0 = scmp.ge.s32.totalorder %s18416_s24, 1  ;;  %s18416_s24 = sphi %s18547_s24, %s35_s24  }
   0xa   : > { %p669_p1 = scmp.lt.s32.totalorder %s18416_s24, 3 }
   0xc   : > { %p670_p2 = pnand %p13028_p0, %p669_p1 }
   0xe   : > { %673 = sbr.rel (%p670_p2) target bundleno = 4438 (0x1156), region = 112 }
  0x15   : > { %v771_v1 = vld [vmem:[%s23923_s8] sm:$0xff]  ;;  %v772_v2 = vld [vmem:[%s23923_s8 + $0x8] sm:$0xff]  ;;  %v773_v3 = vld [vmem:[%s23923_s8 + $0x10] sm:$0xff]  ;;  %p747_p3 = scmp.lt.s32.totalorder %s13024_s25, 1  ;;  %s24325_s26 = sld [smem:[#allocation141_spill]]  ;;  %vm919_vm0 = vcmask 261120  }
  0x16   : > { %v18564_v4 = vpack.c.bf16 %v772_v2, %v771_v1  ;;  %v774_v5 = vld [vmem:[%s23923_s8 + $0x18] sm:$0xff]  ;;  %v1004_v6 = vld [vmem:[%s23928_s13 + $0x8] sm:$0xff]  ;;  %v1007_v7 = vld [vmem:[%s23928_s13 + $0x20] sm:$0xff]  ;;  %s24326_s6 = sld [smem:[#allocation138_spill]]  ;;  %s24327_s29 = sld [smem:[#allocation142_spill]]  ;;  %vm1216_vm1 = vcmask 130048  }
  0x17   : > { %v18575_v8 = vpack.c.bf16 %v774_v5, %v773_v3  ;;  %s24959_s25 = smov (!%p747_p3, %s13024_s25), 1  ;;  %v16732_v9 = vpack.c.bf16 %v1007_v7, %v1004_v6  ;;  %v1003_v10 = vld [vmem:[%s23928_s13] sm:$0xff]  ;;  %v1006_v11 = vld [vmem:[%s23928_s13 + $0x18] sm:$0xff]  ;;  %v1005_v12 = vld [vmem:[%s23928_s13 + $0x10] sm:$0xff]  ;;  %s18420_s0 = smov 96   ;;  %vm2671_vm2 = vcmask 523264  }
  0x18   : > { %16725 = vmatprep.subr.bf16.mxu0 %v18564_v4  ;;  %v16734_v13 = vpack.c.bf16 %v1006_v11, %v1003_v10  ;;  %v1008_v14 = vld [vmem:[%s23928_s13 + $0x28] sm:$0xff]  ;;  %v1010_v15 = vld [vmem:[%s23928_s13 + $0x38] sm:$0xff]  ;;  %v1013_v16 = vld [vmem:[%s23928_s13 + $0x50] sm:$0xff]  ;;  %s13819_s3 = sshll.u32 %s24959_s25, 4  ;;  %s23943_s22 = smov 32  }
  0x19   : > { %16727 = vmatpush3.bf16.msra.mxu0 %v18564_v4  ;;  %16733 = vmatprep.subr.bf16.mxu1 %v16732_v9  ;;  %v16736_v17 = vpack.c.bf16 %v1013_v16, %v1010_v15  ;;  %v1009_v18 = vld [vmem:[%s23928_s13 + $0x30] sm:$0xff]  ;;  %v1012_v19 = vld [vmem:[%s23928_s13 + $0x48] sm:$0xff]  ;;  %v18612_v20 = vpack.c.bf16 %v1008_v14, %v1005_v12  ;;  %v1019_v23 = vld [vmem:[%s23928_s13 + $0x80] sm:$0xff]  ;;  %s13820_s4 = sshll.u32 %s24959_s25, 6  ;;  %s24329_s1 = sld [smem:[#allocation139_spill]] }
  0x1a   : > { %16729 = vmatprep.subr.bf16.mxu0 %v18575_v8  ;;  %16735 = vmatpush1.bf16.msra.mxu1 %v16734_v13  ;;  %v16738_v21 = vpack.c.bf16 %v1012_v19, %v1009_v18  ;;  %v1016_v22 = vld [vmem:[%s23928_s13 + $0x68] sm:$0xff]  ;;  %v1015_v27 = vld [vmem:[%s23928_s13 + $0x60] sm:$0xff]  ;;  %v1018_v30 = vld [vmem:[%s23928_s13 + $0x78] sm:$0xff]  ;;  %s24330_s7 = sld [smem:[#allocation143_spill]]  ;;  %s24331_s28 = smov 32  }
  0x1b   : > { %s766_s2 = scalar_lea.vmem %s24325_s26, %s13819_s3  ;;  %16737 = vmatprep.subr.bf16.mxu1 %v16736_v17  ;;  %v16740_v26 = vpack.c.bf16 %v1019_v23, %v1016_v22  ;;  %v1022_v31 = vld [vmem:[%s23928_s13 + $0x98] sm:$0xff]  ;;  %v1025_v32 = vld [vmem:[%s23928_s13 + $0xb0] sm:$0xff]  ;;  %v16742_v33 = vpack.c.bf16 %v1018_v30, %v1015_v27  ;;  %v1024_v36 = vld [vmem:[%s23928_s13 + $0xa8] sm:$0xff]  ;;  %v18418_v27 = vmov 0.0  }
  0x1c   : > { %v903_v24 = vld [vmem:[%s766_s2] sm:$0xff]  ;;  %v904_v25 = vld [vmem:[%s766_s2 + $0x8] sm:$0xff]  ;;  %v16744_v34 = vpack.c.bf16 %v1025_v32, %v1022_v31  ;;  %v1021_v35 = vld [vmem:[%s23928_s13 + $0x90] sm:$0xff]  ;;  %1115 = vmatprep.mubr.f32.mxu1 %v18418_v27  ;;  %s751_s27 = scalar_lea.vmem %s24326_s6, %s13819_s3  ;;  %s18419_s3 = smov 64  }
  0x1d   : > { %v13038_v28 = vmul.f32 -1.442695, %v903_v24  ;;  %v13039_v29 = vmul.f32 -1.442695, %v904_v25  ;;  %16731 = vmatpush3.bf16.msra.mxu0 %v18575_v8  ;;  %v1028_v37 = vld [vmem:[%s23928_s13 + $0xc8] sm:$0xff]  ;;  %v1031_v38 = vld [vmem:[%s23928_s13 + $0xe0] sm:$0xff]  ;;  %v16746_v39 = vpack.c.bf16 %v1024_v36, %v1021_v35  ;;  %vm23831_vm5 = vmpackc.low %vm919_vm0, %vm919_vm0 }
  0x1e   : > { %16765 = vmatprep.subr.bf16.mxu0 %v18612_v20  ;;  %16739 = vmatpush1.bf16.msra.mxu1 %v16738_v21  ;;  %v16748_v40 = vpack.c.bf16 %v1031_v38, %v1028_v37  ;;  %v1027_v41 = vld [vmem:[%s23928_s13 + $0xc0] sm:$0xff]  ;;  %v1030_v42 = vld [vmem:[%s23928_s13 + $0xd8] sm:$0xff]  ;;  %v1037_v44 = vld [vmem:[%s23928_s13 + $0x110] sm:$0xff]  ;;  %s24328_s6 = sld [smem:[#allocation144_spill]]  ;;  %s13821_s2 = sshll.u32 %s24959_s25, 8 }
  0x1f   : > { %18242 = vpow2.f32 %v13038_v28  ;;  %16741 = vmatprep.subr.bf16.mxu1 %v16740_v26  ;;  %v1034_v43 = vld [vmem:[%s23928_s13 + $0xf8] sm:$0xff]  ;;  %v16750_v45 = vpack.c.bf16 %v1030_v42, %v1027_v41  ;;  %v1033_v47 = vld [vmem:[%s23928_s13 + $0xf0] sm:$0xff]  ;;  %v1036_v48 = vld [vmem:[%s23928_s13 + $0x108] sm:$0xff]  ;;  %s19018_s26 = scalar_lea.vmem %s24329_s1, %s13820_s4  ;;  %s13037_s1 = sshll.u32 %s24959_s25, 1 }
  0x20   : > { %18244 = vpow2.f32 %v13039_v29  ;;  %v16752_v46 = vpack.c.bf16 %v1037_v44, %v1034_v43  ;;  %v1040_v50 = vld [vmem:[%s23928_s13 + $0x128] sm:$0xff]  ;;  %v1043_v51 = vld [vmem:[%s23928_s13 + $0x140] sm:$0xff]  ;;  %v16754_v55 = vpack.c.bf16 %v1036_v48, %v1033_v47  ;;  %v1042_v58 = vld [vmem:[%s23928_s13 + $0x138] sm:$0xff] }
  0x21   : > { %v16756_v56 = vpack.c.bf16 %v1043_v51, %v1040_v50  ;;  %v1039_v57 = vld [vmem:[%s23928_s13 + $0x120] sm:$0xff]  ;;  %v1014_v61 = vld [vmem:[%s23928_s13 + $0x58] sm:$0xff]  ;;  %v1017_v1 = vld [vmem:[%s23928_s13 + $0x70] sm:$0xff] }
  0x22   : > { %16743 = vmatpush1.bf16.msra.mxu1 %v16742_v33  ;;  %v16758_v59 = vpack.c.bf16 %v1042_v58, %v1039_v57  ;;  %v1011_v60 = vld [vmem:[%s23928_s13 + $0x40] sm:$0xff]  ;;  %v1020_v2 = vld [vmem:[%s23928_s13 + $0x88] sm:$0xff]  ;;  %v1026_v6 = vld [vmem:[%s23928_s13 + $0xb8] sm:$0xff] }
  0x23   : > { %16745 = vmatprep.subr.bf16.mxu1 %v16744_v34  ;;  %v16768_v63 = vpack.c.bf16 %v1014_v61, %v1011_v60  ;;  %v16772_v3 = vpack.c.bf16 %v1020_v2, %v1017_v1  ;;  %v1023_v5 = vld [vmem:[%s23928_s13 + $0xa0] sm:$0xff]  ;;  %v1029_v9 = vld [vmem:[%s23928_s13 + $0xd0] sm:$0xff]  ;;  %v1032_v10 = vld [vmem:[%s23928_s13 + $0xe8] sm:$0xff] }
  0x24   : > { %v16776_v7 = vpack.c.bf16 %v1026_v6, %v1023_v5  ;;  %v16780_v11 = vpack.c.bf16 %v1032_v10, %v1029_v9  ;;  %v1035_v12 = vld [vmem:[%s23928_s13 + $0x100] sm:$0xff]  ;;  %v1038_v13 = vld [vmem:[%s23928_s13 + $0x118] sm:$0xff]  ;;  %v1041_v15 = vld [vmem:[%s23928_s13 + $0x130] sm:$0xff] }
  0x25   : > { %v16784_v14 = vpack.c.bf16 %v1038_v13, %v1035_v12  ;;  %v1044_v16 = vld [vmem:[%s23928_s13 + $0x148] sm:$0xff]  ;;  %v1046_v18 = vld [vmem:[%s23928_s13 + $0x158] sm:$0xff]  ;;  %v1049_v19 = vld [vmem:[%s23928_s13 + $0x170] sm:$0xff] }
  0x26   : > { %16747 = vmatpush1.bf16.msra.mxu1 %v16746_v39  ;;  %v16788_v17 = vpack.c.bf16 %v1044_v16, %v1041_v15  ;;  %v1045_v21 = vld [vmem:[%s23928_s13 + $0x150] sm:$0xff]  ;;  %v1048_v22 = vld [vmem:[%s23928_s13 + $0x168] sm:$0xff]  ;;  %v1047_v23 = vld [vmem:[%s23928_s13 + $0x160] sm:$0xff] }
  0x27   : > { %16749 = vmatprep.subr.bf16.mxu1 %v16748_v40  ;;  %v16762_v24 = vpack.c.bf16 %v1048_v22, %v1045_v21  ;;  %v1050_v25 = vld [vmem:[%s23928_s13 + $0x178] sm:$0xff]  ;;  %v906_v28 = vld [vmem:[%s751_s27 + $0x8] sm:$0xff]  ;;  %v905_v29 = vld [vmem:[%s751_s27] sm:$0xff] }
  0x28   : > { %v16792_v26 = vpack.c.bf16 %v1050_v25, %v1047_v23  ;;  %v1203_v34 = vld [vmem:[%s24327_s29] sm:$0xff]  ;;  %v13042_v48 = vld [vmem:[%s24327_s29 + $0x10] sm:$0xff]  ;;  %v13049_v58 = vld [vmem:[%s24327_s29 + $0x28] sm:$0xff] }
  0x29   : > { %v18243_v49 = vpop.eup %18242  ;;  %v13048_v47 = vld [vmem:[%s24327_s29 + $0x20] sm:$0xff]  ;;  %v13052_v60 = vld [vmem:[%s24327_s29 + $0x30] sm:$0xff]  ;;  %v13043_v6 = vld [vmem:[%s24327_s29 + $0x18] sm:$0xff] }
  0x2a   : > { %v18245_v52 = vpop.eup %18244  ;;  %v913_v53 = vadd.f32 1.0, %v18243_v49  ;;  %16751 = vmatpush1.bf16.msra.mxu1 %v16750_v45  ;;  %v13056_v5 = vld [vmem:[%s24327_s29 + $0x40] sm:$0xff]  ;;  %v13060_v12 = vld [vmem:[%s24327_s29 + $0x50] sm:$0xff]  ;;  %v13069_v22 = vld [vmem:[%s24327_s29 + $0x78] sm:$0xff] }
  0x2b   : > { %v914_v54 = vadd.f32 1.0, %v18245_v52  ;;  %16753 = vmatprep.subr.bf16.mxu1 %v16752_v46  ;;  %v1204_v46 = vld [vmem:[%s24327_s29 + $0x8] sm:$0xff]  ;;  %v13068_v21 = vld [vmem:[%s24327_s29 + $0x70] sm:$0xff]  ;;  %v13072_v23 = vld [vmem:[%s24327_s29 + $0x80] sm:$0xff] }
  0x2c   : > { %18246 = vrcp.f32 %v913_v53  ;;  %v2026_v25 = vld [vmem:[%s24328_s6] sm:$0xff] }
  0x2d   : > { %18248 = vrcp.f32 %v914_v54 }
  0x2e   : > { %16755 = vmatpush1.bf16.msra.mxu1 %v16754_v55 }
  0x2f   : > { %16757 = vmatprep.subr.bf16.mxu1 %v16756_v56 }
  0x32   : > { %16759 = vmatpush1.bf16.msra.mxu1 %v16758_v59 }
  0x36   : > { %v18247_v62 = vpop.eup %18246 }
  0x37   : > { %v18249_v0 = vpop.eup %18248  ;;  %14947 = vmatprep.mubr.msk.f32.mxu0 %vm919_vm0, %v18247_v62 }
  0x38   : > { %14948 = vmatmul.mubr.msk.f32.vlgmr.msra.gmra.mrb[0].mxu0 %vm919_vm0, %v18249_v0 }
  0x39   : > { %16767 = vmatpush3.bf16.msra.mxu0 %v18612_v20  ;;  %v16760_v20 = vpack.c.bf16 %v1049_v19, %v1046_v18  ;;  %v13064_v18 = vld [vmem:[%s24327_s29 + $0x60] sm:$0xff] }
  0x3a   : > { %16769 = vmatprep.subr.bf16.mxu0 %v16768_v63 }
  0x3b   : > { %16761 = vmatprep.subr.bf16.mxu1 %v16760_v20  ;;  %v13065_v20 = vld [vmem:[%s24327_s29 + $0x68] sm:$0xff] }
  0x3c   : > { %16763 = vmatpush1.bf16.msra.mxu1 %v16762_v24  ;;  %v13073_v24 = vld [vmem:[%s24327_s29 + $0x88] sm:$0xff] }
  0x3d   : > { %16771 = vmatpush3.bf16.msra.mxu0 %v16768_v63 }
  0x3e   : > { %16773 = vmatprep.subr.bf16.mxu0 %v16772_v3 }
  0x41   : > { %16775 = vmatpush3.bf16.msra.mxu0 %v16772_v3  ;;  %v13053_v3 = vld [vmem:[%s24327_s29 + $0x38] sm:$0xff] }
  0x42   : > { %16777 = vmatprep.subr.bf16.mxu0 %v16776_v7 }
  0x45   : > { %16779 = vmatpush3.bf16.msra.mxu0 %v16776_v7 }
  0x46   : > { %16781 = vmatprep.subr.bf16.mxu0 %v16780_v11 }
  0x49   : > { %16783 = vmatpush3.bf16.msra.mxu0 %v16780_v11  ;;  %v13057_v11 = vld [vmem:[%s24327_s29 + $0x48] sm:$0xff] }
  0x4a   : > { %16785 = vmatprep.subr.bf16.mxu0 %v16784_v14 }
  0x4d   : > { %16787 = vmatpush3.bf16.msra.mxu0 %v16784_v14 }
  0x4e   : > { %16789 = vmatprep.subr.bf16.mxu0 %v16788_v17 }
  0x51   : > { %16791 = vmatpush3.bf16.msra.mxu0 %v16788_v17  ;;  %v13061_v17 = vld [vmem:[%s24327_s29 + $0x58] sm:$0xff] }
  0x52   : > { %16793 = vmatprep.subr.bf16.mxu0 %v16792_v26 }
  0x55   : > { %16795 = vmatpush3.bf16.msra.mxu0 %v16792_v26 }
 0x10b   : > { %v14949_v30 = vpop.f32.mrb[0].mxu0 }
 0x10c   : > { %v1002_v31 = vmul.f32 %v14949_v30, %v906_v28  ;;  %v992_v32 = vpop.f32.mrb[1].mxu0  ;;  %v13076_v30 = vld [vmem:[%s23929_s14] ss:$0 sm:$0xff] }
 0x10d   : > { %v1001_v33 = vmul.f32 %v992_v32, %v905_v29 }
 0x10f   : > { %1116 = vmatmul.mubr.f32.vlgmr.msra.gmra.mrb[0].mxu1 %v1001_v33  ;;  %14982 = vmatprep.mubr.f32.mxu0 %v1001_v33 }
 0x110   : > { %14983 = vmatmul.mubr.f32.vlgmr.msra.gmra.mrb[2].mxu0 %v1002_v31  ;;  %1121 = vmatprep.mubr.f32.mxu1 %v18418_v27 }
 0x111   : > { %14989 = vmatprep.mubr.msk.f32.mxu0 %vm1216_vm1, %v13042_v48  ;;  %v2357_v48 = vld [vmem:[%s23930_s15 + $0x8] sm:$0xff] }
 0x113   : > { %1122 = vmatmul.mubr.f32.gmra.mrb[2].mxu1 %v1002_v31 }
 0x114   : > { %14996 = vmatprep.mubr.msk.f32.mxu1 %vm1216_vm1, %v1203_v34 }
 0x1e2   : > { %v1117_v35 = vpop.f32.mrb[0].mxu1 }
 0x1e3   : > { %v1119_v36 = vpop.f32.mrb[1].mxu1  ;;  %v14984_v37 = vpop.f32.mrb[2].mxu0 }
 0x1e4   : > { %v1194_v38 = vpop.f32.mrb[3].mxu0 }
 0x1e5   : > { %v18744_v39 = vpack.c.bf16 %v14984_v37, %v1194_v38 }
 0x1e6   : > { %v1123_v40 = vpop.f32.mrb[2].mxu1 }
 0x1e7   : > { %v1125_v41 = vpop.f32.mrb[3].mxu1  ;;  %v18090_v42 = vpack.i.bf16 %v1123_v40, %v1117_v35  ;;  %v16800_v43 = vpack.c.bf16 %v1123_v40, %v1117_v35 }
 0x1e8   : > { %v18100_v44 = vpack.i.bf16 %v1125_v41, %v1119_v36  ;;  %v16812_v45 = vpack.c.bf16 %v1125_v41, %v1119_v36  ;;  %v2027_v41 = vld [vmem:[%s24328_s6 + $0x8] sm:$0xff] }
 0x1e9   : > { %18091 = vrot.lane.b32.xlu0 %v18090_v42, %s18419_s3  ;;  %16801 = vmatprep.subr.bf16.mxu1 %v16800_v43 }
 0x1ea   : > { %16803 = vmatpush3.bf16.msra.mxu1 %v16800_v43  ;;  %18101 = vrot.lane.b32.xlu1 %v18100_v44, %s18420_s0  ;;  %v2029_v43 = vld [vmem:[%s24328_s6 + $0x18] sm:$0xff] }
 0x1ed   : > { %18096 = vrot.lane.b32.xlu0 %v18090_v42, %s23943_s22  ;;  %14997 = vmatmul.mubr.msk.f32.vlgmr.msra.gmra.mrb[4].mxu1 %vm1216_vm1, %v1204_v46  ;;  %v2032_v46 = vld [vmem:[%s24328_s6 + $0x30] sm:$0xff] }
 0x1ee   : > { %18106 = vrot.lane.b32.xlu1 %v18100_v44, %s18419_s3  ;;  %15003 = vmatprep.mubr.msk.f32.mxu1 %vm1216_vm1, %v13048_v47  ;;  %v2033_v47 = vld [vmem:[%s24328_s6 + $0x38] sm:$0xff] }
 0x1f1   : > { %18111 = vrot.lane.b32.xlu0 %v18100_v44, %s23943_s22  ;;  %v2030_v44 = vld [vmem:[%s24328_s6 + $0x20] sm:$0xff] }
 0x1f2   : > { %18116 = vrot.lane.b32.xlu1 %v18090_v42, %s18420_s0  ;;  %v2028_v42 = vld [vmem:[%s24328_s6 + $0x10] sm:$0xff] }
 0x25b   : > { %v18092_v49 = vpop.permute.xlu0 %18091 }
 0x25c   : > { %v18094_v50 = vunpack.i.h.bf16 %v18092_v49  ;;  %v18093_v51 = vunpack.i.l.bf16 %v18092_v49  ;;  %v18102_v52 = vpop.permute.xlu1 %18101  ;;  %v2360_v49 = vld [vmem:[%s23930_s15 + $0x20] sm:$0xff] }
 0x25d   : > { %v18104_v1 = vunpack.i.h.bf16 %v18102_v52  ;;  %v18103_v2 = vunpack.i.l.bf16 %v18102_v52  ;;  %v2361_v52 = vld [vmem:[%s23930_s15 + $0x28] sm:$0xff] }
 0x25e   : > { %v16804_v53 = vpack.c.bf16 %v18094_v50, %v18093_v51  ;;  %v16844_v50 = vpack.c.bf16 %v2360_v49, %v2357_v48  ;;  %v2358_v51 = vld [vmem:[%s23930_s15 + $0x10] sm:$0xff] }
 0x25f   : > { %v18097_v54 = vpop.permute.xlu0 %18096  ;;  %v16816_v7 = vpack.c.bf16 %v18104_v1, %v18103_v2  ;;  %v2388_v2 = vld [vmem:[%s23930_s15 + $0x100] sm:$0xff]  ;;  %v2362_v49 = vld [vmem:[%s23930_s15 + $0x30] sm:$0xff] }
 0x260   : > { %v18099_v55 = vunpack.i.h.bf16 %v18097_v54  ;;  %v18098_v56 = vunpack.i.l.bf16 %v18097_v54  ;;  %16805 = vmatprep.subr.bf16.mxu1 %v16804_v53  ;;  %v18107_v57 = vpop.permute.xlu1 %18106  ;;  %v2364_v54 = vld [vmem:[%s23930_s15 + $0x40] sm:$0xff] }
 0x261   : > { %16807 = vmatpush3.bf16.msra.mxu1 %v16804_v53  ;;  %v18109_v9 = vunpack.i.h.bf16 %v18107_v57  ;;  %v18108_v10 = vunpack.i.l.bf16 %v18107_v57  ;;  %v16876_v53 = vpack.c.bf16 %v2361_v52, %v2358_v51  ;;  %v2370_v57 = vld [vmem:[%s23930_s15 + $0x70] sm:$0xff]  ;;  %v2369_v52 = vld [vmem:[%s23930_s15 + $0x68] sm:$0xff] }
 0x262   : > { %v16808_v59 = vpack.c.bf16 %v18099_v55, %v18098_v56  ;;  %v2367_v55 = vld [vmem:[%s23930_s15 + $0x58] sm:$0xff] }
 0x263   : > { %v16820_v13 = vpack.c.bf16 %v18109_v9, %v18108_v10  ;;  %v18112_v14 = vpop.permute.xlu0 %18111  ;;  %v16880_v56 = vpack.c.bf16 %v2367_v55, %v2364_v54 }
 0x264   : > { %15004 = vmatmul.mubr.msk.f32.vlgmr.msra.gmra.mrb[4].mxu1 %vm1216_vm1, %v13049_v58  ;;  %16809 = vmatprep.subr.bf16.mxu1 %v16808_v59  ;;  %v18117_v61 = vpop.permute.xlu1 %18116  ;;  %v18114_v15 = vunpack.i.h.bf16 %v18112_v14  ;;  %v18113_v16 = vunpack.i.l.bf16 %v18112_v14  ;;  %v2373_v58 = vld [vmem:[%s23930_s15 + $0x88] sm:$0xff] }
 0x265   : > { %v18119_v62 = vunpack.i.h.bf16 %v18117_v61  ;;  %v18118_v63 = vunpack.i.l.bf16 %v18117_v61  ;;  %16811 = vmatpush3.bf16.msra.mxu1 %v16808_v59  ;;  %15010 = vmatprep.mubr.msk.f32.mxu1 %vm1216_vm1, %v13052_v60  ;;  %v16884_v59 = vpack.c.bf16 %v2373_v58, %v2370_v57  ;;  %v2376_v60 = vld [vmem:[%s23930_s15 + $0xa0] sm:$0xff]  ;;  %v2379_v61 = vld [vmem:[%s23930_s15 + $0xb8] sm:$0xff] }
 0x266   : > { %16813 = vmatprep.subr.bf16.mxu1 %v16812_v45  ;;  %v16824_v19 = vpack.c.bf16 %v18114_v15, %v18113_v16 }
 0x267   : > { %v16796_v0 = vpack.c.bf16 %v18119_v62, %v18118_v63  ;;  %v16888_v62 = vpack.c.bf16 %v2379_v61, %v2376_v60  ;;  %v2382_v63 = vld [vmem:[%s23930_s15 + $0xd0] sm:$0xff]  ;;  %v2371_v60 = vld [vmem:[%s23930_s15 + $0x78] sm:$0xff] }
 0x268   : > { %v2375_v61 = vld [vmem:[%s23930_s15 + $0x98] sm:$0xff] }
 0x269   : > { %16797 = vmatprep.subr.bf16.mxu0 %v16796_v0 }
 0x26a   : > { %16799 = vmatpush3.bf16.msra.mxu0 %v16796_v0  ;;  %v2385_v0 = vld [vmem:[%s23930_s15 + $0xe8] sm:$0xff] }
 0x26b   : > { %v16892_v1 = vpack.c.bf16 %v2385_v0, %v2382_v63 }
 0x26c   : > { %15011 = vmatmul.mubr.msk.f32.vlgmr.msra.gmra.mrb[4].mxu1 %vm1216_vm1, %v13053_v3  ;;  %v2391_v3 = vld [vmem:[%s23930_s15 + $0x118] sm:$0xff] }
 0x26d   : > { %16815 = vmatpush3.bf16.msra.mxu1 %v16812_v45  ;;  %15017 = vmatprep.mubr.msk.f32.mxu1 %vm1216_vm1, %v13056_v5  ;;  %v2031_v45 = vld [vmem:[%s24328_s6 + $0x28] sm:$0xff]  ;;  %v16896_v5 = vpack.c.bf16 %v2391_v3, %v2388_v2  ;;  %v2374_v3 = vld [vmem:[%s23930_s15 + $0x90] sm:$0xff] }
 0x26e   : > { %16817 = vmatprep.subr.bf16.mxu1 %v16816_v7  ;;  %14990 = vmatmul.mubr.msk.f32.vlgmr.msra.gmra.mrb[4].mxu0 %vm1216_vm1, %v13043_v6  ;;  %v2394_v6 = vld [vmem:[%s23930_s15 + $0x130] sm:$0xff] }
 0x26f   : > { %15052 = vmatprep.mubr.msk.f32.mxu0 %vm1216_vm1, %v2026_v25 }
 0x274   : > { %15018 = vmatmul.mubr.msk.f32.vlgmr.msra.gmra.mrb[4].mxu1 %vm1216_vm1, %v13057_v11 }
 0x275   : > { %16819 = vmatpush3.bf16.msra.mxu1 %v16816_v7  ;;  %15024 = vmatprep.mubr.msk.f32.mxu1 %vm1216_vm1, %v13060_v12  ;;  %v2397_v7 = vld [vmem:[%s23930_s15 + $0x148] sm:$0xff] }
 0x276   : > { %16821 = vmatprep.subr.bf16.mxu1 %v16820_v13  ;;  %v16900_v9 = vpack.c.bf16 %v2397_v7, %v2394_v6  ;;  %v2381_v6 = vld [vmem:[%s23930_s15 + $0xc8] sm:$0xff]  ;;  %v2384_v7 = vld [vmem:[%s23930_s15 + $0xe0] sm:$0xff] }
 0x27c   : > { %15025 = vmatmul.mubr.msk.f32.vlgmr.msra.gmra.mrb[4].mxu1 %vm1216_vm1, %v13061_v17 }
 0x27d   : > { %16823 = vmatpush3.bf16.msra.mxu1 %v16820_v13  ;;  %15031 = vmatprep.mubr.msk.f32.mxu1 %vm1216_vm1, %v13064_v18 }
 0x27e   : > { %16825 = vmatprep.subr.bf16.mxu1 %v16824_v19 }
 0x284   : > { %15032 = vmatmul.mubr.msk.f32.vlgmr.msra.gmra.mrb[4].mxu1 %vm1216_vm1, %v13065_v20 }
 0x285   : > { %16827 = vmatpush3.bf16.msra.mxu1 %v16824_v19  ;;  %15038 = vmatprep.mubr.msk.f32.mxu1 %vm1216_vm1, %v13068_v21 }
 0x286   : > { %16829 = vmatprep.subr.bf16.mxu1 %v18744_v39 }
 0x28c   : > { %15039 = vmatmul.mubr.msk.f32.vlgmr.msra.gmra.mrb[4].mxu1 %vm1216_vm1, %v13069_v22 }
 0x28d   : > { %16831 = vmatpush3.bf16.msra.mxu1 %v18744_v39  ;;  %15045 = vmatprep.mubr.msk.f32.mxu1 %vm1216_vm1, %v13072_v23 }
 0x28e   : > { %16877 = vmatprep.subr.bf16.mxu1 %v16876_v53 }
 0x294   : > { %15046 = vmatmul.mubr.msk.f32.vlgmr.msra.gmra.mrb[4].mxu1 %vm1216_vm1, %v13073_v24 }
 0x295   : > { %16879 = vmatpush3.bf16.msra.mxu1 %v16876_v53  ;;  %v2372_v53 = vld [vmem:[%s23930_s15 + $0x80] sm:$0xff] }
 0x296   : > { %16881 = vmatprep.subr.bf16.mxu1 %v16880_v56  ;;  %v16852_v58 = vpack.c.bf16 %v2372_v53, %v2369_v52 }
 0x299   : > { %16883 = vmatpush3.bf16.msra.mxu1 %v16880_v56 }
 0x29a   : > { %16885 = vmatprep.subr.bf16.mxu1 %v16884_v59 }
 0x29d   : > { %16887 = vmatpush3.bf16.msra.mxu1 %v16884_v59  ;;  %v2368_v59 = vld [vmem:[%s23930_s15 + $0x60] sm:$0xff] }
 0x29e   : > { %16889 = vmatprep.subr.bf16.mxu1 %v16888_v62  ;;  %v16854_v0 = vpack.c.bf16 %v2371_v60, %v2368_v59 }
 0x2a1   : > { %16891 = vmatpush3.bf16.msra.mxu1 %v16888_v62  ;;  %v2378_v62 = vld [vmem:[%s23930_s15 + $0xb0] sm:$0xff] }
 0x2a2   : > { %16893 = vmatprep.subr.bf16.mxu1 %v16892_v1  ;;  %v16856_v2 = vpack.c.bf16 %v2378_v62, %v2375_v61 }
 0x2a5   : > { %16895 = vmatpush3.bf16.msra.mxu1 %v16892_v1 }
 0x2a6   : > { %16897 = vmatprep.subr.bf16.mxu1 %v16896_v5 }
 0x2a9   : > { %16899 = vmatpush3.bf16.msra.mxu1 %v16896_v5  ;;  %v2377_v5 = vld [vmem:[%s23930_s15 + $0xa8] sm:$0xff] }
 0x2aa   : > { %16901 = vmatprep.subr.bf16.mxu1 %v16900_v9 }
 0x2ad   : > { %16903 = vmatpush3.bf16.msra.mxu1 %v16900_v9  ;;  %v16858_v9 = vpack.c.bf16 %v2377_v5, %v2374_v3 }
 0x341   : > { %v14991_v26 = vpop.f32.mrb[4].mxu0 }
 0x342   : > { %v1289_v28 = vpop.f32.mrb[5].mxu0 }
 0x367   : > { %v15047_v29 = vpop.f32.mrb[4].mxu1 }
 0x368   : > { %v17484_v31 = vadd.f32 %v15047_v29, %v14991_v26  ;;  %v2002_v32 = vpop.f32.mrb[5].mxu1 }
 0x369   : > { %v17485_v33 = vadd.f32 %v2002_v32, %v1289_v28 }
 0x36a   : > { %v2021_v34 = vadd.f32 %v17484_v31, %v13076_v30 }
 0x36b   : > { %v2020_v35 = vadd.f32 %v17485_v33, %v13076_v30 }
 0x36c   : > { %v2023_v36 = vmax.f32 %v2021_v34, 0.0 }
 0x36d   : > { %v2022_v37 = vmax.f32 %v2020_v35, 0.0 }
 0x36e   : > { %v2025_v38 = vmin.f32 %v2023_v36, 6.0 }
 0x36f   : > { %v2024_v39 = vmin.f32 %v2022_v37, 6.0 }
 0x371   : > { %v16832_v40 = vpack.c.bf16 %v2025_v38, %v2024_v39  ;;  %v2356_v39 = vld [vmem:[%s23930_s15] sm:$0xff] }
 0x373   : > { %16833 = vmatprep.subr.bf16.mxu0 %v16832_v40 }
 0x374   : > { %16835 = vmatpush3.bf16.msra.mxu0 %v16832_v40  ;;  %v2359_v40 = vld [vmem:[%s23930_s15 + $0x18] sm:$0xff] }
 0x375   : > { %16837 = vmatprep.subr.bf16.mxu0 %v18564_v4 }
 0x377   : > { %15053 = vmatmul.mubr.msk.f32.vlgmr.msra.gmra.mrb[6].mxu0 %vm1216_vm1, %v2027_v41  ;;  %v2363_v41 = vld [vmem:[%s23930_s15 + $0x38] sm:$0xff] }
 0x378   : > { %15055 = vmatprep.mubr.msk.f32.mxu0 %vm1216_vm1, %v2028_v42  ;;  %16839 = vmatpush3.bf16.msra.mxu0 %v18564_v4  ;;  %v2366_v42 = vld [vmem:[%s23930_s15 + $0x50] sm:$0xff] }
 0x379   : > { %16841 = vmatprep.subr.bf16.mxu0 %v18575_v8  ;;  %v16848_v48 = vpack.c.bf16 %v2366_v42, %v2363_v41 }
 0x37b   : > { %15056 = vmatmul.mubr.msk.f32.gmra.mrb[8].mxu0 %vm1216_vm1, %v2029_v43 }
 0x37c   : > { %15058 = vmatprep.mubr.msk.f32.mxu0 %vm1216_vm1, %v2030_v44  ;;  %16843 = vmatpush3.bf16.msra.mxu0 %v18575_v8 }
 0x37d   : > { %16845 = vmatprep.subr.bf16.mxu0 %v16844_v50  ;;  %v2365_v50 = vld [vmem:[%s23930_s15 + $0x48] sm:$0xff] }
 0x37e   : > { %v16850_v56 = vpack.c.bf16 %v2365_v50, %v2362_v49  ;;  %v2168_v50 = vld [vmem:[%s19018_s26 + $0x28] sm:$0xff] }
 0x37f   : > { %15059 = vmatmul.mubr.msk.f32.gmra.mrb[10].mxu0 %vm1216_vm1, %v2031_v45 }
 0x380   : > { %15061 = vmatprep.mubr.msk.f32.mxu0 %vm1216_vm1, %v2032_v46  ;;  %v16846_v46 = vpack.c.bf16 %v2359_v40, %v2356_v39  ;;  %v2164_v39 = vld [vmem:[%s19018_s26 + $0x8] sm:$0xff] }
 0x383   : > { %15062 = vmatmul.mubr.msk.f32.gmra.mrb[12].mxu0 %vm1216_vm1, %v2033_v47 }
 0x44a   : > { %v15054_v10 = vpop.f32.mrb[6].mxu0 }
 0x44b   : > { %v13086_v11 = vmul.f32 -1.442695, %v15054_v10  ;;  %v2124_v12 = vpop.f32.mrb[7].mxu0  ;;  %v16860_v10 = vpack.c.bf16 %v2384_v7, %v2381_v6 }
 0x44c   : > { %v13085_v13 = vmul.f32 -1.442695, %v2124_v12  ;;  %v2383_v12 = vld [vmem:[%s23930_s15 + $0xd8] sm:$0xff] }
 0x44d   : > { %18250 = vpow2.f32 %v13086_v11  ;;  %v2380_v11 = vld [vmem:[%s23930_s15 + $0xc0] sm:$0xff] }
 0x44e   : > { %18252 = vpow2.f32 %v13085_v13  ;;  %v15057_v14 = vpop.f32.mrb[8].mxu0 }
 0x44f   : > { %v13088_v15 = vmul.f32 -1.442695, %v15057_v14  ;;  %v2134_v16 = vpop.f32.mrb[9].mxu0  ;;  %v2387_v14 = vld [vmem:[%s23930_s15 + $0xf8] sm:$0xff] }
 0x450   : > { %v13087_v17 = vmul.f32 -1.442695, %v2134_v16 }
 0x451   : > { %18254 = vpow2.f32 %v13088_v15  ;;  %v2390_v15 = vld [vmem:[%s23930_s15 + $0x110] sm:$0xff] }
 0x452   : > { %18256 = vpow2.f32 %v13087_v17  ;;  %v15060_v18 = vpop.f32.mrb[10].mxu0  ;;  %v16862_v17 = vpack.c.bf16 %v2383_v12, %v2380_v11 }
 0x453   : > { %v13090_v19 = vmul.f32 -1.442695, %v15060_v18  ;;  %v2144_v20 = vpop.f32.mrb[11].mxu0  ;;  %v16864_v18 = vpack.c.bf16 %v2390_v15, %v2387_v14 }
 0x454   : > { %v13089_v21 = vmul.f32 -1.442695, %v2144_v20  ;;  %v2389_v20 = vld [vmem:[%s23930_s15 + $0x108] sm:$0xff] }
 0x455   : > { %18258 = vpow2.f32 %v13090_v19  ;;  %v2386_v19 = vld [vmem:[%s23930_s15 + $0xf0] sm:$0xff] }
 0x456   : > { %18260 = vpow2.f32 %v13089_v21  ;;  %v15063_v22 = vpop.f32.mrb[12].mxu0  ;;  %v2393_v21 = vld [vmem:[%s23930_s15 + $0x128] sm:$0xff] }
 0x457   : > { %v18251_v23 = vpop.eup %18250  ;;  %v13092_v24 = vmul.f32 -1.442695, %v15063_v22  ;;  %v2154_v25 = vpop.f32.mrb[13].mxu0  ;;  %v2396_v22 = vld [vmem:[%s23930_s15 + $0x140] sm:$0xff] }
 0x458   : > { %v18253_v26 = vpop.eup %18252  ;;  %v2196_v28 = vadd.f32 1.0, %v18251_v23  ;;  %v13091_v29 = vmul.f32 -1.442695, %v2154_v25  ;;  %v16866_v23 = vpack.c.bf16 %v2389_v20, %v2386_v19  ;;  %v2392_v25 = vld [vmem:[%s23930_s15 + $0x120] sm:$0xff] }
 0x459   : > { %v2195_v30 = vadd.f32 1.0, %v18253_v26  ;;  %18262 = vpow2.f32 %v13092_v24  ;;  %v16868_v24 = vpack.c.bf16 %v2396_v22, %v2393_v21  ;;  %v2395_v26 = vld [vmem:[%s23930_s15 + $0x138] sm:$0xff] }
 0x45a   : > { %18264 = vrcp.f32 %v2196_v28  ;;  %v16870_v28 = vpack.c.bf16 %v2395_v26, %v2392_v25 }
 0x45b   : > { %v18255_v31 = vpop.eup %18254  ;;  %18266 = vrcp.f32 %v2195_v30  ;;  %v2402_v30 = vld [vmem:[%s23930_s15 + $0x170] sm:$0xff] }
 0x45c   : > { %v18257_v32 = vpop.eup %18256  ;;  %v2198_v33 = vadd.f32 1.0, %v18255_v31  ;;  %18268 = vpow2.f32 %v13091_v29  ;;  %v2399_v29 = vld [vmem:[%s23930_s15 + $0x158] sm:$0xff] }
 0x45d   : > { %v2197_v34 = vadd.f32 1.0, %v18257_v32  ;;  %v16872_v31 = vpack.c.bf16 %v2402_v30, %v2399_v29  ;;  %v2398_v32 = vld [vmem:[%s23930_s15 + $0x150] sm:$0xff] }
 0x45e   : > { %18270 = vrcp.f32 %v2198_v33  ;;  %v2401_v33 = vld [vmem:[%s23930_s15 + $0x168] sm:$0xff] }
 0x45f   : > { %v18259_v35 = vpop.eup %18258  ;;  %18272 = vrcp.f32 %v2197_v34  ;;  %v2400_v34 = vld [vmem:[%s23930_s15 + $0x160] sm:$0xff] }
 0x460   : > { %v18261_v36 = vpop.eup %18260  ;;  %v2200_v37 = vadd.f32 1.0, %v18259_v35  ;;  %v16874_v35 = vpack.c.bf16 %v2401_v33, %v2398_v32 }
 0x461   : > { %v2199_v38 = vadd.f32 1.0, %v18261_v36  ;;  %v2403_v36 = vld [vmem:[%s23930_s15 + $0x178] sm:$0xff] }
 0x462   : > { %18274 = vrcp.f32 %v2200_v37  ;;  %v16904_v37 = vpack.c.bf16 %v2403_v36, %v2400_v34 }
 0x463   : > { %v18263_v43 = vpop.eup %18262  ;;  %18276 = vrcp.f32 %v2199_v38  ;;  %v2163_v38 = vld [vmem:[%s19018_s26] sm:$0xff] }
 0x464   : > { %v18265_v44 = vpop.eup %18264  ;;  %v2202_v45 = vadd.f32 1.0, %v18263_v43  ;;  %16905 = vmatprep.subr.bf16.mxu1 %v16904_v37  ;;  %v2166_v43 = vld [vmem:[%s19018_s26 + $0x18] sm:$0xff] }
 0x465   : > { %v18267_v47 = vpop.eup %18266  ;;  %16907 = vmatpush3.bf16.msra.mxu1 %v16904_v37 }
 0x466   : > { %v18269_v51 = vpop.eup %18268  ;;  %15072 = vmatprep.mubr.msk.f32.mxu0 %vm919_vm0, %v18267_v47  ;;  %18278 = vrcp.f32 %v2202_v45  ;;  %v2165_v45 = vld [vmem:[%s19018_s26 + $0x10] sm:$0xff] }
 0x467   : > { %v2201_v54 = vadd.f32 1.0, %v18269_v51  ;;  %15073 = vmatmul.mubr.msk.f32.vlgmr.msra.gmra.mrb[14].mxu0 %vm919_vm0, %v18265_v44  ;;  %v2167_v51 = vld [vmem:[%s19018_s26 + $0x20] sm:$0xff] }
 0x468   : > { %v18271_v55 = vpop.eup %18270  ;;  %16847 = vmatpush1.bf16.msra.mxu0 %v16846_v46 }
 0x469   : > { %v18273_v57 = vpop.eup %18272  ;;  %18280 = vrcp.f32 %v2201_v54  ;;  %16849 = vmatprep.subr.bf16.mxu0 %v16848_v48 }
 0x46a   : > { %15075 = vmatprep.mubr.msk.f32.mxu0 %vm919_vm0, %v18273_v57  ;;  %v2169_v57 = vld [vmem:[%s19018_s26 + $0x30] sm:$0xff] }
 0x46b   : > { %15076 = vmatmul.mubr.msk.f32.gmra.mrb[16].mxu0 %vm919_vm0, %v18271_v55 }
 0x46c   : > { %v18275_v63 = vpop.eup %18274  ;;  %16851 = vmatpush1.bf16.msra.mxu0 %v16850_v56  ;;  %v2170_v56 = vld [vmem:[%s19018_s26 + $0x38] sm:$0xff] }
 0x46d   : > { %v18277_v1 = vpop.eup %18276  ;;  %16853 = vmatprep.subr.bf16.mxu0 %v16852_v58 }
 0x46e   : > { %15078 = vmatprep.mubr.msk.f32.mxu0 %vm919_vm0, %v18277_v1 }
 0x46f   : > { %15079 = vmatmul.mubr.msk.f32.gmra.mrb[18].mxu0 %vm919_vm0, %v18275_v63 }
 0x470   : > { %16855 = vmatpush1.bf16.msra.mxu0 %v16854_v0  ;;  %v18279_v13 = vpop.eup %18278 }
 0x471   : > { %16857 = vmatprep.subr.bf16.mxu0 %v16856_v2 }
 0x473   : > { %v18281_v16 = vpop.eup %18280 }
 0x474   : > { %15081 = vmatprep.mubr.msk.f32.mxu0 %vm919_vm0, %v18281_v16  ;;  %16859 = vmatpush1.bf16.msra.mxu0 %v16858_v9 }
 0x475   : > { %15082 = vmatmul.mubr.msk.f32.gmra.mrb[20].mxu0 %vm919_vm0, %v18279_v13  ;;  %16861 = vmatprep.subr.bf16.mxu0 %v16860_v10 }
 0x476   : > { %2468 = vmatprep.mubr.f32.mxu0 %v18418_v27 }
 0x478   : > { %16863 = vmatpush1.bf16.msra.mxu0 %v16862_v17 }
 0x479   : > { %16865 = vmatprep.subr.bf16.mxu0 %v16864_v18 }
 0x47c   : > { %16867 = vmatpush1.bf16.msra.mxu0 %v16866_v23 }
 0x47d   : > { %16869 = vmatprep.subr.bf16.mxu0 %v16868_v24 }
 0x480   : > { %16871 = vmatpush1.bf16.msra.mxu0 %v16870_v28 }
 0x481   : > { %16873 = vmatprep.subr.bf16.mxu0 %v16872_v31 }
 0x484   : > { %16875 = vmatpush1.bf16.msra.mxu0 %v16874_v35 }
 0x53a   : > { %v15074_v40 = vpop.f32.mrb[14].mxu0 }
 0x53b   : > { %v2309_v41 = vpop.f32.mrb[15].mxu0  ;;  %v2349_v44 = vmul.f32 %v15074_v40, %v2164_v39 }
 0x53c   : > { %v2348_v42 = vmul.f32 %v2309_v41, %v2163_v38  ;;  %v13101_v38 = vld [vmem:[%s24330_s7 + $0x40] sm:$0xff] }
 0x53e   : > { %v15077_v46 = vpop.f32.mrb[16].mxu0  ;;  %2469 = vmatmul.mubr.f32.vlgmr.msra.gmra.mrb[22].mxu0 %v2348_v42  ;;  %15116 = vmatprep.mubr.f32.mxu1 %v2348_v42 }
 0x53f   : > { %v2351_v47 = vmul.f32 %v15077_v46, %v2166_v43  ;;  %v2319_v48 = vpop.f32.mrb[17].mxu0  ;;  %15117 = vmatmul.mubr.f32.vlgmr.msra.gmra.mrb[6].mxu1 %v2349_v44  ;;  %2474 = vmatprep.mubr.f32.mxu0 %v18418_v27 }
 0x540   : > { %v2350_v49 = vmul.f32 %v2319_v48, %v2165_v45 }
 0x542   : > { %2475 = vmatmul.mubr.f32.gmra.mrb[24].mxu0 %v2349_v44  ;;  %15119 = vmatprep.mubr.f32.mxu1 %v2350_v49  ;;  %v15080_v52 = vpop.f32.mrb[18].mxu0 }
 0x543   : > { %15120 = vmatmul.mubr.f32.gmra.mrb[8].mxu1 %v2351_v47  ;;  %v2353_v53 = vmul.f32 %v15080_v52, %v2168_v50  ;;  %2480 = vmatprep.mubr.f32.mxu0 %v18418_v27  ;;  %v2329_v54 = vpop.f32.mrb[19].mxu0 }
 0x544   : > { %v2352_v55 = vmul.f32 %v2329_v54, %v2167_v51 }
 0x546   : > { %2481 = vmatmul.mubr.f32.gmra.mrb[26].mxu0 %v2350_v49  ;;  %15122 = vmatprep.mubr.f32.mxu1 %v2352_v55 }
 0x547   : > { %2486 = vmatprep.mubr.f32.mxu0 %v18418_v27  ;;  %15123 = vmatmul.mubr.f32.gmra.mrb[10].mxu1 %v2353_v53 }
 0x548   : > { %v15083_v58 = vpop.f32.mrb[20].mxu0 }
 0x549   : > { %v2355_v59 = vmul.f32 %v15083_v58, %v2170_v56  ;;  %v2339_v60 = vpop.f32.mrb[21].mxu0 }
 0x54a   : > { %2487 = vmatmul.mubr.f32.gmra.mrb[28].mxu0 %v2351_v47  ;;  %v2354_v61 = vmul.f32 %v2339_v60, %v2169_v57 }
 0x54b   : > { %2492 = vmatprep.mubr.f32.mxu0 %v18418_v27 }
 0x54c   : > { %15125 = vmatprep.mubr.f32.mxu1 %v2354_v61 }
 0x54d   : > { %15126 = vmatmul.mubr.f32.gmra.mrb[12].mxu1 %v2355_v59 }
 0x54e   : > { %2493 = vmatmul.mubr.f32.gmra.mrb[30].mxu0 %v2352_v55  ;;  %15144 = vmatprep.mubr.msk.f32.mxu1 %vm2671_vm2, %v13101_v38 }
 0x54f   : > { %2498 = vmatprep.mubr.f32.mxu0 %v18418_v27 }
 0x552   : > { %2499 = vmatmul.mubr.f32.gmra.mrb[32].mxu0 %v2353_v53 }
 0x553   : > { %2504 = vmatprep.mubr.f32.mxu0 %v18418_v27 }
 0x556   : > { %2505 = vmatmul.mubr.f32.gmra.mrb[34].mxu0 %v2354_v61  ;;  %v13102_v61 = vld [vmem:[%s24330_s7 + $0x48] sm:$0xff] }
 0x557   : > { %2510 = vmatprep.mubr.f32.mxu0 %v18418_v27 }
 0x55a   : > { %2511 = vmatmul.mubr.f32.gmra.mrb[36].mxu0 %v2355_v59 }
 0x611   : > { %v2470_v62 = vpop.f32.mrb[22].mxu0 }
 0x612   : > { %v2472_v63 = vpop.f32.mrb[23].mxu0  ;;  %v15118_v0 = vpop.f32.mrb[6].mxu1 }
 0x613   : > { %v2583_v1 = vpop.f32.mrb[7].mxu1 }
 0x614   : > { %v19035_v2 = vpack.c.bf16 %v15118_v0, %v2583_v1  ;;  %v13105_v0 = vld [vmem:[%s24330_s7 + $0x60] sm:$0xff] }
 0x615   : > { %v2476_v3 = vpop.f32.mrb[24].mxu0 }
 0x616   : > { %v2478_v5 = vpop.f32.mrb[25].mxu0  ;;  %v15121_v6 = vpop.f32.mrb[8].mxu1  ;;  %v18120_v7 = vpack.i.bf16 %v2476_v3, %v2470_v62  ;;  %v19037_v9 = vpack.c.bf16 %v2476_v3, %v2470_v62  ;;  %v13103_v62 = vld [vmem:[%s24330_s7 + $0x50] sm:$0xff]  ;;  %v13106_v3 = vld [vmem:[%s24330_s7 + $0x68] sm:$0xff] }
 0x617   : > { %v2593_v10 = vpop.f32.mrb[9].mxu1  ;;  %v18180_v11 = vpack.i.bf16 %v2478_v5, %v2472_v63  ;;  %v19039_v12 = vpack.c.bf16 %v2478_v5, %v2472_v63  ;;  %v13104_v63 = vld [vmem:[%s24330_s7 + $0x58] sm:$0xff]  ;;  %v13107_v5 = vld [vmem:[%s24330_s7 + $0x70] sm:$0xff] }
 0x618   : > { %v19041_v13 = vpack.c.bf16 %v15121_v6, %v2593_v10  ;;  %18121 = vrot.lane.b32.xlu0 %v18120_v7, %s18420_s0  ;;  %v13108_v10 = vld [vmem:[%s24330_s7 + $0x78] sm:$0xff] }
 0x619   : > { %v2482_v27 = vpop.f32.mrb[26].mxu0 }
 0x61a   : > { %v2484_v14 = vpop.f32.mrb[27].mxu0  ;;  %v15124_v15 = vpop.f32.mrb[10].mxu1 }
 0x61b   : > { %v2603_v16 = vpop.f32.mrb[11].mxu1 }
 0x61c   : > { %v19044_v17 = vpack.c.bf16 %v15124_v15, %v2603_v16 }
 0x61d   : > { %v2488_v18 = vpop.f32.mrb[28].mxu0 }
 0x61e   : > { %v2490_v19 = vpop.f32.mrb[29].mxu0  ;;  %v18125_v20 = vpack.i.bf16 %v2488_v18, %v2482_v27  ;;  %v19046_v21 = vpack.c.bf16 %v2488_v18, %v2482_v27  ;;  %v2623_v18 = vld [vmem:[%s24330_s7 + $0x8] sm:$0xff] }
 0x61f   : > { %v18185_v22 = vpack.i.bf16 %v2490_v19, %v2484_v14  ;;  %v19048_v23 = vpack.c.bf16 %v2490_v19, %v2484_v14  ;;  %v2624_v19 = vld [vmem:[%s24330_s7 + $0x10] sm:$0xff] }
 0x620   : > { %18126 = vrot.lane.b32.xlu1 %v18125_v20, %s18420_s0  ;;  %v15127_v24 = vpop.f32.mrb[12].mxu1 }
 0x621   : > { %v2494_v25 = vpop.f32.mrb[30].mxu0  ;;  %v2613_v26 = vpop.f32.mrb[13].mxu1 }
 0x622   : > { %v2496_v28 = vpop.f32.mrb[31].mxu0  ;;  %v19051_v29 = vpack.c.bf16 %v15127_v24, %v2613_v26  ;;  %v2626_v26 = vld [vmem:[%s24330_s7 + $0x20] sm:$0xff] }
 0x625   : > { %v2500_v30 = vpop.f32.mrb[32].mxu0 }
 0x626   : > { %v2502_v31 = vpop.f32.mrb[33].mxu0  ;;  %v18130_v32 = vpack.i.bf16 %v2500_v30, %v2494_v25  ;;  %v19053_v33 = vpack.c.bf16 %v2500_v30, %v2494_v25  ;;  %v2625_v25 = vld [vmem:[%s24330_s7 + $0x18] sm:$0xff] }
 0x627   : > { %v18190_v34 = vpack.i.bf16 %v2502_v31, %v2496_v28  ;;  %v19055_v35 = vpack.c.bf16 %v2502_v31, %v2496_v28 }
 0x628   : > { %18131 = vrot.lane.b32.xlu0 %v18130_v32, %s18420_s0 }
 0x629   : > { %v2506_v36 = vpop.f32.mrb[34].mxu0 }
 0x62a   : > { %v2508_v37 = vpop.f32.mrb[35].mxu0 }
 0x62c   : > { %18141 = vrot.lane.b32.xlu0 %v18120_v7, %s18419_s3 }
 0x62d   : > { %v2512_v39 = vpop.f32.mrb[36].mxu0 }
 0x62e   : > { %v2514_v40 = vpop.f32.mrb[37].mxu0  ;;  %v18135_v41 = vpack.i.bf16 %v2512_v39, %v2506_v36  ;;  %v19063_v42 = vpack.c.bf16 %v2512_v39, %v2506_v36 }
 0x62f   : > { %v18195_v43 = vpack.i.bf16 %v2514_v40, %v2508_v37  ;;  %v19065_v44 = vpack.c.bf16 %v2514_v40, %v2508_v37  ;;  %v2629_v40 = vld [vmem:[%s24330_s7 + $0x38] sm:$0xff] }
 0x630   : > { %18151 = vrot.lane.b32.xlu0 %v18130_v32, %s18419_s3  ;;  %18136 = vrot.lane.b32.xlu1 %v18135_v41, %s18420_s0 }
 0x634   : > { %18161 = vrot.lane.b32.xlu0 %v18120_v7, %s24331_s28  ;;  %18146 = vrot.lane.b32.xlu1 %v18125_v20, %s18419_s3 }
 0x638   : > { %18171 = vrot.lane.b32.xlu0 %v18130_v32, %s24331_s28  ;;  %18156 = vrot.lane.b32.xlu1 %v18135_v41, %s18419_s3 }
 0x63c   : > { %18181 = vrot.lane.b32.xlu0 %v18180_v11, %s18420_s0  ;;  %18166 = vrot.lane.b32.xlu1 %v18125_v20, %s24331_s28 }
 0x640   : > { %18191 = vrot.lane.b32.xlu0 %v18190_v34, %s18420_s0  ;;  %18176 = vrot.lane.b32.xlu1 %v18135_v41, %s24331_s28  ;;  %v13125_v41 = vld [vmem:[%s24330_s7 + $0x80] sm:$0xff] }
 0x644   : > { %18201 = vrot.lane.b32.xlu0 %v18180_v11, %s18419_s3  ;;  %18186 = vrot.lane.b32.xlu1 %v18185_v22, %s18420_s0 }
 0x648   : > { %18211 = vrot.lane.b32.xlu0 %v18190_v34, %s18419_s3  ;;  %18196 = vrot.lane.b32.xlu1 %v18195_v43, %s18420_s0  ;;  %s24332_s0 = sld [smem:[#allocation145_spill]] }
 0x64c   : > { %18221 = vrot.lane.b32.xlu0 %v18180_v11, %s24331_s28  ;;  %18206 = vrot.lane.b32.xlu1 %v18185_v22, %s18419_s3  ;;  %v2622_v11 = vld [vmem:[%s24330_s7] sm:$0xff] }
 0x650   : > { %18231 = vrot.lane.b32.xlu0 %v18190_v34, %s24331_s28  ;;  %18216 = vrot.lane.b32.xlu1 %v18195_v43, %s18419_s3  ;;  %v2628_v34 = vld [vmem:[%s24330_s7 + $0x30] sm:$0xff]  ;;  %s24368_s3 = sld [smem:[#allocation140_spill]] }
 0x654   : > { %18226 = vrot.lane.b32.xlu1 %v18185_v22, %s24331_s28 }
 0x656   : > { %s20119_s22 = scalar_lea.vmem %s24368_s3, %s13821_s2  ;;  %s770_s2 = scalar_lea.vmem %s23938_s23, %s13037_s1 }
 0x658   : > { %18236 = vrot.lane.b32.xlu1 %v18195_v43, %s24331_s28 }
 0x68a   : > { %v18122_v45 = vpop.permute.xlu0 %18121 }
 0x68b   : > { %v18124_v46 = vunpack.i.h.bf16 %v18122_v45  ;;  %v18123_v47 = vunpack.i.l.bf16 %v18122_v45 }
 0x68d   : > { %v16908_v48 = vpack.c.bf16 %v18124_v46, %v18123_v47  ;;  %v13126_v47 = vld [vmem:[%s24330_s7 + $0x88] sm:$0xff] }
 0x68f   : > { %16909 = vmatprep.subr.bf16.mxu1 %v16908_v48 }
 0x690   : > { %16911 = vmatpush3.bf16.msra.mxu1 %v16908_v48  ;;  %v13127_v48 = vld [vmem:[%s24330_s7 + $0x90] sm:$0xff] }
 0x692   : > { %v18127_v49 = vpop.permute.xlu1 %18126 }
 0x693   : > { %v18129_v50 = vunpack.i.h.bf16 %v18127_v49  ;;  %v18128_v51 = vunpack.i.l.bf16 %v18127_v49 }
 0x695   : > { %v16912_v52 = vpack.c.bf16 %v18129_v50, %v18128_v51 }
 0x697   : > { %16913 = vmatprep.subr.bf16.mxu1 %v16912_v52 }
 0x698   : > { %16915 = vmatpush3.bf16.msra.mxu1 %v16912_v52 }
 0x69a   : > { %v18132_v53 = vpop.permute.xlu0 %18131 }
 0x69b   : > { %v18134_v54 = vunpack.i.h.bf16 %v18132_v53  ;;  %v18133_v55 = vunpack.i.l.bf16 %v18132_v53  ;;  %v13128_v53 = vld [vmem:[%s24330_s7 + $0x98] sm:$0xff] }
 0x69d   : > { %v16916_v56 = vpack.c.bf16 %v18134_v54, %v18133_v55  ;;  %v13129_v54 = vld [vmem:[%s24330_s7 + $0xa0] sm:$0xff] }
 0x69e   : > { %v18142_v1 = vpop.permute.xlu0 %18141 }
 0x69f   : > { %16917 = vmatprep.subr.bf16.mxu1 %v16916_v56  ;;  %v18144_v6 = vunpack.i.h.bf16 %v18142_v1  ;;  %v18143_v7 = vunpack.i.l.bf16 %v18142_v1  ;;  %v13144_v1 = vld [vmem:[%s24330_s7 + $0xd8] sm:$0xff] }
 0x6a0   : > { %16919 = vmatpush3.bf16.msra.mxu1 %v16916_v56 }
 0x6a1   : > { %v16940_v15 = vpack.c.bf16 %v18144_v6, %v18143_v7  ;;  %v13147_v6 = vld [vmem:[%s24330_s7 + $0xf0] sm:$0xff] }
 0x6a2   : > { %v18137_v57 = vpop.permute.xlu1 %18136  ;;  %v18152_v16 = vpop.permute.xlu0 %18151 }
 0x6a3   : > { %v18139_v58 = vunpack.i.h.bf16 %v18137_v57  ;;  %v18138_v59 = vunpack.i.l.bf16 %v18137_v57  ;;  %v18154_v20 = vunpack.i.h.bf16 %v18152_v16 }
 0x6a5   : > { %v16920_v60 = vpack.c.bf16 %v18139_v58, %v18138_v59  ;;  %v13130_v58 = vld [vmem:[%s24330_s7 + $0xa8] sm:$0xff]  ;;  %v13131_v59 = vld [vmem:[%s24330_s7 + $0xb0] sm:$0xff] }
 0x6a6   : > { %v18162_v32 = vpop.permute.xlu0 %18161 }
 0x6a7   : > { %16921 = vmatprep.subr.bf16.mxu1 %v16920_v60  ;;  %v18164_v36 = vunpack.i.h.bf16 %v18162_v32  ;;  %v18163_v37 = vunpack.i.l.bf16 %v18162_v32  ;;  %v13163_v32 = vld [vmem:[%s24330_s7 + $0x130] sm:$0xff] }
 0x6a8   : > { %16923 = vmatpush3.bf16.msra.mxu1 %v16920_v60 }
 0x6a9   : > { %16925 = vmatprep.subr.bf16.mxu1 %v19037_v9  ;;  %v16956_v45 = vpack.c.bf16 %v18164_v36, %v18163_v37 }
 0x6aa   : > { %v18172_v46 = vpop.permute.xlu0 %18171 }
 0x6ab   : > { %15145 = vmatmul.mubr.msk.f32.vlgmr.msra.gmra.mrb[14].mxu1 %vm2671_vm2, %v13102_v61  ;;  %v18174_v49 = vunpack.i.h.bf16 %v18172_v46  ;;  %v18173_v50 = vunpack.i.l.bf16 %v18172_v46  ;;  %v13132_v61 = vld [vmem:[%s24330_s7 + $0xb8] sm:$0xff]  ;;  %v13175_v46 = vld [vmem:[%s24330_s7 + $0x150] sm:$0xff] }
 0x6ac   : > { %16927 = vmatpush3.bf16.msra.mxu1 %v19037_v9  ;;  %15147 = vmatprep.mubr.msk.f32.mxu1 %vm2671_vm2, %v13103_v62  ;;  %v18147_v9 = vpop.permute.xlu1 %18146  ;;  %v13141_v62 = vld [vmem:[%s24330_s7 + $0xc0] sm:$0xff] }
 0x6ad   : > { %16929 = vmatprep.subr.bf16.mxu1 %v19046_v21  ;;  %v18149_v27 = vunpack.i.h.bf16 %v18147_v9  ;;  %v18148_v14 = vunpack.i.l.bf16 %v18147_v9  ;;  %v16964_v57 = vpack.c.bf16 %v18174_v49, %v18173_v50 }
 0x6af   : > { %15148 = vmatmul.mubr.msk.f32.gmra.mrb[16].mxu1 %vm2671_vm2, %v13104_v63  ;;  %v16944_v22 = vpack.c.bf16 %v18149_v27, %v18148_v14  ;;  %v13142_v63 = vld [vmem:[%s24330_s7 + $0xc8] sm:$0xff] }
 0x6b0   : > { %16931 = vmatpush3.bf16.msra.mxu1 %v19046_v21  ;;  %15150 = vmatprep.mubr.msk.f32.mxu1 %vm2671_vm2, %v13105_v0  ;;  %v18153_v21 = vunpack.i.l.bf16 %v18152_v16  ;;  %v18157_v24 = vpop.permute.xlu1 %18156  ;;  %v13143_v0 = vld [vmem:[%s24330_s7 + $0xd0] sm:$0xff] }
 0x6b1   : > { %16933 = vmatprep.subr.bf16.mxu1 %v19053_v33  ;;  %v18159_v28 = vunpack.i.h.bf16 %v18157_v24  ;;  %v18158_v30 = vunpack.i.l.bf16 %v18157_v24  ;;  %v13161_v24 = vld [vmem:[%s24330_s7 + $0x120] sm:$0xff] }
 0x6b2   : > { %v16948_v31 = vpack.c.bf16 %v18154_v20, %v18153_v21 }
 0x6b3   : > { %15151 = vmatmul.mubr.msk.f32.gmra.mrb[18].mxu1 %vm2671_vm2, %v13106_v3  ;;  %v16952_v38 = vpack.c.bf16 %v18159_v28, %v18158_v30  ;;  %v13145_v3 = vld [vmem:[%s24330_s7 + $0xe0] sm:$0xff] }
 0x6b4   : > { %16935 = vmatpush3.bf16.msra.mxu1 %v19053_v33  ;;  %15153 = vmatprep.mubr.msk.f32.mxu1 %vm2671_vm2, %v13107_v5  ;;  %v2627_v33 = vld [vmem:[%s24330_s7 + $0x28] sm:$0xff]  ;;  %v18167_v39 = vpop.permute.xlu1 %18166  ;;  %v18182_v5 = vpop.permute.xlu0 %18181 }
 0x6b5   : > { %16937 = vmatprep.subr.bf16.mxu1 %v19063_v42  ;;  %v18168_v43 = vunpack.i.l.bf16 %v18167_v39  ;;  %v18184_v7 = vunpack.i.h.bf16 %v18182_v5  ;;  %v18183_v9 = vunpack.i.l.bf16 %v18182_v5 }
 0x6b7   : > { %15154 = vmatmul.mubr.msk.f32.gmra.mrb[20].mxu1 %vm2671_vm2, %v13108_v10 }
 0x6b8   : > { %16939 = vmatpush3.bf16.msra.mxu1 %v19063_v42  ;;  %15172 = vmatprep.mubr.msk.f32.mxu1 %vm2671_vm2, %v2622_v11  ;;  %v18169_v42 = vunpack.i.h.bf16 %v18167_v39  ;;  %v18177_v52 = vpop.permute.xlu1 %18176  ;;  %v13157_v11 = vld [vmem:[%s24330_s7 + $0x100] sm:$0xff]  ;;  %v18192_v16 = vpop.permute.xlu0 %18191 }
 0x6b9   : > { %16941 = vmatprep.subr.bf16.mxu1 %v16940_v15  ;;  %v18179_v55 = vunpack.i.h.bf16 %v18177_v52  ;;  %v18178_v56 = vunpack.i.l.bf16 %v18177_v52  ;;  %v18193_v20 = vunpack.i.l.bf16 %v18192_v16  ;;  %v13173_v39 = vld [vmem:[%s24330_s7 + $0x140] sm:$0xff] }
 0x6ba   : > { %v16960_v51 = vpack.c.bf16 %v18169_v42, %v18168_v43  ;;  %v13177_v52 = vld [vmem:[%s24330_s7 + $0x160] sm:$0xff] }
 0x6bb   : > { %15173 = vmatmul.mubr.msk.f32.vlgmr.msra.gmra.mrb[14].mxu1 %vm2671_vm2, %v2623_v18  ;;  %v16968_v60 = vpack.c.bf16 %v18179_v55, %v18178_v56  ;;  %v13159_v18 = vld [vmem:[%s24330_s7 + $0x110] sm:$0xff] }
 0x6bc   : > { %16943 = vmatpush3.bf16.msra.mxu1 %v16940_v15  ;;  %15175 = vmatprep.mubr.msk.f32.mxu1 %vm2671_vm2, %v2624_v19  ;;  %v18187_v10 = vpop.permute.xlu1 %18186  ;;  %v16988_v15 = vpack.c.bf16 %v18184_v7, %v18183_v9  ;;  %v18194_v19 = vunpack.i.h.bf16 %v18192_v16  ;;  %v18202_v30 = vpop.permute.xlu0 %18201  ;;  %v13191_v7 = vld [vmem:[%s24330_s7 + $0x190] sm:$0xff] }
 0x6bd   : > { %16945 = vmatprep.subr.bf16.mxu1 %v16944_v22  ;;  %v18189_v27 = vunpack.i.h.bf16 %v18187_v10  ;;  %v18188_v14 = vunpack.i.l.bf16 %v18187_v10 }
 0x6be   : > { %v16996_v28 = vpack.c.bf16 %v18194_v19, %v18193_v20  ;;  %v13195_v19 = vld [vmem:[%s24330_s7 + $0x1b0] sm:$0xff] }
 0x6bf   : > { %15176 = vmatmul.mubr.msk.f32.gmra.mrb[16].mxu1 %vm2671_vm2, %v2625_v25  ;;  %v16992_v21 = vpack.c.bf16 %v18189_v27, %v18188_v14  ;;  %v13192_v27 = vld [vmem:[%s24330_s7 + $0x198] sm:$0xff]  ;;  %v13193_v14 = vld [vmem:[%s24330_s7 + $0x1a0] sm:$0xff] }
 0x6c0   : > { %16947 = vmatpush3.bf16.msra.mxu1 %v16944_v22  ;;  %15178 = vmatprep.mubr.msk.f32.mxu1 %vm2671_vm2, %v2626_v26  ;;  %v18197_v22 = vpop.permute.xlu1 %18196  ;;  %v18212_v43 = vpop.permute.xlu0 %18211 }
 0x6c1   : > { %16949 = vmatprep.subr.bf16.mxu1 %v16948_v31  ;;  %v18199_v25 = vunpack.i.h.bf16 %v18197_v22  ;;  %v18198_v26 = vunpack.i.l.bf16 %v18197_v22  ;;  %v13205_v22 = vld [vmem:[%s24330_s7 + $0x1c0] sm:$0xff] }
 0x6c3   : > { %15179 = vmatmul.mubr.msk.f32.gmra.mrb[18].mxu1 %vm2671_vm2, %v2627_v33  ;;  %v18204_v33 = vunpack.i.h.bf16 %v18202_v30  ;;  %v17000_v36 = vpack.c.bf16 %v18199_v25, %v18198_v26  ;;  %v13208_v25 = vld [vmem:[%s24330_s7 + $0x1d8] sm:$0xff]  ;;  %v13209_v26 = vld [vmem:[%s24330_s7 + $0x1e0] sm:$0xff] }
 0x6c4   : > { %16951 = vmatpush3.bf16.msra.mxu1 %v16948_v31  ;;  %15181 = vmatprep.mubr.msk.f32.mxu1 %vm2671_vm2, %v2628_v34  ;;  %v13162_v31 = vld [vmem:[%s24330_s7 + $0x128] sm:$0xff]  ;;  %v18203_v34 = vunpack.i.l.bf16 %v18202_v30  ;;  %v18207_v37 = vpop.permute.xlu1 %18206  ;;  %v18222_v56 = vpop.permute.xlu0 %18221  ;;  %v13221_v30 = vld [vmem:[%s24330_s7 + $0x200] sm:$0xff] }
 0x6c5   : > { %16953 = vmatprep.subr.bf16.mxu1 %v16952_v38 }
 0x6c6   : > { %v17004_v42 = vpack.c.bf16 %v18204_v33, %v18203_v34  ;;  %v13226_v33 = vld [vmem:[%s24330_s7 + $0x228] sm:$0xff]  ;;  %v13227_v34 = vld [vmem:[%s24330_s7 + $0x230] sm:$0xff] }
 0x6c7   : > { %15182 = vmatmul.mubr.msk.f32.gmra.mrb[20].mxu1 %vm2671_vm2, %v2629_v40  ;;  %v18209_v40 = vunpack.i.h.bf16 %v18207_v37 }
 0x6c8   : > { %16955 = vmatpush3.bf16.msra.mxu1 %v16952_v38  ;;  %15200 = vmatprep.mubr.msk.f32.mxu1 %vm2671_vm2, %v13125_v41  ;;  %v13164_v38 = vld [vmem:[%s24330_s7 + $0x138] sm:$0xff]  ;;  %v18208_v41 = vunpack.i.l.bf16 %v18207_v37  ;;  %v18217_v50 = vpop.permute.xlu1 %18216  ;;  %v4111_v37 = vld [vmem:[%s24332_s0] sm:$0xff] }
 0x6c9   : > { %16957 = vmatprep.subr.bf16.mxu1 %v16956_v45  ;;  %15396 = vmatprep.mubr.msk.f32.mxu0 %vm2671_vm2, %v4111_v37 }
 0x6ca   : > { %v17008_v49 = vpack.c.bf16 %v18209_v40, %v18208_v41  ;;  %v842_v40 = vld [vmem:[%s23926_s11 + $0x18] sm:$0xff]  ;;  %v840_v41 = vld [vmem:[%s23926_s11 + $0x8] sm:$0xff] }
 0x6cb   : > { %15201 = vmatmul.mubr.msk.f32.vlgmr.msra.gmra.mrb[14].mxu1 %vm2671_vm2, %v13126_v47  ;;  %v18214_v47 = vunpack.i.h.bf16 %v18212_v43 }
 0x6cc   : > { %16959 = vmatpush3.bf16.msra.mxu1 %v16956_v45  ;;  %15203 = vmatprep.mubr.msk.f32.mxu1 %vm2671_vm2, %v13127_v48  ;;  %v13174_v45 = vld [vmem:[%s24330_s7 + $0x148] sm:$0xff]  ;;  %v18213_v48 = vunpack.i.l.bf16 %v18212_v43 }
 0x6cd   : > { %16961 = vmatprep.subr.bf16.mxu1 %v16960_v51  ;;  %v844_v43 = vld [vmem:[%s23926_s11 + $0x28] sm:$0xff] }
 0x6ce   : > { %v17012_v55 = vpack.c.bf16 %v18214_v47, %v18213_v48  ;;  %v845_v47 = vld [vmem:[%s23926_s11 + $0x30] sm:$0xff]  ;;  %v848_v48 = vld [vmem:[%s23926_s11 + $0x48] sm:$0xff] }
 0x6cf   : > { %15204 = vmatmul.mubr.msk.f32.gmra.mrb[16].mxu1 %vm2671_vm2, %v13128_v53  ;;  %v18219_v53 = vunpack.i.h.bf16 %v18217_v50 }
 0x6d0   : > { %16963 = vmatpush3.bf16.msra.mxu1 %v16960_v51  ;;  %15206 = vmatprep.mubr.msk.f32.mxu1 %vm2671_vm2, %v13129_v54  ;;  %v13176_v51 = vld [vmem:[%s24330_s7 + $0x158] sm:$0xff]  ;;  %v18218_v54 = vunpack.i.l.bf16 %v18217_v50 }
 0x6d1   : > { %16965 = vmatprep.subr.bf16.mxu1 %v16964_v57  ;;  %v850_v50 = vld [vmem:[%s23926_s11 + $0x58] sm:$0xff] }
 0x6d3   : > { %15207 = vmatmul.mubr.msk.f32.gmra.mrb[18].mxu1 %vm2671_vm2, %v13130_v58  ;;  %v13179_v58 = vld [vmem:[%s24330_s7 + $0x170] sm:$0xff] }
 0x6d4   : > { %16967 = vmatpush3.bf16.msra.mxu1 %v16964_v57  ;;  %15209 = vmatprep.mubr.msk.f32.mxu1 %vm2671_vm2, %v13131_v59  ;;  %v13178_v57 = vld [vmem:[%s24330_s7 + $0x168] sm:$0xff]  ;;  %v18224_v59 = vunpack.i.h.bf16 %v18222_v56 }
 0x6d5   : > { %16969 = vmatprep.subr.bf16.mxu1 %v16968_v60 }
 0x6d7   : > { %15210 = vmatmul.mubr.msk.f32.gmra.mrb[20].mxu1 %vm2671_vm2, %v13132_v61  ;;  %v17016_v61 = vpack.c.bf16 %v18219_v53, %v18218_v54  ;;  %v851_v53 = vld [vmem:[%s23926_s11 + $0x60] sm:$0xff]  ;;  %v854_v54 = vld [vmem:[%s23926_s11 + $0x78] sm:$0xff] }
 0x6d8   : > { %16971 = vmatpush3.bf16.msra.mxu1 %v16968_v60  ;;  %15228 = vmatprep.mubr.msk.f32.mxu1 %vm2671_vm2, %v13141_v62  ;;  %v18223_v60 = vunpack.i.l.bf16 %v18222_v56  ;;  %v18227_v62 = vpop.permute.xlu1 %18226  ;;  %v856_v56 = vld [vmem:[%s23926_s11 + $0x88] sm:$0xff] }
 0x6d9   : > { %16973 = vmatprep.subr.bf16.mxu1 %v19039_v12 }
 0x6da   : > { %v17020_v5 = vpack.c.bf16 %v18224_v59, %v18223_v60  ;;  %v857_v59 = vld [vmem:[%s23926_s11 + $0x90] sm:$0xff]  ;;  %v860_v60 = vld [vmem:[%s23926_s11 + $0xa8] sm:$0xff] }
 0x6db   : > { %15229 = vmatmul.mubr.msk.f32.vlgmr.msra.gmra.mrb[14].mxu1 %vm2671_vm2, %v13142_v63  ;;  %v13180_v63 = vld [vmem:[%s24330_s7 + $0x178] sm:$0xff] }
 0x6dc   : > { %16975 = vmatpush3.bf16.msra.mxu1 %v19039_v12  ;;  %15231 = vmatprep.mubr.msk.f32.mxu1 %vm2671_vm2, %v13143_v0  ;;  %v13146_v12 = vld [vmem:[%s24330_s7 + $0xe8] sm:$0xff]  ;;  %v13189_v0 = vld [vmem:[%s24330_s7 + $0x180] sm:$0xff] }
 0x6dd   : > { %16977 = vmatprep.subr.bf16.mxu1 %v19048_v23 }
 0x6df   : > { %15232 = vmatmul.mubr.msk.f32.gmra.mrb[16].mxu1 %vm2671_vm2, %v13144_v1  ;;  %v18229_v1 = vunpack.i.h.bf16 %v18227_v62 }
 0x6e0   : > { %16979 = vmatpush3.bf16.msra.mxu1 %v19048_v23  ;;  %15234 = vmatprep.mubr.msk.f32.mxu1 %vm2671_vm2, %v13145_v3  ;;  %v13148_v23 = vld [vmem:[%s24330_s7 + $0xf8] sm:$0xff]  ;;  %v18228_v3 = vunpack.i.l.bf16 %v18227_v62 }
 0x6e1   : > { %16981 = vmatprep.subr.bf16.mxu1 %v19055_v35 }
 0x6e3   : > { %15235 = vmatmul.mubr.msk.f32.gmra.mrb[18].mxu1 %vm2671_vm2, %v13146_v12  ;;  %v18232_v12 = vpop.permute.xlu0 %18231 }
 0x6e4   : > { %16983 = vmatpush3.bf16.msra.mxu1 %v19055_v35  ;;  %15237 = vmatprep.mubr.msk.f32.mxu1 %vm2671_vm2, %v13147_v6  ;;  %v13158_v35 = vld [vmem:[%s24330_s7 + $0x108] sm:$0xff]  ;;  %v18234_v9 = vunpack.i.h.bf16 %v18232_v12  ;;  %v18233_v10 = vunpack.i.l.bf16 %v18232_v12 }
 0x6e5   : > { %16985 = vmatprep.subr.bf16.mxu1 %v19065_v44  ;;  %v13190_v6 = vld [vmem:[%s24330_s7 + $0x188] sm:$0xff] }
 0x6e7   : > { %15238 = vmatmul.mubr.msk.f32.gmra.mrb[20].mxu1 %vm2671_vm2, %v13148_v23  ;;  %v17024_v23 = vpack.c.bf16 %v18229_v1, %v18228_v3  ;;  %v862_v3 = vld [vmem:[%s23926_s11 + $0xb8] sm:$0xff] }
 0x6e8   : > { %16987 = vmatpush3.bf16.msra.mxu1 %v19065_v44  ;;  %15256 = vmatprep.mubr.msk.f32.mxu1 %vm2671_vm2, %v13157_v11  ;;  %v13160_v44 = vld [vmem:[%s24330_s7 + $0x118] sm:$0xff]  ;;  %v18237_v11 = vpop.permute.xlu1 %18236 }
 0x6e9   : > { %16989 = vmatprep.subr.bf16.mxu1 %v16988_v15  ;;  %v18238_v16 = vunpack.i.l.bf16 %v18237_v11 }
 0x6eb   : > { %15257 = vmatmul.mubr.msk.f32.vlgmr.msra.gmra.mrb[14].mxu1 %vm2671_vm2, %v13158_v35  ;;  %v17028_v35 = vpack.c.bf16 %v18234_v9, %v18233_v10  ;;  %v861_v9 = vld [vmem:[%s23926_s11 + $0xb0] sm:$0xff] }
 0x6ec   : > { %16991 = vmatpush3.bf16.msra.mxu1 %v16988_v15  ;;  %15259 = vmatprep.mubr.msk.f32.mxu1 %vm2671_vm2, %v13159_v18  ;;  %v18239_v15 = vunpack.i.h.bf16 %v18237_v11  ;;  %v13194_v18 = vld [vmem:[%s24330_s7 + $0x1a8] sm:$0xff] }
 0x6ed   : > { %16993 = vmatprep.subr.bf16.mxu1 %v16992_v21 }
 0x6ee   : > { %v17032_v20 = vpack.c.bf16 %v18239_v15, %v18238_v16 }
 0x6ef   : > { %15260 = vmatmul.mubr.msk.f32.gmra.mrb[16].mxu1 %vm2671_vm2, %v13160_v44  ;;  %v13206_v44 = vld [vmem:[%s24330_s7 + $0x1c8] sm:$0xff] }
 0x6f0   : > { %16995 = vmatpush3.bf16.msra.mxu1 %v16992_v21  ;;  %15262 = vmatprep.mubr.msk.f32.mxu1 %vm2671_vm2, %v13161_v24  ;;  %v13196_v21 = vld [vmem:[%s24330_s7 + $0x1b8] sm:$0xff]  ;;  %v13207_v24 = vld [vmem:[%s24330_s7 + $0x1d0] sm:$0xff] }
 0x6f1   : > { %16997 = vmatprep.subr.bf16.mxu1 %v16996_v28 }
 0x6f3   : > { %15263 = vmatmul.mubr.msk.f32.gmra.mrb[18].mxu1 %vm2671_vm2, %v13162_v31  ;;  %v13223_v31 = vld [vmem:[%s24330_s7 + $0x210] sm:$0xff] }
 0x6f4   : > { %16999 = vmatpush3.bf16.msra.mxu1 %v16996_v28  ;;  %15265 = vmatprep.mubr.msk.f32.mxu1 %vm2671_vm2, %v13163_v32  ;;  %v13211_v28 = vld [vmem:[%s24330_s7 + $0x1f0] sm:$0xff]  ;;  %v13224_v32 = vld [vmem:[%s24330_s7 + $0x218] sm:$0xff] }
 0x6f5   : > { %17001 = vmatprep.subr.bf16.mxu1 %v17000_v36 }
 0x6f7   : > { %15266 = vmatmul.mubr.msk.f32.gmra.mrb[20].mxu1 %vm2671_vm2, %v13164_v38  ;;  %v839_v38 = vld [vmem:[%s23926_s11] sm:$0xff] }
 0x6f8   : > { %17003 = vmatpush3.bf16.msra.mxu1 %v17000_v36  ;;  %15284 = vmatprep.mubr.msk.f32.mxu1 %vm2671_vm2, %v13173_v39  ;;  %v13228_v36 = vld [vmem:[%s24330_s7 + $0x238] sm:$0xff]  ;;  %v18422_v39 = vmov 0  }
 0x6f9   : > { %17005 = vmatprep.subr.bf16.mxu1 %v17004_v42  ;;  %18240 = vset.pattern.permute.xlu0 %v18422_v39 }
 0x6fa   : > { %18241 = vset.pattern.permute.xlu1 %v18422_v39  ;;  %5043 = vperm.xlu0 %18240, %v839_v38  }
 0x6fb   : > { %15285 = vmatmul.mubr.msk.f32.vlgmr.msra.gmra.mrb[14].mxu1 %vm2671_vm2, %v13174_v45  ;;  %5048 = vperm.xlu1 %18241, %v840_v41   ;;  %v843_v45 = vld [vmem:[%s23926_s11 + $0x20] sm:$0xff] }
 0x6fc   : > { %17007 = vmatpush3.bf16.msra.mxu1 %v17004_v42  ;;  %15287 = vmatprep.mubr.msk.f32.mxu1 %vm2671_vm2, %v13175_v46  ;;  %v841_v42 = vld [vmem:[%s23926_s11 + $0x10] sm:$0xff]  ;;  %v846_v46 = vld [vmem:[%s23926_s11 + $0x38] sm:$0xff] }
 0x6fd   : > { %17009 = vmatprep.subr.bf16.mxu1 %v17008_v49 }
 0x6fe   : > { %5058 = vperm.xlu0 %18240, %v842_v40   ;;  %v867_v40 = vld [vmem:[%s23926_s11 + $0xe0] sm:$0xff] }
 0x6ff   : > { %15288 = vmatmul.mubr.msk.f32.gmra.mrb[16].mxu1 %vm2671_vm2, %v13176_v51  ;;  %5053 = vperm.xlu1 %18241, %v841_v42   ;;  %v849_v51 = vld [vmem:[%s23926_s11 + $0x50] sm:$0xff] }
 0x700   : > { %17011 = vmatpush3.bf16.msra.mxu1 %v17008_v49  ;;  %15290 = vmatprep.mubr.msk.f32.mxu1 %vm2671_vm2, %v13177_v52  ;;  %v847_v49 = vld [vmem:[%s23926_s11 + $0x40] sm:$0xff]  ;;  %v852_v52 = vld [vmem:[%s23926_s11 + $0x68] sm:$0xff]  ;;  %v869_v42 = vld [vmem:[%s23926_s11 + $0xf0] sm:$0xff] }
 0x701   : > { %17013 = vmatprep.subr.bf16.mxu1 %v17012_v55 }
 0x702   : > { %5068 = vperm.xlu0 %18240, %v844_v43  }
 0x703   : > { %15291 = vmatmul.mubr.msk.f32.gmra.mrb[18].mxu1 %vm2671_vm2, %v13178_v57  ;;  %5063 = vperm.xlu1 %18241, %v843_v45   ;;  %v855_v57 = vld [vmem:[%s23926_s11 + $0x80] sm:$0xff] }
 0x704   : > { %17015 = vmatpush3.bf16.msra.mxu1 %v17012_v55  ;;  %15293 = vmatprep.mubr.msk.f32.mxu1 %vm2671_vm2, %v13179_v58  ;;  %v853_v55 = vld [vmem:[%s23926_s11 + $0x70] sm:$0xff]  ;;  %v858_v58 = vld [vmem:[%s23926_s11 + $0x98] sm:$0xff] }
 0x705   : > { %17017 = vmatprep.subr.bf16.mxu1 %v17016_v61 }
 0x706   : > { %5078 = vperm.xlu0 %18240, %v846_v46   ;;  %v870_v46 = vld [vmem:[%s23926_s11 + $0xf8] sm:$0xff] }
 0x707   : > { %15294 = vmatmul.mubr.msk.f32.gmra.mrb[20].mxu1 %vm2671_vm2, %v13180_v63  ;;  %5073 = vperm.xlu1 %18241, %v845_v47   ;;  %v859_v63 = vld [vmem:[%s23926_s11 + $0xa0] sm:$0xff]  ;;  %v776_v47 = vld [vmem:[%s23924_s9 + $0x8] sm:$0xff] }
 0x708   : > { %17019 = vmatpush3.bf16.msra.mxu1 %v17016_v61  ;;  %15312 = vmatprep.mubr.msk.f32.mxu1 %vm2671_vm2, %v13189_v0  ;;  %v13237_v61 = vld [vmem:[%s23931_s16] ss:$0 sm:$0xff] }
 0x709   : > { %17021 = vmatprep.subr.bf16.mxu1 %v17020_v5 }
 0x70a   : > { %5088 = vperm.xlu0 %18240, %v848_v48   ;;  %v4112_v48 = vld [vmem:[%s24332_s0 + $0x8] sm:$0xff] }
 0x70b   : > { %15313 = vmatmul.mubr.msk.f32.vlgmr.msra.gmra.mrb[14].mxu1 %vm2671_vm2, %v13190_v6  ;;  %5083 = vperm.xlu1 %18241, %v847_v49   ;;  %v4113_v49 = vld [vmem:[%s24332_s0 + $0x10] sm:$0xff] }
 0x70c   : > { %17023 = vmatpush3.bf16.msra.mxu1 %v17020_v5  ;;  %15315 = vmatprep.mubr.msk.f32.mxu1 %vm2671_vm2, %v13191_v7 }
 0x70d   : > { %17025 = vmatprep.subr.bf16.mxu1 %v17024_v23 }
 0x70e   : > { %5098 = vperm.xlu0 %18240, %v850_v50   ;;  %v778_v50 = vld [vmem:[%s23924_s9 + $0x18] sm:$0xff] }
 0x70f   : > { %15316 = vmatmul.mubr.msk.f32.gmra.mrb[16].mxu1 %vm2671_vm2, %v13192_v27  ;;  %5093 = vperm.xlu1 %18241, %v849_v51   ;;  %v864_v27 = vld [vmem:[%s23926_s11 + $0xc8] sm:$0xff]  ;;  %v775_v51 = vld [vmem:[%s23924_s9] sm:$0xff] }
 0x710   : > { %17027 = vmatpush3.bf16.msra.mxu1 %v17024_v23  ;;  %15318 = vmatprep.mubr.msk.f32.mxu1 %vm2671_vm2, %v13193_v14 }
 0x711   : > { %17029 = vmatprep.subr.bf16.mxu1 %v17028_v35 }
 0x712   : > { %5108 = vperm.xlu0 %18240, %v852_v52   ;;  %v4114_v52 = vld [vmem:[%s24332_s0 + $0x18] sm:$0xff] }
 0x713   : > { %15319 = vmatmul.mubr.msk.f32.gmra.mrb[18].mxu1 %vm2671_vm2, %v13194_v18  ;;  %5103 = vperm.xlu1 %18241, %v851_v53   ;;  %v4115_v53 = vld [vmem:[%s24332_s0 + $0x20] sm:$0xff] }
 0x714   : > { %17031 = vmatpush3.bf16.msra.mxu1 %v17028_v35  ;;  %15321 = vmatprep.mubr.msk.f32.mxu1 %vm2671_vm2, %v13195_v19 }
 0x715   : > { %17033 = vmatprep.subr.bf16.mxu1 %v17032_v20 }
 0x716   : > { %5118 = vperm.xlu0 %18240, %v854_v54   ;;  %v780_v54 = vld [vmem:[%s23924_s9 + $0x28] sm:$0xff] }
 0x717   : > { %15322 = vmatmul.mubr.msk.f32.gmra.mrb[20].mxu1 %vm2671_vm2, %v13196_v21  ;;  %5113 = vperm.xlu1 %18241, %v853_v55   ;;  %v777_v55 = vld [vmem:[%s23924_s9 + $0x10] sm:$0xff] }
 0x718   : > { %17035 = vmatpush3.bf16.msra.mxu1 %v17032_v20  ;;  %15340 = vmatprep.mubr.msk.f32.mxu1 %vm2671_vm2, %v13205_v22  ;;  %v863_v20 = vld [vmem:[%s23926_s11 + $0xc0] sm:$0xff] }
 0x719   : > { %17037 = vmatprep.subr.bf16.mxu1 %v19035_v2 }
 0x71a   : > { %5128 = vperm.xlu0 %18240, %v856_v56   ;;  %v4117_v56 = vld [vmem:[%s24332_s0 + $0x30] sm:$0xff] }
 0x71b   : > { %15341 = vmatmul.mubr.msk.f32.vlgmr.msra.gmra.mrb[14].mxu1 %vm2671_vm2, %v13206_v44  ;;  %5123 = vperm.xlu1 %18241, %v855_v57   ;;  %v782_v57 = vld [vmem:[%s23924_s9 + $0x38] sm:$0xff] }
 0x71c   : > { %17039 = vmatpush3.bf16.msra.mxu1 %v19035_v2  ;;  %15343 = vmatprep.mubr.msk.f32.mxu1 %vm2671_vm2, %v13207_v24  ;;  %v13210_v2 = vld [vmem:[%s24330_s7 + $0x1e8] sm:$0xff]  ;;  %v866_v24 = vld [vmem:[%s23926_s11 + $0xd8] sm:$0xff] }
 0x71d   : > { %17041 = vmatprep.subr.bf16.mxu1 %v19041_v13 }
 0x71e   : > { %5138 = vperm.xlu0 %18240, %v858_v58   ;;  %v779_v58 = vld [vmem:[%s23924_s9 + $0x20] sm:$0xff] }
 0x71f   : > { %15344 = vmatmul.mubr.msk.f32.gmra.mrb[16].mxu1 %vm2671_vm2, %v13208_v25  ;;  %5133 = vperm.xlu1 %18241, %v857_v59   ;;  %v4119_v59 = vld [vmem:[%s24332_s0 + $0x40] sm:$0xff] }
 0x720   : > { %17043 = vmatpush3.bf16.msra.mxu1 %v19041_v13  ;;  %15346 = vmatprep.mubr.msk.f32.mxu1 %vm2671_vm2, %v13209_v26  ;;  %v13212_v13 = vld [vmem:[%s24330_s7 + $0x1f8] sm:$0xff] }
 0x721   : > { %17045 = vmatprep.subr.bf16.mxu1 %v19044_v17 }
 0x722   : > { %5148 = vperm.xlu0 %18240, %v860_v60   ;;  %v784_v60 = vld [vmem:[%s23924_s9 + $0x48] sm:$0xff] }
 0x723   : > { %15347 = vmatmul.mubr.msk.f32.gmra.mrb[18].mxu1 %vm2671_vm2, %v13210_v2  ;;  %5143 = vperm.xlu1 %18241, %v859_v63   ;;  %v4121_v63 = vld [vmem:[%s24332_s0 + $0x50] sm:$0xff] }
 0x724   : > { %17047 = vmatpush3.bf16.msra.mxu1 %v19044_v17  ;;  %15349 = vmatprep.mubr.msk.f32.mxu1 %vm2671_vm2, %v13211_v28  ;;  %v13222_v17 = vld [vmem:[%s24330_s7 + $0x208] sm:$0xff] }
 0x725   : > { %17049 = vmatprep.subr.bf16.mxu1 %v19051_v29 }
 0x726   : > { %5158 = vperm.xlu0 %18240, %v862_v3   ;;  %v4123_v3 = vld [vmem:[%s24332_s0 + $0x60] sm:$0xff] }
 0x727   : > { %15350 = vmatmul.mubr.msk.f32.gmra.mrb[20].mxu1 %vm2671_vm2, %v13212_v13  ;;  %5153 = vperm.xlu1 %18241, %v861_v9   ;;  %v4126_v9 = vld [vmem:[%s24332_s0 + $0x78] sm:$0xff] }
 0x728   : > { %17051 = vmatpush3.bf16.msra.mxu1 %v19051_v29  ;;  %15368 = vmatprep.mubr.msk.f32.mxu1 %vm2671_vm2, %v13221_v30  ;;  %v13225_v29 = vld [vmem:[%s24330_s7 + $0x220] sm:$0xff] }
 0x72a   : > { %5168 = vperm.xlu0 %18240, %v864_v27   ;;  %v4129_v27 = vld [vmem:[%s24332_s0 + $0x90] sm:$0xff] }
 0x72b   : > { %15369 = vmatmul.mubr.msk.f32.vlgmr.msra.gmra.mrb[14].mxu1 %vm2671_vm2, %v13222_v17  ;;  %5163 = vperm.xlu1 %18241, %v863_v20   ;;  %v865_v17 = vld [vmem:[%s23926_s11 + $0xd0] sm:$0xff]  ;;  %v798_v20 = vld [vmem:[%s23924_s9 + $0xb8] sm:$0xff] }
 0x72c   : > { %15371 = vmatprep.mubr.msk.f32.mxu1 %vm2671_vm2, %v13223_v31 }
 0x72e   : > { %5178 = vperm.xlu0 %18240, %v866_v24   ;;  %v4136_v24 = vld [vmem:[%s24332_s0 + $0xc8] sm:$0xff] }
 0x72f   : > { %15372 = vmatmul.mubr.msk.f32.gmra.mrb[16].mxu1 %vm2671_vm2, %v13224_v32  ;;  %5173 = vperm.xlu1 %18241, %v865_v17   ;;  %v4141_v17 = vld [vmem:[%s24332_s0 + $0xf0] sm:$0xff] }
 0x730   : > { %15374 = vmatprep.mubr.msk.f32.mxu1 %vm2671_vm2, %v13225_v29 }
 0x733   : > { %15375 = vmatmul.mubr.msk.f32.gmra.mrb[18].mxu1 %vm2671_vm2, %v13226_v33  ;;  %v868_v33 = vld [vmem:[%s23926_s11 + $0xe8] sm:$0xff]  ;;  %5183 = vperm.xlu1 %18241, %v867_v40  }
 0x734   : > { %15377 = vmatprep.mubr.msk.f32.mxu1 %vm2671_vm2, %v13227_v34  ;;  %5188 = vperm.xlu0 %18240, %v868_v33   ;;  %v810_v33 = vld [vmem:[%s23925_s10 + $0x18] sm:$0xff]  ;;  %v816_v40 = vld [vmem:[%s23925_s10 + $0x48] sm:$0xff] }
 0x737   : > { %15378 = vmatmul.mubr.msk.f32.gmra.mrb[20].mxu1 %vm2671_vm2, %v13228_v36  ;;  %5198 = vperm.xlu1 %18241, %v870_v46   ;;  %v793_v46 = vld [vmem:[%s23924_s9 + $0x90] sm:$0xff] }
 0x738   : > { %5193 = vperm.xlu0 %18240, %v869_v42   ;;  %v818_v42 = vld [vmem:[%s23925_s10 + $0x58] sm:$0xff] }
 0x73b   : > { %5302 = vperm.xlu1 %18241, %v775_v51   ;;  %v826_v51 = vld [vmem:[%s23925_s10 + $0x98] sm:$0xff] }
 0x73c   : > { %5307 = vperm.xlu0 %18240, %v776_v47   ;;  %v822_v47 = vld [vmem:[%s23925_s10 + $0x78] sm:$0xff] }
 0x73f   : > { %5312 = vperm.xlu1 %18241, %v777_v55   ;;  %v801_v55 = vld [vmem:[%s23924_s9 + $0xd0] sm:$0xff] }
 0x740   : > { %5317 = vperm.xlu0 %18240, %v778_v50   ;;  %v797_v50 = vld [vmem:[%s23924_s9 + $0xb0] sm:$0xff] }
 0x743   : > { %5322 = vperm.xlu1 %18241, %v779_v58   ;;  %v832_v58 = vld [vmem:[%s23925_s10 + $0xc8] sm:$0xff] }
 0x744   : > { %5327 = vperm.xlu0 %18240, %v780_v54  }
 0x748   : > { %5337 = vperm.xlu0 %18240, %v782_v57   ;;  %v803_v57 = vld [vmem:[%s23924_s9 + $0xe0] sm:$0xff] }
 0x74c   : > { %5347 = vperm.xlu0 %18240, %v784_v60  }
 0x779   : > { %v19746_v54 = vpop.permute.xlu0 %5043 }
 0x77a   : > { %24333 = vst [vmem:[#allocation3_spill] sm:$0xff] %v19746_v54 }
 0x7fe   : > { %v15370_v62 = vpop.f32.mrb[14].mxu1 }
 0x7ff   : > { %v4088_v0 = vadd.f32 %v15370_v62, %v13237_v61  ;;  %v4033_v1 = vpop.f32.mrb[15].mxu1  ;;  %v4120_v62 = vld [vmem:[%s24332_s0 + $0x48] sm:$0xff] }
 0x800   : > { %v4087_v5 = vadd.f32 %v13237_v61, %v4033_v1  ;;  %v4122_v1 = vld [vmem:[%s24332_s0 + $0x58] sm:$0xff] }
 0x801   : > { %v4096_v12 = vmax.f32 %v4088_v0, 0.0  ;;  %v786_v0 = vld [vmem:[%s23924_s9 + $0x58] sm:$0xff] }
 0x802   : > { %v4095_v6 = vmax.f32 %v4087_v5, 0.0  ;;  %v15373_v7 = vpop.f32.mrb[16].mxu1  ;;  %5357 = vperm.xlu0 %18240, %v786_v0   ;;  %v788_v5 = vld [vmem:[%s23924_s9 + $0x68] sm:$0xff]  ;;  %v809_v0 = vld [vmem:[%s23925_s10 + $0x10] sm:$0xff] }
 0x803   : > { %v4104_v10 = vmin.f32 %v4096_v12, 6.0  ;;  %v4090_v23 = vadd.f32 %v15373_v7, %v13237_v61  ;;  %v4043_v11 = vpop.f32.mrb[17].mxu1  ;;  %v4124_v12 = vld [vmem:[%s24332_s0 + $0x68] sm:$0xff]  ;;  %v790_v7 = vld [vmem:[%s23924_s9 + $0x78] sm:$0xff] }
 0x804   : > { %v4103_v14 = vmin.f32 %v4095_v6, 6.0  ;;  %v4089_v15 = vadd.f32 %v13237_v61, %v4043_v11  ;;  %v4125_v6 = vld [vmem:[%s24332_s0 + $0x70] sm:$0xff]  ;;  %v4128_v11 = vld [vmem:[%s24332_s0 + $0x88] sm:$0xff] }
 0x805   : > { %v4098_v16 = vmax.f32 %v4090_v23, 0.0  ;;  %v792_v23 = vld [vmem:[%s23924_s9 + $0x88] sm:$0xff] }
 0x806   : > { %v17052_v35 = vpack.c.bf16 %v4104_v10, %v4103_v14  ;;  %v4097_v18 = vmax.f32 %v4089_v15, 0.0  ;;  %v15376_v19 = vpop.f32.mrb[18].mxu1  ;;  %5367 = vperm.xlu0 %18240, %v788_v5   ;;  %v4127_v10 = vld [vmem:[%s24332_s0 + $0x80] sm:$0xff]  ;;  %v794_v14 = vld [vmem:[%s23924_s9 + $0x98] sm:$0xff] }
 0x807   : > { %v4106_v21 = vmin.f32 %v4098_v16, 6.0  ;;  %v4092_v22 = vadd.f32 %v15376_v19, %v13237_v61  ;;  %v4053_v44 = vpop.f32.mrb[19].mxu1  ;;  %v4130_v15 = vld [vmem:[%s24332_s0 + $0x98] sm:$0xff]  ;;  %v4131_v16 = vld [vmem:[%s24332_s0 + $0xa0] sm:$0xff]  ;;  %v4133_v19 = vld [vmem:[%s24332_s0 + $0xb0] sm:$0xff] }
 0x808   : > { %v4105_v25 = vmin.f32 %v4097_v18, 6.0  ;;  %v4091_v26 = vadd.f32 %v13237_v61, %v4053_v44  ;;  %17053 = vmatprep.subr.bf16.mxu0 %v17052_v35  ;;  %v4132_v18 = vld [vmem:[%s24332_s0 + $0xa8] sm:$0xff]  ;;  %v902_v5 = vld [vmem:[%s23927_s12 + $0xf8] sm:$0xff] }
 0x809   : > { %v4100_v2 = vmax.f32 %v4092_v22, 0.0  ;;  %17055 = vmatpush3.bf16.msra.mxu0 %v17052_v35  ;;  %v796_v35 = vld [vmem:[%s23924_s9 + $0xa8] sm:$0xff]  ;;  %v4135_v22 = vld [vmem:[%s24332_s0 + $0xc0] sm:$0xff] }
 0x80a   : > { %v17056_v28 = vpack.c.bf16 %v4106_v21, %v4105_v25  ;;  %v4099_v13 = vmax.f32 %v4091_v26, 0.0  ;;  %v15379_v30 = vpop.f32.mrb[20].mxu1  ;;  %5377 = vperm.xlu0 %18240, %v790_v7   ;;  %v4134_v21 = vld [vmem:[%s24332_s0 + $0xb8] sm:$0xff]  ;;  %v800_v44 = vld [vmem:[%s23924_s9 + $0xc8] sm:$0xff]  ;;  %v4137_v25 = vld [vmem:[%s24332_s0 + $0xd0] sm:$0xff] }
 0x80b   : > { %v4108_v31 = vmin.f32 %v4100_v2, 6.0  ;;  %v4094_v32 = vadd.f32 %v15379_v30, %v13237_v61  ;;  %v4063_v29 = vpop.f32.mrb[21].mxu1  ;;  %v802_v26 = vld [vmem:[%s23924_s9 + $0xd8] sm:$0xff]  ;;  %v4140_v30 = vld [vmem:[%s24332_s0 + $0xe8] sm:$0xff]  ;;  %v873_v7 = vld [vmem:[%s23927_s12 + $0x10] sm:$0xff] }
 0x80c   : > { %v4107_v34 = vmin.f32 %v4099_v13, 6.0  ;;  %v4093_v36 = vadd.f32 %v13237_v61, %v4063_v29  ;;  %17057 = vmatprep.subr.bf16.mxu0 %v17056_v28  ;;  %v781_v61 = vld [vmem:[%s23924_s9 + $0x30] sm:$0xff]  ;;  %v4138_v2 = vld [vmem:[%s24332_s0 + $0xd8] sm:$0xff]  ;;  %v804_v13 = vld [vmem:[%s23924_s9 + $0xe8] sm:$0xff] }
 0x80d   : > { %v4102_v37 = vmax.f32 %v4094_v32, 0.0  ;;  %17059 = vmatpush3.bf16.msra.mxu0 %v17056_v28  ;;  %5332 = vperm.xlu1 %18241, %v781_v61   ;;  %v4139_v28 = vld [vmem:[%s24332_s0 + $0xe0] sm:$0xff]  ;;  %v806_v32 = vld [vmem:[%s23924_s9 + $0xf8] sm:$0xff]  ;;  %v808_v29 = vld [vmem:[%s23925_s10 + $0x8] sm:$0xff] }
 0x80e   : > { %v17060_v38 = vpack.c.bf16 %v4108_v31, %v4107_v34  ;;  %v4101_v39 = vmax.f32 %v4093_v36, 0.0  ;;  %5387 = vperm.xlu0 %18240, %v792_v23   ;;  %v4142_v31 = vld [vmem:[%s24332_s0 + $0xf8] sm:$0xff]  ;;  %v783_v34 = vld [vmem:[%s23924_s9 + $0x40] sm:$0xff]  ;;  %v812_v36 = vld [vmem:[%s23925_s10 + $0x28] sm:$0xff] }
 0x80f   : > { %v4110_v41 = vmin.f32 %v4102_v37, 6.0  ;;  %v785_v37 = vld [vmem:[%s23924_s9 + $0x50] sm:$0xff]  ;;  %v807_v61 = vld [vmem:[%s23925_s10] sm:$0xff] }
 0x810   : > { %v4109_v43 = vmin.f32 %v4101_v39, 6.0  ;;  %17061 = vmatprep.subr.bf16.mxu0 %v17060_v38  ;;  %v787_v39 = vld [vmem:[%s23924_s9 + $0x60] sm:$0xff] }
 0x811   : > { %17063 = vmatpush3.bf16.msra.mxu0 %v17060_v38  ;;  %5342 = vperm.xlu1 %18241, %v783_v34   ;;  %v814_v38 = vld [vmem:[%s23925_s10 + $0x38] sm:$0xff]  ;;  %v875_v23 = vld [vmem:[%s23927_s12 + $0x20] sm:$0xff] }
 0x812   : > { %v17064_v45 = vpack.c.bf16 %v4110_v41, %v4109_v43  ;;  %5397 = vperm.xlu0 %18240, %v794_v14   ;;  %v789_v41 = vld [vmem:[%s23924_s9 + $0x70] sm:$0xff]  ;;  %v791_v43 = vld [vmem:[%s23924_s9 + $0x80] sm:$0xff] }
 0x814   : > { %17065 = vmatprep.subr.bf16.mxu0 %v17064_v45 }
 0x815   : > { %17067 = vmatpush3.bf16.msra.mxu0 %v17064_v45  ;;  %5352 = vperm.xlu1 %18241, %v785_v37   ;;  %v820_v45 = vld [vmem:[%s23925_s10 + $0x68] sm:$0xff] }
 0x816   : > { %17069 = vmatprep.subr.bf16.mxu0 %v18564_v4  ;;  %5407 = vperm.xlu0 %18240, %v796_v35  }
 0x818   : > { %15397 = vmatmul.mubr.msk.f32.vlgmr.msra.gmra.mrb[38].mxu0 %vm2671_vm2, %v4112_v48  ;;  %v795_v48 = vld [vmem:[%s23924_s9 + $0xa0] sm:$0xff] }
 0x819   : > { %15399 = vmatprep.mubr.msk.f32.mxu0 %vm2671_vm2, %v4113_v49  ;;  %17071 = vmatpush3.bf16.msra.mxu0 %v18564_v4  ;;  %v4116_v4 = vld [vmem:[%s24332_s0 + $0x28] sm:$0xff] }
 0x81a   : > { %17073 = vmatprep.subr.bf16.mxu0 %v18575_v8  ;;  %5417 = vperm.xlu0 %18240, %v798_v20   ;;  %v824_v49 = vld [vmem:[%s23925_s10 + $0x88] sm:$0xff]  ;;  %v823_v20 = vld [vmem:[%s23925_s10 + $0x80] sm:$0xff] }
 0x81b   : > { %5362 = vperm.xlu1 %18241, %v787_v39   ;;  %v895_v39 = vld [vmem:[%s23927_s12 + $0xc0] sm:$0xff] }
 0x81c   : > { %15400 = vmatmul.mubr.msk.f32.gmra.mrb[40].mxu0 %vm2671_vm2, %v4114_v52  ;;  %v799_v52 = vld [vmem:[%s23924_s9 + $0xc0] sm:$0xff] }
 0x81d   : > { %15402 = vmatprep.mubr.msk.f32.mxu0 %vm2671_vm2, %v4115_v53  ;;  %17075 = vmatpush3.bf16.msra.mxu0 %v18575_v8  ;;  %v4118_v8 = vld [vmem:[%s24332_s0 + $0x38] sm:$0xff]  ;;  %v828_v53 = vld [vmem:[%s23925_s10 + $0xa8] sm:$0xff] }
 0x81e   : > { %5427 = vperm.xlu0 %18240, %v800_v44   ;;  %v825_v44 = vld [vmem:[%s23925_s10 + $0x90] sm:$0xff] }
 0x81f   : > { %5372 = vperm.xlu1 %18241, %v789_v41  }
 0x820   : > { %15403 = vmatmul.mubr.msk.f32.gmra.mrb[42].mxu0 %vm2671_vm2, %v4116_v4  ;;  %v830_v4 = vld [vmem:[%s23925_s10 + $0xb8] sm:$0xff] }
 0x821   : > { %15405 = vmatprep.mubr.msk.f32.mxu0 %vm2671_vm2, %v4117_v56  ;;  %v19754_v56 = vpop.permute.xlu0 %5058 }
 0x822   : > { %5437 = vperm.xlu0 %18240, %v802_v26   ;;  %24334 = vst [vmem:[#allocation4_spill] sm:$0xff] %v19754_v56 }
 0x823   : > { %5382 = vperm.xlu1 %18241, %v791_v43   ;;  %v897_v43 = vld [vmem:[%s23927_s12 + $0xd0] sm:$0xff] }
 0x824   : > { %15406 = vmatmul.mubr.msk.f32.gmra.mrb[44].mxu0 %vm2671_vm2, %v4118_v8  ;;  %v805_v8 = vld [vmem:[%s23924_s9 + $0xf0] sm:$0xff] }
 0x825   : > { %15408 = vmatprep.mubr.msk.f32.mxu0 %vm2671_vm2, %v4119_v59  ;;  %v834_v59 = vld [vmem:[%s23925_s10 + $0xd8] sm:$0xff]  ;;  %v19768_v60 = vpop.permute.xlu0 %5068 }
 0x826   : > { %5447 = vperm.xlu0 %18240, %v804_v13   ;;  %24335 = vst [vmem:[#allocation5_spill] sm:$0xff] %v19768_v60  ;;  %v829_v13 = vld [vmem:[%s23925_s10 + $0xb0] sm:$0xff] }
 0x827   : > { %5392 = vperm.xlu1 %18241, %v793_v46  }
 0x828   : > { %15409 = vmatmul.mubr.msk.f32.gmra.mrb[46].mxu0 %vm2671_vm2, %v4120_v62  ;;  %v836_v62 = vld [vmem:[%s23925_s10 + $0xe8] sm:$0xff] }
 0x829   : > { %15411 = vmatprep.mubr.msk.f32.mxu0 %vm2671_vm2, %v4121_v63  ;;  %v19776_v63 = vpop.permute.xlu0 %5078 }
 0x82a   : > { %5457 = vperm.xlu0 %18240, %v806_v32   ;;  %24336 = vst [vmem:[#allocation6_spill] sm:$0xff] %v19776_v63  ;;  %v831_v32 = vld [vmem:[%s23925_s10 + $0xc0] sm:$0xff] }
 0x82b   : > { %5402 = vperm.xlu1 %18241, %v795_v48  }
 0x82c   : > { %15412 = vmatmul.mubr.msk.f32.gmra.mrb[48].mxu0 %vm2671_vm2, %v4122_v1  ;;  %v838_v1 = vld [vmem:[%s23925_s10 + $0xf8] sm:$0xff] }
 0x82d   : > { %15414 = vmatprep.mubr.msk.f32.mxu0 %vm2671_vm2, %v4123_v3  ;;  %v811_v3 = vld [vmem:[%s23925_s10 + $0x20] sm:$0xff] }
 0x82e   : > { %5564 = vperm.xlu0 %18240, %v808_v29   ;;  %v891_v29 = vld [vmem:[%s23927_s12 + $0xa0] sm:$0xff] }
 0x82f   : > { %5412 = vperm.xlu1 %18241, %v797_v50   ;;  %v901_v50 = vld [vmem:[%s23927_s12 + $0xf0] sm:$0xff] }
 0x830   : > { %15415 = vmatmul.mubr.msk.f32.gmra.mrb[50].mxu0 %vm2671_vm2, %v4124_v12  ;;  %v19790_v12 = vpop.permute.xlu0 %5088 }
 0x831   : > { %15417 = vmatprep.mubr.msk.f32.mxu0 %vm2671_vm2, %v4125_v6  ;;  %24337 = vst [vmem:[#allocation7_spill] sm:$0xff] %v19790_v12  ;;  %v813_v6 = vld [vmem:[%s23925_s10 + $0x30] sm:$0xff] }
 0x832   : > { %5574 = vperm.xlu0 %18240, %v810_v33   ;;  %v833_v33 = vld [vmem:[%s23925_s10 + $0xd0] sm:$0xff] }
 0x833   : > { %5422 = vperm.xlu1 %18241, %v799_v52  }
 0x834   : > { %15418 = vmatmul.mubr.msk.f32.gmra.mrb[52].mxu0 %vm2671_vm2, %v4126_v9  ;;  %v19798_v9 = vpop.permute.xlu0 %5098 }
 0x835   : > { %15420 = vmatprep.mubr.msk.f32.mxu0 %vm2671_vm2, %v4127_v10  ;;  %24338 = vst [vmem:[#allocation8_spill] sm:$0xff] %v19798_v9  ;;  %v815_v10 = vld [vmem:[%s23925_s10 + $0x40] sm:$0xff] }
 0x836   : > { %5584 = vperm.xlu0 %18240, %v812_v36   ;;  %v893_v36 = vld [vmem:[%s23927_s12 + $0xb0] sm:$0xff] }
 0x837   : > { %5432 = vperm.xlu1 %18241, %v801_v55   ;;  %v876_v55 = vld [vmem:[%s23927_s12 + $0x28] sm:$0xff] }
 0x838   : > { %15421 = vmatmul.mubr.msk.f32.gmra.mrb[54].mxu0 %vm2671_vm2, %v4128_v11  ;;  %v817_v11 = vld [vmem:[%s23925_s10 + $0x50] sm:$0xff]  ;;  %v19812_v14 = vpop.permute.xlu0 %5108 }
 0x839   : > { %15423 = vmatprep.mubr.msk.f32.mxu0 %vm2671_vm2, %v4129_v27  ;;  %v877_v27 = vld [vmem:[%s23927_s12 + $0x30] sm:$0xff]  ;;  %24339 = vst [vmem:[#allocation9_spill] sm:$0xff] %v19812_v14 }
 0x83a   : > { %5594 = vperm.xlu0 %18240, %v814_v38   ;;  %v835_v38 = vld [vmem:[%s23925_s10 + $0xe0] sm:$0xff] }
 0x83b   : > { %5442 = vperm.xlu1 %18241, %v803_v57   ;;  %v878_v57 = vld [vmem:[%s23927_s12 + $0x38] sm:$0xff] }
 0x83c   : > { %15424 = vmatmul.mubr.msk.f32.gmra.mrb[56].mxu0 %vm2671_vm2, %v4130_v15  ;;  %v819_v15 = vld [vmem:[%s23925_s10 + $0x60] sm:$0xff]  ;;  %v19820_v35 = vpop.permute.xlu0 %5118 }
 0x83d   : > { %15426 = vmatprep.mubr.msk.f32.mxu0 %vm2671_vm2, %v4131_v16  ;;  %v879_v16 = vld [vmem:[%s23927_s12 + $0x40] sm:$0xff]  ;;  %24340 = vst [vmem:[#allocation10_spill] sm:$0xff] %v19820_v35 }
 0x83e   : > { %5604 = vperm.xlu0 %18240, %v816_v40  }
 0x83f   : > { %5452 = vperm.xlu1 %18241, %v805_v8  }
 0x840   : > { %15427 = vmatmul.mubr.msk.f32.gmra.mrb[58].mxu0 %vm2671_vm2, %v4132_v18  ;;  %v821_v18 = vld [vmem:[%s23925_s10 + $0x70] sm:$0xff] }
 0x841   : > { %15429 = vmatprep.mubr.msk.f32.mxu0 %vm2671_vm2, %v4133_v19  ;;  %v881_v19 = vld [vmem:[%s23927_s12 + $0x50] sm:$0xff] }
 0x842   : > { %5614 = vperm.xlu0 %18240, %v818_v42   ;;  %v837_v42 = vld [vmem:[%s23925_s10 + $0xf0] sm:$0xff] }
 0x843   : > { %5559 = vperm.xlu1 %18241, %v807_v61  }
 0x844   : > { %15430 = vmatmul.mubr.msk.f32.gmra.mrb[60].mxu0 %vm2671_vm2, %v4134_v21  ;;  %v883_v21 = vld [vmem:[%s23927_s12 + $0x60] sm:$0xff] }
 0x845   : > { %15432 = vmatprep.mubr.msk.f32.mxu0 %vm2671_vm2, %v4135_v22  ;;  %v19834_v22 = vpop.permute.xlu0 %5128 }
 0x846   : > { %5624 = vperm.xlu0 %18240, %v820_v45   ;;  %24341 = vst [vmem:[#allocation11_spill] sm:$0xff] %v19834_v22  ;;  %v871_v45 = vld [vmem:[%s23927_s12] sm:$0xff] }
 0x847   : > { %5569 = vperm.xlu1 %18241, %v809_v0   ;;  %v880_v0 = vld [vmem:[%s23927_s12 + $0x48] sm:$0xff] }
 0x848   : > { %15433 = vmatmul.mubr.msk.f32.gmra.mrb[62].mxu0 %vm2671_vm2, %v4136_v24  ;;  %v885_v24 = vld [vmem:[%s23927_s12 + $0x70] sm:$0xff] }
 0x849   : > { %15435 = vmatprep.mubr.msk.f32.mxu0 %vm2671_vm2, %v4137_v25  ;;  %v19842_v25 = vpop.permute.xlu1 %5048  ;;  %v19844_v26 = vpop.permute.xlu0 %5138 }
 0x84a   : > { %5634 = vperm.xlu0 %18240, %v822_v47   ;;  %24342 = vst [vmem:[#allocation12_spill] sm:$0xff] %v19842_v25  ;;  %24343 = vst [vmem:[#allocation13_spill] sm:$0xff] %v19844_v26  ;;  %v899_v47 = vld [vmem:[%s23927_s12 + $0xe0] sm:$0xff] }
 0x84b   : > { %5579 = vperm.xlu1 %18241, %v811_v3  }
 0x84c   : > { %15436 = vmatmul.mubr.msk.f32.gmra.mrb[64].mxu0 %vm2671_vm2, %v4138_v2  ;;  %v827_v2 = vld [vmem:[%s23925_s10 + $0xa0] sm:$0xff] }
 0x84d   : > { %15438 = vmatprep.mubr.msk.f32.mxu0 %vm2671_vm2, %v4139_v28  ;;  %v887_v28 = vld [vmem:[%s23927_s12 + $0x80] sm:$0xff] }
 0x84e   : > { %5644 = vperm.xlu0 %18240, %v824_v49   ;;  %v872_v49 = vld [vmem:[%s23927_s12 + $0x8] sm:$0xff] }
 0x84f   : > { %5589 = vperm.xlu1 %18241, %v813_v6  }
 0x850   : > { %15439 = vmatmul.mubr.msk.f32.gmra.mrb[66].mxu0 %vm2671_vm2, %v4140_v30  ;;  %v889_v30 = vld [vmem:[%s23927_s12 + $0x90] sm:$0xff] }
 0x851   : > { %15441 = vmatprep.mubr.msk.f32.mxu0 %vm2671_vm2, %v4141_v17  ;;  %v19858_v17 = vpop.permute.xlu1 %5053 }
 0x852   : > { %5654 = vperm.xlu0 %18240, %v826_v51   ;;  %24344 = vst [vmem:[#allocation14_spill] sm:$0xff] %v19858_v17 }
 0x853   : > { %5599 = vperm.xlu1 %18241, %v815_v10  }
 0x854   : > { %15442 = vmatmul.mubr.msk.f32.gmra.mrb[68].mxu0 %vm2671_vm2, %v4142_v31  ;;  %v19860_v31 = vpop.permute.xlu0 %5148 }
 0x855   : > { %24345 = vst [vmem:[#allocation15_spill] sm:$0xff] %v19860_v31  ;;  %v19871_v34 = vpop.permute.xlu1 %5063 }
 0x856   : > { %5664 = vperm.xlu0 %18240, %v828_v53   ;;  %24346 = vst [vmem:[#allocation16_spill] sm:$0xff] %v19871_v34  ;;  %v874_v53 = vld [vmem:[%s23927_s12 + $0x18] sm:$0xff] }
 0x857   : > { %5609 = vperm.xlu1 %18241, %v817_v11  }
 0x858   : > { %v19876_v37 = vpop.permute.xlu0 %5158 }
 0x859   : > { %24347 = vst [vmem:[#allocation17_spill] sm:$0xff] %v19876_v37  ;;  %v19884_v40 = vpop.permute.xlu1 %5073 }
 0x85a   : > { %5674 = vperm.xlu0 %18240, %v830_v4   ;;  %24348 = vst [vmem:[#allocation18_spill] sm:$0xff] %v19884_v40 }
 0x85b   : > { %5619 = vperm.xlu1 %18241, %v819_v15  }
 0x85c   : > { %v19886_v41 = vpop.permute.xlu0 %5168 }
 0x85d   : > { %24349 = vst [vmem:[#allocation19_spill] sm:$0xff] %v19886_v41  ;;  %v19897_v46 = vpop.permute.xlu1 %5083 }
 0x85e   : > { %5684 = vperm.xlu0 %18240, %v832_v58   ;;  %24350 = vst [vmem:[#allocation20_spill] sm:$0xff] %v19897_v46 }
 0x85f   : > { %5629 = vperm.xlu1 %18241, %v821_v18  }
 0x860   : > { %v19902_v48 = vpop.permute.xlu0 %5178 }
 0x861   : > { %24351 = vst [vmem:[#allocation21_spill] sm:$0xff] %v19902_v48  ;;  %v19910_v51 = vpop.permute.xlu1 %5093  ;;  %v4466_v48 = vld [vmem:[%s20119_s22 + $0x10] sm:$0xff] }
 0x862   : > { %5694 = vperm.xlu0 %18240, %v834_v59   ;;  %24352 = vst [vmem:[#allocation22_spill] sm:$0xff] %v19910_v51 }
 0x863   : > { %5639 = vperm.xlu1 %18241, %v823_v20  }
 0x864   : > { %v19912_v52 = vpop.permute.xlu0 %5188 }
 0x865   : > { %24353 = vst [vmem:[#allocation23_spill] sm:$0xff] %v19912_v52  ;;  %v19920_v4 = vpop.permute.xlu1 %5103  ;;  %v4494_v52 = vld [vmem:[%s20119_s22 + $0xf0] sm:$0xff] }
 0x866   : > { %5704 = vperm.xlu0 %18240, %v836_v62   ;;  %24354 = vst [vmem:[#allocation24_spill] sm:$0xff] %v19920_v4 }
 0x867   : > { %5649 = vperm.xlu1 %18241, %v825_v44  }
 0x869   : > { %v19925_v62 = vpop.permute.xlu1 %5113 }
 0x86a   : > { %5714 = vperm.xlu0 %18240, %v838_v1   ;;  %24355 = vst [vmem:[#allocation25_spill] sm:$0xff] %v19925_v62 }
 0x86b   : > { %5659 = vperm.xlu1 %18241, %v827_v2  }
 0x86e   : > { %7677 = vperm.xlu0 %18240, %v902_v5  }
 0x86f   : > { %5669 = vperm.xlu1 %18241, %v829_v13  }
 0x872   : > { %7532 = vperm.xlu0 %18240, %v873_v7   ;;  %v882_v7 = vld [vmem:[%s23927_s12 + $0x58] sm:$0xff] }
 0x873   : > { %5679 = vperm.xlu1 %18241, %v831_v32  }
 0x876   : > { %7542 = vperm.xlu0 %18240, %v875_v23   ;;  %v19933_v23 = vpop.permute.xlu1 %5123 }
 0x877   : > { %5689 = vperm.xlu1 %18241, %v833_v33   ;;  %24356 = vst [vmem:[#allocation26_spill] sm:$0xff] %v19933_v23 }
 0x87a   : > { %7552 = vperm.xlu0 %18240, %v877_v27  }
 0x87b   : > { %5699 = vperm.xlu1 %18241, %v835_v38  }
 0x87e   : > { %7562 = vperm.xlu0 %18240, %v879_v16   ;;  %v884_v16 = vld [vmem:[%s23927_s12 + $0x68] sm:$0xff] }
 0x87f   : > { %5709 = vperm.xlu1 %18241, %v837_v42  }
 0x882   : > { %7572 = vperm.xlu0 %18240, %v881_v19  }
 0x883   : > { %7522 = vperm.xlu1 %18241, %v871_v45   ;;  %v888_v45 = vld [vmem:[%s23927_s12 + $0x88] sm:$0xff] }
 0x886   : > { %7582 = vperm.xlu0 %18240, %v883_v21  }
 0x887   : > { %7527 = vperm.xlu1 %18241, %v872_v49  }
 0x88a   : > { %7592 = vperm.xlu0 %18240, %v885_v24  }
 0x88b   : > { %7537 = vperm.xlu1 %18241, %v874_v53  }
 0x88e   : > { %7602 = vperm.xlu0 %18240, %v887_v28   ;;  %v19938_v28 = vpop.permute.xlu1 %5133 }
 0x88f   : > { %7547 = vperm.xlu1 %18241, %v876_v55   ;;  %24357 = vst [vmem:[#allocation27_spill] sm:$0xff] %v19938_v28 }
 0x892   : > { %7612 = vperm.xlu0 %18240, %v889_v30   ;;  %v886_v30 = vld [vmem:[%s23927_s12 + $0x78] sm:$0xff]  ;;  %v19946_v49 = vpop.permute.xlu1 %5143 }
 0x893   : > { %7557 = vperm.xlu1 %18241, %v878_v57   ;;  %24358 = vst [vmem:[#allocation28_spill] sm:$0xff] %v19946_v49 }
 0x896   : > { %7622 = vperm.xlu0 %18240, %v891_v29  }
 0x897   : > { %7567 = vperm.xlu1 %18241, %v880_v0  }
 0x89a   : > { %7632 = vperm.xlu0 %18240, %v893_v36  }
 0x89b   : > { %7577 = vperm.xlu1 %18241, %v882_v7  }
 0x89e   : > { %7642 = vperm.xlu0 %18240, %v895_v39  }
 0x89f   : > { %7587 = vperm.xlu1 %18241, %v884_v16  }
 0x8a2   : > { %7652 = vperm.xlu0 %18240, %v897_v43  }
 0x8a3   : > { %7597 = vperm.xlu1 %18241, %v886_v30  }
 0x8a6   : > { %7662 = vperm.xlu0 %18240, %v899_v47  }
 0x8a7   : > { %7607 = vperm.xlu1 %18241, %v888_v45  }
 0x8aa   : > { %7672 = vperm.xlu0 %18240, %v901_v50  }
 0x8eb   : > { %v15398_v58 = vpop.f32.mrb[38].mxu0 }
 0x8ec   : > { %v13271_v8 = vmul.f32 -1.442695, %v15398_v58  ;;  %v4305_v59 = vpop.f32.mrb[39].mxu0 }
 0x8ed   : > { %v13270_v61 = vmul.f32 -1.442695, %v4305_v59 }
 0x8ee   : > { %18282 = vpow2.f32 %v13271_v8 }
 0x8ef   : > { %18284 = vpow2.f32 %v13270_v61  ;;  %v15401_v1 = vpop.f32.mrb[40].mxu0  ;;  %v890_v61 = vld [vmem:[%s23927_s12 + $0x98] sm:$0xff] }
 0x8f0   : > { %v13273_v3 = vmul.f32 -1.442695, %v15401_v1  ;;  %v4315_v5 = vpop.f32.mrb[41].mxu0  ;;  %7617 = vperm.xlu1 %18241, %v890_v61  }
 0x8f1   : > { %v13272_v6 = vmul.f32 -1.442695, %v4315_v5 }
 0x8f2   : > { %18286 = vpow2.f32 %v13273_v3 }
 0x8f3   : > { %18288 = vpow2.f32 %v13272_v6  ;;  %v15404_v10 = vpop.f32.mrb[42].mxu0 }
 0x8f4   : > { %v13275_v11 = vmul.f32 -1.442695, %v15404_v10  ;;  %v4325_v27 = vpop.f32.mrb[43].mxu0 }
 0x8f5   : > { %v13274_v15 = vmul.f32 -1.442695, %v4325_v27 }
 0x8f6   : > { %18290 = vpow2.f32 %v13275_v11  ;;  %v19951_v11 = vpop.permute.xlu1 %5153 }
 0x8f7   : > { %18292 = vpow2.f32 %v13274_v15  ;;  %v15407_v18 = vpop.f32.mrb[44].mxu0  ;;  %24359 = vst [vmem:[#allocation29_spill] sm:$0xff] %v19951_v11  ;;  %v892_v15 = vld [vmem:[%s23927_s12 + $0xa8] sm:$0xff] }
 0x8f8   : > { %v18283_v19 = vpop.eup %18282  ;;  %v13277_v20 = vmul.f32 -1.442695, %v15407_v18  ;;  %v4335_v21 = vpop.f32.mrb[45].mxu0  ;;  %7627 = vperm.xlu1 %18241, %v892_v15  }
 0x8f9   : > { %v18285_v44 = vpop.eup %18284  ;;  %v4593_v24 = vadd.f32 1.0, %v18283_v19  ;;  %v13276_v2 = vmul.f32 -1.442695, %v4335_v21 }
 0x8fa   : > { %v4592_v13 = vadd.f32 1.0, %v18285_v44  ;;  %18294 = vpow2.f32 %v13277_v20 }
 0x8fb   : > { %18296 = vrcp.f32 %v4593_v24  ;;  %v15410_v32 = vpop.f32.mrb[46].mxu0 }
 0x8fc   : > { %v18287_v29 = vpop.eup %18286  ;;  %18298 = vrcp.f32 %v4592_v13  ;;  %v13279_v33 = vmul.f32 -1.442695, %v15410_v32  ;;  %v4345_v36 = vpop.f32.mrb[47].mxu0  ;;  %v894_v32 = vld [vmem:[%s23927_s12 + $0xb8] sm:$0xff] }
 0x8fd   : > { %v18289_v38 = vpop.eup %18288  ;;  %v4595_v39 = vadd.f32 1.0, %v18287_v29  ;;  %18300 = vpow2.f32 %v13276_v2  ;;  %v13278_v42 = vmul.f32 -1.442695, %v4345_v36  ;;  %v19962_v36 = vpop.permute.xlu1 %5163  ;;  %7637 = vperm.xlu1 %18241, %v894_v32  }
 0x8fe   : > { %v4594_v43 = vadd.f32 1.0, %v18289_v38  ;;  %18302 = vpow2.f32 %v13279_v33  ;;  %24360 = vst [vmem:[#allocation30_spill] sm:$0xff] %v19962_v36 }
 0x8ff   : > { %18304 = vrcp.f32 %v4595_v39  ;;  %v15413_v47 = vpop.f32.mrb[48].mxu0 }
 0x900   : > { %v18291_v50 = vpop.eup %18290  ;;  %18306 = vrcp.f32 %v4594_v43  ;;  %v13281_v53 = vmul.f32 -1.442695, %v15413_v47  ;;  %v4355_v55 = vpop.f32.mrb[49].mxu0 }
 0x901   : > { %v18293_v57 = vpop.eup %18292  ;;  %v4597_v58 = vadd.f32 1.0, %v18291_v50  ;;  %18308 = vpow2.f32 %v13278_v42  ;;  %v13280_v8 = vmul.f32 -1.442695, %v4355_v55  ;;  %v896_v55 = vld [vmem:[%s23927_s12 + $0xc8] sm:$0xff] }
 0x902   : > { %v4596_v59 = vadd.f32 1.0, %v18293_v57  ;;  %18310 = vpow2.f32 %v13281_v53  ;;  %7647 = vperm.xlu1 %18241, %v896_v55  }
 0x903   : > { %18312 = vrcp.f32 %v4597_v58  ;;  %v15416_v0 = vpop.f32.mrb[50].mxu0 }
 0x904   : > { %v18295_v1 = vpop.eup %18294  ;;  %18314 = vrcp.f32 %v4596_v59  ;;  %v13283_v3 = vmul.f32 -1.442695, %v15416_v0  ;;  %v4365_v5 = vpop.f32.mrb[51].mxu0 }
 0x905   : > { %v18297_v6 = vpop.eup %18296  ;;  %v4599_v7 = vadd.f32 1.0, %v18295_v1  ;;  %18316 = vpow2.f32 %v13280_v8  ;;  %v13282_v10 = vmul.f32 -1.442695, %v4365_v5 }
 0x906   : > { %v18299_v27 = vpop.eup %18298  ;;  %18318 = vpow2.f32 %v13283_v3  ;;  %v19970_v3 = vpop.permute.xlu1 %5173 }
 0x907   : > { %v18301_v16 = vpop.eup %18300  ;;  %v15419_v18 = vpop.f32.mrb[52].mxu0  ;;  %15452 = vmatprep.mubr.msk.f32.mxu0 %vm919_vm0, %v18299_v27  ;;  %18320 = vpow2.f32 %v13282_v10  ;;  %24361 = vst [vmem:[#allocation31_spill] sm:$0xff] %v19970_v3 }
 0x908   : > { %v18303_v19 = vpop.eup %18302  ;;  %v4598_v20 = vadd.f32 1.0, %v18301_v16  ;;  %v13285_v21 = vmul.f32 -1.442695, %v15419_v18  ;;  %v4375_v44 = vpop.f32.mrb[53].mxu0  ;;  %15453 = vmatmul.mubr.msk.f32.vlgmr.msra.gmra.mrb[70].mxu0 %vm919_vm0, %v18297_v6  ;;  %18322 = vrcp.f32 %v4599_v7  ;;  %v898_v7 = vld [vmem:[%s23927_s12 + $0xd8] sm:$0xff] }
 0x909   : > { %v18305_v24 = vpop.eup %18304  ;;  %v4601_v2 = vadd.f32 1.0, %v18303_v19  ;;  %v13284_v13 = vmul.f32 -1.442695, %v4375_v44  ;;  %7657 = vperm.xlu1 %18241, %v898_v7  }
 0x90a   : > { %v18307_v30 = vpop.eup %18306  ;;  %18324 = vrcp.f32 %v4598_v20  ;;  %v19980_v32 = vpop.permute.xlu1 %5183 }
 0x90b   : > { %v18309_v29 = vpop.eup %18308  ;;  %18326 = vrcp.f32 %v4601_v2  ;;  %v15422_v33 = vpop.f32.mrb[54].mxu0  ;;  %15455 = vmatprep.mubr.msk.f32.mxu0 %vm919_vm0, %v18307_v30  ;;  %24362 = vst [vmem:[#allocation32_spill] sm:$0xff] %v19980_v32 }
 0x90c   : > { %v18311_v38 = vpop.eup %18310  ;;  %v4600_v39 = vadd.f32 1.0, %v18309_v29  ;;  %18328 = vpow2.f32 %v13285_v21  ;;  %v13287_v42 = vmul.f32 -1.442695, %v15422_v33  ;;  %v4385_v43 = vpop.f32.mrb[55].mxu0  ;;  %15456 = vmatmul.mubr.msk.f32.gmra.mrb[72].mxu0 %vm919_vm0, %v18305_v24  ;;  %v900_v24 = vld [vmem:[%s23927_s12 + $0xe8] sm:$0xff] }
 0x90d   : > { %v18313_v45 = vpop.eup %18312  ;;  %v4603_v47 = vadd.f32 1.0, %v18311_v38  ;;  %18330 = vpow2.f32 %v13284_v13  ;;  %v13286_v50 = vmul.f32 -1.442695, %v4385_v43  ;;  %7667 = vperm.xlu1 %18241, %v900_v24   ;;  %v20128_v32 = vpop.permute.xlu0 %5193 }
 0x90e   : > { %v18315_v53 = vpop.eup %18314  ;;  %18332 = vrcp.f32 %v4600_v39  ;;  %24371 = vst [vmem:[#allocation40_spill] sm:$0xff] %v20128_v32 }
 0x90f   : > { %v18317_v57 = vpop.eup %18316  ;;  %18334 = vrcp.f32 %v4603_v47  ;;  %v15425_v58 = vpop.f32.mrb[56].mxu0  ;;  %15458 = vmatprep.mubr.msk.f32.mxu0 %vm919_vm0, %v18315_v53  ;;  %v12900_v47 = vld [vmem:[#allocation2] sm:$0x1] }
 0x910   : > { %v18319_v8 = vpop.eup %18318  ;;  %v4602_v59 = vadd.f32 1.0, %v18317_v57  ;;  %18336 = vpow2.f32 %v13287_v42  ;;  %v13289_v61 = vmul.f32 -1.442695, %v15425_v58  ;;  %v4395_v0 = vpop.f32.mrb[57].mxu0  ;;  %15459 = vmatmul.mubr.msk.f32.gmra.mrb[74].mxu0 %vm919_vm0, %v18313_v45 }
 0x911   : > { %v4605_v1 = vadd.f32 1.0, %v18319_v8  ;;  %18338 = vpow2.f32 %v13286_v50  ;;  %v18321_v5 = vpop.eup %18320  ;;  %v13288_v6 = vmul.f32 -1.442695, %v4395_v0  ;;  %v20159_v36 = vpop.permute.xlu0 %5307 }
 0x912   : > { %18340 = vrcp.f32 %v4602_v59  ;;  %v18323_v10 = vpop.eup %18322  ;;  %v4604_v27 = vadd.f32 1.0, %v18321_v5  ;;  %24380 = vst [vmem:[#allocation48_spill] sm:$0xff] %v20159_v36 }
 0x913   : > { %18342 = vrcp.f32 %v4605_v1  ;;  %v15428_v15 = vpop.f32.mrb[58].mxu0  ;;  %v19985_v1 = vpop.permute.xlu1 %5198  ;;  %12903 = vperm.xlu1 %18241, %v12900_v47  }
 0x914   : > { %v18325_v16 = vpop.eup %18324  ;;  %18344 = vpow2.f32 %v13289_v61  ;;  %v13291_v18 = vmul.f32 -1.442695, %v15428_v15  ;;  %v4405_v19 = vpop.f32.mrb[59].mxu0  ;;  %24363 = vst [vmem:[#allocation33_spill] sm:$0xff] %v19985_v1 }
 0x915   : > { %v18327_v20 = vpop.eup %18326  ;;  %18346 = vrcp.f32 %v4604_v27  ;;  %15461 = vmatprep.mubr.msk.f32.mxu0 %vm919_vm0, %v18325_v16  ;;  %v13290_v21 = vmul.f32 -1.442695, %v4405_v19 }
 0x916   : > { %v18329_v44 = vpop.eup %18328  ;;  %18348 = vpow2.f32 %v13288_v6  ;;  %15462 = vmatmul.mubr.msk.f32.gmra.mrb[76].mxu0 %vm919_vm0, %v18323_v10 }
 0x917   : > { %v18331_v2 = vpop.eup %18330  ;;  %v4607_v13 = vadd.f32 1.0, %v18329_v44  ;;  %18350 = vpow2.f32 %v13291_v18  ;;  %v15431_v30 = vpop.f32.mrb[60].mxu0 }
 0x918   : > { %v18333_v29 = vpop.eup %18332  ;;  %v4606_v33 = vadd.f32 1.0, %v18331_v2  ;;  %18352 = vpow2.f32 %v13290_v21  ;;  %v13293_v38 = vmul.f32 -1.442695, %v15431_v30  ;;  %v4415_v39 = vpop.f32.mrb[61].mxu0 }
 0x919   : > { %v18335_v42 = vpop.eup %18334  ;;  %18354 = vrcp.f32 %v4607_v13  ;;  %15464 = vmatprep.mubr.msk.f32.mxu0 %vm919_vm0, %v18333_v29  ;;  %v13292_v43 = vmul.f32 -1.442695, %v4415_v39  ;;  %v20143_v32 = vpop.permute.xlu1 %5302 }
 0x91a   : > { %v18337_v45 = vpop.eup %18336  ;;  %18356 = vrcp.f32 %v4606_v33  ;;  %15465 = vmatmul.mubr.msk.f32.gmra.mrb[78].mxu0 %vm919_vm0, %v18327_v20  ;;  %24375 = vst [vmem:[#allocation44_spill] sm:$0xff] %v20143_v32 }
 0x91b   : > { %v18339_v50 = vpop.eup %18338  ;;  %v4609_v53 = vadd.f32 1.0, %v18337_v45  ;;  %18358 = vpow2.f32 %v13293_v38  ;;  %v15434_v55 = vpop.f32.mrb[62].mxu0 }
 0x91c   : > { %v18341_v57 = vpop.eup %18340  ;;  %v4608_v58 = vadd.f32 1.0, %v18339_v50  ;;  %18360 = vpow2.f32 %v13292_v43  ;;  %v13295_v8 = vmul.f32 -1.442695, %v15434_v55  ;;  %v4425_v59 = vpop.f32.mrb[63].mxu0 }
 0x91d   : > { %v18343_v61 = vpop.eup %18342  ;;  %18362 = vrcp.f32 %v4609_v53  ;;  %15467 = vmatprep.mubr.msk.f32.mxu0 %vm919_vm0, %v18341_v57  ;;  %v13294_v0 = vmul.f32 -1.442695, %v4425_v59 }
 0x91e   : > { %v18345_v5 = vpop.eup %18344  ;;  %18364 = vrcp.f32 %v4608_v58  ;;  %15468 = vmatmul.mubr.msk.f32.gmra.mrb[80].mxu0 %vm919_vm0, %v18335_v42 }
 0x91f   : > { %v18347_v6 = vpop.eup %18346  ;;  %18366 = vpow2.f32 %v13295_v8  ;;  %v15437_v7 = vpop.f32.mrb[64].mxu0  ;;  %v4611_v27 = vadd.f32 1.0, %v18345_v5 }
 0x920   : > { %v18349_v10 = vpop.eup %18348  ;;  %18368 = vpow2.f32 %v13294_v0  ;;  %v13297_v15 = vmul.f32 -1.442695, %v15437_v7  ;;  %15470 = vmatprep.mubr.msk.f32.mxu0 %vm919_vm0, %v18347_v6  ;;  %v4435_v16 = vpop.f32.mrb[65].mxu0 }
 0x921   : > { %v18351_v18 = vpop.eup %18350  ;;  %v4610_v19 = vadd.f32 1.0, %v18349_v10  ;;  %v13296_v21 = vmul.f32 -1.442695, %v4435_v16 }
 0x922   : > { %v18353_v20 = vpop.eup %18352  ;;  %18370 = vpow2.f32 %v13297_v15  ;;  %15471 = vmatmul.mubr.msk.f32.gmra.mrb[82].mxu0 %vm919_vm0, %v18343_v61  ;;  %v4613_v30 = vadd.f32 1.0, %v18351_v18 }
 0x923   : > { %v18355_v44 = vpop.eup %18354  ;;  %18372 = vrcp.f32 %v4610_v19  ;;  %v4612_v24 = vadd.f32 1.0, %v18353_v20  ;;  %v15440_v2 = vpop.f32.mrb[66].mxu0 }
 0x924   : > { %v18357_v13 = vpop.eup %18356  ;;  %18374 = vrcp.f32 %v4611_v27  ;;  %v13299_v29 = vmul.f32 -1.442695, %v15440_v2  ;;  %v4445_v33 = vpop.f32.mrb[67].mxu0 }
 0x925   : > { %v18359_v38 = vpop.eup %18358  ;;  %18376 = vrcp.f32 %v4612_v24  ;;  %15473 = vmatprep.mubr.msk.f32.mxu0 %vm919_vm0, %v18357_v13  ;;  %v13298_v42 = vmul.f32 -1.442695, %v4445_v33 }
 0x926   : > { %v18361_v39 = vpop.eup %18360  ;;  %18378 = vpow2.f32 %v13296_v21  ;;  %15474 = vmatmul.mubr.msk.f32.gmra.mrb[84].mxu0 %vm919_vm0, %v18355_v44  ;;  %v4615_v53 = vadd.f32 1.0, %v18359_v38 }
 0x927   : > { %v18363_v43 = vpop.eup %18362  ;;  %v4614_v45 = vadd.f32 1.0, %v18361_v39  ;;  %18380 = vpow2.f32 %v13299_v29  ;;  %v15443_v47 = vpop.f32.mrb[68].mxu0 }
 0x928   : > { %v18365_v50 = vpop.eup %18364  ;;  %18382 = vrcp.f32 %v4613_v30  ;;  %v13301_v55 = vmul.f32 -1.442695, %v15443_v47  ;;  %v4455_v57 = vpop.f32.mrb[69].mxu0 }
 0x929   : > { %v18367_v58 = vpop.eup %18366  ;;  %18384 = vrcp.f32 %v4614_v45  ;;  %15476 = vmatprep.mubr.msk.f32.mxu0 %vm919_vm0, %v18365_v50  ;;  %v13300_v59 = vmul.f32 -1.442695, %v4455_v57  ;;  %v13335_v57 = vld [vmem:[%s23932_s17 + $0x88] sm:$0xff] }
 0x92a   : > { %v18369_v8 = vpop.eup %18368  ;;  %18386 = vpow2.f32 %v13298_v42  ;;  %15477 = vmatmul.mubr.msk.f32.gmra.mrb[86].mxu0 %vm919_vm0, %v18363_v43  ;;  %v4617_v5 = vadd.f32 1.0, %v18367_v58 }
 0x92b   : > { %v4616_v61 = vadd.f32 1.0, %v18369_v8  ;;  %18388 = vpow2.f32 %v13301_v55  ;;  %v13334_v55 = vld [vmem:[%s23932_s17 + $0x80] sm:$0xff]  ;;  %v13336_v8 = vld [vmem:[%s23932_s17 + $0x90] sm:$0xff] }
 0x92c   : > { %v18371_v0 = vpop.eup %18370  ;;  %18390 = vrcp.f32 %v4615_v53  ;;  %v17076_v58 = vpack.c.bf16 %v13335_v57, %v13334_v55 }
 0x92d   : > { %v18373_v6 = vpop.eup %18372  ;;  %18392 = vrcp.f32 %v4616_v61  ;;  %v4619_v15 = vadd.f32 1.0, %v18371_v0  ;;  %v13338_v0 = vld [vmem:[%s23932_s17 + $0xa0] sm:$0xff] }
 0x92e   : > { %v18375_v7 = vpop.eup %18374  ;;  %18394 = vpow2.f32 %v13300_v59  ;;  %15479 = vmatprep.mubr.msk.f32.mxu0 %vm919_vm0, %v18373_v6  ;;  %17077 = vmatprep.subr.bf16.mxu0 %v17076_v58  ;;  %v13337_v59 = vld [vmem:[%s23932_s17 + $0x98] sm:$0xff] }
 0x92f   : > { %v18377_v10 = vpop.eup %18376  ;;  %15480 = vmatmul.mubr.msk.f32.gmra.mrb[88].mxu0 %vm919_vm0, %v18375_v7  ;;  %18396 = vrcp.f32 %v4617_v5  ;;  %v17080_v61 = vpack.c.bf16 %v13337_v59, %v13336_v8  ;;  %v13339_v5 = vld [vmem:[%s23932_s17 + $0xa8] sm:$0xff]  ;;  %v13340_v7 = vld [vmem:[%s23932_s17 + $0xb0] sm:$0xff] }
 0x930   : > { %v18379_v27 = vpop.eup %18378  ;;  %15482 = vmatprep.mubr.msk.f32.mxu0 %vm919_vm0, %v18377_v10  ;;  %17079 = vmatpush3.bf16.msra.mxu0 %v17076_v58  ;;  %v17084_v6 = vpack.c.bf16 %v13339_v5, %v13338_v0  ;;  %v13341_v10 = vld [vmem:[%s23932_s17 + $0xb8] sm:$0xff] }
 0x931   : > { %v18381_v16 = vpop.eup %18380  ;;  %v4618_v18 = vadd.f32 1.0, %v18379_v27  ;;  %17081 = vmatprep.subr.bf16.mxu0 %v17080_v61  ;;  %v17088_v27 = vpack.c.bf16 %v13341_v10, %v13340_v7 }
 0x932   : > { %v18383_v19 = vpop.eup %18382  ;;  %v4621_v44 = vadd.f32 1.0, %v18381_v16  ;;  %v13343_v16 = vld [vmem:[%s23932_s17 + $0xc8] sm:$0xff] }
 0x933   : > { %v18385_v20 = vpop.eup %18384  ;;  %18398 = vrcp.f32 %v4618_v18  ;;  %15483 = vmatmul.mubr.msk.f32.gmra.mrb[90].mxu0 %vm919_vm0, %v18383_v19  ;;  %v13344_v19 = vld [vmem:[%s23932_s17 + $0xd0] sm:$0xff] }
 0x934   : > { %v18387_v21 = vpop.eup %18386  ;;  %18400 = vrcp.f32 %v4619_v15  ;;  %15485 = vmatprep.mubr.msk.f32.mxu0 %vm919_vm0, %v18385_v20  ;;  %17083 = vmatpush3.bf16.msra.mxu0 %v17080_v61  ;;  %v13342_v15 = vld [vmem:[%s23932_s17 + $0xc0] sm:$0xff]  ;;  %v13345_v20 = vld [vmem:[%s23932_s17 + $0xd8] sm:$0xff] }
 0x935   : > { %v18389_v24 = vpop.eup %18388  ;;  %v4620_v2 = vadd.f32 1.0, %v18387_v21  ;;  %17085 = vmatprep.subr.bf16.mxu0 %v17084_v6  ;;  %v17092_v18 = vpack.c.bf16 %v13343_v16, %v13342_v15  ;;  %v17096_v21 = vpack.c.bf16 %v13345_v20, %v13344_v19 }
 0x936   : > { %v18391_v13 = vpop.eup %18390  ;;  %v4623_v33 = vadd.f32 1.0, %v18389_v24  ;;  %v13347_v24 = vld [vmem:[%s23932_s17 + $0xe8] sm:$0xff] }
 0x937   : > { %v18393_v30 = vpop.eup %18392  ;;  %18402 = vrcp.f32 %v4620_v2  ;;  %15486 = vmatmul.mubr.msk.f32.gmra.mrb[92].mxu0 %vm919_vm0, %v18391_v13  ;;  %v13348_v13 = vld [vmem:[%s23932_s17 + $0xf0] sm:$0xff] }
 0x938   : > { %v18395_v29 = vpop.eup %18394  ;;  %18404 = vrcp.f32 %v4621_v44  ;;  %15488 = vmatprep.mubr.msk.f32.mxu0 %vm919_vm0, %v18393_v30  ;;  %17087 = vmatpush3.bf16.msra.mxu0 %v17084_v6  ;;  %v13346_v44 = vld [vmem:[%s23932_s17 + $0xe0] sm:$0xff]  ;;  %v13349_v30 = vld [vmem:[%s23932_s17 + $0xf8] sm:$0xff] }
 0x939   : > { %v4622_v38 = vadd.f32 1.0, %v18395_v29  ;;  %v18397_v39 = vpop.eup %18396  ;;  %17089 = vmatprep.subr.bf16.mxu0 %v17088_v27  ;;  %v17100_v2 = vpack.c.bf16 %v13347_v24, %v13346_v44  ;;  %v17104_v29 = vpack.c.bf16 %v13349_v30, %v13348_v13 }
 0x93b   : > { %18406 = vrcp.f32 %v4622_v38  ;;  %15489 = vmatmul.mubr.msk.f32.gmra.mrb[94].mxu0 %vm919_vm0, %v18397_v39  ;;  %v5750_v38 = vld [vmem:[%s23932_s17 + $0x8] sm:$0xff] }
 0x93c   : > { %18408 = vrcp.f32 %v4623_v33  ;;  %17091 = vmatpush3.bf16.msra.mxu0 %v17088_v27  ;;  %v5749_v33 = vld [vmem:[%s23932_s17] sm:$0xff] }
 0x93d   : > { %v18399_v42 = vpop.eup %18398  ;;  %17093 = vmatprep.subr.bf16.mxu0 %v17092_v18  ;;  %v20062_v39 = vpack.c.bf16 %v5750_v38, %v5749_v33  ;;  %v4495_v33 = vld [vmem:[%s20119_s22 + $0xf8] sm:$0xff]  ;;  %v4464_v38 = vld [vmem:[%s20119_s22] sm:$0xff] }
 0x93e   : > { %v18401_v43 = vpop.eup %18400  ;;  %15491 = vmatprep.mubr.msk.f32.mxu0 %vm919_vm0, %v18399_v42 }
 0x93f   : > { %15492 = vmatmul.mubr.msk.f32.gmra.mrb[96].mxu0 %vm919_vm0, %v18401_v43 }
 0x940   : > { %17095 = vmatpush3.bf16.msra.mxu0 %v17092_v18 }
 0x941   : > { %v18403_v45 = vpop.eup %18402  ;;  %17097 = vmatprep.subr.bf16.mxu0 %v17096_v21 }
 0x942   : > { %v18405_v47 = vpop.eup %18404  ;;  %15494 = vmatprep.mubr.msk.f32.mxu0 %vm919_vm0, %v18403_v45 }
 0x943   : > { %15495 = vmatmul.mubr.msk.f32.gmra.mrb[98].mxu0 %vm919_vm0, %v18405_v47 }
 0x944   : > { %17099 = vmatpush3.bf16.msra.mxu0 %v17096_v21 }
 0x945   : > { %v18407_v50 = vpop.eup %18406  ;;  %17101 = vmatprep.subr.bf16.mxu0 %v17100_v2 }
 0x946   : > { %v18409_v53 = vpop.eup %18408  ;;  %15497 = vmatprep.mubr.msk.f32.mxu0 %vm919_vm0, %v18407_v50 }
 0x947   : > { %15498 = vmatmul.mubr.msk.f32.gmra.mrb[100].mxu0 %vm919_vm0, %v18409_v53 }
 0x948   : > { %17103 = vmatpush3.bf16.msra.mxu0 %v17100_v2 }
 0x949   : > { %17105 = vmatprep.subr.bf16.mxu0 %v17104_v29 }
 0x94c   : > { %17107 = vmatpush3.bf16.msra.mxu0 %v17104_v29 }
 0x94d   : > { %17109 = vmatprep.subr.bf16.mxu0 %v20062_v39 }
 0x9db   : > { %v15454_v42 = vpop.f32.mrb[70].mxu0 }
 0x9dc   : > { %v4850_v43 = vpop.f32.mrb[71].mxu0 }
 0x9dd   : > { %v20133_v41 = vmul.f32 %v4850_v43, %v4464_v38 }
 0x9df   : > { %v20065_v45 = vpop.f32.mrb[72].mxu0  ;;  %24373 = vst [vmem:[#allocation42_spill] sm:$0xff] %v20133_v41 }
 0x9e0   : > { %v4860_v47 = vpop.f32.mrb[73].mxu0 }
 0x9e1   : > { %v20162_v32 = vmul.f32 %v4860_v47, %v4466_v48  ;;  %v4468_v47 = vld [vmem:[%s20119_s22 + $0x20] sm:$0xff] }
 0x9e3   : > { %v20067_v50 = vpop.f32.mrb[74].mxu0  ;;  %24381 = vst [vmem:[#allocation49_spill] sm:$0xff] %v20162_v32 }
 0x9e4   : > { %v20069_v53 = vpop.f32.mrb[75].mxu0 }
 0x9e9   : > { %v20071_v55 = vpop.f32.mrb[76].mxu0 }
 0x9ea   : > { %v20073_v57 = vpop.f32.mrb[77].mxu0 }
 0x9ed   : > { %v20075_v58 = vpop.f32.mrb[78].mxu0 }
 0x9ee   : > { %v20077_v8 = vpop.f32.mrb[79].mxu0 }
 0x9f1   : > { %v20079_v59 = vpop.f32.mrb[80].mxu0 }
 0x9f2   : > { %v20081_v61 = vpop.f32.mrb[81].mxu0 }
 0x9f5   : > { %v20083_v0 = vpop.f32.mrb[82].mxu0 }
 0x9f6   : > { %v20085_v5 = vpop.f32.mrb[83].mxu0 }
 0x9f9   : > { %v20087_v6 = vpop.f32.mrb[84].mxu0 }
 0x9fa   : > { %v20089_v7 = vpop.f32.mrb[85].mxu0 }
 0x9fd   : > { %v20091_v10 = vpop.f32.mrb[86].mxu0 }
 0x9fe   : > { %v20093_v27 = vpop.f32.mrb[87].mxu0 }
 0xa02   : > { %v20095_v15 = vpop.f32.mrb[88].mxu0 }
 0xa03   : > { %v20097_v16 = vpop.f32.mrb[89].mxu0 }
 0xa06   : > { %v20099_v18 = vpop.f32.mrb[90].mxu0 }
 0xa07   : > { %v20101_v19 = vpop.f32.mrb[91].mxu0 }
 0xa0a   : > { %v20103_v20 = vpop.f32.mrb[92].mxu0 }
 0xa0b   : > { %v20105_v21 = vpop.f32.mrb[93].mxu0 }
 0xa0e   : > { %v20107_v44 = vpop.f32.mrb[94].mxu0 }
 0xa0f   : > { %24364 = vst [vmem:[#allocation34_spill] sm:$0xff] %v20107_v44  ;;  %v20109_v24 = vpop.f32.mrb[95].mxu0 }
 0xa10   : > { %24365 = vst [vmem:[#allocation35_spill] sm:$0xff] %v20109_v24  ;;  %v4467_v24 = vld [vmem:[%s20119_s22 + $0x18] sm:$0xff] }
 0xa12   : > { %v20111_v2 = vpop.f32.mrb[96].mxu0 }
 0xa13   : > { %24366 = vst [vmem:[#allocation36_spill] sm:$0xff] %v20111_v2  ;;  %v20114_v13 = vpop.f32.mrb[97].mxu0 }
 0xa14   : > { %24367 = vst [vmem:[#allocation37_spill] sm:$0xff] %v20114_v13  ;;  %v4465_v13 = vld [vmem:[%s20119_s22 + $0x8] sm:$0xff] }
 0xa16   : > { %v20121_v30 = vpop.f32.mrb[98].mxu0 }
 0xa17   : > { %24369 = vst [vmem:[#allocation38_spill] sm:$0xff] %v20121_v30  ;;  %v20123_v29 = vpop.f32.mrb[99].mxu0  ;;  %v5752_v30 = vld [vmem:[%s23932_s17 + $0x18] sm:$0xff] }
 0xa18   : > { %24370 = vst [vmem:[#allocation39_spill] sm:$0xff] %v20123_v29  ;;  %v5751_v29 = vld [vmem:[%s23932_s17 + $0x10] sm:$0xff] }
 0xa19   : > { %v17112_v38 = vpack.c.bf16 %v5752_v30, %v5751_v29  ;;  %v20182_v30 = vpop.permute.xlu1 %5312  ;;  %v20185_v29 = vmul.f32 %v20065_v45, %v4467_v24  ;;  %v20205_v45 = vmul.f32 %v19871_v34, %v20162_v32  ;;  %v5755_v24 = vld [vmem:[%s23932_s17 + $0x30] sm:$0xff]  ;;  %v4471_v34 = vld [vmem:[%s20119_s22 + $0x38] sm:$0xff] }
 0xa1a   : > { %v15499_v1 = vpop.f32.mrb[100].mxu0  ;;  %24383 = vst [vmem:[#allocation51_spill] sm:$0xff] %v20182_v30 }
 0xa1b   : > { %v20130_v2 = vmul.f32 %v15499_v1, %v4495_v33  ;;  %v5000_v3 = vpop.f32.mrb[101].mxu0  ;;  %v20157_v33 = vmul.f32 %v15454_v42, %v4465_v13  ;;  %v5753_v42 = vld [vmem:[%s23932_s17 + $0x20] sm:$0xff]  ;;  %v5754_v13 = vld [vmem:[%s23932_s17 + $0x28] sm:$0xff]  ;;  %24384 = vst [vmem:[#allocation52_spill] sm:$0xff] %v20185_v29  ;;  %24390 = vst [vmem:[#allocation56_spill] sm:$0xff] %v20205_v45 }
 0xa1c   : > { %v20135_v44 = vmul.f32 %v5000_v3, %v4494_v52  ;;  %v24378_v3 = vlaneseq  ;;  %v17116_v48 = vpack.c.bf16 %v5754_v13, %v5753_v42  ;;  %v5756_v42 = vld [vmem:[%s23932_s17 + $0x38] sm:$0xff]  ;;  %v4470_v13 = vld [vmem:[%s20119_s22 + $0x30] sm:$0xff] }
 0xa1d   : > { %24372 = vst [vmem:[#allocation41_spill] sm:$0xff] %v20130_v2  ;;  %v20148_v1 = vmul.f32 %v19842_v25, %v20130_v2  ;;  %24379 = vst [vmem:[#allocation47_spill] sm:$0xff] %v20157_v33  ;;  %v20168_v25 = vmul.f32 %v19858_v17, %v20133_v41  ;;  %v20189_v37 = vmul.f32 %v19754_v56, %v20157_v33  ;;  %v4492_v33 = vld [vmem:[%s20119_s22 + $0xe0] sm:$0xff] }
 0xa1e   : > { %24374 = vst [vmem:[#allocation43_spill] sm:$0xff] %v20135_v44  ;;  %v20152_v52 = vmul.f32 %v19746_v54, %v20135_v44  ;;  %v20155_v43 = vshrl.u32 %v24378_v3, 7  ;;  %v20201_v44 = vmul.f32 %v20069_v53, %v4468_v47  ;;  %v17120_v47 = vpack.c.bf16 %v5756_v42, %v5755_v24  ;;  %v4472_v24 = vld [vmem:[%s20119_s22 + $0x40] sm:$0xff] }
 0xa1f   : > { %24376 = vst [vmem:[#allocation45_spill] sm:$0xff] %v20148_v1  ;;  %24382 = vst [vmem:[#allocation50_spill] sm:$0xff] %v20168_v25  ;;  %v24386_v3 = vrot.slane %v20148_v1, 1  ;;  %v20227_v56 = vmul.f32 %v20073_v57, %v4470_v13  ;;  %v20245_v57 = vmul.f32 %v20071_v55, %v4471_v34  ;;  %v5759_v34 = vld [vmem:[%s23932_s17 + $0x50] sm:$0xff]  ;;  %v5760_v55 = vld [vmem:[%s23932_s17 + $0x58] sm:$0xff] }
 0xa20   : > { %24377 = vst [vmem:[#allocation46_spill] sm:$0xff] %v20152_v52  ;;  %15532 = vmatprep.mubr.f32.mxu0 %v20152_v52  ;;  %vm5524_vm3 = vcmp.lt.s32.totalorder %v20155_v43, 7  ;;  %24385 = vst [vmem:[#allocation53_spill] sm:$0xff] %v20189_v37  ;;  %v24387_v17 = vrot.slane %v20152_v52, 1  ;;  %v20231_v32 = vmul.f32 %v19884_v40, %v20201_v44  ;;  %v5233_v2 = vrot.slane %v20152_v52, 7  ;;  %v24452_v52 = vld [vmem:[#allocation44_spill] sm:$0xff] }
 0xa21   : > { %15533 = vmatmul.mubr.f32.vlgmr.msra.gmra.mrb[102].mxu0 %v20148_v1  ;;  %24389 = vst [vmem:[#allocation55_spill] sm:$0xff] %v20201_v44  ;;  %24393 = vst [vmem:[#allocation59_spill] sm:$0xff] %v20227_v56  ;;  %v20255_v44 = vmul.f32 %v20077_v8, %v4472_v24  ;;  %v17128_v24 = vpack.c.bf16 %v5760_v55, %v5759_v34  ;;  %vm5267_vm4 = vcmp.lt.s32.totalorder %v20155_v43, 1 }
 0xa22   : > { %15535 = vmatprep.mubr.f32.mxu0 %v20168_v25  ;;  %17111 = vmatpush3.bf16.msra.mxu0 %v20062_v39  ;;  %v20197_v54 = vsel %vm5524_vm3, %v24387_v17, %v24386_v3  ;;  %v4469_v39 = vld [vmem:[%s20119_s22 + $0x28] sm:$0xff]  ;;  %v20215_v17 = vpop.permute.xlu0 %5317  ;;  %v20223_v3 = vmul.f32 %v19768_v60, %v20185_v29  ;;  %24395 = vst [vmem:[#allocation61_spill] sm:$0xff] %v20245_v57 }
 0xa23   : > { %17113 = vmatprep.subr.bf16.mxu0 %v17112_v38  ;;  %24388 = vst [vmem:[#allocation54_spill] sm:$0xff] %v20197_v54  ;;  %24391 = vst [vmem:[#allocation57_spill] sm:$0xff] %v20215_v17  ;;  %v20219_v53 = vmul.f32 %v20067_v50, %v4469_v39  ;;  %v5757_v50 = vld [vmem:[%s23932_s17 + $0x40] sm:$0xff]  ;;  %v20239_v39 = vpop.permute.xlu1 %5322  ;;  %v4473_v60 = vld [vmem:[%s20119_s22 + $0x48] sm:$0xff]  ;;  %v20259_v29 = vmul.f32 %v19897_v46, %v20227_v56  ;;  %v20285_v56 = vmul.f32 %v19910_v51, %v20255_v44 }
 0xa24   : > { %24394 = vst [vmem:[#allocation60_spill] sm:$0xff] %v20239_v39  ;;  %24397 = vst [vmem:[#allocation63_spill] sm:$0xff] %v20255_v44  ;;  %v4475_v46 = vld [vmem:[%s20119_s22 + $0x58] sm:$0xff]  ;;  %v4477_v51 = vld [vmem:[%s20119_s22 + $0x68] sm:$0xff]  ;;  %v5237_v54 = vrot.slane %v20205_v45, 7 }
 0xa25   : > { %15536 = vmatmul.mubr.f32.gmra.mrb[104].mxu0 %v20189_v37  ;;  %24392 = vst [vmem:[#allocation58_spill] sm:$0xff] %v20219_v53  ;;  %v20249_v42 = vmul.f32 %v19776_v63, %v20219_v53 }
 0xa26   : > { %15538 = vmatprep.mubr.f32.mxu0 %v20205_v45  ;;  %17115 = vmatpush3.bf16.msra.mxu0 %v17112_v38  ;;  %v5758_v38 = vld [vmem:[%s23932_s17 + $0x48] sm:$0xff]  ;;  %v20251_v40 = vpop.permute.xlu0 %5327  ;;  %v13354_v45 = vld [vmem:[%s23932_s17 + $0x120] sm:$0xff] }
 0xa27   : > { %17117 = vmatprep.subr.bf16.mxu0 %v17116_v48  ;;  %v17124_v13 = vpack.c.bf16 %v5758_v38, %v5757_v50  ;;  %24396 = vst [vmem:[#allocation62_spill] sm:$0xff] %v20251_v40  ;;  %v20270_v8 = vpop.permute.xlu1 %5332  ;;  %v20273_v50 = vmul.f32 %v20075_v58, %v4473_v60  ;;  %v20277_v38 = vmul.f32 %v19790_v12, %v20245_v57  ;;  %v5761_v60 = vld [vmem:[%s23932_s17 + $0x60] sm:$0xff]  ;;  %v5762_v58 = vld [vmem:[%s23932_s17 + $0x68] sm:$0xff] }
 0xa28   : > { %24398 = vst [vmem:[#allocation64_spill] sm:$0xff] %v20270_v8  ;;  %v24436_v57 = vld [vmem:[#allocation31_spill] sm:$0xff] }
 0xa29   : > { %15539 = vmatmul.mubr.f32.gmra.mrb[106].mxu0 %v20223_v3  ;;  %24399 = vst [vmem:[#allocation65_spill] sm:$0xff] %v20273_v50  ;;  %v20303_v55 = vmul.f32 %v19798_v9, %v20273_v50  ;;  %v4479_v9 = vld [vmem:[%s20119_s22 + $0x78] sm:$0xff] }
 0xa2a   : > { %15541 = vmatprep.mubr.f32.mxu0 %v20231_v32  ;;  %17119 = vmatpush3.bf16.msra.mxu0 %v17116_v48  ;;  %v4474_v48 = vld [vmem:[%s20119_s22 + $0x50] sm:$0xff]  ;;  %v20295_v34 = vpop.permute.xlu0 %5337 }
 0xa2b   : > { %17121 = vmatprep.subr.bf16.mxu0 %v17120_v47  ;;  %v20281_v63 = vmul.f32 %v20081_v61, %v4474_v48  ;;  %24401 = vst [vmem:[#allocation67_spill] sm:$0xff] %v20295_v34  ;;  %v20299_v61 = vmul.f32 %v20079_v59, %v4475_v46  ;;  %v17132_v48 = vpack.c.bf16 %v5762_v58, %v5761_v60  ;;  %v5763_v46 = vld [vmem:[%s23932_s17 + $0x70] sm:$0xff]  ;;  %v5764_v59 = vld [vmem:[%s23932_s17 + $0x78] sm:$0xff] }
 0xa2c   : > { %v4478_v60 = vld [vmem:[%s20119_s22 + $0x70] sm:$0xff] }
 0xa2d   : > { %15542 = vmatmul.mubr.f32.gmra.mrb[108].mxu0 %v20249_v42  ;;  %24400 = vst [vmem:[#allocation66_spill] sm:$0xff] %v20281_v63  ;;  %24402 = vst [vmem:[#allocation68_spill] sm:$0xff] %v20299_v61  ;;  %v20311_v44 = vmul.f32 %v19920_v4, %v20281_v63  ;;  %v20329_v58 = vmul.f32 %v19812_v14, %v20299_v61  ;;  %v20335_v63 = vmul.f32 %v20089_v7, %v4478_v60  ;;  %v4481_v14 = vld [vmem:[%s20119_s22 + $0x88] sm:$0xff]  ;;  %v4482_v61 = vld [vmem:[%s20119_s22 + $0x90] sm:$0xff] }
 0xa2e   : > { %15544 = vmatprep.mubr.f32.mxu0 %v20259_v29  ;;  %17123 = vmatpush3.bf16.msra.mxu0 %v17120_v47  ;;  %v4476_v47 = vld [vmem:[%s20119_s22 + $0x60] sm:$0xff]  ;;  %v20331_v4 = vpop.permute.xlu0 %5347 }
 0xa2f   : > { %17125 = vmatprep.subr.bf16.mxu0 %v17124_v13  ;;  %v20307_v12 = vmul.f32 %v20085_v5, %v4476_v47  ;;  %v20325_v5 = vmul.f32 %v20083_v0, %v4477_v51  ;;  %v17136_v47 = vpack.c.bf16 %v5764_v59, %v5763_v46  ;;  %24406 = vst [vmem:[#allocation72_spill] sm:$0xff] %v20331_v4  ;;  %24407 = vst [vmem:[#allocation73_spill] sm:$0xff] %v20335_v63  ;;  %v13350_v51 = vld [vmem:[%s23932_s17 + $0x100] sm:$0xff]  ;;  %v13351_v0 = vld [vmem:[%s23932_s17 + $0x108] sm:$0xff] }
 0xa30   : > { %v4480_v46 = vld [vmem:[%s20119_s22 + $0x80] sm:$0xff]  ;;  %v20353_v59 = vmul.f32 %v20087_v6, %v4479_v9  ;;  %v20375_v6 = vmul.f32 %v20091_v10, %v4481_v14 }
 0xa31   : > { %15545 = vmatmul.mubr.f32.gmra.mrb[110].mxu0 %v20277_v38  ;;  %24403 = vst [vmem:[#allocation69_spill] sm:$0xff] %v20307_v12  ;;  %24405 = vst [vmem:[#allocation71_spill] sm:$0xff] %v20325_v5  ;;  %v20357_v60 = vmul.f32 %v19820_v35, %v20325_v5  ;;  %v4484_v14 = vld [vmem:[%s20119_s22 + $0xa0] sm:$0xff]  ;;  %v4486_v35 = vld [vmem:[%s20119_s22 + $0xb0] sm:$0xff] }
 0xa32   : > { %15547 = vmatprep.mubr.f32.mxu0 %v20285_v56  ;;  %17127 = vmatpush3.bf16.msra.mxu0 %v17124_v13  ;;  %v20319_v13 = vpop.permute.xlu1 %5342  ;;  %24409 = vst [vmem:[#allocation75_spill] sm:$0xff] %v20353_v59  ;;  %v20371_v9 = vpop.permute.xlu0 %5357  ;;  %24412 = vst [vmem:[#allocation78_spill] sm:$0xff] %v20375_v6 }
 0xa33   : > { %17129 = vmatprep.subr.bf16.mxu0 %v17128_v24  ;;  %24404 = vst [vmem:[#allocation70_spill] sm:$0xff] %v20319_v13  ;;  %24411 = vst [vmem:[#allocation77_spill] sm:$0xff] %v20371_v9 }
 0xa35   : > { %15548 = vmatmul.mubr.f32.gmra.mrb[112].mxu0 %v20303_v55 }
 0xa36   : > { %15550 = vmatprep.mubr.f32.mxu0 %v20311_v44  ;;  %17131 = vmatpush3.bf16.msra.mxu0 %v17128_v24  ;;  %v20339_v24 = vmul.f32 %v19925_v62, %v20307_v12  ;;  %v20350_v7 = vpop.permute.xlu1 %5352  ;;  %v20359_v62 = vpack.c.bf16 %v13351_v0, %v13350_v51  ;;  %v20363_v12 = vmul.f32 %v20093_v27, %v4480_v46  ;;  %v4483_v51 = vld [vmem:[%s20119_s22 + $0x98] sm:$0xff] }
 0xa37   : > { %17133 = vmatprep.subr.bf16.mxu0 %v17132_v48  ;;  %24408 = vst [vmem:[#allocation74_spill] sm:$0xff] %v20350_v7  ;;  %v20379_v27 = vmul.f32 %v19834_v22, %v20353_v59  ;;  %v20384_v0 = vmul.f32 %v20097_v16, %v4482_v61  ;;  %v20396_v10 = vmul.f32 %v20095_v15, %v4483_v51  ;;  %v20402_v61 = vpop.permute.xlu0 %5367 }
 0xa38   : > { %24410 = vst [vmem:[#allocation76_spill] sm:$0xff] %v20363_v12  ;;  %v20388_v46 = vmul.f32 %v19938_v28, %v20363_v12  ;;  %v20400_v16 = vmul.f32 %v19844_v26, %v20375_v6  ;;  %24416 = vst [vmem:[#allocation82_spill] sm:$0xff] %v20402_v61  ;;  %v20406_v28 = vmul.f32 %v20101_v19, %v4484_v14  ;;  %v4487_v14 = vld [vmem:[%s20119_s22 + $0xb8] sm:$0xff] }
 0xa39   : > { %15551 = vmatmul.mubr.f32.gmra.mrb[114].mxu0 %v20329_v58  ;;  %24413 = vst [vmem:[#allocation79_spill] sm:$0xff] %v20384_v0  ;;  %24415 = vst [vmem:[#allocation81_spill] sm:$0xff] %v20396_v10  ;;  %v20410_v22 = vmul.f32 %v19946_v49, %v20384_v0  ;;  %v20422_v19 = vmul.f32 %v19860_v31, %v20396_v10  ;;  %v20426_v49 = vmul.f32 %v20105_v21, %v4486_v35  ;;  %v4488_v0 = vld [vmem:[%s20119_s22 + $0xc0] sm:$0xff]  ;;  %v4489_v35 = vld [vmem:[%s20119_s22 + $0xc8] sm:$0xff] }
 0xa3a   : > { %15553 = vmatprep.mubr.f32.mxu0 %v20339_v24  ;;  %17135 = vmatpush3.bf16.msra.mxu0 %v17132_v48  ;;  %v20367_v48 = vmul.f32 %v19933_v23, %v20335_v63  ;;  %v20390_v23 = vpop.permute.xlu1 %5362  ;;  %24417 = vst [vmem:[#allocation83_spill] sm:$0xff] %v20406_v28  ;;  %v20430_v26 = vmul.f32 %v19951_v11, %v20406_v28  ;;  %v24424_v21 = vld [vmem:[#allocation35_spill] sm:$0xff]  ;;  %v24426_v10 = vld [vmem:[#allocation30_spill] sm:$0xff]  ;;  %v4490_v63 = vld [vmem:[%s20119_s22 + $0xd0] sm:$0xff] }
 0xa3b   : > { %17137 = vmatprep.subr.bf16.mxu0 %v17136_v47  ;;  %24414 = vst [vmem:[#allocation80_spill] sm:$0xff] %v20390_v23  ;;  %24420 = vst [vmem:[#allocation86_spill] sm:$0xff] %v20426_v49  ;;  %v20434_v6 = vpop.permute.xlu0 %5377  ;;  %v20446_v11 = vmul.f32 %v24424_v21, %v4488_v0  ;;  %v4493_v28 = vld [vmem:[%s20119_s22 + $0xe8] sm:$0xff]  ;;  %v20451_v12 = vmul.f32 %v24426_v10, %v20426_v49  ;;  %v4491_v10 = vld [vmem:[%s20119_s22 + $0xd8] sm:$0xff] }
 0xa3c   : > { %24421 = vst [vmem:[#allocation87_spill] sm:$0xff] %v20434_v6  ;;  %v24432_v0 = vld [vmem:[#allocation19_spill] sm:$0xff]  ;;  %v24434_v49 = vld [vmem:[#allocation37_spill] sm:$0xff] }
 0xa3d   : > { %15554 = vmatmul.mubr.f32.gmra.mrb[116].mxu0 %v20357_v60  ;;  %24425 = vst [vmem:[#allocation35_spill] sm:$0xff] %v20446_v11  ;;  %v20472_v50 = vmul.f32 %v24434_v49, %v4490_v63  ;;  %v20476_v53 = vmul.f32 %v24436_v57, %v20446_v11  ;;  %v24441_v63 = vld [vmem:[#allocation33_spill] sm:$0xff]  ;;  %v24442_v57 = vld [vmem:[#allocation39_spill] sm:$0xff] }
 0xa3e   : > { %15556 = vmatprep.mubr.f32.mxu0 %v20367_v48  ;;  %17139 = vmatpush3.bf16.msra.mxu0 %v17136_v47  ;;  %v4485_v47 = vld [vmem:[%s20119_s22 + $0xa8] sm:$0xff]  ;;  %v20415_v15 = vpop.permute.xlu1 %5372  ;;  %v20495_v11 = vmul.f32 %v24442_v57, %v4492_v33  ;;  %v5234_v33 = vrot.slane %v20148_v1, 7  ;;  %v13352_v1 = vld [vmem:[%s23932_s17 + $0x110] sm:$0xff] }
 0xa3f   : > { %17141 = vmatprep.subr.bf16.mxu0 %v20359_v62  ;;  %24418 = vst [vmem:[#allocation84_spill] sm:$0xff] %v20415_v15  ;;  %v20418_v51 = vmul.f32 %v20099_v18, %v4485_v47  ;;  %v20438_v18 = vmul.f32 %v20103_v20, %v4487_v14  ;;  %v24423_v47 = vld [vmem:[#allocation17_spill] sm:$0xff]  ;;  %v24428_v20 = vld [vmem:[#allocation34_spill] sm:$0xff]  ;;  %v20468_v5 = vpop.permute.xlu0 %5387  ;;  %24435 = vst [vmem:[#allocation37_spill] sm:$0xff] %v20472_v50 }
 0xa40   : > { %v20459_v14 = vmul.f32 %v24428_v20, %v4489_v35  ;;  %24433 = vst [vmem:[#allocation90_spill] sm:$0xff] %v20468_v5  ;;  %v24440_v20 = vld [vmem:[#allocation21_spill] sm:$0xff]  ;;  %24443 = vst [vmem:[#allocation39_spill] sm:$0xff] %v20495_v11  ;;  %v24448_v57 = vld [vmem:[#allocation40_spill] sm:$0xff] }
 0xa41   : > { %15557 = vmatmul.mubr.f32.gmra.mrb[118].mxu0 %v20379_v27  ;;  %24419 = vst [vmem:[#allocation85_spill] sm:$0xff] %v20418_v51  ;;  %24422 = vst [vmem:[#allocation88_spill] sm:$0xff] %v20438_v18  ;;  %v20442_v31 = vmul.f32 %v24423_v47, %v20418_v51  ;;  %v24430_v47 = vld [vmem:[#allocation38_spill] sm:$0xff]  ;;  %v20466_v21 = vmul.f32 %v24432_v0, %v20438_v18  ;;  %v24444_v18 = vld [vmem:[#allocation32_spill] sm:$0xff] }
 0xa42   : > { %15559 = vmatprep.mubr.f32.mxu0 %v20388_v46  ;;  %v20453_v59 = vpop.permute.xlu1 %5382  ;;  %24429 = vst [vmem:[#allocation34_spill] sm:$0xff] %v20459_v14  ;;  %v20462_v51 = vmul.f32 %v24430_v47, %v4493_v28  ;;  %v24438_v47 = vld [vmem:[#allocation36_spill] sm:$0xff]  ;;  %v20488_v0 = vmul.f32 %v24440_v20, %v20459_v14  ;;  %v20499_v41 = vmul.f32 %v24444_v18, %v20472_v50  ;;  %v5236_v14 = vrot.slane %v20189_v37, 7 }
 0xa43   : > { %24427 = vst [vmem:[#allocation89_spill] sm:$0xff] %v20453_v59  ;;  %v20484_v35 = vmul.f32 %v24438_v47, %v4491_v10  ;;  %v20503_v10 = vpop.permute.xlu0 %5397  ;;  %v24446_v47 = vld [vmem:[#allocation23_spill] sm:$0xff]  ;;  %v20515_v18 = vmul.f32 %v24448_v57, %v20495_v11  ;;  %v5298_v11 = vsel %vm5267_vm4, %v5233_v2, %v5234_v33 }
 0xa44   : > { %24431 = vst [vmem:[#allocation38_spill] sm:$0xff] %v20462_v51  ;;  %v20492_v49 = vmul.f32 %v24441_v63, %v20462_v51  ;;  %24445 = vst [vmem:[#allocation92_spill] sm:$0xff] %v20503_v10 }
 0xa45   : > { %15560 = vmatmul.mubr.f32.gmra.mrb[120].mxu0 %v20400_v16  ;;  %24439 = vst [vmem:[#allocation36_spill] sm:$0xff] %v20484_v35  ;;  %v20508_v20 = vmul.f32 %v24446_v47, %v20484_v35  ;;  %24449 = vst [vmem:[#allocation94_spill] sm:$0xff] %v20515_v18  ;;  %v5235_v35 = vrot.slane %v20168_v25, 7  ;;  %v5238_v25 = vrot.slane %v20223_v3, 7 }
 0xa46   : > { %15562 = vmatprep.mubr.f32.mxu0 %v20410_v22  ;;  %v20481_v28 = vpop.permute.xlu1 %5392  ;;  %v24045_v63 = vrot.slane %v20492_v49, 7 }
 0xa47   : > { %24437 = vst [vmem:[#allocation91_spill] sm:$0xff] %v20481_v28  ;;  %24447 = vst [vmem:[#allocation93_spill] sm:$0xff] %v20508_v20  ;;  %v20526_v50 = vpop.permute.xlu0 %5407  ;;  %v5297_v37 = vsel %vm5267_vm4, %v5234_v33, %v5235_v35  ;;  %v13355_v33 = vld [vmem:[%s23932_s17 + $0x128] sm:$0xff] }
 0xa48   : > { %v5299_v47 = vsel %vm5267_vm4, %v24045_v63, %v5233_v2  ;;  %24451 = vst [vmem:[#allocation96_spill] sm:$0xff] %v20526_v50  ;;  %v13353_v63 = vld [vmem:[%s23932_s17 + $0x118] sm:$0xff]  ;;  %v5461_v2 = vmul.f32 %v20159_v36, %v5298_v11  ;;  %v5295_v11 = vsel %vm5267_vm4, %v5236_v14, %v5237_v54  ;;  %v5294_v36 = vsel %vm5267_vm4, %v5237_v54, %v5238_v25 }
 0xa49   : > { %15563 = vmatmul.mubr.f32.gmra.mrb[122].mxu0 %v20422_v19  ;;  %v5460_v57 = vmul.f32 %v24452_v52, %v5299_v47  ;;  %v17144_v52 = vpack.c.bf16 %v13353_v63, %v13352_v1  ;;  %v5240_v63 = vrot.slane %v20249_v42, 7  ;;  %v5465_v54 = vmul.f32 %v20251_v40, %v5294_v36 }
 0xa4a   : > { %15565 = vmatprep.mubr.f32.mxu0 %v20430_v26  ;;  %v20517_v51 = vpop.permute.xlu1 %5402  ;;  %v5243_v36 = vrot.slane %v20285_v56, 7 }
 0xa4b   : > { %24450 = vst [vmem:[#allocation95_spill] sm:$0xff] %v20517_v51  ;;  %v20558_v1 = vpop.permute.xlu0 %5417 }
 0xa4c   : > { %24454 = vst [vmem:[#allocation98_spill] sm:$0xff] %v20558_v1 }
 0xa4d   : > { %15566 = vmatmul.mubr.f32.gmra.mrb[124].mxu0 %v20442_v31 }
 0xa4e   : > { %15568 = vmatprep.mubr.f32.mxu0 %v20451_v12  ;;  %v20542_v47 = vpop.permute.xlu1 %5412 }
 0xa4f   : > { %24453 = vst [vmem:[#allocation97_spill] sm:$0xff] %v20542_v47 }
 0xa51   : > { %15569 = vmatmul.mubr.f32.gmra.mrb[126].mxu0 %v20466_v21 }
 0xa52   : > { %15571 = vmatprep.mubr.f32.mxu0 %v20476_v53 }
 0xa55   : > { %15572 = vmatmul.mubr.f32.gmra.mrb[128].mxu0 %v20488_v0 }
 0xa56   : > { %15574 = vmatprep.mubr.f32.mxu0 %v20499_v41 }
 0xa59   : > { %15575 = vmatmul.mubr.f32.gmra.mrb[130].mxu0 %v20508_v20  ;;  %v5296_v20 = vsel %vm5267_vm4, %v5235_v35, %v5236_v14  ;;  %v17148_v35 = vpack.c.bf16 %v13355_v33, %v13354_v45  ;;  %v13356_v14 = vld [vmem:[%s23932_s17 + $0x130] sm:$0xff]  ;;  %v20578_v33 = vpop.permute.xlu0 %5427 }
 0xa5a   : > { %15577 = vmatprep.mubr.f32.mxu0 %v20515_v18  ;;  %v5462_v18 = vmul.f32 %v20182_v30, %v5297_v37  ;;  %v5463_v37 = vmul.f32 %v20215_v17, %v5296_v20  ;;  %v5464_v30 = vmul.f32 %v20239_v39, %v5295_v11  ;;  %v5241_v20 = vrot.slane %v20259_v29, 7  ;;  %24456 = vst [vmem:[#allocation100_spill] sm:$0xff] %v20578_v33 }
 0xa5b   : > { %v5242_v11 = vrot.slane %v20277_v38, 7 }
 0xa5d   : > { %15578 = vmatmul.mubr.f32.gmra.mrb[132].mxu0 %v20492_v49 }
 0xa5e   : > { %15612 = vmatprep.mubr.f32.mxu0 %v5460_v57  ;;  %v5239_v57 = vrot.slane %v20231_v32, 7 }
 0xa60   : > { %v5293_v45 = vsel %vm5267_vm4, %v5238_v25, %v5239_v57  ;;  %v5292_v17 = vsel %vm5267_vm4, %v5239_v57, %v5240_v63  ;;  %v13359_v25 = vld [vmem:[%s23932_s17 + $0x148] sm:$0xff] }
 0xa61   : > { %15613 = vmatmul.mubr.f32.vlgmr.msra.gmra.mrb[102].mxu0 %v5461_v2  ;;  %v5466_v39 = vmul.f32 %v20270_v8, %v5293_v45  ;;  %v5467_v57 = vmul.f32 %v20295_v34, %v5292_v17  ;;  %v5290_v8 = vsel %vm5267_vm4, %v5241_v20, %v5242_v11  ;;  %v5289_v17 = vsel %vm5267_vm4, %v5242_v11, %v5243_v36  ;;  %v13363_v11 = vld [vmem:[%s23932_s17 + $0x168] sm:$0xff] }
 0xa62   : > { %15615 = vmatprep.mubr.f32.mxu0 %v5462_v18  ;;  %17143 = vmatpush3.bf16.msra.mxu0 %v20359_v62  ;;  %v13357_v18 = vld [vmem:[%s23932_s17 + $0x138] sm:$0xff]  ;;  %v20572_v62 = vpop.permute.xlu1 %5422 }
 0xa63   : > { %17145 = vmatprep.subr.bf16.mxu0 %v17144_v52  ;;  %24455 = vst [vmem:[#allocation99_spill] sm:$0xff] %v20572_v62  ;;  %v17152_v2 = vpack.c.bf16 %v13357_v18, %v13356_v14  ;;  %v5244_v18 = vrot.slane %v20303_v55, 7 }
 0xa65   : > { %15616 = vmatmul.mubr.f32.gmra.mrb[104].mxu0 %v5463_v37  ;;  %v13358_v37 = vld [vmem:[%s23932_s17 + $0x140] sm:$0xff] }
 0xa66   : > { %15618 = vmatprep.mubr.f32.mxu0 %v5464_v30  ;;  %17147 = vmatpush3.bf16.msra.mxu0 %v17144_v52  ;;  %v5291_v52 = vsel %vm5267_vm4, %v5240_v63, %v5241_v20  ;;  %v20593_v30 = vpop.permute.xlu1 %5432  ;;  %v17156_v14 = vpack.c.bf16 %v13359_v25, %v13358_v37  ;;  %v20609_v63 = vpop.permute.xlu0 %5437  ;;  %v5469_v20 = vmul.f32 %v20331_v4, %v5290_v8  ;;  %v5246_v25 = vrot.slane %v20329_v58, 7 }
 0xa67   : > { %17149 = vmatprep.subr.bf16.mxu0 %v17148_v35  ;;  %24457 = vst [vmem:[#allocation101_spill] sm:$0xff] %v20593_v30  ;;  %v5468_v45 = vmul.f32 %v20319_v13, %v5291_v52  ;;  %24458 = vst [vmem:[#allocation102_spill] sm:$0xff] %v20609_v63  ;;  %v5470_v52 = vmul.f32 %v20350_v7, %v5289_v17  ;;  %v5288_v13 = vsel %vm5267_vm4, %v5243_v36, %v5244_v18 }
 0xa68   : > { %v5247_v8 = vrot.slane %v20339_v24, 7  ;;  %v5471_v36 = vmul.f32 %v20371_v9, %v5288_v13  ;;  %v5248_v17 = vrot.slane %v20357_v60, 7  ;;  %v5249_v13 = vrot.slane %v20367_v48, 7 }
 0xa69   : > { %15619 = vmatmul.mubr.f32.gmra.mrb[106].mxu0 %v5465_v54  ;;  %v13360_v54 = vld [vmem:[%s23932_s17 + $0x150] sm:$0xff] }
 0xa6a   : > { %15621 = vmatprep.mubr.f32.mxu0 %v5466_v39  ;;  %17151 = vmatpush3.bf16.msra.mxu0 %v17148_v35  ;;  %v13361_v39 = vld [vmem:[%s23932_s17 + $0x158] sm:$0xff]  ;;  %v5245_v35 = vrot.slane %v20311_v44, 7 }
 0xa6b   : > { %17153 = vmatprep.subr.bf16.mxu0 %v17152_v2  ;;  %v17160_v37 = vpack.c.bf16 %v13361_v39, %v13360_v54  ;;  %v20628_v39 = vpop.permute.xlu0 %5447 }
 0xa6c   : > { %24460 = vst [vmem:[#allocation104_spill] sm:$0xff] %v20628_v39  ;;  %v5286_v4 = vsel %vm5267_vm4, %v5245_v35, %v5246_v25 }
 0xa6d   : > { %15622 = vmatmul.mubr.f32.gmra.mrb[108].mxu0 %v5467_v57  ;;  %v13362_v57 = vld [vmem:[%s23932_s17 + $0x160] sm:$0xff] }
 0xa6e   : > { %15624 = vmatprep.mubr.f32.mxu0 %v5468_v45  ;;  %17155 = vmatpush3.bf16.msra.mxu0 %v17152_v2  ;;  %v20622_v2 = vpop.permute.xlu1 %5442  ;;  %v5287_v45 = vsel %vm5267_vm4, %v5244_v18, %v5245_v35  ;;  %v17164_v54 = vpack.c.bf16 %v13363_v11, %v13362_v57  ;;  %v5285_v18 = vsel %vm5267_vm4, %v5246_v25, %v5247_v8  ;;  %v5250_v11 = vrot.slane %v20379_v27, 7 }
 0xa6f   : > { %17157 = vmatprep.subr.bf16.mxu0 %v17156_v14  ;;  %24459 = vst [vmem:[#allocation103_spill] sm:$0xff] %v20622_v2  ;;  %v5472_v7 = vmul.f32 %v20390_v23, %v5287_v45  ;;  %v5473_v35 = vmul.f32 %v20402_v61, %v5286_v4  ;;  %v5474_v45 = vmul.f32 %v20415_v15, %v5285_v18  ;;  %v20659_v25 = vpop.permute.xlu0 %5457 }
 0xa70   : > { %v5284_v23 = vsel %vm5267_vm4, %v5247_v8, %v5248_v17  ;;  %v5283_v4 = vsel %vm5267_vm4, %v5248_v17, %v5249_v13  ;;  %24462 = vst [vmem:[#allocation106_spill] sm:$0xff] %v20659_v25  ;;  %v5282_v15 = vsel %vm5267_vm4, %v5249_v13, %v5250_v11  ;;  %v5253_v17 = vrot.slane %v20410_v22, 7 }
 0xa71   : > { %15625 = vmatmul.mubr.f32.gmra.mrb[110].mxu0 %v5469_v20  ;;  %v13364_v20 = vld [vmem:[%s23932_s17 + $0x170] sm:$0xff]  ;;  %v5475_v8 = vmul.f32 %v20434_v6, %v5284_v23  ;;  %v5476_v18 = vmul.f32 %v20453_v59, %v5283_v4  ;;  %v5477_v23 = vmul.f32 %v20468_v5, %v5282_v15  ;;  %v5255_v4 = vrot.slane %v20430_v26, 7 }
 0xa72   : > { %15627 = vmatprep.mubr.f32.mxu0 %v5470_v52  ;;  %17159 = vmatpush3.bf16.msra.mxu0 %v17156_v14  ;;  %v13365_v14 = vld [vmem:[%s23932_s17 + $0x178] sm:$0xff]  ;;  %v20643_v52 = vpop.permute.xlu1 %5452 }
 0xa73   : > { %17161 = vmatprep.subr.bf16.mxu0 %v17160_v37  ;;  %24461 = vst [vmem:[#allocation105_spill] sm:$0xff] %v20643_v52  ;;  %v17168_v57 = vpack.c.bf16 %v13365_v14, %v13364_v20  ;;  %v5252_v14 = vrot.slane %v20400_v16, 7 }
 0xa75   : > { %15628 = vmatmul.mubr.f32.gmra.mrb[112].mxu0 %v5471_v36  ;;  %v13366_v36 = vld [vmem:[%s23932_s17 + $0x180] sm:$0xff] }
 0xa76   : > { %15630 = vmatprep.mubr.f32.mxu0 %v5472_v7  ;;  %17163 = vmatpush3.bf16.msra.mxu0 %v17160_v37  ;;  %v13367_v7 = vld [vmem:[%s23932_s17 + $0x188] sm:$0xff]  ;;  %v5251_v37 = vrot.slane %v20388_v46, 7 }
 0xa77   : > { %17165 = vmatprep.subr.bf16.mxu0 %v17164_v54  ;;  %v20662_v20 = vpack.c.bf16 %v13367_v7, %v13366_v36  ;;  %v5254_v36 = vrot.slane %v20422_v19, 7 }
 0xa78   : > { %v5280_v7 = vsel %vm5267_vm4, %v5251_v37, %v5252_v14 }
 0xa79   : > { %15631 = vmatmul.mubr.f32.gmra.mrb[114].mxu0 %v5473_v35  ;;  %v20668_v35 = vpop.permute.xlu1 %5559  ;;  %v5479_v15 = vmul.f32 %v20503_v10, %v5280_v7 }
 0xa7a   : > { %15633 = vmatprep.mubr.f32.mxu0 %v5474_v45  ;;  %17167 = vmatpush3.bf16.msra.mxu0 %v17164_v54  ;;  %24463 = vst [vmem:[#allocation107_spill] sm:$0xff] %v20668_v35  ;;  %v5281_v54 = vsel %vm5267_vm4, %v5250_v11, %v5251_v37  ;;  %v20675_v45 = vpop.permute.xlu0 %5564  ;;  %v5279_v11 = vsel %vm5267_vm4, %v5252_v14, %v5253_v17  ;;  %v5257_v37 = vrot.slane %v20451_v12, 7 }
 0xa7b   : > { %17169 = vmatprep.subr.bf16.mxu0 %v17168_v57  ;;  %24464 = vst [vmem:[#allocation108_spill] sm:$0xff] %v20675_v45  ;;  %v5478_v13 = vmul.f32 %v20481_v28, %v5281_v54  ;;  %v5278_v54 = vsel %vm5267_vm4, %v5253_v17, %v5254_v36  ;;  %v5259_v17 = vrot.slane %v20476_v53, 7 }
 0xa7c   : > { %v5481_v14 = vmul.f32 %v20526_v50, %v5278_v54  ;;  %v5260_v54 = vrot.slane %v20488_v0, 7 }
 0xa7d   : > { %15634 = vmatmul.mubr.f32.gmra.mrb[116].mxu0 %v5475_v8  ;;  %v5256_v8 = vrot.slane %v20442_v31, 7 }
 0xa7e   : > { %15636 = vmatprep.mubr.f32.mxu0 %v5476_v18  ;;  %17171 = vmatpush3.bf16.msra.mxu0 %v17168_v57  ;;  %v20684_v57 = vpop.permute.xlu1 %5569  ;;  %v5480_v18 = vmul.f32 %v20517_v51, %v5279_v11  ;;  %v20694_v28 = vpop.permute.xlu0 %5574 }
 0xa7f   : > { %17173 = vmatprep.subr.bf16.mxu0 %v20662_v20  ;;  %24465 = vst [vmem:[#allocation109_spill] sm:$0xff] %v20684_v57  ;;  %24466 = vst [vmem:[#allocation110_spill] sm:$0xff] %v20694_v28  ;;  %v5276_v11 = vsel %vm5267_vm4, %v5255_v4, %v5256_v8 }
 0xa81   : > { %15637 = vmatmul.mubr.f32.gmra.mrb[118].mxu0 %v5477_v23  ;;  %v5277_v23 = vsel %vm5267_vm4, %v5254_v36, %v5255_v4  ;;  %v5275_v36 = vsel %vm5267_vm4, %v5256_v8, %v5257_v37 }
 0xa82   : > { %15639 = vmatprep.mubr.f32.mxu0 %v5478_v13  ;;  %v5258_v13 = vrot.slane %v20466_v21, 7  ;;  %v5482_v7 = vmul.f32 %v20542_v47, %v5277_v23  ;;  %v20701_v51 = vpop.permute.xlu1 %5579  ;;  %v5484_v23 = vmul.f32 %v20572_v62, %v5275_v36  ;;  %v5261_v47 = vrot.slane %v20499_v41, 7  ;;  %v24471_v62 = vld [vmem:[#allocation94_spill] sm:$0xff] }
 0xa83   : > { %24467 = vst [vmem:[#allocation111_spill] sm:$0xff] %v20701_v51  ;;  %v5272_v36 = vsel %vm5267_vm4, %v5259_v17, %v5260_v54 }
 0xa84   : > { %v5274_v4 = vsel %vm5267_vm4, %v5257_v37, %v5258_v13  ;;  %v5263_v37 = vrot.slane %v24471_v62, 7 }
 0xa85   : > { %15640 = vmatmul.mubr.f32.gmra.mrb[120].mxu0 %v5479_v15  ;;  %v5483_v15 = vmul.f32 %v20558_v1, %v5276_v11  ;;  %v24470_v11 = vld [vmem:[#allocation93_spill] sm:$0xff] }
 0xa86   : > { %15642 = vmatprep.mubr.f32.mxu0 %v5480_v18  ;;  %v20707_v18 = vpop.permute.xlu0 %5584  ;;  %v20716_v8 = vpop.permute.xlu1 %5589  ;;  %v5262_v1 = vrot.slane %v24470_v11, 7 }
 0xa87   : > { %24468 = vst [vmem:[#allocation112_spill] sm:$0xff] %v20707_v18  ;;  %24469 = vst [vmem:[#allocation113_spill] sm:$0xff] %v20716_v8 }
 0xa89   : > { %15643 = vmatmul.mubr.f32.gmra.mrb[122].mxu0 %v5481_v14  ;;  %v5273_v14 = vsel %vm5267_vm4, %v5258_v13, %v5259_v17  ;;  %v5487_v13 = vmul.f32 %v20609_v63, %v5272_v36  ;;  %v5269_v17 = vsel %vm5267_vm4, %v5262_v1, %v5263_v37  ;;  %v24475_v36 = vrot.slane %v20492_v49, 7  ;;  %v24477_v63 = vld [vmem:[#allocation53_spill] sm:$0xff] }
 0xa8a   : > { %15645 = vmatprep.mubr.f32.mxu0 %v5482_v7  ;;  %v5485_v7 = vmul.f32 %v20578_v33, %v5274_v4  ;;  %v5486_v50 = vmul.f32 %v20593_v30, %v5273_v14  ;;  %v20726_v10 = vpop.permute.xlu0 %5594  ;;  %v5270_v4 = vsel %vm5267_vm4, %v5261_v47, %v5262_v1  ;;  %v20732_v14 = vpop.permute.xlu1 %5599  ;;  %v5495_v30 = vrot.slane %v24477_v63, 1  ;;  %v13368_v63 = vld [vmem:[%s23932_s17 + $0x190] sm:$0xff] }
 0xa8b   : > { %24472 = vst [vmem:[#allocation93_spill] sm:$0xff] %v20726_v10  ;;  %24473 = vst [vmem:[#allocation94_spill] sm:$0xff] %v20732_v14 }
 0xa8d   : > { %15646 = vmatmul.mubr.f32.gmra.mrb[124].mxu0 %v5483_v15  ;;  %v5271_v15 = vsel %vm5267_vm4, %v5260_v54, %v5261_v47 }
 0xa8e   : > { %15648 = vmatprep.mubr.f32.mxu0 %v5484_v23  ;;  %v5488_v23 = vmul.f32 %v20622_v2, %v5271_v15  ;;  %v20737_v54 = vpop.permute.xlu0 %5604  ;;  %v5268_v15 = vsel %vm5267_vm4, %v5263_v37, %v24475_v36  ;;  %v24476_v2 = vld [vmem:[#allocation50_spill] sm:$0xff]  ;;  %v5498_v36 = vrot.slane %v20231_v32, 1 }
 0xa8f   : > { %24474 = vst [vmem:[#allocation114_spill] sm:$0xff] %v20737_v54  ;;  %v5494_v47 = vrot.slane %v24476_v2, 1  ;;  %v5491_v1 = vmul.f32 %v20659_v25, %v5268_v15  ;;  %v13369_v2 = vld [vmem:[%s23932_s17 + $0x198] sm:$0xff] }
 0xa91   : > { %15649 = vmatmul.mubr.f32.gmra.mrb[126].mxu0 %v5485_v7  ;;  %v5489_v7 = vmul.f32 %v20628_v39, %v5270_v4  ;;  %v24480_v39 = vld [vmem:[#allocation54_spill] sm:$0xff] }
 0xa92   : > { %15651 = vmatprep.mubr.f32.mxu0 %v5486_v50  ;;  %v5490_v50 = vmul.f32 %v20643_v52, %v5269_v17  ;;  %v5717_v17 = vmul.f32 %v20668_v35, %v24480_v39  ;;  %v24481_v52 = vld [vmem:[#allocation45_spill] sm:$0xff]  ;;  %v20765_v39 = vpop.permute.xlu0 %5614 }
 0xa93   : > { %v24482_v33 = vrot.slane %v24481_v52, 1  ;;  %24483 = vst [vmem:[#allocation53_spill] sm:$0xff] %v20765_v39 }
 0xa95   : > { %15652 = vmatmul.mubr.f32.gmra.mrb[128].mxu0 %v5487_v13  ;;  %v20746_v13 = vpop.permute.xlu1 %5609  ;;  %v5554_v37 = vsel %vm5524_vm3, %v24482_v33, %v5494_v47  ;;  %v17176_v33 = vpack.c.bf16 %v13369_v2, %v13368_v63  ;;  %v5500_v2 = vrot.slane %v20259_v29, 1 }
 0xa96   : > { %15654 = vmatprep.mubr.f32.mxu0 %v5488_v23  ;;  %24478 = vst [vmem:[#allocation50_spill] sm:$0xff] %v20746_v13  ;;  %v24479_v23 = vld [vmem:[#allocation56_spill] sm:$0xff]  ;;  %v5718_v52 = vmul.f32 %v20675_v45, %v5554_v37  ;;  %v20785_v63 = vpop.permute.xlu0 %5624 }
 0xa97   : > { %v5496_v4 = vrot.slane %v24479_v23, 1  ;;  %24485 = vst [vmem:[#allocation54_spill] sm:$0xff] %v20785_v63 }
 0xa99   : > { %15655 = vmatmul.mubr.f32.gmra.mrb[130].mxu0 %v5489_v7  ;;  %v5497_v7 = vrot.slane %v20223_v3, 1  ;;  %v5552_v23 = vsel %vm5524_vm3, %v5495_v30, %v5496_v4  ;;  %v13370_v3 = vld [vmem:[%s23932_s17 + $0x1a0] sm:$0xff] }
 0xa9a   : > { %15657 = vmatprep.mubr.f32.mxu0 %v5490_v50  ;;  %v5553_v50 = vsel %vm5524_vm3, %v5494_v47, %v5495_v30  ;;  %v13371_v47 = vld [vmem:[%s23932_s17 + $0x1a8] sm:$0xff]  ;;  %v5720_v30 = vmul.f32 %v20694_v28, %v5552_v23 }
 0xa9b   : > { %v5719_v15 = vmul.f32 %v20684_v57, %v5553_v50  ;;  %v5551_v32 = vsel %vm5524_vm3, %v5496_v4, %v5497_v7  ;;  %v17180_v37 = vpack.c.bf16 %v13371_v47, %v13370_v3  ;;  %v13372_v4 = vld [vmem:[%s23932_s17 + $0x1b0] sm:$0xff]  ;;  %v5502_v3 = vrot.slane %v20285_v56, 1  ;;  %v20816_v56 = vpop.permute.xlu0 %5634 }
 0xa9c   : > { %v5721_v50 = vmul.f32 %v20701_v51, %v5551_v32  ;;  %24487 = vst [vmem:[#allocation115_spill] sm:$0xff] %v20816_v56 }
 0xa9d   : > { %15658 = vmatmul.mubr.f32.gmra.mrb[132].mxu0 %v5491_v1  ;;  %v20778_v1 = vpop.permute.xlu1 %5619 }
 0xa9e   : > { %15692 = vmatprep.mubr.f32.mxu0 %v5717_v17  ;;  %24484 = vst [vmem:[#allocation56_spill] sm:$0xff] %v20778_v1  ;;  %v5499_v17 = vrot.slane %v20249_v42, 1  ;;  %v5550_v42 = vsel %vm5524_vm3, %v5497_v7, %v5498_v36 }
 0xa9f   : > { %v5722_v7 = vmul.f32 %v20707_v18, %v5550_v42  ;;  %v5504_v42 = vrot.slane %v20311_v44, 1 }
 0xaa0   : > { %v5548_v32 = vsel %vm5524_vm3, %v5499_v17, %v5500_v2 }
 0xaa1   : > { %15693 = vmatmul.mubr.f32.vlgmr.msra.gmra.mrb[102].mxu0 %v5718_v52  ;;  %v5501_v52 = vrot.slane %v20277_v38, 1  ;;  %v20800_v29 = vpop.permute.xlu1 %5629  ;;  %v13374_v38 = vld [vmem:[%s23932_s17 + $0x1c0] sm:$0xff] }
 0xaa2   : > { %15695 = vmatprep.mubr.f32.mxu0 %v5719_v15  ;;  %17175 = vmatpush3.bf16.msra.mxu0 %v20662_v20  ;;  %v13373_v20 = vld [vmem:[%s23932_s17 + $0x1b8] sm:$0xff]  ;;  %v5549_v15 = vsel %vm5524_vm3, %v5498_v36, %v5499_v17  ;;  %24486 = vst [vmem:[#allocation45_spill] sm:$0xff] %v20800_v29  ;;  %v5503_v36 = vrot.slane %v20303_v55, 1  ;;  %v5724_v17 = vmul.f32 %v20726_v10, %v5548_v32  ;;  %v13376_v55 = vld [vmem:[%s23932_s17 + $0x1d0] sm:$0xff]  ;;  %v5506_v32 = vrot.slane %v20339_v24, 1 }
 0xaa3   : > { %17177 = vmatprep.subr.bf16.mxu0 %v17176_v33  ;;  %v17184_v23 = vpack.c.bf16 %v13373_v20, %v13372_v4  ;;  %v5723_v47 = vmul.f32 %v20716_v8, %v5549_v15  ;;  %v5546_v20 = vsel %vm5524_vm3, %v5501_v52, %v5502_v3  ;;  %v5505_v15 = vrot.slane %v20329_v58, 1  ;;  %v13378_v58 = vld [vmem:[%s23932_s17 + $0x1e0] sm:$0xff] }
 0xaa4   : > { %v5545_v44 = vsel %vm5524_vm3, %v5502_v3, %v5503_v36  ;;  %v5507_v3 = vrot.slane %v20357_v60, 1  ;;  %v13380_v60 = vld [vmem:[%s23932_s17 + $0x1f0] sm:$0xff] }
 0xaa5   : > { %15696 = vmatmul.mubr.f32.gmra.mrb[104].mxu0 %v5720_v30  ;;  %v5547_v30 = vsel %vm5524_vm3, %v5500_v2, %v5501_v52  ;;  %v13377_v2 = vld [vmem:[%s23932_s17 + $0x1d8] sm:$0xff]  ;;  %v5726_v52 = vmul.f32 %v20737_v54, %v5546_v20 }
 0xaa6   : > { %15698 = vmatprep.mubr.f32.mxu0 %v5721_v50  ;;  %17179 = vmatpush3.bf16.msra.mxu0 %v17176_v33  ;;  %v13375_v33 = vld [vmem:[%s23932_s17 + $0x1c8] sm:$0xff]  ;;  %v5725_v4 = vmul.f32 %v20732_v14, %v5547_v30  ;;  %v5543_v30 = vsel %vm5524_vm3, %v5504_v42, %v5505_v15 }
 0xaa7   : > { %17181 = vmatprep.subr.bf16.mxu0 %v17180_v37  ;;  %v17188_v50 = vpack.c.bf16 %v13375_v33, %v13374_v38  ;;  %v5727_v38 = vmul.f32 %v20746_v13, %v5545_v44  ;;  %v5544_v33 = vsel %vm5524_vm3, %v5503_v36, %v5504_v42  ;;  %v5729_v20 = vmul.f32 %v20778_v1, %v5543_v30  ;;  %v24559_v1 = vld [vmem:[#allocation103_spill] sm:$0xff] }
 0xaa8   : > { %v5728_v36 = vmul.f32 %v20765_v39, %v5544_v33  ;;  %v5509_v42 = vrot.slane %v20379_v27, 1  ;;  %v13382_v27 = vld [vmem:[%s23932_s17 + $0x200] sm:$0xff] }
 0xaa9   : > { %15699 = vmatmul.mubr.f32.gmra.mrb[106].mxu0 %v5722_v7  ;;  %v17192_v7 = vpack.c.bf16 %v13377_v2, %v13376_v55  ;;  %v5542_v55 = vsel %vm5524_vm3, %v5505_v15, %v5506_v32  ;;  %v5541_v2 = vsel %vm5524_vm3, %v5506_v32, %v5507_v3  ;;  %v13383_v32 = vld [vmem:[%s23932_s17 + $0x208] sm:$0xff] }
 0xaaa   : > { %15701 = vmatprep.mubr.f32.mxu0 %v5723_v47  ;;  %17183 = vmatpush3.bf16.msra.mxu0 %v17180_v37  ;;  %v20829_v37 = vpop.permute.xlu1 %5639  ;;  %v20835_v47 = vpop.permute.xlu0 %5644  ;;  %v5730_v15 = vmul.f32 %v20785_v63, %v5542_v55  ;;  %v5513_v55 = vrot.slane %v20422_v19, 1  ;;  %v5515_v19 = vrot.slane %v20442_v31, 1  ;;  %v5517_v31 = vrot.slane %v20466_v21, 1 }
 0xaab   : > { %17185 = vmatprep.subr.bf16.mxu0 %v17184_v23  ;;  %24488 = vst [vmem:[#allocation116_spill] sm:$0xff] %v20829_v37  ;;  %24489 = vst [vmem:[#allocation117_spill] sm:$0xff] %v20835_v47 }
 0xaad   : > { %15702 = vmatmul.mubr.f32.gmra.mrb[108].mxu0 %v5724_v17 }
 0xaae   : > { %15704 = vmatprep.mubr.f32.mxu0 %v5725_v4  ;;  %17187 = vmatpush3.bf16.msra.mxu0 %v17184_v23  ;;  %v13379_v23 = vld [vmem:[%s23932_s17 + $0x1e8] sm:$0xff]  ;;  %v20850_v24 = vpop.permute.xlu1 %5649  ;;  %v5508_v4 = vrot.slane %v20367_v48, 1  ;;  %v20866_v48 = vpop.permute.xlu0 %5654 }
 0xaaf   : > { %17189 = vmatprep.subr.bf16.mxu0 %v17188_v50  ;;  %24490 = vst [vmem:[#allocation118_spill] sm:$0xff] %v20850_v24  ;;  %v17196_v17 = vpack.c.bf16 %v13379_v23, %v13378_v58  ;;  %24491 = vst [vmem:[#allocation119_spill] sm:$0xff] %v20866_v48  ;;  %v5511_v58 = vrot.slane %v20400_v16, 1 }
 0xab0   : > { %v5540_v33 = vsel %vm5524_vm3, %v5507_v3, %v5508_v4  ;;  %v20885_v3 = vpack.c.bf16 %v13383_v32, %v13382_v27 }
 0xab1   : > { %15705 = vmatmul.mubr.f32.gmra.mrb[110].mxu0 %v5726_v52  ;;  %v5510_v52 = vrot.slane %v20388_v46, 1  ;;  %v5539_v46 = vsel %vm5524_vm3, %v5508_v4, %v5509_v42  ;;  %v5732_v23 = vmul.f32 %v20816_v56, %v5540_v33 }
 0xab2   : > { %15707 = vmatprep.mubr.f32.mxu0 %v5727_v38  ;;  %17191 = vmatpush3.bf16.msra.mxu0 %v17188_v50  ;;  %v13381_v50 = vld [vmem:[%s23932_s17 + $0x1f8] sm:$0xff]  ;;  %v5731_v38 = vmul.f32 %v20800_v29, %v5541_v2  ;;  %v20887_v30 = vpop.permute.xlu0 %5664 }
 0xab3   : > { %17193 = vmatprep.subr.bf16.mxu0 %v17192_v7  ;;  %v17200_v44 = vpack.c.bf16 %v13381_v50, %v13380_v60  ;;  %24493 = vst [vmem:[#allocation121_spill] sm:$0xff] %v20887_v30  ;;  %v5538_v16 = vsel %vm5524_vm3, %v5509_v42, %v5510_v52  ;;  %v24555_v29 = vld [vmem:[#allocation101_spill] sm:$0xff] }
 0xab4   : > { %v5734_v60 = vmul.f32 %v20835_v47, %v5538_v16 }
 0xab5   : > { %15708 = vmatmul.mubr.f32.gmra.mrb[112].mxu0 %v5728_v36  ;;  %v5512_v36 = vrot.slane %v20410_v22, 1  ;;  %v5514_v22 = vrot.slane %v20430_v26, 1 }
 0xab6   : > { %15710 = vmatprep.mubr.f32.mxu0 %v5729_v20  ;;  %17195 = vmatpush3.bf16.msra.mxu0 %v17192_v7  ;;  %v20879_v7 = vpop.permute.xlu1 %5659  ;;  %v5733_v20 = vmul.f32 %v20829_v37, %v5539_v46  ;;  %v24551_v37 = vld [vmem:[#allocation99_spill] sm:$0xff] }
 0xab7   : > { %17197 = vmatprep.subr.bf16.mxu0 %v17196_v17  ;;  %24492 = vst [vmem:[#allocation120_spill] sm:$0xff] %v20879_v7  ;;  %v5536_v42 = vsel %vm5524_vm3, %v5511_v58, %v5512_v36  ;;  %v5535_v2 = vsel %vm5524_vm3, %v5512_v36, %v5513_v55  ;;  %v5533_v27 = vsel %vm5524_vm3, %v5514_v22, %v5515_v19  ;;  %v5519_v36 = vrot.slane %v20488_v0, 1 }
 0xab8   : > { %v5737_v26 = vmul.f32 %v20879_v7, %v5535_v2 }
 0xab9   : > { %15711 = vmatmul.mubr.f32.gmra.mrb[114].mxu0 %v5730_v15  ;;  %v20907_v15 = vpop.permute.xlu0 %5674 }
 0xaba   : > { %15713 = vmatprep.mubr.f32.mxu0 %v5731_v38  ;;  %17199 = vmatpush3.bf16.msra.mxu0 %v17196_v17  ;;  %v5537_v17 = vsel %vm5524_vm3, %v5510_v52, %v5511_v58  ;;  %v20896_v4 = vpop.permute.xlu1 %5669  ;;  %24495 = vst [vmem:[#allocation123_spill] sm:$0xff] %v20907_v15  ;;  %v5516_v52 = vrot.slane %v20451_v12, 1  ;;  %v5534_v38 = vsel %vm5524_vm3, %v5513_v55, %v5514_v22  ;;  %v5518_v12 = vrot.slane %v20476_v53, 1 }
 0xabb   : > { %17201 = vmatprep.subr.bf16.mxu0 %v17200_v44  ;;  %24494 = vst [vmem:[#allocation122_spill] sm:$0xff] %v20896_v4  ;;  %v5735_v50 = vmul.f32 %v20850_v24, %v5537_v17  ;;  %v5738_v32 = vmul.f32 %v20887_v30, %v5534_v38  ;;  %v5739_v46 = vmul.f32 %v20896_v4, %v5533_v27  ;;  %v5520_v55 = vrot.slane %v20499_v41, 1  ;;  %v24502_v27 = vld [vmem:[#allocation41_spill] sm:$0xff] }
 0xabc   : > { %v5531_v21 = vsel %vm5524_vm3, %v5516_v52, %v5517_v31  ;;  %v5530_v17 = vsel %vm5524_vm3, %v5517_v31, %v5518_v12  ;;  %v5529_v0 = vsel %vm5524_vm3, %v5518_v12, %v5519_v36  ;;  %v24547_v24 = vld [vmem:[#allocation97_spill] sm:$0xff] }
 0xabd   : > { %15714 = vmatmul.mubr.f32.gmra.mrb[116].mxu0 %v5732_v23  ;;  %v20920_v58 = vpop.permute.xlu0 %5684  ;;  %v5532_v23 = vsel %vm5524_vm3, %v5515_v19, %v5516_v52  ;;  %v5528_v19 = vsel %vm5524_vm3, %v5519_v36, %v5520_v55  ;;  %v24505_v36 = vld [vmem:[#allocation47_spill] sm:$0xff] }
 0xabe   : > { %15716 = vmatprep.mubr.f32.mxu0 %v5733_v20  ;;  %17203 = vmatpush3.bf16.msra.mxu0 %v17200_v44  ;;  %v5736_v44 = vmul.f32 %v20866_v48, %v5536_v42  ;;  %v20914_v33 = vpop.permute.xlu1 %5679  ;;  %24497 = vst [vmem:[#allocation125_spill] sm:$0xff] %v20920_v58  ;;  %v5740_v16 = vmul.f32 %v20907_v15, %v5532_v23  ;;  %v5522_v42 = vrot.slane %v24471_v62, 1 }
 0xabf   : > { %17205 = vmatprep.subr.bf16.mxu0 %v20885_v3  ;;  %24496 = vst [vmem:[#allocation124_spill] sm:$0xff] %v20914_v33  ;;  %v5741_v53 = vmul.f32 %v20914_v33, %v5531_v21  ;;  %v6507_v21 = vrot.slane %v24505_v36, 7  ;;  %v24529_v33 = vld [vmem:[#allocation71_spill] sm:$0xff] }
 0xac0   : > { %v6519_v15 = vrot.slane %v24529_v33, 7 }
 0xac1   : > { %15717 = vmatmul.mubr.f32.gmra.mrb[118].mxu0 %v5734_v60  ;;  %v5521_v60 = vrot.slane %v24470_v11, 1  ;;  %v20939_v22 = vpop.permute.xlu0 %5694  ;;  %v5523_v11 = vrot.slane %v20492_v49, 1  ;;  %v24099_v49 = vrot.slane %v24502_v27, 7 }
 0xac2   : > { %15719 = vmatprep.mubr.f32.mxu0 %v5735_v50  ;;  %v20929_v20 = vpop.permute.xlu1 %5689  ;;  %24499 = vst [vmem:[#allocation127_spill] sm:$0xff] %v20939_v22  ;;  %v5742_v50 = vmul.f32 %v20920_v58, %v5530_v17  ;;  %v5744_v52 = vmul.f32 %v20939_v22, %v5528_v19  ;;  %v24510_v19 = vld [vmem:[#allocation44_spill] sm:$0xff] }
 0xac3   : > { %24498 = vst [vmem:[#allocation126_spill] sm:$0xff] %v20929_v20  ;;  %v5743_v41 = vmul.f32 %v20929_v20, %v5529_v0  ;;  %v5526_v38 = vsel %vm5524_vm3, %v5521_v60, %v5522_v42  ;;  %v5525_v31 = vsel %vm5524_vm3, %v5522_v42, %v5523_v11  ;;  %v24508_v0 = vld [vmem:[#allocation49_spill] sm:$0xff] }
 0xac5   : > { %15720 = vmatmul.mubr.f32.gmra.mrb[120].mxu0 %v5736_v44  ;;  %v5527_v44 = vsel %vm5524_vm3, %v5520_v55, %v5521_v60  ;;  %v24506_v55 = vld [vmem:[#allocation46_spill] sm:$0xff] }
 0xac6   : > { %15722 = vmatprep.mubr.f32.mxu0 %v5737_v26  ;;  %v20946_v2 = vpop.permute.xlu1 %5699  ;;  %v20952_v26 = vpop.permute.xlu0 %5704 }
 0xac7   : > { %24500 = vst [vmem:[#allocation128_spill] sm:$0xff] %v20946_v2  ;;  %24501 = vst [vmem:[#allocation129_spill] sm:$0xff] %v20952_v26  ;;  %v5745_v62 = vmul.f32 %v20946_v2, %v5527_v44  ;;  %v5746_v12 = vmul.f32 %v20952_v26, %v5526_v38  ;;  %v13384_v38 = vld [vmem:[%s23932_s17 + $0x210] sm:$0xff] }
 0xac8   : > { %v24519_v2 = vld [vmem:[#allocation61_spill] sm:$0xff] }
 0xac9   : > { %15723 = vmatmul.mubr.f32.gmra.mrb[122].mxu0 %v5738_v32  ;;  %v6513_v22 = vrot.slane %v24519_v2, 7 }
 0xaca   : > { %15725 = vmatprep.mubr.f32.mxu0 %v5739_v46  ;;  %v20960_v32 = vpop.permute.xlu1 %5709  ;;  %v24504_v46 = vld [vmem:[#allocation42_spill] sm:$0xff]  ;;  %v20975_v42 = vpop.permute.xlu0 %5714 }
 0xacb   : > { %24503 = vst [vmem:[#allocation41_spill] sm:$0xff] %v20960_v32  ;;  %v6506_v23 = vrot.slane %v24504_v46, 7  ;;  %24509 = vst [vmem:[#allocation42_spill] sm:$0xff] %v20975_v42 }
 0xacd   : > { %15726 = vmatmul.mubr.f32.gmra.mrb[124].mxu0 %v5740_v16  ;;  %v5747_v16 = vmul.f32 %v20960_v32, %v5525_v31  ;;  %v6569_v60 = vsel %vm5267_vm4, %v24099_v49, %v6506_v23  ;;  %v13385_v31 = vld [vmem:[%s23932_s17 + $0x218] sm:$0xff] }
 0xace   : > { %15728 = vmatprep.mubr.f32.mxu0 %v5741_v53  ;;  %v24507_v53 = vrot.slane %v24506_v55, 1  ;;  %v6570_v44 = vmul.f32 %v6569_v60, %v24510_v19  ;;  %v24514_v60 = vld [vmem:[#allocation51_spill] sm:$0xff] }
 0xad0   : > { %v5556_v17 = vsel %vm5524_vm3, %v5523_v11, %v24507_v53  ;;  %v24513_v53 = vld [vmem:[#allocation48_spill] sm:$0xff] }
 0xad1   : > { %15729 = vmatmul.mubr.f32.gmra.mrb[126].mxu0 %v5742_v50  ;;  %v6508_v50 = vrot.slane %v24508_v0, 7 }
 0xad2   : > { %15731 = vmatprep.mubr.f32.mxu0 %v5743_v41  ;;  %v5748_v41 = vmul.f32 %v20975_v42, %v5556_v17  ;;  %v24515_v42 = vld [vmem:[#allocation58_spill] sm:$0xff] }
 0xad3   : > { %v6511_v32 = vrot.slane %v24515_v42, 7 }
 0xad5   : > { %15732 = vmatmul.mubr.f32.gmra.mrb[128].mxu0 %v5744_v52  ;;  %v6568_v52 = vsel %vm5267_vm4, %v6506_v23, %v6507_v21  ;;  %v17208_v23 = vpack.c.bf16 %v13385_v31, %v13384_v38 }
 0xad6   : > { %15734 = vmatprep.mubr.f32.mxu0 %v5745_v62  ;;  %v24511_v62 = vld [vmem:[#allocation52_spill] sm:$0xff]  ;;  %v6571_v17 = vmul.f32 %v6568_v52, %v24513_v53  ;;  %v24516_v52 = vld [vmem:[#allocation59_spill] sm:$0xff] }
 0xad7   : > { %v6509_v11 = vrot.slane %v24511_v62, 7  ;;  %v6512_v38 = vrot.slane %v24516_v52, 7 }
 0xad9   : > { %15735 = vmatmul.mubr.f32.gmra.mrb[130].mxu0 %v5746_v12  ;;  %v6567_v12 = vsel %vm5267_vm4, %v6507_v21, %v6508_v50  ;;  %v6566_v19 = vsel %vm5267_vm4, %v6508_v50, %v6509_v11  ;;  %v13387_v21 = vld [vmem:[%s23932_s17 + $0x228] sm:$0xff]  ;;  %v24517_v50 = vld [vmem:[#allocation57_spill] sm:$0xff] }
 0xada   : > { %15737 = vmatprep.mubr.f32.mxu0 %v5747_v16  ;;  %v24512_v16 = vld [vmem:[#allocation55_spill] sm:$0xff]  ;;  %v6572_v49 = vmul.f32 %v6567_v12, %v24514_v60  ;;  %v6573_v31 = vmul.f32 %v6566_v19, %v24517_v50  ;;  %v24518_v60 = vld [vmem:[#allocation60_spill] sm:$0xff]  ;;  %v24522_v50 = vld [vmem:[#allocation65_spill] sm:$0xff] }
 0xadb   : > { %v6510_v55 = vrot.slane %v24512_v16, 7  ;;  %v24520_v19 = vld [vmem:[#allocation63_spill] sm:$0xff]  ;;  %v6515_v20 = vrot.slane %v24522_v50, 7 }
 0xadd   : > { %15738 = vmatmul.mubr.f32.gmra.mrb[132].mxu0 %v5748_v41  ;;  %v13386_v41 = vld [vmem:[%s23932_s17 + $0x220] sm:$0xff]  ;;  %v6564_v26 = vsel %vm5267_vm4, %v6510_v55, %v6511_v32 }
 0xade   : > { %15772 = vmatprep.mubr.f32.mxu0 %v6570_v44  ;;  %v6565_v44 = vsel %vm5267_vm4, %v6509_v11, %v6510_v55  ;;  %v17212_v12 = vpack.c.bf16 %v13387_v21, %v13386_v41  ;;  %v13388_v11 = vld [vmem:[%s23932_s17 + $0x230] sm:$0xff]  ;;  %v6575_v55 = vmul.f32 %v6564_v26, %v20251_v40 }
 0xadf   : > { %v6574_v53 = vmul.f32 %v6565_v44, %v24518_v60  ;;  %v24521_v21 = vld [vmem:[#allocation64_spill] sm:$0xff]  ;;  %v6562_v60 = vsel %vm5267_vm4, %v6512_v38, %v6513_v22 }
 0xae0   : > { %v24525_v40 = vld [vmem:[#allocation68_spill] sm:$0xff] }
 0xae1   : > { %15773 = vmatmul.mubr.f32.vlgmr.msra.gmra.mrb[102].mxu0 %v6571_v17  ;;  %v6514_v17 = vrot.slane %v24520_v19, 7  ;;  %v6517_v58 = vrot.slane %v24525_v40, 7 }
 0xae2   : > { %15775 = vmatprep.mubr.f32.mxu0 %v6572_v49  ;;  %17207 = vmatpush3.bf16.msra.mxu0 %v20885_v3  ;;  %v13389_v49 = vld [vmem:[%s23932_s17 + $0x238] sm:$0xff]  ;;  %v6563_v3 = vsel %vm5267_vm4, %v6511_v32, %v6512_v38  ;;  %v13391_v32 = vld [vmem:[%s23932_s17 + $0x248] sm:$0xff]  ;;  %v6577_v38 = vmul.f32 %v6562_v60, %v20295_v34 }
 0xae3   : > { %17209 = vmatprep.subr.bf16.mxu0 %v17208_v23  ;;  %v17216_v41 = vpack.c.bf16 %v13389_v49, %v13388_v11  ;;  %v6576_v44 = vmul.f32 %v6563_v3, %v24521_v21  ;;  %v6561_v26 = vsel %vm5267_vm4, %v6513_v22, %v6514_v17  ;;  %v24524_v49 = vld [vmem:[#allocation70_spill] sm:$0xff]  ;;  %v6560_v21 = vsel %vm5267_vm4, %v6514_v17, %v6515_v20 }
 0xae4   : > { %v6578_v3 = vmul.f32 %v6561_v26, %v24524_v49  ;;  %v13393_v22 = vld [vmem:[%s23932_s17 + $0x258] sm:$0xff] }
 0xae5   : > { %15776 = vmatmul.mubr.f32.gmra.mrb[104].mxu0 %v6573_v31  ;;  %v13390_v31 = vld [vmem:[%s23932_s17 + $0x240] sm:$0xff] }
 0xae6   : > { %15778 = vmatprep.mubr.f32.mxu0 %v6574_v53  ;;  %17211 = vmatpush3.bf16.msra.mxu0 %v17208_v23  ;;  %v24523_v53 = vld [vmem:[#allocation66_spill] sm:$0xff]  ;;  %v17220_v11 = vpack.c.bf16 %v13391_v32, %v13390_v31  ;;  %v24527_v31 = vld [vmem:[#allocation72_spill] sm:$0xff] }
 0xae7   : > { %17213 = vmatprep.subr.bf16.mxu0 %v17212_v12  ;;  %v6516_v23 = vrot.slane %v24523_v53, 7  ;;  %v6579_v17 = vmul.f32 %v6560_v21, %v24527_v31  ;;  %v24528_v26 = vld [vmem:[#allocation74_spill] sm:$0xff]  ;;  %v24530_v21 = vld [vmem:[#allocation73_spill] sm:$0xff]  ;;  %v24532_v31 = vld [vmem:[#allocation75_spill] sm:$0xff] }
 0xae8   : > { %v6521_v4 = vrot.slane %v24532_v31, 7 }
 0xae9   : > { %15779 = vmatmul.mubr.f32.gmra.mrb[106].mxu0 %v6575_v55  ;;  %v13392_v55 = vld [vmem:[%s23932_s17 + $0x250] sm:$0xff]  ;;  %v6559_v60 = vsel %vm5267_vm4, %v6515_v20, %v6516_v23  ;;  %v6558_v34 = vsel %vm5267_vm4, %v6516_v23, %v6517_v58  ;;  %v13395_v20 = vld [vmem:[%s23932_s17 + $0x268] sm:$0xff] }
 0xaea   : > { %15781 = vmatprep.mubr.f32.mxu0 %v6576_v44  ;;  %17215 = vmatpush3.bf16.msra.mxu0 %v17212_v12  ;;  %v24526_v12 = vld [vmem:[#allocation69_spill] sm:$0xff]  ;;  %v17224_v32 = vpack.c.bf16 %v13393_v22, %v13392_v55  ;;  %v6580_v49 = vmul.f32 %v6559_v60, %v24528_v26  ;;  %v6581_v23 = vmul.f32 %v6558_v34, %v20371_v9  ;;  %v24531_v22 = vld [vmem:[#allocation80_spill] sm:$0xff]  ;;  %v24535_v9 = vld [vmem:[#allocation78_spill] sm:$0xff] }
 0xaeb   : > { %17217 = vmatprep.subr.bf16.mxu0 %v17216_v41  ;;  %v6518_v44 = vrot.slane %v24526_v12, 7  ;;  %v6523_v30 = vrot.slane %v24535_v9, 7 }
 0xaed   : > { %15782 = vmatmul.mubr.f32.gmra.mrb[108].mxu0 %v6577_v38  ;;  %v13394_v38 = vld [vmem:[%s23932_s17 + $0x260] sm:$0xff]  ;;  %v6556_v26 = vsel %vm5267_vm4, %v6518_v44, %v6519_v15 }
 0xaee   : > { %15784 = vmatprep.mubr.f32.mxu0 %v6578_v3  ;;  %17219 = vmatpush3.bf16.msra.mxu0 %v17216_v41  ;;  %v6557_v41 = vsel %vm5267_vm4, %v6517_v58, %v6518_v44  ;;  %v6520_v3 = vrot.slane %v24530_v21, 7  ;;  %v17228_v55 = vpack.c.bf16 %v13395_v20, %v13394_v38  ;;  %v13397_v58 = vld [vmem:[%s23932_s17 + $0x278] sm:$0xff]  ;;  %v6583_v44 = vmul.f32 %v6556_v26, %v20402_v61  ;;  %v24534_v20 = vld [vmem:[#allocation84_spill] sm:$0xff]  ;;  %v24536_v26 = vld [vmem:[#allocation79_spill] sm:$0xff] }
 0xaef   : > { %17221 = vmatprep.subr.bf16.mxu0 %v17220_v11  ;;  %v6582_v60 = vmul.f32 %v6557_v41, %v24531_v22 }
 0xaf0   : > { %v6555_v34 = vsel %vm5267_vm4, %v6519_v15, %v6520_v3  ;;  %v6554_v22 = vsel %vm5267_vm4, %v6520_v3, %v6521_v4  ;;  %v13399_v15 = vld [vmem:[%s23932_s17 + $0x288] sm:$0xff] }
 0xaf1   : > { %15785 = vmatmul.mubr.f32.gmra.mrb[110].mxu0 %v6579_v17  ;;  %v13396_v17 = vld [vmem:[%s23932_s17 + $0x270] sm:$0xff]  ;;  %v6584_v41 = vmul.f32 %v6555_v34, %v24534_v20  ;;  %v6585_v3 = vmul.f32 %v6554_v22, %v20434_v6  ;;  %v24539_v22 = vld [vmem:[#allocation91_spill] sm:$0xff] }
 0xaf2   : > { %15787 = vmatprep.mubr.f32.mxu0 %v6580_v49  ;;  %17223 = vmatpush3.bf16.msra.mxu0 %v17220_v11  ;;  %v24533_v11 = vld [vmem:[#allocation76_spill] sm:$0xff]  ;;  %v17232_v38 = vpack.c.bf16 %v13397_v58, %v13396_v17  ;;  %v24537_v20 = vld [vmem:[#allocation81_spill] sm:$0xff] }
 0xaf3   : > { %17225 = vmatprep.subr.bf16.mxu0 %v17224_v32  ;;  %v6522_v49 = vrot.slane %v24533_v11, 7  ;;  %v6525_v61 = vrot.slane %v24537_v20, 7 }
 0xaf5   : > { %15788 = vmatmul.mubr.f32.gmra.mrb[112].mxu0 %v6581_v23  ;;  %v13398_v23 = vld [vmem:[%s23932_s17 + $0x280] sm:$0xff]  ;;  %v6552_v34 = vsel %vm5267_vm4, %v6522_v49, %v6523_v30 }
 0xaf6   : > { %15790 = vmatprep.mubr.f32.mxu0 %v6582_v60  ;;  %17227 = vmatpush3.bf16.msra.mxu0 %v17224_v32  ;;  %v6553_v32 = vsel %vm5267_vm4, %v6521_v4, %v6522_v49  ;;  %v6524_v60 = vrot.slane %v24536_v26, 7  ;;  %v21091_v17 = vpack.c.bf16 %v13399_v15, %v13398_v23  ;;  %v24540_v49 = vld [vmem:[#allocation85_spill] sm:$0xff] }
 0xaf7   : > { %17229 = vmatprep.subr.bf16.mxu0 %v17228_v55  ;;  %v6586_v58 = vmul.f32 %v6553_v32, %v20453_v59  ;;  %v6527_v15 = vrot.slane %v24540_v49, 7  ;;  %v24543_v59 = vld [vmem:[#allocation95_spill] sm:$0xff] }
 0xaf8   : > { %v6551_v4 = vsel %vm5267_vm4, %v6523_v30, %v6524_v60  ;;  %v6550_v23 = vsel %vm5267_vm4, %v6524_v60, %v6525_v61  ;;  %v24541_v30 = vld [vmem:[#allocation86_spill] sm:$0xff] }
 0xaf9   : > { %15791 = vmatmul.mubr.f32.gmra.mrb[114].mxu0 %v6583_v44  ;;  %v24538_v44 = vld [vmem:[#allocation83_spill] sm:$0xff] }
 0xafa   : > { %15793 = vmatprep.mubr.f32.mxu0 %v6584_v41  ;;  %17231 = vmatpush3.bf16.msra.mxu0 %v17228_v55  ;;  %v6526_v7 = vrot.slane %v24538_v44, 7  ;;  %v6587_v55 = vmul.f32 %v6552_v34, %v20468_v5  ;;  %v6588_v41 = vmul.f32 %v6551_v4, %v24539_v22  ;;  %v24544_v4 = vld [vmem:[#allocation88_spill] sm:$0xff] }
 0xafb   : > { %17233 = vmatprep.subr.bf16.mxu0 %v17232_v38  ;;  %v6529_v22 = vrot.slane %v24544_v4, 7 }
 0xafc   : > { %v6549_v32 = vsel %vm5267_vm4, %v6525_v61, %v6526_v7  ;;  %v6548_v5 = vsel %vm5267_vm4, %v6526_v7, %v6527_v15  ;;  %v24546_v61 = vld [vmem:[#allocation96_spill] sm:$0xff] }
 0xafd   : > { %15794 = vmatmul.mubr.f32.gmra.mrb[116].mxu0 %v6585_v3  ;;  %v6528_v3 = vrot.slane %v24541_v30, 7  ;;  %v6590_v34 = vmul.f32 %v6549_v32, %v24543_v59  ;;  %v6591_v48 = vmul.f32 %v6548_v5, %v24546_v61  ;;  %v24548_v32 = vld [vmem:[#allocation34_spill] sm:$0xff] }
 0xafe   : > { %15796 = vmatprep.mubr.f32.mxu0 %v6586_v58  ;;  %17235 = vmatpush3.bf16.msra.mxu0 %v17232_v38  ;;  %v24542_v58 = vld [vmem:[#allocation92_spill] sm:$0xff]  ;;  %v6531_v59 = vrot.slane %v24548_v32, 7 }
 0xaff   : > { %17237 = vmatprep.subr.bf16.mxu0 %v21091_v17  ;;  %v6589_v38 = vmul.f32 %v6550_v23, %v24542_v58  ;;  %v6547_v60 = vsel %vm5267_vm4, %v6527_v15, %v6528_v3  ;;  %v6546_v23 = vsel %vm5267_vm4, %v6528_v3, %v6529_v22  ;;  %v24550_v15 = vld [vmem:[#allocation98_spill] sm:$0xff] }
 0xb00   : > { %v6593_v47 = vmul.f32 %v6546_v23, %v24550_v15 }
 0xb01   : > { %15797 = vmatmul.mubr.f32.gmra.mrb[118].mxu0 %v6587_v55  ;;  %v24545_v55 = vld [vmem:[#allocation35_spill] sm:$0xff] }
 0xb02   : > { %15799 = vmatprep.mubr.f32.mxu0 %v6588_v41  ;;  %v6530_v6 = vrot.slane %v24545_v55, 7  ;;  %v6592_v41 = vmul.f32 %v6547_v60, %v24547_v24  ;;  %v24552_v60 = vld [vmem:[#allocation36_spill] sm:$0xff] }
 0xb03   : > { %v6533_v24 = vrot.slane %v24552_v60, 7 }
 0xb04   : > { %v6545_v7 = vsel %vm5267_vm4, %v6529_v22, %v6530_v6  ;;  %v6544_v5 = vsel %vm5267_vm4, %v6530_v6, %v6531_v59  ;;  %v24554_v22 = vld [vmem:[#allocation100_spill] sm:$0xff] }
 0xb05   : > { %15800 = vmatmul.mubr.f32.gmra.mrb[120].mxu0 %v6589_v38  ;;  %v24549_v38 = vld [vmem:[#allocation37_spill] sm:$0xff]  ;;  %v6595_v56 = vmul.f32 %v6544_v5, %v24554_v22 }
 0xb06   : > { %15802 = vmatprep.mubr.f32.mxu0 %v6590_v34  ;;  %v6532_v58 = vrot.slane %v24549_v38, 7  ;;  %v6594_v34 = vmul.f32 %v6545_v7, %v24551_v37  ;;  %v24556_v7 = vld [vmem:[#allocation38_spill] sm:$0xff] }
 0xb07   : > { %v6535_v37 = vrot.slane %v24556_v7, 7 }
 0xb08   : > { %v6543_v3 = vsel %vm5267_vm4, %v6531_v59, %v6532_v58  ;;  %v6542_v23 = vsel %vm5267_vm4, %v6532_v58, %v6533_v24  ;;  %v24558_v59 = vld [vmem:[#allocation102_spill] sm:$0xff] }
 0xb09   : > { %15803 = vmatmul.mubr.f32.gmra.mrb[122].mxu0 %v6591_v48  ;;  %v24553_v48 = vld [vmem:[#allocation39_spill] sm:$0xff]  ;;  %v6597_v63 = vmul.f32 %v6542_v23, %v24558_v59 }
 0xb0a   : > { %15805 = vmatprep.mubr.f32.mxu0 %v6592_v41  ;;  %v6534_v61 = vrot.slane %v24553_v48, 7  ;;  %v6596_v41 = vmul.f32 %v6543_v3, %v24555_v29  ;;  %v24560_v3 = vld [vmem:[#allocation104_spill] sm:$0xff]  ;;  %v24561_v29 = vld [vmem:[#allocation105_spill] sm:$0xff] }
 0xb0c   : > { %v6541_v6 = vsel %vm5267_vm4, %v6533_v24, %v6534_v61  ;;  %v6540_v5 = vsel %vm5267_vm4, %v6534_v61, %v6535_v37  ;;  %v24562_v24 = vrot.slane %v24502_v27, 7 }
 0xb0d   : > { %15806 = vmatmul.mubr.f32.gmra.mrb[124].mxu0 %v6593_v47  ;;  %v24557_v47 = vld [vmem:[#allocation43_spill] sm:$0xff] }
 0xb0e   : > { %15808 = vmatprep.mubr.f32.mxu0 %v6594_v34  ;;  %v6536_v15 = vrot.slane %v24557_v47, 7  ;;  %v6598_v34 = vmul.f32 %v6541_v6, %v24559_v1 }
 0xb10   : > { %v6539_v58 = vsel %vm5267_vm4, %v6535_v37, %v6536_v15  ;;  %v13401_v37 = vld [vmem:[%s23932_s17 + $0x298] sm:$0xff] }
 0xb11   : > { %15809 = vmatmul.mubr.f32.gmra.mrb[126].mxu0 %v6595_v56  ;;  %v6599_v56 = vmul.f32 %v6540_v5, %v24560_v3  ;;  %v6600_v22 = vmul.f32 %v6539_v58, %v24561_v29  ;;  %v13405_v5 = vld [vmem:[%s23932_s17 + $0x2b8] sm:$0xff] }
 0xb12   : > { %15811 = vmatprep.mubr.f32.mxu0 %v6596_v41  ;;  %v6538_v41 = vsel %vm5267_vm4, %v6536_v15, %v24562_v24  ;;  %v13402_v15 = vld [vmem:[%s23932_s17 + $0x2a0] sm:$0xff] }
 0xb13   : > { %v6601_v23 = vmul.f32 %v6538_v41, %v20659_v25  ;;  %v13408_v41 = vld [vmem:[%s23932_s17 + $0x2d0] sm:$0xff]  ;;  %v13418_v25 = vld [vmem:[%s23932_s17 + $0x320] sm:$0xff] }
 0xb15   : > { %15812 = vmatmul.mubr.f32.gmra.mrb[128].mxu0 %v6597_v63  ;;  %v13400_v63 = vld [vmem:[%s23932_s17 + $0x290] sm:$0xff] }
 0xb16   : > { %15814 = vmatprep.mubr.f32.mxu0 %v6598_v34  ;;  %v17240_v61 = vpack.c.bf16 %v13401_v37, %v13400_v63  ;;  %v13404_v34 = vld [vmem:[%s23932_s17 + $0x2b0] sm:$0xff]  ;;  %v13410_v37 = vld [vmem:[%s23932_s17 + $0x2e0] sm:$0xff] }
 0xb17   : > { %v17248_v58 = vpack.c.bf16 %v13405_v5, %v13404_v34  ;;  %v13414_v5 = vld [vmem:[%s23932_s17 + $0x300] sm:$0xff] }
 0xb19   : > { %15815 = vmatmul.mubr.f32.gmra.mrb[130].mxu0 %v6599_v56  ;;  %v13407_v56 = vld [vmem:[%s23932_s17 + $0x2c8] sm:$0xff] }
 0xb1a   : > { %15817 = vmatprep.mubr.f32.mxu0 %v6600_v22  ;;  %v13403_v22 = vld [vmem:[%s23932_s17 + $0x2a8] sm:$0xff] }
 0xb1b   : > { %v17244_v6 = vpack.c.bf16 %v13403_v22, %v13402_v15  ;;  %v13412_v22 = vld [vmem:[%s23932_s17 + $0x2f0] sm:$0xff] }
 0xb1d   : > { %15818 = vmatmul.mubr.f32.gmra.mrb[132].mxu0 %v6601_v23  ;;  %v13409_v23 = vld [vmem:[%s23932_s17 + $0x2d8] sm:$0xff] }
 0xb1e   : > { %15852 = vmatprep.mubr.f32.mxu0 %v24504_v46  ;;  %v17256_v63 = vpack.c.bf16 %v13409_v23, %v13408_v41  ;;  %v6604_v41 = vrot.slane %v24508_v0, 1 }
 0xb21   : > { %15853 = vmatmul.mubr.f32.vlgmr.msra.gmra.mrb[102].mxu0 %v24505_v36 }
 0xb22   : > { %15855 = vmatprep.mubr.f32.mxu0 %v24508_v0  ;;  %17239 = vmatpush3.bf16.msra.mxu0 %v21091_v17  ;;  %v13406_v17 = vld [vmem:[%s23932_s17 + $0x2c0] sm:$0xff] }
 0xb23   : > { %17241 = vmatprep.subr.bf16.mxu0 %v17240_v61  ;;  %v17252_v24 = vpack.c.bf16 %v13407_v56, %v13406_v17  ;;  %v24154_v56 = vrot.slane %v24504_v46, 1 }
 0xb25   : > { %15856 = vmatmul.mubr.f32.gmra.mrb[104].mxu0 %v24511_v62 }
 0xb26   : > { %15858 = vmatprep.mubr.f32.mxu0 %v24512_v16  ;;  %17243 = vmatpush3.bf16.msra.mxu0 %v17240_v61  ;;  %v13411_v61 = vld [vmem:[%s23932_s17 + $0x2e8] sm:$0xff] }
 0xb27   : > { %17245 = vmatprep.subr.bf16.mxu0 %v17244_v6  ;;  %v17260_v15 = vpack.c.bf16 %v13411_v61, %v13410_v37 }
 0xb29   : > { %15859 = vmatmul.mubr.f32.gmra.mrb[106].mxu0 %v24515_v42 }
 0xb2a   : > { %15861 = vmatprep.mubr.f32.mxu0 %v24516_v52  ;;  %17247 = vmatpush3.bf16.msra.mxu0 %v17244_v6  ;;  %v13413_v6 = vld [vmem:[%s23932_s17 + $0x2f8] sm:$0xff] }
 0xb2b   : > { %17249 = vmatprep.subr.bf16.mxu0 %v17248_v58  ;;  %v17264_v34 = vpack.c.bf16 %v13413_v6, %v13412_v22  ;;  %v13416_v22 = vld [vmem:[%s23932_s17 + $0x310] sm:$0xff]  ;;  %v13417_v6 = vld [vmem:[%s23932_s17 + $0x318] sm:$0xff] }
 0xb2d   : > { %15862 = vmatmul.mubr.f32.gmra.mrb[108].mxu0 %v24519_v2 }
 0xb2e   : > { %15864 = vmatprep.mubr.f32.mxu0 %v24520_v19  ;;  %17251 = vmatpush3.bf16.msra.mxu0 %v17248_v58  ;;  %v13415_v58 = vld [vmem:[%s23932_s17 + $0x308] sm:$0xff] }
 0xb2f   : > { %17253 = vmatprep.subr.bf16.mxu0 %v17252_v24  ;;  %v17268_v17 = vpack.c.bf16 %v13415_v58, %v13414_v5  ;;  %v6607_v5 = vrot.slane %v24515_v42, 1 }
 0xb31   : > { %15865 = vmatmul.mubr.f32.gmra.mrb[110].mxu0 %v24522_v50 }
 0xb32   : > { %15867 = vmatprep.mubr.f32.mxu0 %v24523_v53  ;;  %17255 = vmatpush3.bf16.msra.mxu0 %v17252_v24  ;;  %v6603_v24 = vrot.slane %v24505_v36, 1 }
 0xb33   : > { %17257 = vmatprep.subr.bf16.mxu0 %v17256_v63 }
 0xb34   : > { %v6664_v23 = vsel %vm5524_vm3, %v24154_v56, %v6603_v24  ;;  %v6663_v61 = vsel %vm5524_vm3, %v6603_v24, %v6604_v41  ;;  %v17272_v24 = vpack.c.bf16 %v13417_v6, %v13416_v22 }
 0xb35   : > { %15868 = vmatmul.mubr.f32.gmra.mrb[112].mxu0 %v24525_v40  ;;  %v6666_v37 = vmul.f32 %v6664_v23, %v20668_v35  ;;  %v6667_v58 = vmul.f32 %v6663_v61, %v20675_v45  ;;  %v6608_v35 = vrot.slane %v24516_v52, 1  ;;  %v6609_v61 = vrot.slane %v24519_v2, 1  ;;  %v24587_v45 = vld [vmem:[#allocation125_spill] sm:$0xff] }
 0xb36   : > { %15870 = vmatprep.mubr.f32.mxu0 %v24526_v12  ;;  %17259 = vmatpush3.bf16.msra.mxu0 %v17256_v63  ;;  %v6605_v63 = vrot.slane %v24511_v62, 1 }
 0xb37   : > { %17261 = vmatprep.subr.bf16.mxu0 %v17260_v15 }
 0xb39   : > { %15871 = vmatmul.mubr.f32.gmra.mrb[114].mxu0 %v24529_v33 }
 0xb3a   : > { %15873 = vmatprep.mubr.f32.mxu0 %v24530_v21  ;;  %17263 = vmatpush3.bf16.msra.mxu0 %v17260_v15  ;;  %v6606_v15 = vrot.slane %v24512_v16, 1 }
 0xb3b   : > { %17265 = vmatprep.subr.bf16.mxu0 %v17264_v34 }
 0xb3c   : > { %v6661_v56 = vsel %vm5524_vm3, %v6605_v63, %v6606_v15 }
 0xb3d   : > { %15874 = vmatmul.mubr.f32.gmra.mrb[116].mxu0 %v24532_v31 }
 0xb3e   : > { %15876 = vmatprep.mubr.f32.mxu0 %v24533_v11  ;;  %17267 = vmatpush3.bf16.msra.mxu0 %v17264_v34  ;;  %v6662_v34 = vsel %vm5524_vm3, %v6604_v41, %v6605_v63  ;;  %v13419_v41 = vld [vmem:[%s23932_s17 + $0x328] sm:$0xff]  ;;  %v6669_v63 = vmul.f32 %v6661_v56, %v20694_v28 }
 0xb3f   : > { %17269 = vmatprep.subr.bf16.mxu0 %v17268_v17  ;;  %v6668_v23 = vmul.f32 %v6662_v34, %v20684_v57  ;;  %v17276_v22 = vpack.c.bf16 %v13419_v41, %v13418_v25  ;;  %v6659_v34 = vsel %vm5524_vm3, %v6607_v5, %v6608_v35  ;;  %v6610_v57 = vrot.slane %v24520_v19, 1 }
 0xb40   : > { %v6611_v25 = vrot.slane %v24522_v50, 1  ;;  %v6671_v56 = vmul.f32 %v6659_v34, %v20707_v18 }
 0xb41   : > { %15877 = vmatmul.mubr.f32.gmra.mrb[118].mxu0 %v24535_v9  ;;  %v6657_v41 = vsel %vm5524_vm3, %v6609_v61, %v6610_v57 }
 0xb42   : > { %15879 = vmatprep.mubr.f32.mxu0 %v24536_v26 }
 0xb45   : > { %15880 = vmatmul.mubr.f32.gmra.mrb[120].mxu0 %v24537_v20 }
 0xb46   : > { %15882 = vmatprep.mubr.f32.mxu0 %v24538_v44 }
 0xb49   : > { %15883 = vmatmul.mubr.f32.gmra.mrb[122].mxu0 %v24540_v49 }
 0xb4a   : > { %15885 = vmatprep.mubr.f32.mxu0 %v24541_v30 }
 0xb4d   : > { %15886 = vmatmul.mubr.f32.gmra.mrb[124].mxu0 %v24544_v4 }
 0xb4e   : > { %15888 = vmatprep.mubr.f32.mxu0 %v24545_v55 }
 0xb51   : > { %15889 = vmatmul.mubr.f32.gmra.mrb[126].mxu0 %v24548_v32 }
 0xb52   : > { %15891 = vmatprep.mubr.f32.mxu0 %v24549_v38 }
 0xb55   : > { %15892 = vmatmul.mubr.f32.gmra.mrb[128].mxu0 %v24552_v60 }
 0xb56   : > { %15894 = vmatprep.mubr.f32.mxu0 %v24553_v48 }
 0xb59   : > { %15895 = vmatmul.mubr.f32.gmra.mrb[130].mxu0 %v24556_v7 }
 0xb5a   : > { %15897 = vmatprep.mubr.f32.mxu0 %v24557_v47 }
 0xb5d   : > { %15898 = vmatmul.mubr.f32.gmra.mrb[132].mxu0 %v24502_v27 }
 0xb5e   : > { %15932 = vmatprep.mubr.f32.mxu0 %v6666_v37  ;;  %v6660_v37 = vsel %vm5524_vm3, %v6606_v15, %v6607_v5  ;;  %v13421_v15 = vld [vmem:[%s23932_s17 + $0x338] sm:$0xff] }
 0xb5f   : > { %v6670_v6 = vmul.f32 %v6660_v37, %v20701_v51  ;;  %v6612_v37 = vrot.slane %v24523_v53, 1  ;;  %v24581_v51 = vld [vmem:[#allocation122_spill] sm:$0xff] }
 0xb61   : > { %15933 = vmatmul.mubr.f32.vlgmr.msra.gmra.mrb[102].mxu0 %v6667_v58  ;;  %v13420_v58 = vld [vmem:[%s23932_s17 + $0x330] sm:$0xff] }
 0xb62   : > { %15935 = vmatprep.mubr.f32.mxu0 %v6668_v23  ;;  %17271 = vmatpush3.bf16.msra.mxu0 %v17268_v17  ;;  %v6658_v17 = vsel %vm5524_vm3, %v6608_v35, %v6609_v61  ;;  %v17280_v5 = vpack.c.bf16 %v13421_v15, %v13420_v58  ;;  %v13423_v35 = vld [vmem:[%s23932_s17 + $0x348] sm:$0xff]  ;;  %v6673_v61 = vmul.f32 %v6657_v41, %v20726_v10  ;;  %v6620_v10 = vrot.slane %v24536_v26, 1 }
 0xb63   : > { %17273 = vmatprep.subr.bf16.mxu0 %v17272_v24  ;;  %v6672_v23 = vmul.f32 %v6658_v17, %v20716_v8  ;;  %v6655_v15 = vsel %vm5524_vm3, %v6611_v25, %v6612_v37  ;;  %v6614_v17 = vrot.slane %v24526_v12, 1  ;;  %v6622_v8 = vrot.slane %v24538_v44, 1 }
 0xb65   : > { %15936 = vmatmul.mubr.f32.gmra.mrb[104].mxu0 %v6669_v63  ;;  %v13422_v63 = vld [vmem:[%s23932_s17 + $0x340] sm:$0xff] }
 0xb66   : > { %15938 = vmatprep.mubr.f32.mxu0 %v6670_v6  ;;  %17275 = vmatpush3.bf16.msra.mxu0 %v17272_v24  ;;  %v6656_v24 = vsel %vm5524_vm3, %v6610_v57, %v6611_v25  ;;  %v6613_v6 = vrot.slane %v24525_v40, 1  ;;  %v17284_v34 = vpack.c.bf16 %v13423_v35, %v13422_v63  ;;  %v13425_v57 = vld [vmem:[%s23932_s17 + $0x358] sm:$0xff]  ;;  %v6675_v25 = vmul.f32 %v6655_v15, %v20737_v54 }
 0xb67   : > { %17277 = vmatprep.subr.bf16.mxu0 %v17276_v22  ;;  %v6674_v58 = vmul.f32 %v6656_v24, %v20732_v14  ;;  %v6616_v24 = vrot.slane %v24530_v21, 1  ;;  %v6617_v15 = vrot.slane %v24532_v31, 1 }
 0xb68   : > { %v6653_v35 = vsel %vm5524_vm3, %v6613_v6, %v6614_v17 }
 0xb69   : > { %15939 = vmatmul.mubr.f32.gmra.mrb[106].mxu0 %v6671_v56  ;;  %v13424_v56 = vld [vmem:[%s23932_s17 + $0x350] sm:$0xff] }
 0xb6a   : > { %15941 = vmatprep.mubr.f32.mxu0 %v6672_v23  ;;  %17279 = vmatpush3.bf16.msra.mxu0 %v17276_v22  ;;  %v6654_v22 = vsel %vm5524_vm3, %v6612_v37, %v6613_v6  ;;  %v6615_v23 = vrot.slane %v24529_v33, 1  ;;  %v17288_v41 = vpack.c.bf16 %v13425_v57, %v13424_v56  ;;  %v13427_v37 = vld [vmem:[%s23932_s17 + $0x368] sm:$0xff]  ;;  %v21328_v56 = vpop.permute.xlu0 %7677  ;;  %v6677_v6 = vmul.f32 %v6653_v35, %v20765_v39  ;;  %v24569_v39 = vld [vmem:[#allocation45_spill] sm:$0xff] }
 0xb6b   : > { %17281 = vmatprep.subr.bf16.mxu0 %v17280_v5  ;;  %v6676_v63 = vmul.f32 %v6654_v22, %v20746_v13  ;;  %24564 = vst [vmem:[#allocation46_spill] sm:$0xff] %v21328_v56  ;;  %v24565_v22 = vld [vmem:[#allocation56_spill] sm:$0xff]  ;;  %v6619_v35 = vrot.slane %v24535_v9, 1 }
 0xb6c   : > { %v6651_v54 = vsel %vm5524_vm3, %v6615_v23, %v6616_v24 }
 0xb6d   : > { %15942 = vmatmul.mubr.f32.gmra.mrb[108].mxu0 %v6673_v61  ;;  %v13426_v61 = vld [vmem:[%s23932_s17 + $0x360] sm:$0xff] }
 0xb6e   : > { %15944 = vmatprep.mubr.f32.mxu0 %v6674_v58  ;;  %17283 = vmatpush3.bf16.msra.mxu0 %v17280_v5  ;;  %v21323_v5 = vpop.permute.xlu1 %7522  ;;  %v6652_v58 = vsel %vm5524_vm3, %v6614_v17, %v6615_v23  ;;  %v17292_v57 = vpack.c.bf16 %v13427_v37, %v13426_v61  ;;  %v13428_v17 = vld [vmem:[%s23932_s17 + $0x370] sm:$0xff]  ;;  %v24567_v23 = vld [vmem:[#allocation54_spill] sm:$0xff] }
 0xb6f   : > { %17285 = vmatprep.subr.bf16.mxu0 %v17284_v34  ;;  %24563 = vst [vmem:[#allocation47_spill] sm:$0xff] %v21323_v5  ;;  %v6678_v13 = vmul.f32 %v6652_v58, %v24565_v22  ;;  %v6679_v37 = vmul.f32 %v6651_v54, %v24567_v23  ;;  %v21347_v22 = vpop.permute.xlu0 %7532  ;;  %v6647_v23 = vsel %vm5524_vm3, %v6619_v35, %v6620_v10 }
 0xb70   : > { %24568 = vst [vmem:[#allocation52_spill] sm:$0xff] %v21347_v22 }
 0xb71   : > { %15945 = vmatmul.mubr.f32.gmra.mrb[110].mxu0 %v6675_v25  ;;  %v6618_v25 = vrot.slane %v24533_v11, 1 }
 0xb72   : > { %15947 = vmatprep.mubr.f32.mxu0 %v6676_v63  ;;  %17287 = vmatpush3.bf16.msra.mxu0 %v17284_v34  ;;  %v13429_v63 = vld [vmem:[%s23932_s17 + $0x378] sm:$0xff]  ;;  %v6650_v34 = vsel %vm5524_vm3, %v6616_v24, %v6617_v15  ;;  %v21344_v61 = vpop.permute.xlu1 %7527  ;;  %v6621_v24 = vrot.slane %v24537_v20, 1 }
 0xb73   : > { %17289 = vmatprep.subr.bf16.mxu0 %v17288_v41  ;;  %24566 = vst [vmem:[#allocation49_spill] sm:$0xff] %v21344_v61  ;;  %v17296_v58 = vpack.c.bf16 %v13429_v63, %v13428_v17  ;;  %v6680_v14 = vmul.f32 %v6650_v34, %v24569_v39  ;;  %v6648_v54 = vsel %vm5524_vm3, %v6618_v25, %v6619_v35  ;;  %v24570_v17 = vld [vmem:[#allocation115_spill] sm:$0xff]  ;;  %v24571_v34 = vld [vmem:[#allocation116_spill] sm:$0xff] }
 0xb74   : > { %v6682_v39 = vmul.f32 %v6648_v54, %v24571_v34  ;;  %v6645_v54 = vsel %vm5524_vm3, %v6621_v24, %v6622_v8  ;;  %v6625_v34 = vrot.slane %v24544_v4, 1 }
 0xb75   : > { %15948 = vmatmul.mubr.f32.gmra.mrb[112].mxu0 %v6677_v6  ;;  %v6649_v6 = vsel %vm5524_vm3, %v6617_v15, %v6618_v25  ;;  %v6646_v25 = vsel %vm5524_vm3, %v6620_v10, %v6621_v24 }
 0xb76   : > { %15950 = vmatprep.mubr.f32.mxu0 %v6678_v13  ;;  %17291 = vmatpush3.bf16.msra.mxu0 %v17288_v41  ;;  %v13430_v13 = vld [vmem:[%s23932_s17 + $0x380] sm:$0xff]  ;;  %v13431_v41 = vld [vmem:[%s23932_s17 + $0x388] sm:$0xff]  ;;  %v6681_v15 = vmul.f32 %v6649_v6, %v24570_v17  ;;  %v24574_v6 = vld [vmem:[#allocation117_spill] sm:$0xff] }
 0xb77   : > { %17293 = vmatprep.subr.bf16.mxu0 %v17292_v57  ;;  %v21363_v63 = vpack.c.bf16 %v13431_v41, %v13430_v13  ;;  %v6683_v13 = vmul.f32 %v6647_v23, %v24574_v6  ;;  %v24575_v41 = vld [vmem:[#allocation118_spill] sm:$0xff]  ;;  %v24579_v17 = vld [vmem:[#allocation120_spill] sm:$0xff] }
 0xb78   : > { %v6684_v35 = vmul.f32 %v6646_v25, %v24575_v41  ;;  %v6626_v41 = vrot.slane %v24545_v55, 1 }
 0xb79   : > { %15951 = vmatmul.mubr.f32.gmra.mrb[114].mxu0 %v6679_v37  ;;  %v21369_v37 = vpop.permute.xlu1 %7537 }
 0xb7a   : > { %15953 = vmatprep.mubr.f32.mxu0 %v6680_v14  ;;  %17295 = vmatpush3.bf16.msra.mxu0 %v17292_v57  ;;  %24572 = vst [vmem:[#allocation55_spill] sm:$0xff] %v21369_v37  ;;  %v6623_v14 = vrot.slane %v24540_v49, 1  ;;  %v21374_v57 = vpop.permute.xlu0 %7542 }
 0xb7b   : > { %17297 = vmatprep.subr.bf16.mxu0 %v17296_v58  ;;  %24573 = vst [vmem:[#allocation58_spill] sm:$0xff] %v21374_v57 }
 0xb7c   : > { %v6644_v10 = vsel %vm5524_vm3, %v6622_v8, %v6623_v14 }
 0xb7d   : > { %15954 = vmatmul.mubr.f32.gmra.mrb[116].mxu0 %v6681_v15  ;;  %v6624_v15 = vrot.slane %v24541_v30, 1  ;;  %v6686_v25 = vmul.f32 %v6644_v10, %v24579_v17  ;;  %v6628_v10 = vrot.slane %v24549_v38, 1 }
 0xb7e   : > { %15956 = vmatprep.mubr.f32.mxu0 %v6682_v39  ;;  %17299 = vmatpush3.bf16.msra.mxu0 %v17296_v58  ;;  %v21385_v39 = vpop.permute.xlu1 %7547  ;;  %v24577_v58 = vld [vmem:[#allocation119_spill] sm:$0xff]  ;;  %v21388_v6 = vpop.permute.xlu0 %7552 }
 0xb7f   : > { %17301 = vmatprep.subr.bf16.mxu0 %v21363_v63  ;;  %24576 = vst [vmem:[#allocation59_spill] sm:$0xff] %v21385_v39  ;;  %v6685_v23 = vmul.f32 %v6645_v54, %v24577_v58  ;;  %24578 = vst [vmem:[#allocation61_spill] sm:$0xff] %v21388_v6  ;;  %v6643_v24 = vsel %vm5524_vm3, %v6623_v14, %v6624_v15  ;;  %v6642_v8 = vsel %vm5524_vm3, %v6624_v15, %v6625_v34 }
 0xb80   : > { %v6688_v54 = vmul.f32 %v6642_v8, %v24581_v51  ;;  %v6641_v58 = vsel %vm5524_vm3, %v6625_v34, %v6626_v41  ;;  %v6629_v15 = vrot.slane %v24552_v60, 1  ;;  %v6630_v51 = vrot.slane %v24553_v48, 1 }
 0xb81   : > { %15957 = vmatmul.mubr.f32.gmra.mrb[118].mxu0 %v6683_v13  ;;  %v6627_v13 = vrot.slane %v24548_v32, 1 }
 0xb82   : > { %15959 = vmatprep.mubr.f32.mxu0 %v6684_v35  ;;  %v24580_v35 = vld [vmem:[#allocation121_spill] sm:$0xff]  ;;  %v21402_v17 = vpop.permute.xlu1 %7557 }
 0xb83   : > { %v6687_v18 = vmul.f32 %v6643_v24, %v24580_v35  ;;  %24582 = vst [vmem:[#allocation63_spill] sm:$0xff] %v21402_v17  ;;  %v6640_v14 = vsel %vm5524_vm3, %v6626_v41, %v6627_v13  ;;  %v24585_v35 = vld [vmem:[#allocation124_spill] sm:$0xff]  ;;  %v6639_v34 = vsel %vm5524_vm3, %v6627_v13, %v6628_v10  ;;  %v6631_v41 = vrot.slane %v24556_v7, 1 }
 0xb84   : > { %v6690_v8 = vmul.f32 %v6640_v14, %v24585_v35  ;;  %v6637_v13 = vsel %vm5524_vm3, %v6629_v15, %v6630_v51  ;;  %v6632_v35 = vrot.slane %v24557_v47, 1 }
 0xb85   : > { %15960 = vmatmul.mubr.f32.gmra.mrb[120].mxu0 %v6685_v23  ;;  %v21407_v23 = vpop.permute.xlu0 %7562 }
 0xb86   : > { %15962 = vmatprep.mubr.f32.mxu0 %v6686_v25  ;;  %24583 = vst [vmem:[#allocation65_spill] sm:$0xff] %v21407_v23  ;;  %v24584_v25 = vld [vmem:[#allocation123_spill] sm:$0xff]  ;;  %v21417_v28 = vpop.permute.xlu1 %7567 }
 0xb87   : > { %v6689_v24 = vmul.f32 %v6641_v58, %v24584_v25  ;;  %24586 = vst [vmem:[#allocation66_spill] sm:$0xff] %v21417_v28  ;;  %v24589_v58 = vld [vmem:[#allocation126_spill] sm:$0xff] }
 0xb89   : > { %15963 = vmatmul.mubr.f32.gmra.mrb[122].mxu0 %v6687_v18  ;;  %v6638_v18 = vsel %vm5524_vm3, %v6628_v10, %v6629_v15  ;;  %v21420_v29 = vpop.permute.xlu0 %7572  ;;  %v6636_v10 = vsel %vm5524_vm3, %v6630_v51, %v6631_v41  ;;  %v21440_v15 = vmul.f32 %v21344_v61, %v24511_v62  ;;  %v21447_v51 = vmul.f32 %v21347_v22, %v24512_v16  ;;  %v24594_v62 = vld [vmem:[#allocation129_spill] sm:$0xff] }
 0xb8a   : > { %15965 = vmatprep.mubr.f32.mxu0 %v6688_v54  ;;  %v6691_v54 = vmul.f32 %v6639_v34, %v24587_v45  ;;  %24588 = vst [vmem:[#allocation68_spill] sm:$0xff] %v21420_v29  ;;  %v6692_v14 = vmul.f32 %v6638_v18, %v24589_v58  ;;  %v21435_v34 = vmul.f32 %v21328_v56, %v24505_v36  ;;  %v24590_v18 = vld [vmem:[#allocation127_spill] sm:$0xff]  ;;  %v24591_v45 = vld [vmem:[#allocation128_spill] sm:$0xff]  ;;  %v24595_v16 = vld [vmem:[#allocation41_spill] sm:$0xff] }
 0xb8b   : > { %v6693_v58 = vmul.f32 %v6637_v13, %v24590_v18 }
 0xb8c   : > { %v24187_v61 = vrot.slane %v21435_v34, 7 }
 0xb8d   : > { %15966 = vmatmul.mubr.f32.gmra.mrb[124].mxu0 %v6689_v24  ;;  %v21428_v24 = vmul.f32 %v21323_v5, %v24508_v0  ;;  %v6694_v0 = vmul.f32 %v6636_v10, %v24591_v45  ;;  %v21454_v56 = vpop.permute.xlu0 %7582  ;;  %v7713_v5 = vrot.slane %v21440_v15, 7  ;;  %v24602_v45 = vld [vmem:[#allocation51_spill] sm:$0xff] }
 0xb8e   : > { %15968 = vmatprep.mubr.f32.mxu0 %v6690_v8  ;;  %v6633_v8 = vrot.slane %v24502_v27, 1  ;;  %24593 = vst [vmem:[#allocation71_spill] sm:$0xff] %v21454_v56 }
 0xb8f   : > { %v7712_v13 = vrot.slane %v21428_v24, 7 }
 0xb90   : > { %v6634_v36 = vsel %vm5524_vm3, %v6632_v35, %v6633_v8 }
 0xb91   : > { %15969 = vmatmul.mubr.f32.gmra.mrb[126].mxu0 %v6691_v54  ;;  %v6635_v54 = vsel %vm5524_vm3, %v6631_v41, %v6632_v35  ;;  %v21460_v41 = vmul.f32 %v21369_v37, %v24515_v42  ;;  %v6696_v22 = vmul.f32 %v6634_v36, %v24595_v16  ;;  %v7775_v42 = vsel %vm5267_vm4, %v24187_v61, %v7712_v13  ;;  %v24598_v37 = vld [vmem:[#allocation42_spill] sm:$0xff] }
 0xb92   : > { %15971 = vmatprep.mubr.f32.mxu0 %v6692_v14  ;;  %v21449_v14 = vpop.permute.xlu1 %7577  ;;  %v6695_v10 = vmul.f32 %v6635_v54, %v24594_v62  ;;  %v7714_v54 = vrot.slane %v21447_v51, 7  ;;  %v21506_v62 = vmul.f32 %v21402_v17, %v24522_v50 }
 0xb93   : > { %24592 = vst [vmem:[#allocation69_spill] sm:$0xff] %v21449_v14  ;;  %v7715_v61 = vrot.slane %v21460_v41, 7 }
 0xb95   : > { %15972 = vmatmul.mubr.f32.gmra.mrb[128].mxu0 %v6693_v58  ;;  %v24596_v58 = vrot.slane %v24504_v46, 1 }
 0xb96   : > { %15974 = vmatprep.mubr.f32.mxu0 %v6694_v0  ;;  %v21470_v0 = vmul.f32 %v21374_v57, %v24516_v52  ;;  %v21477_v36 = vpop.permute.xlu1 %7587  ;;  %v24600_v52 = vld [vmem:[#allocation44_spill] sm:$0xff]  ;;  %v7774_v57 = vsel %vm5267_vm4, %v7712_v13, %v7713_v5 }
 0xb97   : > { %v6665_v35 = vsel %vm5524_vm3, %v6633_v8, %v24596_v58  ;;  %24597 = vst [vmem:[#allocation73_spill] sm:$0xff] %v21477_v36  ;;  %v21480_v8 = vpop.permute.xlu0 %7592  ;;  %v21484_v58 = vmul.f32 %v21385_v39, %v24519_v2  ;;  %v7773_v2 = vsel %vm5267_vm4, %v7713_v5, %v7714_v54  ;;  %v13434_v5 = vld [vmem:[%s23932_s17 + $0x3a0] sm:$0xff] }
 0xb98   : > { %v6697_v16 = vmul.f32 %v6665_v35, %v24598_v37  ;;  %24599 = vst [vmem:[#allocation75_spill] sm:$0xff] %v21480_v8  ;;  %v13433_v35 = vld [vmem:[%s23932_s17 + $0x398] sm:$0xff]  ;;  %v21498_v37 = vmul.f32 %v21388_v6, %v24520_v19  ;;  %v7716_v13 = vrot.slane %v21470_v0, 7  ;;  %v7778_v18 = vmul.f32 %v7773_v2, %v24602_v45 }
 0xb99   : > { %15975 = vmatmul.mubr.f32.gmra.mrb[130].mxu0 %v6695_v10  ;;  %v7776_v10 = vmul.f32 %v7775_v42, %v24600_v52  ;;  %v24601_v42 = vld [vmem:[#allocation48_spill] sm:$0xff]  ;;  %v7772_v19 = vsel %vm5267_vm4, %v7714_v54, %v7715_v61  ;;  %v24605_v2 = vld [vmem:[#allocation57_spill] sm:$0xff]  ;;  %v7719_v45 = vrot.slane %v21506_v62, 7 }
 0xb9a   : > { %15977 = vmatprep.mubr.f32.mxu0 %v6696_v22  ;;  %v13432_v22 = vld [vmem:[%s23932_s17 + $0x390] sm:$0xff]  ;;  %v7777_v39 = vmul.f32 %v7774_v57, %v24601_v42  ;;  %v13435_v57 = vld [vmem:[%s23932_s17 + $0x3a8] sm:$0xff]  ;;  %v21522_v50 = vpop.permute.xlu1 %7597  ;;  %v7771_v54 = vsel %vm5267_vm4, %v7715_v61, %v7716_v13  ;;  %v7779_v17 = vmul.f32 %v7772_v19, %v24605_v2  ;;  %v21547_v19 = vmul.f32 %v21420_v29, %v24526_v12 }
 0xb9b   : > { %v17304_v52 = vpack.c.bf16 %v13433_v35, %v13432_v22  ;;  %24603 = vst [vmem:[#allocation76_spill] sm:$0xff] %v21522_v50  ;;  %v7718_v22 = vrot.slane %v21498_v37, 7  ;;  %v21527_v35 = vpop.permute.xlu0 %7602  ;;  %v17308_v6 = vpack.c.bf16 %v13435_v57, %v13434_v5  ;;  %v24608_v57 = vld [vmem:[#allocation62_spill] sm:$0xff]  ;;  %v21559_v12 = vmul.f32 %v21449_v14, %v24529_v33 }
 0xb9c   : > { %24604 = vst [vmem:[#allocation78_spill] sm:$0xff] %v21527_v35 }
 0xb9d   : > { %15978 = vmatmul.mubr.f32.gmra.mrb[132].mxu0 %v6697_v16  ;;  %v7717_v16 = vrot.slane %v21484_v58, 7 }
 0xb9e   : > { %16012 = vmatprep.mubr.f32.mxu0 %v7776_v10  ;;  %v21520_v10 = vmul.f32 %v21407_v23, %v24523_v53  ;;  %v21533_v53 = vmul.f32 %v21417_v28, %v24525_v40  ;;  %v24606_v23 = vld [vmem:[#allocation60_spill] sm:$0xff]  ;;  %v21552_v5 = vpop.permute.xlu1 %7607 }
 0xb9f   : > { %v7770_v61 = vsel %vm5267_vm4, %v7716_v13, %v7717_v16  ;;  %v7769_v40 = vsel %vm5267_vm4, %v7717_v16, %v7718_v22  ;;  %24607 = vst [vmem:[#allocation79_spill] sm:$0xff] %v21552_v5  ;;  %v7768_v16 = vsel %vm5267_vm4, %v7718_v22, %v7719_v45  ;;  %v7722_v22 = vrot.slane %v21547_v19, 7 }
 0xba0   : > { %v7720_v13 = vrot.slane %v21520_v10, 7 }
 0xba1   : > { %16013 = vmatmul.mubr.f32.vlgmr.msra.gmra.mrb[102].mxu0 %v7777_v39  ;;  %v7780_v39 = vmul.f32 %v7771_v54, %v24606_v23  ;;  %v7781_v54 = vmul.f32 %v7770_v61, %v24608_v57  ;;  %v21555_v23 = vpop.permute.xlu0 %7612  ;;  %v13439_v61 = vld [vmem:[%s23932_s17 + $0x3c8] sm:$0xff]  ;;  %v24612_v57 = vld [vmem:[#allocation70_spill] sm:$0xff] }
 0xba2   : > { %16015 = vmatprep.mubr.f32.mxu0 %v7778_v18  ;;  %17303 = vmatpush3.bf16.msra.mxu0 %v21363_v63  ;;  %v13436_v18 = vld [vmem:[%s23932_s17 + $0x3b0] sm:$0xff]  ;;  %v13437_v63 = vld [vmem:[%s23932_s17 + $0x3b8] sm:$0xff]  ;;  %24609 = vst [vmem:[#allocation81_spill] sm:$0xff] %v21555_v23  ;;  %v7767_v33 = vsel %vm5267_vm4, %v7719_v45, %v7720_v13 }
 0xba3   : > { %17305 = vmatprep.subr.bf16.mxu0 %v17304_v52  ;;  %v17312_v28 = vpack.c.bf16 %v13437_v63, %v13436_v18  ;;  %v21573_v18 = vmul.f32 %v21454_v56, %v24530_v21  ;;  %v24611_v63 = vld [vmem:[#allocation67_spill] sm:$0xff]  ;;  %v7784_v2 = vmul.f32 %v7767_v33, %v24612_v57  ;;  %v13440_v45 = vld [vmem:[%s23932_s17 + $0x3d0] sm:$0xff]  ;;  %v21607_v56 = vmul.f32 %v21522_v50, %v24535_v9 }
 0xba5   : > { %16016 = vmatmul.mubr.f32.gmra.mrb[104].mxu0 %v7779_v17  ;;  %v24610_v17 = vld [vmem:[#allocation64_spill] sm:$0xff] }
 0xba6   : > { %16018 = vmatprep.mubr.f32.mxu0 %v7780_v39  ;;  %17307 = vmatpush3.bf16.msra.mxu0 %v17304_v52  ;;  %v7782_v29 = vmul.f32 %v7769_v40, %v24610_v17  ;;  %v7721_v39 = vrot.slane %v21533_v53, 7  ;;  %v13438_v52 = vld [vmem:[%s23932_s17 + $0x3c0] sm:$0xff]  ;;  %v7783_v40 = vmul.f32 %v7768_v16, %v24611_v63  ;;  %v21581_v17 = vmul.f32 %v21477_v36, %v24532_v31 }
 0xba7   : > { %17309 = vmatprep.subr.bf16.mxu0 %v17308_v6  ;;  %v17316_v14 = vpack.c.bf16 %v13439_v61, %v13438_v52  ;;  %v21597_v31 = vmul.f32 %v21480_v8, %v24533_v11  ;;  %v7724_v16 = vrot.slane %v21573_v18, 7  ;;  %v21602_v52 = vpop.permute.xlu0 %7622  ;;  %v24615_v61 = vld [vmem:[#allocation72_spill] sm:$0xff]  ;;  %v24616_v11 = vld [vmem:[#allocation74_spill] sm:$0xff] }
 0xba8   : > { %v7766_v21 = vsel %vm5267_vm4, %v7720_v13, %v7721_v39  ;;  %v7765_v13 = vsel %vm5267_vm4, %v7721_v39, %v7722_v22  ;;  %24614 = vst [vmem:[#allocation85_spill] sm:$0xff] %v21602_v52  ;;  %v7725_v39 = vrot.slane %v21581_v17, 7 }
 0xba9   : > { %16019 = vmatmul.mubr.f32.gmra.mrb[106].mxu0 %v7781_v54  ;;  %v7723_v54 = vrot.slane %v21559_v12, 7  ;;  %v7785_v33 = vmul.f32 %v7766_v21, %v24615_v61  ;;  %v7786_v8 = vmul.f32 %v7765_v13, %v24616_v11  ;;  %v21621_v21 = vmul.f32 %v21527_v35, %v24536_v26 }
 0xbaa   : > { %16021 = vmatprep.mubr.f32.mxu0 %v7782_v29  ;;  %17311 = vmatpush3.bf16.msra.mxu0 %v17308_v6  ;;  %v13441_v29 = vld [vmem:[%s23932_s17 + $0x3d8] sm:$0xff]  ;;  %v21593_v6 = vpop.permute.xlu1 %7617  ;;  %v21633_v26 = vmul.f32 %v21552_v5, %v24537_v20 }
 0xbab   : > { %17313 = vmatprep.subr.bf16.mxu0 %v17312_v28  ;;  %24613 = vst [vmem:[#allocation83_spill] sm:$0xff] %v21593_v6  ;;  %v17320_v36 = vpack.c.bf16 %v13441_v29, %v13440_v45  ;;  %v7763_v9 = vsel %vm5267_vm4, %v7723_v54, %v7724_v16  ;;  %v24618_v29 = vld [vmem:[#allocation77_spill] sm:$0xff]  ;;  %v21629_v11 = vpop.permute.xlu0 %7632 }
 0xbac   : > { %24619 = vst [vmem:[#allocation88_spill] sm:$0xff] %v21629_v11 }
 0xbad   : > { %16022 = vmatmul.mubr.f32.gmra.mrb[108].mxu0 %v7783_v40  ;;  %v7764_v40 = vsel %vm5267_vm4, %v7722_v22, %v7723_v54  ;;  %v7726_v22 = vrot.slane %v21597_v31, 7  ;;  %v7762_v54 = vsel %vm5267_vm4, %v7724_v16, %v7725_v39  ;;  %v7728_v16 = vrot.slane %v21621_v21, 7 }
 0xbae   : > { %16024 = vmatprep.mubr.f32.mxu0 %v7784_v2  ;;  %17315 = vmatpush3.bf16.msra.mxu0 %v17312_v28  ;;  %v13442_v2 = vld [vmem:[%s23932_s17 + $0x3e0] sm:$0xff]  ;;  %v13443_v28 = vld [vmem:[%s23932_s17 + $0x3e8] sm:$0xff]  ;;  %v21626_v45 = vpop.permute.xlu1 %7627  ;;  %v7787_v13 = vmul.f32 %v7764_v40, %v24618_v29  ;;  %v13445_v40 = vld [vmem:[%s23932_s17 + $0x3f8] sm:$0xff] }
 0xbaf   : > { %17317 = vmatprep.subr.bf16.mxu0 %v17316_v14  ;;  %24617 = vst [vmem:[#allocation86_spill] sm:$0xff] %v21626_v45  ;;  %v17324_v50 = vpack.c.bf16 %v13443_v28, %v13442_v2  ;;  %v21647_v2 = vmul.f32 %v21555_v23, %v24538_v44  ;;  %v7761_v20 = vsel %vm5267_vm4, %v7725_v39, %v7726_v22  ;;  %v24621_v28 = vld [vmem:[#allocation82_spill] sm:$0xff]  ;;  %v24622_v29 = vld [vmem:[#allocation84_spill] sm:$0xff] }
 0xbb0   : > { %v7790_v61 = vmul.f32 %v7761_v20, %v24622_v29  ;;  %v21683_v23 = vmul.f32 %v21626_v45, %v24544_v4 }
 0xbb1   : > { %16025 = vmatmul.mubr.f32.gmra.mrb[110].mxu0 %v7785_v33  ;;  %v24620_v33 = vld [vmem:[#allocation80_spill] sm:$0xff] }
 0xbb2   : > { %16027 = vmatprep.mubr.f32.mxu0 %v7786_v8  ;;  %17319 = vmatpush3.bf16.msra.mxu0 %v17316_v14  ;;  %v7788_v35 = vmul.f32 %v7763_v9, %v24620_v33  ;;  %v7727_v8 = vrot.slane %v21607_v56, 7  ;;  %v13444_v14 = vld [vmem:[%s23932_s17 + $0x3f0] sm:$0xff]  ;;  %v7789_v9 = vmul.f32 %v7762_v54, %v24621_v28  ;;  %v21655_v33 = vmul.f32 %v21593_v6, %v24540_v49  ;;  %v21667_v39 = vpop.permute.xlu1 %7637 }
 0xbb3   : > { %17321 = vmatprep.subr.bf16.mxu0 %v17320_v36  ;;  %v17328_v5 = vpack.c.bf16 %v13445_v40, %v13444_v14  ;;  %24623 = vst [vmem:[#allocation35_spill] sm:$0xff] %v21667_v39  ;;  %v21671_v49 = vmul.f32 %v21602_v52, %v24541_v30  ;;  %v7730_v54 = vrot.slane %v21647_v2, 7  ;;  %v21676_v14 = vpop.permute.xlu0 %7642  ;;  %v24625_v40 = vld [vmem:[#allocation87_spill] sm:$0xff]  ;;  %v24626_v30 = vld [vmem:[#allocation89_spill] sm:$0xff] }
 0xbb4   : > { %v7760_v44 = vsel %vm5267_vm4, %v7726_v22, %v7727_v8  ;;  %v7759_v22 = vsel %vm5267_vm4, %v7727_v8, %v7728_v16  ;;  %24624 = vst [vmem:[#allocation34_spill] sm:$0xff] %v21676_v14  ;;  %v7731_v52 = vrot.slane %v21655_v33, 7 }
 0xbb5   : > { %16028 = vmatmul.mubr.f32.gmra.mrb[112].mxu0 %v7787_v13  ;;  %v7729_v13 = vrot.slane %v21633_v26, 7  ;;  %v7791_v20 = vmul.f32 %v7760_v44, %v24625_v40  ;;  %v7732_v44 = vrot.slane %v21671_v49, 7 }
 0xbb6   : > { %16030 = vmatprep.mubr.f32.mxu0 %v7788_v35  ;;  %17323 = vmatpush3.bf16.msra.mxu0 %v17320_v36  ;;  %v13446_v35 = vld [vmem:[%s23932_s17 + $0x400] sm:$0xff]  ;;  %v13447_v36 = vld [vmem:[%s23932_s17 + $0x408] sm:$0xff]  ;;  %v21696_v4 = vpop.permute.xlu1 %7647 }
 0xbb7   : > { %17325 = vmatprep.subr.bf16.mxu0 %v17324_v50  ;;  %v21679_v6 = vpack.c.bf16 %v13447_v36, %v13446_v35  ;;  %v7758_v8 = vsel %vm5267_vm4, %v7728_v16, %v7729_v13  ;;  %24627 = vst [vmem:[#allocation37_spill] sm:$0xff] %v21696_v4  ;;  %v24628_v35 = vld [vmem:[#allocation90_spill] sm:$0xff]  ;;  %v21700_v16 = vpop.permute.xlu0 %7652 }
 0xbb8   : > { %v7793_v36 = vmul.f32 %v7758_v8, %v24628_v35  ;;  %24629 = vst [vmem:[#allocation36_spill] sm:$0xff] %v21700_v16  ;;  %v7755_v8 = vsel %vm5267_vm4, %v7731_v52, %v7732_v44 }
 0xbb9   : > { %16031 = vmatmul.mubr.f32.gmra.mrb[114].mxu0 %v7789_v9  ;;  %v7792_v9 = vmul.f32 %v7759_v22, %v24626_v30  ;;  %v24630_v22 = vld [vmem:[#allocation91_spill] sm:$0xff] }
 0xbba   : > { %16033 = vmatprep.mubr.f32.mxu0 %v7790_v61  ;;  %17327 = vmatpush3.bf16.msra.mxu0 %v17324_v50  ;;  %v21691_v61 = vmul.f32 %v21629_v11, %v24545_v55  ;;  %v7757_v50 = vsel %vm5267_vm4, %v7729_v13, %v7730_v54  ;;  %v21704_v55 = vmul.f32 %v21667_v39, %v24548_v32  ;;  %v24631_v32 = vld [vmem:[#allocation92_spill] sm:$0xff] }
 0xbbb   : > { %17329 = vmatprep.subr.bf16.mxu0 %v17328_v5  ;;  %v7756_v13 = vsel %vm5267_vm4, %v7730_v54, %v7731_v52  ;;  %v24632_v54 = vld [vmem:[#allocation95_spill] sm:$0xff]  ;;  %v21730_v52 = vmul.f32 %v21700_v16, %v24553_v48 }
 0xbbc   : > { %v7734_v11 = vrot.slane %v21691_v61, 7  ;;  %v7795_v39 = vmul.f32 %v7756_v13, %v24631_v32  ;;  %v7796_v45 = vmul.f32 %v7755_v8, %v24632_v54  ;;  %v21735_v13 = vpop.permute.xlu0 %7662  ;;  %v24635_v8 = vld [vmem:[#allocation96_spill] sm:$0xff] }
 0xbbd   : > { %16034 = vmatmul.mubr.f32.gmra.mrb[116].mxu0 %v7791_v20  ;;  %v7794_v20 = vmul.f32 %v7757_v50, %v24630_v22  ;;  %v21720_v50 = vmul.f32 %v21696_v4, %v24552_v60  ;;  %24634 = vst [vmem:[#allocation38_spill] sm:$0xff] %v21735_v13 }
 0xbbe   : > { %16036 = vmatprep.mubr.f32.mxu0 %v7792_v9  ;;  %17331 = vmatpush3.bf16.msra.mxu0 %v17328_v5  ;;  %v7733_v9 = vrot.slane %v21683_v23, 7  ;;  %v21712_v5 = vmul.f32 %v21676_v14, %v24549_v38  ;;  %v7735_v38 = vrot.slane %v21704_v55, 7  ;;  %v24636_v14 = vld [vmem:[#allocation97_spill] sm:$0xff] }
 0xbbf   : > { %17333 = vmatprep.subr.bf16.mxu0 %v21679_v6 }
 0xbc0   : > { %v7754_v22 = vsel %vm5267_vm4, %v7732_v44, %v7733_v9  ;;  %v7736_v60 = vrot.slane %v21712_v5, 7  ;;  %v7752_v48 = vsel %vm5267_vm4, %v7734_v11, %v7735_v38  ;;  %v21756_v16 = vpop.permute.xlu0 %7672 }
 0xbc1   : > { %16037 = vmatmul.mubr.f32.gmra.mrb[118].mxu0 %v7793_v36  ;;  %v21726_v36 = vpop.permute.xlu1 %7657  ;;  %v7797_v4 = vmul.f32 %v7754_v22, %v24635_v8  ;;  %v7738_v22 = vrot.slane %v21730_v52, 7  ;;  %24639 = vst [vmem:[#allocation102_spill] sm:$0xff] %v21756_v16 }
 0xbc2   : > { %16039 = vmatprep.mubr.f32.mxu0 %v7794_v20  ;;  %24633 = vst [vmem:[#allocation39_spill] sm:$0xff] %v21726_v36  ;;  %v7753_v20 = vsel %vm5267_vm4, %v7733_v9, %v7734_v11  ;;  %v21740_v44 = vmul.f32 %v21726_v36, %v24556_v7  ;;  %v21748_v9 = vmul.f32 %v21735_v13, %v24557_v47  ;;  %v24638_v36 = vld [vmem:[#allocation98_spill] sm:$0xff] }
 0xbc3   : > { %v7798_v54 = vmul.f32 %v7753_v20, %v24636_v14  ;;  %v7799_v20 = vmul.f32 %v7752_v48, %v24638_v36  ;;  %v24640_v14 = vld [vmem:[#allocation99_spill] sm:$0xff]  ;;  %v21771_v48 = vmul.f32 %v21756_v16, %v24504_v46 }
 0xbc4   : > { %v7740_v13 = vrot.slane %v21748_v9, 7 }
 0xbc5   : > { %16040 = vmatmul.mubr.f32.gmra.mrb[120].mxu0 %v7795_v39  ;;  %v7737_v39 = vrot.slane %v21720_v50, 7  ;;  %v21753_v7 = vpop.permute.xlu1 %7667 }
 0xbc6   : > { %16042 = vmatprep.mubr.f32.mxu0 %v7796_v45  ;;  %v7751_v45 = vsel %vm5267_vm4, %v7735_v38, %v7736_v60  ;;  %24637 = vst [vmem:[#allocation43_spill] sm:$0xff] %v21753_v7  ;;  %v21760_v11 = vmul.f32 %v21753_v7, %v24502_v27  ;;  %v7739_v38 = vrot.slane %v21740_v44, 7  ;;  %v24641_v27 = vld [vmem:[#allocation100_spill] sm:$0xff] }
 0xbc7   : > { %v7800_v47 = vmul.f32 %v7751_v45, %v24640_v14  ;;  %v24642_v14 = vld [vmem:[#allocation101_spill] sm:$0xff] }
 0xbc8   : > { %v7741_v45 = vrot.slane %v21760_v11, 7 }
 0xbc9   : > { %16043 = vmatmul.mubr.f32.gmra.mrb[122].mxu0 %v7797_v4  ;;  %v7750_v4 = vsel %vm5267_vm4, %v7736_v60, %v7737_v39  ;;  %v7748_v60 = vsel %vm5267_vm4, %v7738_v22, %v7739_v38 }
 0xbca   : > { %16045 = vmatprep.mubr.f32.mxu0 %v7798_v54  ;;  %v7749_v54 = vsel %vm5267_vm4, %v7737_v39, %v7738_v22  ;;  %v7801_v7 = vmul.f32 %v7750_v4, %v24641_v27  ;;  %v7747_v39 = vsel %vm5267_vm4, %v7739_v38, %v7740_v13  ;;  %v7746_v4 = vsel %vm5267_vm4, %v7740_v13, %v7741_v45  ;;  %v13448_v13 = vld [vmem:[%s23932_s17 + $0x410] sm:$0xff] }
 0xbcb   : > { %v7802_v36 = vmul.f32 %v7749_v54, %v24642_v14  ;;  %v7804_v46 = vmul.f32 %v7747_v39, %v24559_v1  ;;  %v7805_v22 = vmul.f32 %v7746_v4, %v24560_v3  ;;  %v13452_v4 = vld [vmem:[%s23932_s17 + $0x430] sm:$0xff] }
 0xbcd   : > { %16046 = vmatmul.mubr.f32.gmra.mrb[124].mxu0 %v7799_v20  ;;  %v7742_v20 = vrot.slane %v21771_v48, 7 }
 0xbce   : > { %16048 = vmatprep.mubr.f32.mxu0 %v7800_v47  ;;  %v7803_v47 = vmul.f32 %v7748_v60, %v24558_v59  ;;  %v24645_v60 = vld [vmem:[#allocation106_spill] sm:$0xff] }
 0xbcf   : > { %v7745_v54 = vsel %vm5267_vm4, %v7741_v45, %v7742_v20  ;;  %v13449_v45 = vld [vmem:[%s23932_s17 + $0x418] sm:$0xff] }
 0xbd1   : > { %16049 = vmatmul.mubr.f32.gmra.mrb[126].mxu0 %v7801_v7  ;;  %v24643_v7 = vld [vmem:[#allocation105_spill] sm:$0xff] }
 0xbd2   : > { %16051 = vmatprep.mubr.f32.mxu0 %v7802_v36  ;;  %v7806_v16 = vmul.f32 %v7745_v54, %v24643_v7  ;;  %v24644_v36 = vrot.slane %v21435_v34, 7  ;;  %v13453_v54 = vld [vmem:[%s23932_s17 + $0x438] sm:$0xff] }
 0xbd4   : > { %v7744_v38 = vsel %vm5267_vm4, %v7742_v20, %v24644_v36  ;;  %v13450_v20 = vld [vmem:[%s23932_s17 + $0x420] sm:$0xff]  ;;  %v13455_v36 = vld [vmem:[%s23932_s17 + $0x448] sm:$0xff] }
 0xbd5   : > { %16052 = vmatmul.mubr.f32.gmra.mrb[128].mxu0 %v7803_v47  ;;  %v7807_v39 = vmul.f32 %v7744_v38, %v24645_v60  ;;  %v17336_v47 = vpack.c.bf16 %v13449_v45, %v13448_v13  ;;  %v13457_v13 = vld [vmem:[%s23932_s17 + $0x458] sm:$0xff] }
 0xbd6   : > { %16054 = vmatprep.mubr.f32.mxu0 %v7804_v46 }
 0xbd9   : > { %16055 = vmatmul.mubr.f32.gmra.mrb[130].mxu0 %v7805_v22  ;;  %v17344_v22 = vpack.c.bf16 %v13453_v54, %v13452_v4  ;;  %v13461_v4 = vld [vmem:[%s23932_s17 + $0x478] sm:$0xff] }
 0xbda   : > { %16057 = vmatprep.mubr.f32.mxu0 %v7806_v16  ;;  %v13451_v16 = vld [vmem:[%s23932_s17 + $0x428] sm:$0xff] }
 0xbdb   : > { %v17340_v46 = vpack.c.bf16 %v13451_v16, %v13450_v20  ;;  %v13459_v20 = vld [vmem:[%s23932_s17 + $0x468] sm:$0xff] }
 0xbdd   : > { %16058 = vmatmul.mubr.f32.gmra.mrb[132].mxu0 %v7807_v39  ;;  %v13456_v39 = vld [vmem:[%s23932_s17 + $0x450] sm:$0xff] }
 0xbde   : > { %16092 = vmatprep.mubr.f32.mxu0 %v21428_v24  ;;  %v17352_v45 = vpack.c.bf16 %v13457_v13, %v13456_v39  ;;  %v7811_v39 = vrot.slane %v21460_v41, 1  ;;  %v24646_v13 = vld [vmem:[#allocation107_spill] sm:$0xff] }
 0xbe1   : > { %16093 = vmatmul.mubr.f32.vlgmr.msra.gmra.mrb[102].mxu0 %v21440_v15 }
 0xbe2   : > { %16095 = vmatprep.mubr.f32.mxu0 %v21447_v51  ;;  %17335 = vmatpush3.bf16.msra.mxu0 %v21679_v6  ;;  %v13454_v6 = vld [vmem:[%s23932_s17 + $0x440] sm:$0xff] }
 0xbe3   : > { %17337 = vmatprep.subr.bf16.mxu0 %v17336_v47  ;;  %v17348_v38 = vpack.c.bf16 %v13455_v36, %v13454_v6  ;;  %v7809_v6 = vrot.slane %v21440_v15, 1  ;;  %v7810_v36 = vrot.slane %v21447_v51, 1 }
 0xbe5   : > { %16096 = vmatmul.mubr.f32.gmra.mrb[104].mxu0 %v21460_v41  ;;  %v7869_v15 = vsel %vm5524_vm3, %v7809_v6, %v7810_v36  ;;  %v7868_v51 = vsel %vm5524_vm3, %v7810_v36, %v7811_v39  ;;  %v24648_v41 = vld [vmem:[#allocation109_spill] sm:$0xff]  ;;  %v24649_v36 = vld [vmem:[#allocation110_spill] sm:$0xff] }
 0xbe6   : > { %16098 = vmatprep.mubr.f32.mxu0 %v21470_v0  ;;  %17339 = vmatpush3.bf16.msra.mxu0 %v17336_v47  ;;  %v13458_v47 = vld [vmem:[%s23932_s17 + $0x460] sm:$0xff] }
 0xbe7   : > { %17341 = vmatprep.subr.bf16.mxu0 %v17340_v46  ;;  %v17356_v16 = vpack.c.bf16 %v13459_v20, %v13458_v47  ;;  %v7812_v47 = vrot.slane %v21470_v0, 1  ;;  %v7813_v20 = vrot.slane %v21484_v58, 1 }
 0xbe9   : > { %16099 = vmatmul.mubr.f32.gmra.mrb[106].mxu0 %v21484_v58  ;;  %v7866_v0 = vsel %vm5524_vm3, %v7812_v47, %v7813_v20  ;;  %v24650_v58 = vld [vmem:[#allocation111_spill] sm:$0xff] }
 0xbea   : > { %16101 = vmatprep.mubr.f32.mxu0 %v21498_v37  ;;  %17343 = vmatpush3.bf16.msra.mxu0 %v17340_v46  ;;  %v13460_v46 = vld [vmem:[%s23932_s17 + $0x470] sm:$0xff] }
 0xbeb   : > { %17345 = vmatprep.subr.bf16.mxu0 %v17344_v22  ;;  %v17360_v54 = vpack.c.bf16 %v13461_v4, %v13460_v46  ;;  %v7874_v4 = vmul.f32 %v7868_v51, %v24648_v41  ;;  %v7816_v51 = vrot.slane %v21520_v10, 1 }
 0xbed   : > { %16102 = vmatmul.mubr.f32.gmra.mrb[108].mxu0 %v21506_v62 }
 0xbee   : > { %16104 = vmatprep.mubr.f32.mxu0 %v21520_v10  ;;  %17347 = vmatpush3.bf16.msra.mxu0 %v17344_v22  ;;  %v24214_v22 = vrot.slane %v21428_v24, 1 }
 0xbef   : > { %17349 = vmatprep.subr.bf16.mxu0 %v17348_v38 }
 0xbf1   : > { %16105 = vmatmul.mubr.f32.gmra.mrb[110].mxu0 %v21533_v53 }
 0xbf2   : > { %16107 = vmatprep.mubr.f32.mxu0 %v21547_v19  ;;  %17351 = vmatpush3.bf16.msra.mxu0 %v17348_v38  ;;  %v7870_v38 = vsel %vm5524_vm3, %v24214_v22, %v7809_v6  ;;  %v7815_v6 = vrot.slane %v21506_v62, 1  ;;  %v24652_v62 = vld [vmem:[#allocation113_spill] sm:$0xff] }
 0xbf3   : > { %17353 = vmatprep.subr.bf16.mxu0 %v17352_v45 }
 0xbf5   : > { %16108 = vmatmul.mubr.f32.gmra.mrb[112].mxu0 %v21559_v12 }
 0xbf6   : > { %16110 = vmatprep.mubr.f32.mxu0 %v21573_v18  ;;  %17355 = vmatpush3.bf16.msra.mxu0 %v17352_v45  ;;  %v7872_v45 = vmul.f32 %v7870_v38, %v24646_v13  ;;  %v7814_v38 = vrot.slane %v21498_v37, 1 }
 0xbf7   : > { %17357 = vmatprep.subr.bf16.mxu0 %v17356_v16 }
 0xbf8   : > { %v7864_v37 = vsel %vm5524_vm3, %v7814_v38, %v7815_v6 }
 0xbf9   : > { %16111 = vmatmul.mubr.f32.gmra.mrb[114].mxu0 %v21581_v17 }
 0xbfa   : > { %16113 = vmatprep.mubr.f32.mxu0 %v21597_v31  ;;  %17359 = vmatpush3.bf16.msra.mxu0 %v17356_v16  ;;  %v24647_v16 = vld [vmem:[#allocation108_spill] sm:$0xff] }
 0xbfb   : > { %17361 = vmatprep.subr.bf16.mxu0 %v17360_v54  ;;  %v7873_v46 = vmul.f32 %v7869_v15, %v24647_v16  ;;  %v7865_v15 = vsel %vm5524_vm3, %v7813_v20, %v7814_v38  ;;  %v24653_v20 = vld [vmem:[#allocation93_spill] sm:$0xff] }
 0xbfd   : > { %16114 = vmatmul.mubr.f32.gmra.mrb[116].mxu0 %v21607_v56 }
 0xbfe   : > { %16116 = vmatprep.mubr.f32.mxu0 %v21621_v21  ;;  %17363 = vmatpush3.bf16.msra.mxu0 %v17360_v54  ;;  %v7867_v54 = vsel %vm5524_vm3, %v7811_v39, %v7812_v47  ;;  %v7817_v39 = vrot.slane %v21533_v53, 1  ;;  %v24651_v47 = vld [vmem:[#allocation112_spill] sm:$0xff]  ;;  %v24654_v53 = vld [vmem:[#allocation94_spill] sm:$0xff] }
 0xbff   : > { %v7875_v22 = vmul.f32 %v7867_v54, %v24649_v36  ;;  %v7863_v54 = vsel %vm5524_vm3, %v7815_v6, %v7816_v51  ;;  %v7821_v6 = vrot.slane %v21581_v17, 1  ;;  %v24658_v17 = vld [vmem:[#allocation56_spill] sm:$0xff] }
 0xc00   : > { %v7862_v10 = vsel %vm5524_vm3, %v7816_v51, %v7817_v39  ;;  %v7879_v38 = vmul.f32 %v7863_v54, %v24653_v20  ;;  %v24655_v51 = vld [vmem:[#allocation114_spill] sm:$0xff] }
 0xc01   : > { %16117 = vmatmul.mubr.f32.gmra.mrb[118].mxu0 %v21633_v26 }
 0xc02   : > { %16119 = vmatprep.mubr.f32.mxu0 %v21647_v2 }
 0xc05   : > { %16120 = vmatmul.mubr.f32.gmra.mrb[120].mxu0 %v21655_v33 }
 0xc06   : > { %16122 = vmatprep.mubr.f32.mxu0 %v21671_v49 }
 0xc09   : > { %16123 = vmatmul.mubr.f32.gmra.mrb[122].mxu0 %v21683_v23 }
 0xc0a   : > { %16125 = vmatprep.mubr.f32.mxu0 %v21691_v61 }
 0xc0d   : > { %16126 = vmatmul.mubr.f32.gmra.mrb[124].mxu0 %v21704_v55 }
 0xc0e   : > { %16128 = vmatprep.mubr.f32.mxu0 %v21712_v5 }
 0xc11   : > { %16129 = vmatmul.mubr.f32.gmra.mrb[126].mxu0 %v21720_v50 }
 0xc12   : > { %16131 = vmatprep.mubr.f32.mxu0 %v21730_v52 }
 0xc15   : > { %16132 = vmatmul.mubr.f32.gmra.mrb[128].mxu0 %v21740_v44 }
 0xc16   : > { %16134 = vmatprep.mubr.f32.mxu0 %v21748_v9 }
 0xc19   : > { %16135 = vmatmul.mubr.f32.gmra.mrb[130].mxu0 %v21760_v11 }
 0xc1a   : > { %16137 = vmatprep.mubr.f32.mxu0 %v21771_v48 }
 0xc1d   : > { %16138 = vmatmul.mubr.f32.gmra.mrb[132].mxu0 %v21435_v34 }
 0xc1e   : > { %16172 = vmatprep.mubr.f32.mxu0 %v7872_v45  ;;  %v7876_v45 = vmul.f32 %v7866_v0, %v24650_v58  ;;  %v7818_v0 = vrot.slane %v21547_v19, 1 }
 0xc21   : > { %16173 = vmatmul.mubr.f32.vlgmr.msra.gmra.mrb[102].mxu0 %v7873_v46  ;;  %v7877_v46 = vmul.f32 %v7865_v15, %v24651_v47  ;;  %v7861_v15 = vsel %vm5524_vm3, %v7817_v39, %v7818_v0  ;;  %v7823_v39 = vrot.slane %v21607_v56, 1  ;;  %v24660_v56 = vld [vmem:[#allocation45_spill] sm:$0xff] }
 0xc22   : > { %16175 = vmatprep.mubr.f32.mxu0 %v7874_v4  ;;  %v7878_v4 = vmul.f32 %v7864_v37, %v24652_v62  ;;  %v7820_v37 = vrot.slane %v21573_v18, 1 }
 0xc24   : > { %v7858_v18 = vsel %vm5524_vm3, %v7820_v37, %v7821_v6 }
 0xc25   : > { %16176 = vmatmul.mubr.f32.gmra.mrb[104].mxu0 %v7875_v22  ;;  %v7819_v22 = vrot.slane %v21559_v12, 1  ;;  %v24656_v12 = vld [vmem:[#allocation50_spill] sm:$0xff] }
 0xc26   : > { %16178 = vmatprep.mubr.f32.mxu0 %v7876_v45  ;;  %v7880_v45 = vmul.f32 %v7862_v10, %v24654_v53  ;;  %v7822_v10 = vrot.slane %v21597_v31, 1 }
 0xc27   : > { %v7860_v19 = vsel %vm5524_vm3, %v7818_v0, %v7819_v22  ;;  %v7859_v54 = vsel %vm5524_vm3, %v7819_v22, %v7820_v37  ;;  %v24657_v0 = vld [vmem:[#allocation53_spill] sm:$0xff]  ;;  %v7825_v22 = vrot.slane %v21633_v26, 1  ;;  %v24659_v37 = vld [vmem:[#allocation54_spill] sm:$0xff]  ;;  %v24662_v26 = vld [vmem:[#allocation116_spill] sm:$0xff] }
 0xc28   : > { %v7856_v31 = vsel %vm5524_vm3, %v7822_v10, %v7823_v39 }
 0xc29   : > { %16179 = vmatmul.mubr.f32.gmra.mrb[106].mxu0 %v7877_v46  ;;  %v7881_v46 = vmul.f32 %v7861_v15, %v24655_v51  ;;  %v7857_v15 = vsel %vm5524_vm3, %v7821_v6, %v7822_v10  ;;  %v7827_v6 = vrot.slane %v21655_v33, 1  ;;  %v24661_v10 = vld [vmem:[#allocation115_spill] sm:$0xff]  ;;  %v24664_v33 = vld [vmem:[#allocation118_spill] sm:$0xff] }
 0xc2a   : > { %16181 = vmatprep.mubr.f32.mxu0 %v7878_v4  ;;  %v7882_v4 = vmul.f32 %v7860_v19, %v24656_v12  ;;  %v7824_v19 = vrot.slane %v21621_v21, 1 }
 0xc2c   : > { %v7854_v21 = vsel %vm5524_vm3, %v7824_v19, %v7825_v22 }
 0xc2d   : > { %16182 = vmatmul.mubr.f32.gmra.mrb[108].mxu0 %v7879_v38  ;;  %v7883_v38 = vmul.f32 %v7859_v54, %v24657_v0  ;;  %v7855_v54 = vsel %vm5524_vm3, %v7823_v39, %v7824_v19  ;;  %v7829_v39 = vrot.slane %v21683_v23, 1  ;;  %v24663_v19 = vld [vmem:[#allocation117_spill] sm:$0xff]  ;;  %v24666_v23 = vld [vmem:[#allocation120_spill] sm:$0xff] }
 0xc2e   : > { %16184 = vmatprep.mubr.f32.mxu0 %v7880_v45  ;;  %v7884_v45 = vmul.f32 %v7858_v18, %v24658_v17  ;;  %v7826_v18 = vrot.slane %v21647_v2, 1 }
 0xc30   : > { %v7852_v2 = vsel %vm5524_vm3, %v7826_v18, %v7827_v6 }
 0xc31   : > { %16185 = vmatmul.mubr.f32.gmra.mrb[110].mxu0 %v7881_v46  ;;  %v7885_v46 = vmul.f32 %v7857_v15, %v24659_v37  ;;  %v7853_v15 = vsel %vm5524_vm3, %v7825_v22, %v7826_v18  ;;  %v7831_v22 = vrot.slane %v21704_v55, 1  ;;  %v24665_v18 = vld [vmem:[#allocation119_spill] sm:$0xff]  ;;  %v24668_v55 = vld [vmem:[#allocation122_spill] sm:$0xff] }
 0xc32   : > { %16187 = vmatprep.mubr.f32.mxu0 %v7882_v4  ;;  %v7886_v4 = vmul.f32 %v7856_v31, %v24660_v56  ;;  %v7828_v31 = vrot.slane %v21671_v49, 1 }
 0xc34   : > { %v7850_v49 = vsel %vm5524_vm3, %v7828_v31, %v7829_v39 }
 0xc35   : > { %16188 = vmatmul.mubr.f32.gmra.mrb[112].mxu0 %v7883_v38  ;;  %v7887_v38 = vmul.f32 %v7855_v54, %v24661_v10  ;;  %v7851_v54 = vsel %vm5524_vm3, %v7827_v6, %v7828_v31  ;;  %v7833_v6 = vrot.slane %v21720_v50, 1  ;;  %v24667_v31 = vld [vmem:[#allocation121_spill] sm:$0xff]  ;;  %v24669_v50 = vld [vmem:[#allocation124_spill] sm:$0xff] }
 0xc36   : > { %16190 = vmatprep.mubr.f32.mxu0 %v7884_v45  ;;  %v7888_v45 = vmul.f32 %v7854_v21, %v24662_v26  ;;  %v7830_v21 = vrot.slane %v21691_v61, 1  ;;  %v22067_v26 = vld [vmem:[%s23933_s18] ss:$0 sm:$0xff] }
 0xc38   : > { %v7848_v61 = vsel %vm5524_vm3, %v7830_v21, %v7831_v22 }
 0xc39   : > { %16191 = vmatmul.mubr.f32.gmra.mrb[114].mxu0 %v7885_v46  ;;  %v7889_v46 = vmul.f32 %v7853_v15, %v24663_v19  ;;  %v7849_v15 = vsel %vm5524_vm3, %v7829_v39, %v7830_v21  ;;  %v7835_v39 = vrot.slane %v21740_v44, 1  ;;  %v24671_v44 = vld [vmem:[#allocation126_spill] sm:$0xff] }
 0xc3a   : > { %16193 = vmatprep.mubr.f32.mxu0 %v7886_v4  ;;  %v7890_v4 = vmul.f32 %v7852_v2, %v24664_v33  ;;  %v7832_v2 = vrot.slane %v21712_v5, 1 }
 0xc3c   : > { %v7846_v5 = vsel %vm5524_vm3, %v7832_v2, %v7833_v6 }
 0xc3d   : > { %16194 = vmatmul.mubr.f32.gmra.mrb[116].mxu0 %v7887_v38  ;;  %v7891_v38 = vmul.f32 %v7851_v54, %v24665_v18  ;;  %v7847_v54 = vsel %vm5524_vm3, %v7831_v22, %v7832_v2  ;;  %v7837_v22 = vrot.slane %v21760_v11, 1  ;;  %v24670_v2 = vld [vmem:[#allocation125_spill] sm:$0xff]  ;;  %v7839_v11 = vrot.slane %v21435_v34, 1 }
 0xc3e   : > { %16196 = vmatprep.mubr.f32.mxu0 %v7888_v45  ;;  %v7892_v45 = vmul.f32 %v7850_v49, %v24666_v23  ;;  %v7834_v49 = vrot.slane %v21730_v52, 1  ;;  %v7895_v21 = vmul.f32 %v7847_v54, %v24584_v25  ;;  %v7838_v54 = vrot.slane %v21771_v48, 1  ;;  %v24674_v48 = vld [vmem:[#allocation129_spill] sm:$0xff] }
 0xc40   : > { %v7844_v52 = vsel %vm5524_vm3, %v7834_v49, %v7835_v39 }
 0xc41   : > { %16197 = vmatmul.mubr.f32.gmra.mrb[118].mxu0 %v7889_v46  ;;  %v7893_v46 = vmul.f32 %v7849_v15, %v24667_v31  ;;  %v7836_v15 = vrot.slane %v21748_v9, 1 }
 0xc42   : > { %16199 = vmatprep.mubr.f32.mxu0 %v7890_v4  ;;  %v7894_v4 = vmul.f32 %v7848_v61, %v24668_v55 }
 0xc43   : > { %v7842_v9 = vsel %vm5524_vm3, %v7836_v15, %v7837_v22 }
 0xc45   : > { %16200 = vmatmul.mubr.f32.gmra.mrb[120].mxu0 %v7891_v38  ;;  %v7896_v38 = vmul.f32 %v7846_v5, %v24669_v50 }
 0xc46   : > { %16202 = vmatprep.mubr.f32.mxu0 %v7892_v45  ;;  %v7845_v45 = vsel %vm5524_vm3, %v7833_v6, %v7834_v49  ;;  %v24672_v6 = vld [vmem:[#allocation127_spill] sm:$0xff]  ;;  %v24673_v49 = vld [vmem:[#allocation128_spill] sm:$0xff] }
 0xc47   : > { %v7897_v61 = vmul.f32 %v7845_v45, %v24670_v2 }
 0xc49   : > { %16203 = vmatmul.mubr.f32.gmra.mrb[122].mxu0 %v7893_v46  ;;  %v7898_v46 = vmul.f32 %v7844_v52, %v24671_v44  ;;  %v24675_v52 = vld [vmem:[#allocation41_spill] sm:$0xff] }
 0xc4a   : > { %16205 = vmatprep.mubr.f32.mxu0 %v7894_v4  ;;  %v7843_v4 = vsel %vm5524_vm3, %v7835_v39, %v7836_v15  ;;  %v7840_v39 = vsel %vm5524_vm3, %v7838_v54, %v7839_v11  ;;  %v24676_v15 = vrot.slane %v21428_v24, 1  ;;  %v13465_v24 = vld [vmem:[%s23934_s19 + $0x30] sm:$0xff] }
 0xc4b   : > { %v7899_v5 = vmul.f32 %v7843_v4, %v24672_v6 }
 0xc4c   : > { %v7871_v34 = vsel %vm5524_vm3, %v7839_v11, %v24676_v15  ;;  %v13466_v11 = vld [vmem:[%s23934_s19 + $0x38] sm:$0xff] }
 0xc4d   : > { %16206 = vmatmul.mubr.f32.gmra.mrb[124].mxu0 %v7895_v21  ;;  %v7900_v21 = vmul.f32 %v7842_v9, %v24673_v49 }
 0xc4e   : > { %16208 = vmatprep.mubr.f32.mxu0 %v7896_v38  ;;  %v7841_v38 = vsel %vm5524_vm3, %v7837_v22, %v7838_v54  ;;  %v13463_v22 = vld [vmem:[%s23934_s19 + $0x20] sm:$0xff]  ;;  %v13464_v54 = vld [vmem:[%s23934_s19 + $0x28] sm:$0xff] }
 0xc4f   : > { %v7901_v45 = vmul.f32 %v7841_v38, %v24674_v48  ;;  %v17364_v9 = vpack.c.bf16 %v13464_v54, %v13463_v22  ;;  %v9054_v38 = vld [vmem:[%s23934_s19 + $0x8] sm:$0xff] }
 0xc51   : > { %16209 = vmatmul.mubr.f32.gmra.mrb[126].mxu0 %v7897_v61  ;;  %v7902_v61 = vmul.f32 %v7840_v39, %v24675_v52  ;;  %17365 = vmatprep.subr.bf16.mxu1 %v17364_v9 }
 0xc52   : > { %16211 = vmatprep.mubr.f32.mxu0 %v7898_v46  ;;  %v24677_v46 = vld [vmem:[#allocation42_spill] sm:$0xff]  ;;  %17367 = vmatpush3.bf16.msra.mxu1 %v17364_v9 }
 0xc53   : > { %v7903_v4 = vmul.f32 %v7871_v34, %v24677_v46 }
 0xc55   : > { %16212 = vmatmul.mubr.f32.gmra.mrb[128].mxu0 %v7899_v5  ;;  %v17368_v5 = vpack.c.bf16 %v13466_v11, %v13465_v24 }
 0xc56   : > { %16214 = vmatprep.mubr.f32.mxu0 %v7900_v21  ;;  %v9053_v21 = vld [vmem:[%s23934_s19] sm:$0xff] }
 0xc57   : > { %17369 = vmatprep.subr.bf16.mxu1 %v17368_v5  ;;  %v22019_v39 = vpack.c.bf16 %v9054_v38, %v9053_v21 }
 0xc58   : > { %17371 = vmatpush3.bf16.msra.mxu1 %v17368_v5 }
 0xc59   : > { %16215 = vmatmul.mubr.f32.gmra.mrb[130].mxu0 %v7901_v45  ;;  %17373 = vmatprep.subr.bf16.mxu1 %v22019_v39 }
 0xc5a   : > { %16217 = vmatprep.mubr.f32.mxu0 %v7902_v61 }
 0xc5d   : > { %16218 = vmatmul.mubr.f32.gmra.mrb[132].mxu0 %v7903_v4 }
 0xcf4   : > { %v16174_v45 = vpop.f32.mrb[102].mxu0 }
 0xcf5   : > { %v8535_v61 = vpop.f32.mrb[103].mxu0  ;;  %v8734_v17 = vadd.f32 %v16174_v45, %v22067_v26 }
 0xcf6   : > { %v8733_v37 = vadd.f32 %v22067_v26, %v8535_v61 }
 0xcf7   : > { %v8766_v58 = vmax.f32 %v8734_v17, 0.0  ;;  %v24682_v17 = vld [vmem:[#allocation3_spill] sm:$0xff] }
 0xcf8   : > { %v16177_v15 = vpop.f32.mrb[104].mxu0  ;;  %v8765_v53 = vmax.f32 %v8733_v37, 0.0 }
 0xcf9   : > { %v8545_v34 = vpop.f32.mrb[105].mxu0  ;;  %v8736_v36 = vadd.f32 %v16177_v15, %v22067_v26 }
 0xcfa   : > { %v8735_v20 = vadd.f32 %v22067_v26, %v8545_v34  ;;  %v22082_v61 = vmin.f32 %v8765_v53, 6.0 }
 0xcfc   : > { %v16180_v4 = vpop.f32.mrb[106].mxu0  ;;  %24679 = vst [vmem:[#allocation131_spill] sm:$0xff] %v22082_v61  ;;  %v8767_v45 = vmax.f32 %v8735_v20, 0.0 }
 0xcfd   : > { %v8555_v22 = vpop.f32.mrb[107].mxu0  ;;  %v8738_v53 = vadd.f32 %v16180_v4, %v22067_v26  ;;  %v13532_v4 = vld [vmem:[%s23934_s19 + $0x48] sm:$0xff] }
 0xcfe   : > { %v8737_v16 = vadd.f32 %v22067_v26, %v8555_v22  ;;  %v22103_v34 = vmin.f32 %v8767_v45, 6.0 }
 0xd00   : > { %v22022_v54 = vpop.f32.mrb[108].mxu0  ;;  %v8769_v20 = vmax.f32 %v8737_v16, 0.0  ;;  %v13531_v16 = vld [vmem:[%s23934_s19 + $0x40] sm:$0xff] }
 0xd01   : > { %v8565_v24 = vpop.f32.mrb[109].mxu0 }
 0xd02   : > { %v8739_v22 = vadd.f32 %v22067_v26, %v8565_v24  ;;  %v24689_v24 = vld [vmem:[#allocation4_spill] sm:$0xff] }
 0xd04   : > { %v22024_v9 = vpop.f32.mrb[110].mxu0 }
 0xd05   : > { %v22026_v11 = vpop.f32.mrb[111].mxu0 }
 0xd08   : > { %v22028_v5 = vpop.f32.mrb[112].mxu0 }
 0xd09   : > { %v22030_v46 = vpop.f32.mrb[113].mxu0 }
 0xd0c   : > { %v22032_v21 = vpop.f32.mrb[114].mxu0 }
 0xd0d   : > { %v22034_v38 = vpop.f32.mrb[115].mxu0 }
 0xd10   : > { %v22036_v52 = vpop.f32.mrb[116].mxu0 }
 0xd11   : > { %v22038_v48 = vpop.f32.mrb[117].mxu0 }
 0xd14   : > { %v22040_v49 = vpop.f32.mrb[118].mxu0 }
 0xd15   : > { %v22042_v6 = vpop.f32.mrb[119].mxu0 }
 0xd18   : > { %v22044_v44 = vpop.f32.mrb[120].mxu0 }
 0xd19   : > { %v22046_v2 = vpop.f32.mrb[121].mxu0 }
 0xd1c   : > { %v22048_v50 = vpop.f32.mrb[122].mxu0 }
 0xd1d   : > { %v22050_v25 = vpop.f32.mrb[123].mxu0 }
 0xd20   : > { %v22052_v55 = vpop.f32.mrb[124].mxu0 }
 0xd21   : > { %v22054_v31 = vpop.f32.mrb[125].mxu0 }
 0xd24   : > { %v22056_v23 = vpop.f32.mrb[126].mxu0 }
 0xd25   : > { %v22058_v18 = vpop.f32.mrb[127].mxu0 }
 0xd28   : > { %v22060_v33 = vpop.f32.mrb[128].mxu0 }
 0xd29   : > { %v22062_v19 = vpop.f32.mrb[129].mxu0 }
 0xd2c   : > { %v22069_v10 = vpop.f32.mrb[130].mxu0 }
 0xd2d   : > { %v22071_v56 = vpop.f32.mrb[131].mxu0 }
 0xd30   : > { %v16219_v0 = vpop.f32.mrb[132].mxu0 }
 0xd31   : > { %v8764_v12 = vadd.f32 %v16219_v0, %v22067_v26  ;;  %v8685_v51 = vpop.f32.mrb[133].mxu0  ;;  %v9055_v0 = vld [vmem:[%s23934_s19 + $0x10] sm:$0xff] }
 0xd32   : > { %v8763_v62 = vadd.f32 %v22067_v26, %v8685_v51  ;;  %v9056_v51 = vld [vmem:[%s23934_s19 + $0x18] sm:$0xff] }
 0xd33   : > { %v8796_v47 = vmax.f32 %v8764_v12, 0.0  ;;  %v22092_v12 = vmin.f32 %v8766_v58, 6.0  ;;  %v17376_v15 = vpack.c.bf16 %v9056_v51, %v9055_v0  ;;  %v8770_v51 = vmax.f32 %v8738_v53, 0.0  ;;  %v24692_v53 = vld [vmem:[#allocation5_spill] sm:$0xff] }
 0xd34   : > { %v8795_v41 = vmax.f32 %v8763_v62, 0.0  ;;  %v8768_v62 = vmax.f32 %v8736_v36, 0.0  ;;  %v24686_v36 = vld [vmem:[#allocation14_spill] sm:$0xff] }
 0xd35   : > { %v22080_v13 = vmin.f32 %v8796_v47, 6.0  ;;  %24681 = vst [vmem:[#allocation133_spill] sm:$0xff] %v22092_v12  ;;  %v22110_v58 = vmul.f32 %v22082_v61, %v24686_v36  ;;  %v22126_v0 = vmul.f32 %v22092_v12, %v24689_v24  ;;  %v22133_v36 = vpack.c.bf16 %v13532_v4, %v13531_v16  ;;  %v24691_v61 = vld [vmem:[#allocation16_spill] sm:$0xff]  ;;  %v24694_v16 = vld [vmem:[#allocation18_spill] sm:$0xff] }
 0xd36   : > { %v22084_v60 = vmin.f32 %v8795_v41, 6.0  ;;  %v24684_v41 = vld [vmem:[#allocation12_spill] sm:$0xff]  ;;  %v22120_v45 = vmin.f32 %v8768_v62, 6.0  ;;  %v8771_v62 = vmax.f32 %v8739_v22, 0.0  ;;  %v8742_v22 = vadd.f32 %v22024_v9, %v22067_v26 }
 0xd37   : > { %24678 = vst [vmem:[#allocation130_spill] sm:$0xff] %v22080_v13  ;;  %v22101_v37 = vmul.f32 %v22080_v13, %v24684_v41  ;;  %24685 = vst [vmem:[#allocation12_spill] sm:$0xff] %v22103_v34  ;;  %v8740_v41 = vadd.f32 %v22022_v54, %v22067_v26  ;;  %v22139_v13 = vmul.f32 %v22103_v34, %v24691_v61 }
 0xd38   : > { %24680 = vst [vmem:[#allocation132_spill] sm:$0xff] %v22084_v60  ;;  %v22096_v47 = vmul.f32 %v22084_v60, %v24682_v17  ;;  %24687 = vst [vmem:[#allocation14_spill] sm:$0xff] %v22110_v58  ;;  %v22129_v17 = vmin.f32 %v8769_v20, 6.0  ;;  %v8741_v60 = vadd.f32 %v22067_v26, %v22026_v11  ;;  %v22150_v20 = vmul.f32 %v22120_v45, %v24692_v53 }
 0xd39   : > { %24688 = vst [vmem:[#allocation134_spill] sm:$0xff] %v22120_v45  ;;  %v8958_v24 = vrot.slane %v22101_v37, 1  ;;  %v22152_v11 = vmin.f32 %v8770_v51, 6.0  ;;  %v8772_v61 = vmax.f32 %v8740_v41, 0.0  ;;  %v8743_v53 = vadd.f32 %v22067_v26, %v22030_v46 }
 0xd3a   : > { %24683 = vst [vmem:[#allocation3_spill] sm:$0xff] %v22096_v47  ;;  %16228 = vmatprep.mubr.msk.f32.mxu1 %vm919_vm0, %v22096_v47  ;;  %24690 = vst [vmem:[#allocation4_spill] sm:$0xff] %v22129_v17  ;;  %v22158_v4 = vmul.f32 %v22129_v17, %v24694_v16  ;;  %v8773_v54 = vmax.f32 %v8741_v60, 0.0  ;;  %v24699_v9 = vrot.slane %v22096_v47, 1  ;;  %v8774_v46 = vmax.f32 %v8742_v22, 0.0  ;;  %v24701_v16 = vld [vmem:[#allocation6_spill] sm:$0xff] }
 0xd3b   : > { %16229 = vmatmul.mubr.msk.f32.vlgmr.msra.gmra.mrb[22].mxu1 %vm919_vm0, %v22101_v37  ;;  %24693 = vst [vmem:[#allocation16_spill] sm:$0xff] %v22152_v11  ;;  %v22181_v60 = vmin.f32 %v8772_v61, 6.0  ;;  %v8775_v45 = vmax.f32 %v8743_v53, 0.0  ;;  %v24705_v22 = vld [vmem:[#allocation7_spill] sm:$0xff] }
 0xd3c   : > { %16231 = vmatprep.mubr.msk.f32.mxu1 %vm919_vm0, %v22110_v58  ;;  %17375 = vmatpush3.bf16.msra.mxu1 %v22019_v39  ;;  %24695 = vst [vmem:[#allocation5_spill] sm:$0xff] %v22158_v4  ;;  %v22161_v39 = vmin.f32 %v8771_v62, 6.0  ;;  %v22177_v41 = vsel %vm5524_vm3, %v24699_v9, %v8958_v24  ;;  %v8744_v62 = vadd.f32 %v22028_v5, %v22067_v26  ;;  %v22189_v17 = vmin.f32 %v8773_v54, 6.0  ;;  %v24703_v9 = vld [vmem:[#allocation20_spill] sm:$0xff] }
 0xd3d   : > { %17377 = vmatprep.subr.bf16.mxu1 %v17376_v15  ;;  %24700 = vst [vmem:[#allocation136_spill] sm:$0xff] %v22181_v60  ;;  %v22201_v5 = vmin.f32 %v8774_v46, 6.0  ;;  %v8746_v54 = vadd.f32 %v22032_v21, %v22067_v26  ;;  %v22207_v53 = vmul.f32 %v22181_v60, %v24705_v22  ;;  %v8749_v22 = vadd.f32 %v22067_v26, %v22042_v6 }
 0xd3e   : > { %24696 = vst [vmem:[#allocation18_spill] sm:$0xff] %v22161_v39  ;;  %24702 = vst [vmem:[#allocation6_spill] sm:$0xff] %v22189_v17  ;;  %v22195_v34 = vmul.f32 %v22161_v39, %v24703_v9  ;;  %v8776_v61 = vmax.f32 %v8744_v62, 0.0  ;;  %v8747_v9 = vadd.f32 %v22067_v26, %v22038_v48  ;;  %v24707_v39 = vld [vmem:[#allocation22_spill] sm:$0xff]  ;;  %v24709_v62 = vld [vmem:[#allocation8_spill] sm:$0xff] }
 0xd3f   : > { %16232 = vmatmul.mubr.msk.f32.gmra.mrb[24].mxu1 %vm919_vm0, %v22126_v0  ;;  %24704 = vst [vmem:[#allocation20_spill] sm:$0xff] %v22201_v5  ;;  %v8778_v46 = vmax.f32 %v8746_v54, 0.0  ;;  %v8750_v54 = vadd.f32 %v22040_v49, %v22067_v26 }
 0xd40   : > { %16234 = vmatprep.mubr.msk.f32.mxu1 %vm919_vm0, %v22139_v13  ;;  %17379 = vmatpush3.bf16.msra.mxu1 %v17376_v15  ;;  %v24697_v15 = vrot.slane %v22110_v58, 1  ;;  %v22221_v21 = vmin.f32 %v8776_v61, 6.0 }
 0xd41   : > { %17381 = vmatprep.subr.bf16.mxu1 %v22133_v36 }
 0xd42   : > { %v22169_v51 = vsel %vm5524_vm3, %v8958_v24, %v24697_v15  ;;  %v22187_v15 = vmul.f32 %v22152_v11, %v24701_v16  ;;  %v8745_v24 = vadd.f32 %v22067_v26, %v22034_v38  ;;  %v22209_v38 = vmin.f32 %v8775_v45, 6.0  ;;  %24708 = vst [vmem:[#allocation22_spill] sm:$0xff] %v22221_v21 }
 0xd43   : > { %24698 = vst [vmem:[#allocation135_spill] sm:$0xff] %v22169_v51  ;;  %16235 = vmatmul.mubr.msk.f32.gmra.mrb[26].mxu1 %vm919_vm0, %v22150_v20  ;;  %v22215_v11 = vmul.f32 %v22189_v17, %v24707_v39  ;;  %v8748_v45 = vadd.f32 %v22036_v52, %v22067_v26  ;;  %v8779_v39 = vmax.f32 %v8747_v9, 0.0  ;;  %v24711_v17 = vld [vmem:[#allocation24_spill] sm:$0xff]  ;;  %v22241_v52 = vmin.f32 %v8778_v46, 6.0 }
 0xd44   : > { %16237 = vmatprep.mubr.msk.f32.mxu1 %vm919_vm0, %v22158_v4  ;;  %24706 = vst [vmem:[#allocation7_spill] sm:$0xff] %v22209_v38  ;;  %v8777_v16 = vmax.f32 %v8745_v24, 0.0  ;;  %v22227_v24 = vmul.f32 %v22201_v5, %v24709_v62  ;;  %v22235_v60 = vmul.f32 %v22209_v38, %v24711_v17  ;;  %v8781_v17 = vmax.f32 %v8749_v22, 0.0  ;;  %v24715_v38 = vld [vmem:[#allocation25_spill] sm:$0xff] }
 0xd45   : > { %24712 = vst [vmem:[#allocation24_spill] sm:$0xff] %v22241_v52  ;;  %v8780_v61 = vmax.f32 %v8748_v45, 0.0  ;;  %v22249_v6 = vmin.f32 %v8779_v39, 6.0  ;;  %v8751_v62 = vadd.f32 %v22067_v26, %v22046_v2  ;;  %v8782_v46 = vmax.f32 %v8750_v54, 0.0  ;;  %v24717_v39 = vld [vmem:[#allocation10_spill] sm:$0xff] }
 0xd46   : > { %v22229_v48 = vmin.f32 %v8777_v16, 6.0  ;;  %v24713_v16 = vld [vmem:[#allocation9_spill] sm:$0xff]  ;;  %v8752_v45 = vadd.f32 %v22044_v44, %v22067_v26  ;;  %v22267_v22 = vmul.f32 %v22241_v52, %v24717_v39  ;;  %v22269_v2 = vmin.f32 %v8781_v17, 6.0  ;;  %v24721_v17 = vld [vmem:[#allocation11_spill] sm:$0xff] }
 0xd47   : > { %16238 = vmatmul.mubr.msk.f32.gmra.mrb[28].mxu1 %vm919_vm0, %v22187_v15  ;;  %v22247_v9 = vmul.f32 %v22221_v21, %v24713_v16  ;;  %24714 = vst [vmem:[#allocation9_spill] sm:$0xff] %v22249_v6  ;;  %v22261_v49 = vmin.f32 %v8780_v61, 6.0  ;;  %v8753_v16 = vadd.f32 %v22067_v26, %v22050_v25  ;;  %v8754_v44 = vadd.f32 %v22048_v50, %v22067_v26 }
 0xd48   : > { %16240 = vmatprep.mubr.msk.f32.mxu1 %vm919_vm0, %v22195_v34  ;;  %24710 = vst [vmem:[#allocation8_spill] sm:$0xff] %v22229_v48  ;;  %v22255_v5 = vmul.f32 %v22229_v48, %v24715_v38  ;;  %24718 = vst [vmem:[#allocation10_spill] sm:$0xff] %v22269_v2  ;;  %v8783_v38 = vmax.f32 %v8751_v62, 0.0  ;;  %v24719_v48 = vld [vmem:[#allocation26_spill] sm:$0xff]  ;;  %v22283_v61 = vmin.f32 %v8782_v46, 6.0  ;;  %v8784_v54 = vmax.f32 %v8752_v45, 0.0 }
 0xd49   : > { %24716 = vst [vmem:[#allocation25_spill] sm:$0xff] %v22261_v49  ;;  %v22275_v21 = vmul.f32 %v22249_v6, %v24719_v48  ;;  %v22287_v62 = vmul.f32 %v22261_v49, %v24721_v17  ;;  %v8785_v48 = vmax.f32 %v8753_v16, 0.0  ;;  %v8755_v39 = vadd.f32 %v22067_v26, %v22054_v31  ;;  %v24723_v6 = vld [vmem:[#allocation27_spill] sm:$0xff] }
 0xd4a   : > { %24720 = vst [vmem:[#allocation26_spill] sm:$0xff] %v22283_v61  ;;  %v22289_v25 = vmin.f32 %v8783_v38, 6.0  ;;  %v22295_v52 = vmul.f32 %v22269_v2, %v24723_v6  ;;  %v8786_v50 = vmax.f32 %v8754_v44, 0.0  ;;  %v22301_v46 = vmin.f32 %v8784_v54, 6.0  ;;  %v24725_v38 = vld [vmem:[#allocation13_spill] sm:$0xff]  ;;  %v24727_v2 = vld [vmem:[#allocation28_spill] sm:$0xff] }
 0xd4b   : > { %16241 = vmatmul.mubr.msk.f32.gmra.mrb[30].mxu1 %vm919_vm0, %v22207_v53  ;;  %v8756_v45 = vadd.f32 %v22052_v55, %v22067_v26  ;;  %v22307_v16 = vmul.f32 %v22283_v61, %v24725_v38  ;;  %v22309_v31 = vmin.f32 %v8785_v48, 6.0  ;;  %v8787_v6 = vmax.f32 %v8755_v39, 0.0  ;;  %v24731_v61 = vld [vmem:[#allocation29_spill] sm:$0xff] }
 0xd4c   : > { %16243 = vmatprep.mubr.msk.f32.mxu1 %vm919_vm0, %v22215_v11  ;;  %24722 = vst [vmem:[#allocation11_spill] sm:$0xff] %v22289_v25  ;;  %24724 = vst [vmem:[#allocation27_spill] sm:$0xff] %v22301_v46  ;;  %v8757_v17 = vadd.f32 %v22067_v26, %v22058_v18  ;;  %v22315_v44 = vmul.f32 %v22289_v25, %v24727_v2  ;;  %v22319_v54 = vmin.f32 %v8786_v50, 6.0  ;;  %v24729_v18 = vld [vmem:[#allocation15_spill] sm:$0xff] }
 0xd4d   : > { %24726 = vst [vmem:[#allocation13_spill] sm:$0xff] %v22309_v31  ;;  %v8788_v55 = vmax.f32 %v8756_v45, 0.0  ;;  %v8758_v48 = vadd.f32 %v22056_v23, %v22067_v26  ;;  %v8762_v39 = vadd.f32 %v22069_v10, %v22067_v26  ;;  %v22329_v38 = vmul.f32 %v22301_v46, %v24729_v18  ;;  %v24732_v10 = vld [vmem:[#allocation17_spill] sm:$0xff]  ;;  %v24735_v46 = vld [vmem:[#allocation30_spill] sm:$0xff] }
 0xd4e   : > { %24728 = vst [vmem:[#allocation28_spill] sm:$0xff] %v22319_v54  ;;  %v22331_v2 = vmin.f32 %v8787_v6, 6.0  ;;  %v8789_v25 = vmax.f32 %v8757_v17, 0.0  ;;  %v8759_v50 = vadd.f32 %v22067_v26, %v22062_v19  ;;  %v22337_v49 = vmul.f32 %v22309_v31, %v24731_v61 }
 0xd4f   : > { %16244 = vmatmul.mubr.msk.f32.gmra.mrb[32].mxu1 %vm919_vm0, %v22227_v24  ;;  %v22345_v23 = vmul.f32 %v22319_v54, %v24732_v10  ;;  %v22347_v45 = vmin.f32 %v8788_v55, 6.0  ;;  %v8790_v6 = vmax.f32 %v8758_v48, 0.0  ;;  %v8760_v19 = vadd.f32 %v22060_v33, %v22067_v26 }
 0xd50   : > { %16246 = vmatprep.mubr.msk.f32.mxu1 %vm919_vm0, %v22235_v60  ;;  %24730 = vst [vmem:[#allocation15_spill] sm:$0xff] %v22331_v2  ;;  %v8794_v17 = vmax.f32 %v8762_v39, 0.0  ;;  %v22351_v18 = vmin.f32 %v8789_v25, 6.0  ;;  %v8791_v61 = vmax.f32 %v8759_v50, 0.0  ;;  %v8761_v31 = vadd.f32 %v22067_v26, %v22071_v56  ;;  %v24738_v25 = vld [vmem:[#allocation19_spill] sm:$0xff] }
 0xd51   : > { %24733 = vst [vmem:[#allocation29_spill] sm:$0xff] %v22347_v45  ;;  %v22357_v12 = vmul.f32 %v22331_v2, %v24735_v46  ;;  %v22363_v55 = vmin.f32 %v8790_v6, 6.0  ;;  %v8792_v33 = vmax.f32 %v8760_v19, 0.0  ;;  %v22369_v39 = vmul.f32 %v22347_v45, %v24738_v25  ;;  %v24740_v46 = vld [vmem:[#allocation31_spill] sm:$0xff]  ;;  %v24742_v6 = vld [vmem:[#allocation21_spill] sm:$0xff]  ;;  %v24745_v25 = vld [vmem:[#allocation32_spill] sm:$0xff] }
 0xd52   : > { %24734 = vst [vmem:[#allocation17_spill] sm:$0xff] %v22351_v18  ;;  %v22365_v48 = vmin.f32 %v8794_v17, 6.0  ;;  %v22371_v56 = vmin.f32 %v8791_v61, 6.0  ;;  %v8793_v26 = vmax.f32 %v8761_v31, 0.0  ;;  %v22375_v50 = vmul.f32 %v22351_v18, %v24740_v46  ;;  %v24743_v17 = vld [vmem:[#allocation33_spill] sm:$0xff] }
 0xd53   : > { %16247 = vmatmul.mubr.msk.f32.gmra.mrb[34].mxu1 %vm919_vm0, %v22247_v9  ;;  %24736 = vst [vmem:[#allocation30_spill] sm:$0xff] %v22363_v55  ;;  %v22381_v10 = vmin.f32 %v8792_v33, 6.0  ;;  %v22385_v19 = vmul.f32 %v22363_v55, %v24742_v6  ;;  %v8861_v18 = vrot.slane %v22096_v47, 7  ;;  %v24746_v33 = vld [vmem:[#allocation23_spill] sm:$0xff]  ;;  %v13533_v55 = vld [vmem:[%s23934_s19 + $0x50] sm:$0xff]  ;;  %v8865_v45 = vrot.slane %v22139_v13, 7 }
 0xd54   : > { %16249 = vmatprep.mubr.msk.f32.mxu1 %vm919_vm0, %v22255_v5  ;;  %24737 = vst [vmem:[#allocation137_spill] sm:$0xff] %v22365_v48  ;;  %24739 = vst [vmem:[#allocation19_spill] sm:$0xff] %v22371_v56  ;;  %v22389_v61 = vmul.f32 %v22365_v48, %v24743_v17  ;;  %v22391_v31 = vmin.f32 %v8793_v26, 6.0  ;;  %v22395_v46 = vmul.f32 %v22371_v56, %v24745_v25  ;;  %v8862_v26 = vrot.slane %v22101_v37, 7  ;;  %v24747_v48 = vld [vmem:[#allocation40_spill] sm:$0xff] }
 0xd55   : > { %24741 = vst [vmem:[#allocation31_spill] sm:$0xff] %v22381_v10  ;;  %v22404_v6 = vmul.f32 %v22381_v10, %v24746_v33  ;;  %v8863_v33 = vrot.slane %v22110_v58, 7  ;;  %v8864_v10 = vrot.slane %v22126_v0, 7  ;;  %v8866_v54 = vrot.slane %v22150_v20, 7  ;;  %v13567_v58 = vld [vmem:[%s23934_s19 + $0x60] sm:$0xff] }
 0xd56   : > { %24744 = vst [vmem:[#allocation21_spill] sm:$0xff] %v22391_v31  ;;  %v24274_v17 = vrot.slane %v22389_v61, 7  ;;  %v22410_v25 = vmul.f32 %v22391_v31, %v24747_v48  ;;  %v8923_v37 = vsel %vm5267_vm4, %v8861_v18, %v8862_v26  ;;  %v24748_v48 = vld [vmem:[#allocation44_spill] sm:$0xff] }
 0xd57   : > { %16250 = vmatmul.mubr.msk.f32.gmra.mrb[36].mxu1 %vm919_vm0, %v22267_v22  ;;  %v8921_v51 = vsel %vm5267_vm4, %v8863_v33, %v8864_v10 }
 0xd58   : > { %16252 = vmatprep.mubr.msk.f32.mxu1 %vm919_vm0, %v22275_v21  ;;  %v8924_v56 = vsel %vm5267_vm4, %v24274_v17, %v8861_v18  ;;  %v13534_v17 = vld [vmem:[%s23934_s19 + $0x58] sm:$0xff]  ;;  %v8922_v18 = vsel %vm5267_vm4, %v8862_v26, %v8863_v33  ;;  %v13568_v26 = vld [vmem:[%s23934_s19 + $0x68] sm:$0xff] }
 0xd59   : > { %v8925_v31 = vmul.f32 %v8924_v56, %v24748_v48  ;;  %v8926_v56 = vmul.f32 %v8923_v37, %v24601_v42  ;;  %v17384_v2 = vpack.c.bf16 %v13534_v17, %v13533_v55  ;;  %v24749_v48 = vld [vmem:[#allocation51_spill] sm:$0xff]  ;;  %v8920_v55 = vsel %vm5267_vm4, %v8864_v10, %v8865_v45  ;;  %v24750_v17 = vld [vmem:[#allocation57_spill] sm:$0xff]  ;;  %v24753_v10 = vld [vmem:[#allocation64_spill] sm:$0xff] }
 0xd5a   : > { %v8927_v47 = vmul.f32 %v8922_v18, %v24749_v48  ;;  %v8928_v33 = vmul.f32 %v8921_v51, %v24750_v17  ;;  %v22455_v37 = vpack.c.bf16 %v13568_v26, %v13567_v58  ;;  %v8868_v18 = vrot.slane %v22187_v15, 7  ;;  %v24751_v48 = vld [vmem:[#allocation60_spill] sm:$0xff] }
 0xd5b   : > { %16253 = vmatmul.mubr.msk.f32.gmra.mrb[38].mxu1 %vm919_vm0, %v22287_v62  ;;  %v8929_v42 = vmul.f32 %v8920_v55, %v24751_v48  ;;  %v8870_v51 = vrot.slane %v22207_v53, 7  ;;  %v8871_v55 = vrot.slane %v22215_v11, 7 }
 0xd5c   : > { %16255 = vmatprep.mubr.msk.f32.mxu1 %vm919_vm0, %v22295_v52 }
 0xd5f   : > { %16256 = vmatmul.mubr.msk.f32.gmra.mrb[40].mxu1 %vm919_vm0, %v22307_v16 }
 0xd60   : > { %16258 = vmatprep.mubr.msk.f32.mxu1 %vm919_vm0, %v22315_v44 }
 0xd63   : > { %16259 = vmatmul.mubr.msk.f32.gmra.mrb[42].mxu1 %vm919_vm0, %v22329_v38 }
 0xd64   : > { %16261 = vmatprep.mubr.msk.f32.mxu1 %vm919_vm0, %v22337_v49 }
 0xd67   : > { %16262 = vmatmul.mubr.msk.f32.gmra.mrb[44].mxu1 %vm919_vm0, %v22345_v23 }
 0xd68   : > { %16264 = vmatprep.mubr.msk.f32.mxu1 %vm919_vm0, %v22357_v12 }
 0xd6b   : > { %16265 = vmatmul.mubr.msk.f32.gmra.mrb[46].mxu1 %vm919_vm0, %v22369_v39 }
 0xd6c   : > { %16267 = vmatprep.mubr.msk.f32.mxu1 %vm919_vm0, %v22375_v50 }
 0xd6f   : > { %16268 = vmatmul.mubr.msk.f32.gmra.mrb[48].mxu1 %vm919_vm0, %v22385_v19 }
 0xd70   : > { %16270 = vmatprep.mubr.msk.f32.mxu1 %vm919_vm0, %v22395_v46 }
 0xd73   : > { %16271 = vmatmul.mubr.msk.f32.gmra.mrb[50].mxu1 %vm919_vm0, %v22404_v6 }
 0xd74   : > { %16273 = vmatprep.mubr.msk.f32.mxu1 %vm919_vm0, %v22410_v25 }
 0xd77   : > { %16274 = vmatmul.mubr.msk.f32.gmra.mrb[52].mxu1 %vm919_vm0, %v22389_v61 }
 0xd78   : > { %16284 = vmatprep.mubr.msk.f32.mxu1 %vm919_vm0, %v8925_v31  ;;  %v8867_v31 = vrot.slane %v22158_v4, 7  ;;  %v8919_v4 = vsel %vm5267_vm4, %v8865_v45, %v8866_v54 }
 0xd7a   : > { %v8917_v45 = vsel %vm5267_vm4, %v8867_v31, %v8868_v18 }
 0xd7b   : > { %16285 = vmatmul.mubr.msk.f32.vlgmr.msra.gmra.mrb[22].mxu1 %vm919_vm0, %v8926_v56  ;;  %v8869_v56 = vrot.slane %v22195_v34, 7 }
 0xd7c   : > { %16287 = vmatprep.mubr.msk.f32.mxu1 %vm919_vm0, %v8927_v47  ;;  %17383 = vmatpush3.bf16.msra.mxu1 %v22133_v36  ;;  %v8918_v47 = vsel %vm5267_vm4, %v8866_v54, %v8867_v31  ;;  %v24752_v36 = vld [vmem:[#allocation62_spill] sm:$0xff]  ;;  %v8873_v31 = vrot.slane %v22235_v60, 7 }
 0xd7d   : > { %17385 = vmatprep.subr.bf16.mxu1 %v17384_v2  ;;  %v8930_v58 = vmul.f32 %v8919_v4, %v24752_v36  ;;  %v8931_v26 = vmul.f32 %v8918_v47, %v24753_v10  ;;  %v8916_v54 = vsel %vm5267_vm4, %v8868_v18, %v8869_v56  ;;  %v8872_v4 = vrot.slane %v22227_v24, 7  ;;  %v24754_v18 = vld [vmem:[#allocation72_spill] sm:$0xff] }
 0xd7e   : > { %v8914_v47 = vsel %vm5267_vm4, %v8870_v51, %v8871_v55 }
 0xd7f   : > { %16288 = vmatmul.mubr.msk.f32.gmra.mrb[24].mxu1 %vm919_vm0, %v8928_v33  ;;  %v8915_v33 = vsel %vm5267_vm4, %v8869_v56, %v8870_v51  ;;  %v8875_v56 = vrot.slane %v22255_v5, 7  ;;  %v24756_v51 = vld [vmem:[#allocation77_spill] sm:$0xff] }
 0xd80   : > { %16290 = vmatprep.mubr.msk.f32.mxu1 %vm919_vm0, %v8929_v42  ;;  %17387 = vmatpush3.bf16.msra.mxu1 %v17384_v2  ;;  %v8932_v42 = vmul.f32 %v8917_v45, %v24611_v63  ;;  %v8933_v2 = vmul.f32 %v8916_v54, %v24612_v57  ;;  %v24755_v45 = vld [vmem:[#allocation74_spill] sm:$0xff]  ;;  %v8913_v54 = vsel %vm5267_vm4, %v8871_v55, %v8872_v4  ;;  %v8877_v55 = vrot.slane %v22275_v21, 7 }
 0xd81   : > { %17389 = vmatprep.subr.bf16.mxu1 %v22455_v37  ;;  %v8935_v63 = vmul.f32 %v8914_v47, %v24755_v45 }
 0xd83   : > { %16291 = vmatmul.mubr.msk.f32.gmra.mrb[26].mxu1 %vm919_vm0, %v8930_v58  ;;  %v8934_v58 = vmul.f32 %v8915_v33, %v24754_v18  ;;  %v8876_v33 = vrot.slane %v22267_v22, 7  ;;  %v24757_v18 = vld [vmem:[#allocation80_spill] sm:$0xff] }
 0xd84   : > { %16293 = vmatprep.mubr.msk.f32.mxu1 %vm919_vm0, %v8931_v26  ;;  %v8874_v26 = vrot.slane %v22247_v9, 7 }
 0xd86   : > { %v8911_v47 = vsel %vm5267_vm4, %v8873_v31, %v8874_v26 }
 0xd87   : > { %16294 = vmatmul.mubr.msk.f32.gmra.mrb[28].mxu1 %vm919_vm0, %v8932_v42  ;;  %v8912_v42 = vsel %vm5267_vm4, %v8872_v4, %v8873_v31  ;;  %v8878_v4 = vrot.slane %v22287_v62, 7  ;;  %v8879_v31 = vrot.slane %v22295_v52, 7 }
 0xd88   : > { %16296 = vmatprep.mubr.msk.f32.mxu1 %vm919_vm0, %v8933_v2  ;;  %v8936_v2 = vmul.f32 %v8913_v54, %v24756_v51  ;;  %v8937_v57 = vmul.f32 %v8912_v42, %v24757_v18  ;;  %v8909_v42 = vsel %vm5267_vm4, %v8875_v56, %v8876_v33 }
 0xd8b   : > { %16297 = vmatmul.mubr.msk.f32.gmra.mrb[30].mxu1 %vm919_vm0, %v8934_v58  ;;  %v8910_v58 = vsel %vm5267_vm4, %v8874_v26, %v8875_v56  ;;  %v8880_v26 = vrot.slane %v22307_v16, 7  ;;  %v8881_v56 = vrot.slane %v22315_v44, 7 }
 0xd8c   : > { %16299 = vmatprep.mubr.msk.f32.mxu1 %vm919_vm0, %v8935_v63  ;;  %v8938_v63 = vmul.f32 %v8911_v47, %v24621_v28  ;;  %v8939_v54 = vmul.f32 %v8910_v58, %v24622_v29  ;;  %v8907_v58 = vsel %vm5267_vm4, %v8877_v55, %v8878_v4 }
 0xd8f   : > { %16300 = vmatmul.mubr.msk.f32.gmra.mrb[32].mxu1 %vm919_vm0, %v8936_v2  ;;  %v8908_v2 = vsel %vm5267_vm4, %v8876_v33, %v8877_v55  ;;  %v8942_v33 = vmul.f32 %v8907_v58, %v24628_v35  ;;  %v8883_v55 = vrot.slane %v22337_v49, 7  ;;  %v24759_v58 = vld [vmem:[#allocation95_spill] sm:$0xff] }
 0xd90   : > { %16302 = vmatprep.mubr.msk.f32.mxu1 %vm919_vm0, %v8937_v57  ;;  %v8940_v57 = vmul.f32 %v8909_v42, %v24625_v40  ;;  %v8941_v47 = vmul.f32 %v8908_v2, %v24626_v30  ;;  %v24758_v42 = vld [vmem:[#allocation91_spill] sm:$0xff]  ;;  %v8905_v2 = vsel %vm5267_vm4, %v8879_v31, %v8880_v26 }
 0xd93   : > { %16303 = vmatmul.mubr.msk.f32.gmra.mrb[34].mxu1 %vm919_vm0, %v8938_v63  ;;  %v8906_v63 = vsel %vm5267_vm4, %v8878_v4, %v8879_v31  ;;  %v8944_v4 = vmul.f32 %v8905_v2, %v24631_v32  ;;  %v8885_v31 = vrot.slane %v22357_v12, 7  ;;  %v24760_v2 = vld [vmem:[#allocation97_spill] sm:$0xff] }
 0xd94   : > { %16305 = vmatprep.mubr.msk.f32.mxu1 %vm919_vm0, %v8939_v54  ;;  %v8882_v54 = vrot.slane %v22329_v38, 7  ;;  %v8943_v40 = vmul.f32 %v8906_v63, %v24758_v42 }
 0xd96   : > { %v8903_v63 = vsel %vm5267_vm4, %v8881_v56, %v8882_v54 }
 0xd97   : > { %16306 = vmatmul.mubr.msk.f32.gmra.mrb[36].mxu1 %vm919_vm0, %v8940_v57  ;;  %v8904_v57 = vsel %vm5267_vm4, %v8880_v26, %v8881_v56  ;;  %v8886_v26 = vrot.slane %v22369_v39, 7  ;;  %v8887_v56 = vrot.slane %v22375_v50, 7 }
 0xd98   : > { %16308 = vmatprep.mubr.msk.f32.mxu1 %vm919_vm0, %v8941_v47  ;;  %v8884_v47 = vrot.slane %v22345_v23, 7  ;;  %v8945_v35 = vmul.f32 %v8904_v57, %v24759_v58 }
 0xd9a   : > { %v8901_v57 = vsel %vm5267_vm4, %v8883_v55, %v8884_v47 }
 0xd9b   : > { %16309 = vmatmul.mubr.msk.f32.gmra.mrb[38].mxu1 %vm919_vm0, %v8942_v33  ;;  %v8902_v33 = vsel %vm5267_vm4, %v8882_v54, %v8883_v55  ;;  %v24761_v54 = vld [vmem:[#allocation98_spill] sm:$0xff]  ;;  %v8889_v55 = vrot.slane %v22395_v46, 7 }
 0xd9c   : > { %16311 = vmatprep.mubr.msk.f32.mxu1 %vm919_vm0, %v8943_v40  ;;  %v8946_v40 = vmul.f32 %v8903_v63, %v24635_v8  ;;  %v8947_v32 = vmul.f32 %v8902_v33, %v24760_v2  ;;  %v8888_v63 = vrot.slane %v22385_v19, 7  ;;  %v24762_v8 = vld [vmem:[#allocation99_spill] sm:$0xff]  ;;  %v8899_v33 = vsel %vm5267_vm4, %v8885_v31, %v8886_v26 }
 0xd9f   : > { %16312 = vmatmul.mubr.msk.f32.gmra.mrb[40].mxu1 %vm919_vm0, %v8944_v4  ;;  %v8900_v4 = vsel %vm5267_vm4, %v8884_v47, %v8885_v31  ;;  %v8890_v47 = vrot.slane %v22404_v6, 7  ;;  %v8891_v31 = vrot.slane %v22410_v25, 7 }
 0xda0   : > { %16314 = vmatprep.mubr.msk.f32.mxu1 %vm919_vm0, %v8945_v35  ;;  %v8948_v35 = vmul.f32 %v8901_v57, %v24761_v54  ;;  %v8949_v58 = vmul.f32 %v8900_v4, %v24762_v8  ;;  %v8897_v4 = vsel %vm5267_vm4, %v8887_v56, %v8888_v63 }
 0xda3   : > { %16315 = vmatmul.mubr.msk.f32.gmra.mrb[42].mxu1 %vm919_vm0, %v8946_v40  ;;  %v8898_v40 = vsel %vm5267_vm4, %v8886_v26, %v8887_v56  ;;  %v8894_v56 = vsel %vm5267_vm4, %v8890_v47, %v8891_v31 }
 0xda4   : > { %16317 = vmatprep.mubr.msk.f32.mxu1 %vm919_vm0, %v8947_v32  ;;  %v8950_v32 = vmul.f32 %v8899_v33, %v24641_v27  ;;  %v8951_v57 = vmul.f32 %v8898_v40, %v24642_v14  ;;  %v8895_v33 = vsel %vm5267_vm4, %v8889_v55, %v8890_v47  ;;  %v8961_v47 = vrot.slane %v22139_v13, 1 }
 0xda5   : > { %v8954_v40 = vmul.f32 %v8895_v33, %v24560_v3  ;;  %v13569_v33 = vld [vmem:[%s23934_s19 + $0x70] sm:$0xff] }
 0xda7   : > { %16318 = vmatmul.mubr.msk.f32.gmra.mrb[44].mxu1 %vm919_vm0, %v8948_v35  ;;  %v8896_v35 = vsel %vm5267_vm4, %v8888_v63, %v8889_v55  ;;  %v8955_v63 = vmul.f32 %v8894_v56, %v24643_v7  ;;  %v24764_v55 = vld [vmem:[#allocation106_spill] sm:$0xff]  ;;  %v24771_v7 = vld [vmem:[#allocation109_spill] sm:$0xff] }
 0xda8   : > { %16320 = vmatprep.mubr.msk.f32.mxu1 %vm919_vm0, %v8949_v58  ;;  %v8952_v58 = vmul.f32 %v8897_v4, %v24558_v59  ;;  %v8953_v26 = vmul.f32 %v8896_v35, %v24559_v1  ;;  %v8960_v4 = vrot.slane %v22126_v0, 1  ;;  %v8962_v0 = vrot.slane %v22150_v20, 1  ;;  %v24766_v56 = vld [vmem:[#allocation14_spill] sm:$0xff] }
 0xdaa   : > { %v9016_v20 = vsel %vm5524_vm3, %v8960_v4, %v8961_v47 }
 0xdab   : > { %16321 = vmatmul.mubr.msk.f32.gmra.mrb[46].mxu1 %vm919_vm0, %v8950_v32  ;;  %v24763_v32 = vrot.slane %v22389_v61, 7 }
 0xdac   : > { %16323 = vmatprep.mubr.msk.f32.mxu1 %vm919_vm0, %v8951_v57 }
 0xdad   : > { %v8893_v57 = vsel %vm5267_vm4, %v8891_v31, %v24763_v32  ;;  %v13570_v31 = vld [vmem:[%s23934_s19 + $0x78] sm:$0xff] }
 0xdae   : > { %v8956_v35 = vmul.f32 %v8893_v57, %v24764_v55  ;;  %v17392_v57 = vpack.c.bf16 %v13570_v31, %v13569_v33 }
 0xdaf   : > { %16324 = vmatmul.mubr.msk.f32.gmra.mrb[48].mxu1 %vm919_vm0, %v8952_v58  ;;  %v24765_v58 = vld [vmem:[#allocation107_spill] sm:$0xff] }
 0xdb0   : > { %16326 = vmatprep.mubr.msk.f32.mxu1 %vm919_vm0, %v8953_v26  ;;  %v9021_v26 = vmul.f32 %v22177_v41, %v24765_v58  ;;  %v24768_v41 = vld [vmem:[#allocation108_spill] sm:$0xff]  ;;  %v24770_v58 = vld [vmem:[#allocation5_spill] sm:$0xff] }
 0xdb1   : > { %v8963_v55 = vrot.slane %v24770_v58, 1  ;;  %v9015_v58 = vsel %vm5524_vm3, %v8961_v47, %v8962_v0 }
 0xdb3   : > { %16327 = vmatmul.mubr.msk.f32.gmra.mrb[50].mxu1 %vm919_vm0, %v8954_v40  ;;  %v24767_v40 = vrot.slane %v24766_v56, 1  ;;  %v13604_v56 = vld [vmem:[%s23934_s19 + $0x88] sm:$0xff] }
 0xdb4   : > { %16329 = vmatprep.mubr.msk.f32.mxu1 %vm919_vm0, %v8955_v63  ;;  %v24769_v63 = vld [vmem:[#allocation135_spill] sm:$0xff] }
 0xdb5   : > { %v9017_v13 = vsel %vm5524_vm3, %v24767_v40, %v8960_v4  ;;  %v9022_v32 = vmul.f32 %v24769_v63, %v24768_v41  ;;  %v24772_v4 = vld [vmem:[#allocation110_spill] sm:$0xff]  ;;  %v8965_v40 = vrot.slane %v22195_v34, 1  ;;  %v8967_v34 = vrot.slane %v22215_v11, 1 }
 0xdb6   : > { %v9023_v3 = vmul.f32 %v9017_v13, %v24771_v7  ;;  %v9024_v33 = vmul.f32 %v9016_v20, %v24772_v4  ;;  %v24773_v13 = vld [vmem:[#allocation111_spill] sm:$0xff]  ;;  %v24775_v20 = vld [vmem:[#allocation113_spill] sm:$0xff] }
 0xdb7   : > { %16330 = vmatmul.mubr.msk.f32.gmra.mrb[52].mxu1 %vm919_vm0, %v8956_v35  ;;  %v13603_v35 = vld [vmem:[%s23934_s19 + $0x80] sm:$0xff]  ;;  %v9025_v63 = vmul.f32 %v9015_v58, %v24773_v13  ;;  %v8969_v58 = vrot.slane %v22235_v60, 1 }
 0xdb8   : > { %16340 = vmatprep.mubr.msk.f32.mxu1 %vm919_vm0, %v9021_v26  ;;  %v8964_v26 = vrot.slane %v22187_v15, 1  ;;  %v22630_v31 = vpack.c.bf16 %v13604_v56, %v13603_v35  ;;  %v9014_v15 = vsel %vm5524_vm3, %v8962_v0, %v8963_v55 }
 0xdba   : > { %v9012_v0 = vsel %vm5524_vm3, %v8964_v26, %v8965_v40 }
 0xdbb   : > { %16341 = vmatmul.mubr.msk.f32.vlgmr.msra.gmra.mrb[22].mxu1 %vm919_vm0, %v9022_v32  ;;  %v8966_v32 = vrot.slane %v22207_v53, 1  ;;  %v8968_v53 = vrot.slane %v22227_v24, 1 }
 0xdbc   : > { %16343 = vmatprep.mubr.msk.f32.mxu1 %vm919_vm0, %v9023_v3  ;;  %17391 = vmatpush3.bf16.msra.mxu1 %v22455_v37  ;;  %v9013_v3 = vsel %vm5524_vm3, %v8963_v55, %v8964_v26  ;;  %v24774_v37 = vld [vmem:[#allocation112_spill] sm:$0xff]  ;;  %v8970_v26 = vrot.slane %v22247_v9, 1 }
 0xdbd   : > { %17393 = vmatprep.subr.bf16.mxu1 %v17392_v57  ;;  %v9026_v47 = vmul.f32 %v9014_v15, %v24774_v37  ;;  %v9027_v35 = vmul.f32 %v9013_v3, %v24775_v20  ;;  %v9011_v55 = vsel %vm5524_vm3, %v8965_v40, %v8966_v32  ;;  %v9009_v24 = vsel %vm5524_vm3, %v8967_v34, %v8968_v53  ;;  %v24778_v40 = vld [vmem:[#allocation114_spill] sm:$0xff] }
 0xdbe   : > { %v8971_v3 = vrot.slane %v22255_v5, 1  ;;  %v9007_v9 = vsel %vm5524_vm3, %v8969_v58, %v8970_v26 }
 0xdbf   : > { %16344 = vmatmul.mubr.msk.f32.gmra.mrb[24].mxu1 %vm919_vm0, %v9024_v33  ;;  %v24777_v33 = vld [vmem:[#allocation94_spill] sm:$0xff] }
 0xdc0   : > { %16346 = vmatprep.mubr.msk.f32.mxu1 %vm919_vm0, %v9025_v63  ;;  %17395 = vmatpush3.bf16.msra.mxu1 %v17392_v57  ;;  %v24776_v57 = vld [vmem:[#allocation93_spill] sm:$0xff]  ;;  %v9029_v11 = vmul.f32 %v9011_v55, %v24777_v33  ;;  %v9010_v63 = vsel %vm5524_vm3, %v8966_v32, %v8967_v34  ;;  %v8972_v32 = vrot.slane %v22267_v22, 1  ;;  %v8973_v55 = vrot.slane %v22275_v21, 1 }
 0xdc1   : > { %17397 = vmatprep.subr.bf16.mxu1 %v22630_v31  ;;  %v9028_v56 = vmul.f32 %v9012_v0, %v24776_v57  ;;  %v9030_v15 = vmul.f32 %v9010_v63, %v24778_v40  ;;  %v24780_v34 = vld [vmem:[#allocation53_spill] sm:$0xff] }
 0xdc2   : > { %v9005_v22 = vsel %vm5524_vm3, %v8971_v3, %v8972_v32 }
 0xdc3   : > { %16347 = vmatmul.mubr.msk.f32.gmra.mrb[26].mxu1 %vm919_vm0, %v9026_v47  ;;  %v24779_v47 = vld [vmem:[#allocation50_spill] sm:$0xff] }
 0xdc4   : > { %16349 = vmatprep.mubr.msk.f32.mxu1 %vm919_vm0, %v9027_v35  ;;  %v9031_v60 = vmul.f32 %v9009_v24, %v24779_v47  ;;  %v9008_v35 = vsel %vm5524_vm3, %v8968_v53, %v8969_v58  ;;  %v8974_v53 = vrot.slane %v22287_v62, 1  ;;  %v24782_v58 = vld [vmem:[#allocation54_spill] sm:$0xff]  ;;  %v8975_v24 = vrot.slane %v22295_v52, 1 }
 0xdc5   : > { %v9032_v0 = vmul.f32 %v9008_v35, %v24780_v34 }
 0xdc6   : > { %v9003_v62 = vsel %vm5524_vm3, %v8973_v55, %v8974_v53 }
 0xdc7   : > { %16350 = vmatmul.mubr.msk.f32.gmra.mrb[28].mxu1 %vm919_vm0, %v9028_v56  ;;  %v24781_v56 = vld [vmem:[#allocation56_spill] sm:$0xff] }
 0xdc8   : > { %16352 = vmatprep.mubr.msk.f32.mxu1 %vm919_vm0, %v9029_v11  ;;  %v9033_v5 = vmul.f32 %v9007_v9, %v24781_v56  ;;  %v9006_v11 = vsel %vm5524_vm3, %v8970_v26, %v8971_v3  ;;  %v8976_v26 = vrot.slane %v22307_v16, 1  ;;  %v24784_v3 = vld [vmem:[#allocation115_spill] sm:$0xff]  ;;  %v8977_v9 = vrot.slane %v22315_v44, 1 }
 0xdc9   : > { %v9034_v63 = vmul.f32 %v9006_v11, %v24782_v58 }
 0xdca   : > { %v9001_v16 = vsel %vm5524_vm3, %v8975_v24, %v8976_v26 }
 0xdcb   : > { %16353 = vmatmul.mubr.msk.f32.gmra.mrb[30].mxu1 %vm919_vm0, %v9030_v15  ;;  %v24783_v15 = vld [vmem:[#allocation45_spill] sm:$0xff] }
 0xdcc   : > { %16355 = vmatprep.mubr.msk.f32.mxu1 %vm919_vm0, %v9031_v60  ;;  %v9035_v21 = vmul.f32 %v9005_v22, %v24783_v15  ;;  %v9004_v60 = vsel %vm5524_vm3, %v8972_v32, %v8973_v55  ;;  %v8978_v32 = vrot.slane %v22329_v38, 1  ;;  %v24786_v55 = vld [vmem:[#allocation117_spill] sm:$0xff]  ;;  %v8979_v22 = vrot.slane %v22337_v49, 1 }
 0xdcd   : > { %v9036_v35 = vmul.f32 %v9004_v60, %v24784_v3  ;;  %v24839_v3 = vld [vmem:[#allocation96_spill] sm:$0xff] }
 0xdce   : > { %v8999_v38 = vsel %vm5524_vm3, %v8977_v9, %v8978_v32 }
 0xdcf   : > { %16356 = vmatmul.mubr.msk.f32.gmra.mrb[32].mxu1 %vm919_vm0, %v9032_v0  ;;  %v24785_v0 = vld [vmem:[#allocation116_spill] sm:$0xff] }
 0xdd0   : > { %16358 = vmatprep.mubr.msk.f32.mxu1 %vm919_vm0, %v9033_v5  ;;  %v9037_v52 = vmul.f32 %v9003_v62, %v24785_v0  ;;  %v9002_v5 = vsel %vm5524_vm3, %v8974_v53, %v8975_v24  ;;  %v8980_v53 = vrot.slane %v22345_v23, 1  ;;  %v24788_v24 = vld [vmem:[#allocation119_spill] sm:$0xff]  ;;  %v8981_v62 = vrot.slane %v22357_v12, 1 }
 0xdd1   : > { %v9038_v11 = vmul.f32 %v9002_v5, %v24786_v55  ;;  %v24835_v55 = vld [vmem:[#allocation92_spill] sm:$0xff]  ;;  %v24836_v0 = vld [vmem:[#allocation95_spill] sm:$0xff] }
 0xdd2   : > { %v8997_v23 = vsel %vm5524_vm3, %v8979_v22, %v8980_v53 }
 0xdd3   : > { %16359 = vmatmul.mubr.msk.f32.gmra.mrb[34].mxu1 %vm919_vm0, %v9034_v63  ;;  %v24787_v63 = vld [vmem:[#allocation118_spill] sm:$0xff] }
 0xdd4   : > { %16361 = vmatprep.mubr.msk.f32.mxu1 %vm919_vm0, %v9035_v21  ;;  %v9039_v44 = vmul.f32 %v9001_v16, %v24787_v63  ;;  %v9000_v21 = vsel %vm5524_vm3, %v8976_v26, %v8977_v9  ;;  %v8982_v26 = vrot.slane %v22369_v39, 1  ;;  %v24790_v9 = vld [vmem:[#allocation121_spill] sm:$0xff]  ;;  %v8983_v16 = vrot.slane %v22375_v50, 1  ;;  %v24832_v63 = vld [vmem:[#allocation90_spill] sm:$0xff] }
 0xdd5   : > { %v9040_v60 = vmul.f32 %v9000_v21, %v24788_v24  ;;  %v24829_v24 = vld [vmem:[#allocation87_spill] sm:$0xff] }
 0xdd6   : > { %v8995_v39 = vsel %vm5524_vm3, %v8981_v62, %v8982_v26 }
 0xdd7   : > { %16362 = vmatmul.mubr.msk.f32.gmra.mrb[36].mxu1 %vm919_vm0, %v9036_v35  ;;  %v24789_v35 = vld [vmem:[#allocation120_spill] sm:$0xff] }
 0xdd8   : > { %16364 = vmatprep.mubr.msk.f32.mxu1 %vm919_vm0, %v9037_v52  ;;  %v9041_v49 = vmul.f32 %v8999_v38, %v24789_v35  ;;  %v8998_v52 = vsel %vm5524_vm3, %v8978_v32, %v8979_v22  ;;  %v8984_v32 = vrot.slane %v22385_v19, 1  ;;  %v24792_v22 = vld [vmem:[#allocation123_spill] sm:$0xff]  ;;  %v8985_v38 = vrot.slane %v22395_v46, 1 }
 0xdd9   : > { %v9042_v5 = vmul.f32 %v8998_v52, %v24790_v9 }
 0xdda   : > { %v8993_v19 = vsel %vm5524_vm3, %v8983_v16, %v8984_v32 }
 0xddb   : > { %16365 = vmatmul.mubr.msk.f32.gmra.mrb[38].mxu1 %vm919_vm0, %v9038_v11  ;;  %v24791_v11 = vld [vmem:[#allocation122_spill] sm:$0xff] }
 0xddc   : > { %16367 = vmatprep.mubr.msk.f32.mxu1 %vm919_vm0, %v9039_v44  ;;  %v9043_v12 = vmul.f32 %v8997_v23, %v24791_v11  ;;  %v8996_v44 = vsel %vm5524_vm3, %v8980_v53, %v8981_v62  ;;  %v8986_v53 = vrot.slane %v22404_v6, 1  ;;  %v24794_v62 = vld [vmem:[#allocation125_spill] sm:$0xff]  ;;  %v8987_v23 = vrot.slane %v22410_v25, 1  ;;  %v24812_v11 = vld [vmem:[#allocation16_spill] sm:$0xff] }
 0xddd   : > { %v9044_v21 = vmul.f32 %v8996_v44, %v24792_v22  ;;  %v10067_v9 = vrot.slane %v24812_v11, 7 }
 0xdde   : > { %v8991_v6 = vsel %vm5524_vm3, %v8985_v38, %v8986_v53  ;;  %v8990_v25 = vsel %vm5524_vm3, %v8986_v53, %v8987_v23 }
 0xddf   : > { %16368 = vmatmul.mubr.msk.f32.gmra.mrb[40].mxu1 %vm919_vm0, %v9040_v60  ;;  %v24793_v60 = vld [vmem:[#allocation124_spill] sm:$0xff] }
 0xde0   : > { %16370 = vmatprep.mubr.msk.f32.mxu1 %vm919_vm0, %v9041_v49  ;;  %v9045_v50 = vmul.f32 %v8995_v39, %v24793_v60  ;;  %v8994_v49 = vsel %vm5524_vm3, %v8982_v26, %v8983_v16  ;;  %v8988_v26 = vrot.slane %v22389_v61, 1  ;;  %v24796_v16 = vld [vmem:[#allocation127_spill] sm:$0xff]  ;;  %v24797_v39 = vld [vmem:[#allocation128_spill] sm:$0xff]  ;;  %v24798_v61 = vld [vmem:[#allocation130_spill] sm:$0xff] }
 0xde1   : > { %v9046_v52 = vmul.f32 %v8994_v49, %v24794_v62  ;;  %v24799_v49 = vld [vmem:[#allocation129_spill] sm:$0xff]  ;;  %v24808_v62 = vld [vmem:[#allocation134_spill] sm:$0xff] }
 0xde3   : > { %16371 = vmatmul.mubr.msk.f32.gmra.mrb[42].mxu1 %vm919_vm0, %v9042_v5  ;;  %v24795_v5 = vld [vmem:[#allocation126_spill] sm:$0xff] }
 0xde4   : > { %16373 = vmatprep.mubr.msk.f32.mxu1 %vm919_vm0, %v9043_v12  ;;  %v9047_v46 = vmul.f32 %v8993_v19, %v24795_v5  ;;  %v8992_v12 = vsel %vm5524_vm3, %v8984_v32, %v8985_v38  ;;  %v8989_v32 = vsel %vm5524_vm3, %v8987_v23, %v8988_v26  ;;  %v9050_v38 = vmul.f32 %v8990_v25, %v24799_v49  ;;  %v24800_v19 = vld [vmem:[#allocation131_spill] sm:$0xff]  ;;  %v24806_v25 = vld [vmem:[#allocation42_spill] sm:$0xff] }
 0xde5   : > { %v9048_v44 = vmul.f32 %v8992_v12, %v24796_v16  ;;  %v24802_v16 = vld [vmem:[#allocation41_spill] sm:$0xff] }
 0xde7   : > { %16374 = vmatmul.mubr.msk.f32.gmra.mrb[44].mxu1 %vm919_vm0, %v9044_v21  ;;  %v9049_v21 = vmul.f32 %v8991_v6, %v24797_v39  ;;  %v9051_v6 = vmul.f32 %v8989_v32, %v24802_v16  ;;  %v24803_v39 = vld [vmem:[#allocation3_spill] sm:$0xff] }
 0xde8   : > { %16376 = vmatprep.mubr.msk.f32.mxu1 %vm919_vm0, %v9045_v50  ;;  %v24293_v50 = vrot.slane %v24798_v61, 7  ;;  %v24804_v5 = vrot.slane %v24803_v39, 1  ;;  %v24807_v39 = vld [vmem:[#allocation44_spill] sm:$0xff] }
 0xdea   : > { %v9020_v53 = vsel %vm5524_vm3, %v8988_v26, %v24804_v5  ;;  %v10065_v5 = vrot.slane %v24808_v62, 7  ;;  %v13605_v26 = vld [vmem:[%s23934_s19 + $0x90] sm:$0xff] }
 0xdeb   : > { %16377 = vmatmul.mubr.msk.f32.gmra.mrb[46].mxu1 %vm919_vm0, %v9046_v52  ;;  %v10062_v52 = vrot.slane %v24800_v19, 7  ;;  %v9052_v49 = vmul.f32 %v9020_v53, %v24806_v25  ;;  %v24809_v53 = vld [vmem:[#allocation4_spill] sm:$0xff]  ;;  %v24811_v25 = vld [vmem:[#allocation51_spill] sm:$0xff] }
 0xdec   : > { %16379 = vmatprep.mubr.msk.f32.mxu1 %vm919_vm0, %v9047_v46  ;;  %v24801_v46 = vld [vmem:[#allocation133_spill] sm:$0xff] }
 0xded   : > { %v10063_v12 = vrot.slane %v24801_v46, 7  ;;  %v10125_v23 = vsel %vm5267_vm4, %v24293_v50, %v10062_v52  ;;  %v10066_v50 = vrot.slane %v24809_v53, 7 }
 0xdee   : > { %v10126_v16 = vmul.f32 %v10125_v23, %v24807_v39 }
 0xdef   : > { %16380 = vmatmul.mubr.msk.f32.gmra.mrb[48].mxu1 %vm919_vm0, %v9048_v44  ;;  %v24805_v44 = vld [vmem:[#allocation12_spill] sm:$0xff]  ;;  %v10124_v32 = vsel %vm5267_vm4, %v10062_v52, %v10063_v12 }
 0xdf0   : > { %16382 = vmatprep.mubr.msk.f32.mxu1 %vm919_vm0, %v9049_v21  ;;  %v10064_v21 = vrot.slane %v24805_v44, 7  ;;  %v24810_v52 = vld [vmem:[#allocation48_spill] sm:$0xff] }
 0xdf1   : > { %v10127_v23 = vmul.f32 %v10124_v32, %v24810_v52  ;;  %v24813_v32 = vld [vmem:[#allocation18_spill] sm:$0xff] }
 0xdf2   : > { %v10122_v22 = vsel %vm5267_vm4, %v10064_v21, %v10065_v5 }
 0xdf3   : > { %16383 = vmatmul.mubr.msk.f32.gmra.mrb[50].mxu1 %vm919_vm0, %v9050_v38  ;;  %v13606_v38 = vld [vmem:[%s23934_s19 + $0x98] sm:$0xff] }
 0xdf4   : > { %16385 = vmatprep.mubr.msk.f32.mxu1 %vm919_vm0, %v9051_v6  ;;  %v10123_v6 = vsel %vm5267_vm4, %v10063_v12, %v10064_v21  ;;  %v17400_v39 = vpack.c.bf16 %v13606_v38, %v13605_v26  ;;  %v13640_v12 = vld [vmem:[%s23934_s19 + $0xa8] sm:$0xff]  ;;  %v10068_v26 = vrot.slane %v24813_v32, 7  ;;  %v10129_v21 = vmul.f32 %v10122_v22, %v24750_v17 }
 0xdf5   : > { %v10128_v60 = vmul.f32 %v10123_v6, %v24811_v25  ;;  %v10120_v25 = vsel %vm5267_vm4, %v10066_v50, %v10067_v9  ;;  %v24822_v17 = vld [vmem:[#allocation72_spill] sm:$0xff] }
 0xdf7   : > { %16386 = vmatmul.mubr.msk.f32.gmra.mrb[52].mxu1 %vm919_vm0, %v9052_v49  ;;  %v13639_v49 = vld [vmem:[%s23934_s19 + $0xa0] sm:$0xff] }
 0xdf8   : > { %16396 = vmatprep.mubr.msk.f32.mxu1 %vm919_vm0, %v10126_v16  ;;  %v10121_v16 = vsel %vm5267_vm4, %v10065_v5, %v10066_v50  ;;  %v22810_v38 = vpack.c.bf16 %v13640_v12, %v13639_v49  ;;  %v10119_v5 = vsel %vm5267_vm4, %v10067_v9, %v10068_v26  ;;  %v24816_v49 = vld [vmem:[#allocation20_spill] sm:$0xff] }
 0xdf9   : > { %v10130_v6 = vmul.f32 %v10121_v16, %v24751_v48  ;;  %v10132_v22 = vmul.f32 %v10119_v5, %v24753_v10  ;;  %v10071_v12 = vrot.slane %v24816_v49, 7  ;;  %v24817_v16 = vld [vmem:[#allocation7_spill] sm:$0xff]  ;;  %v24820_v10 = vld [vmem:[#allocation22_spill] sm:$0xff]  ;;  %v24821_v48 = vld [vmem:[#allocation8_spill] sm:$0xff] }
 0xdfb   : > { %16397 = vmatmul.mubr.msk.f32.vlgmr.msra.gmra.mrb[22].mxu1 %vm919_vm0, %v10127_v23  ;;  %v24814_v23 = vld [vmem:[#allocation136_spill] sm:$0xff] }
 0xdfc   : > { %16399 = vmatprep.mubr.msk.f32.mxu1 %vm919_vm0, %v10128_v60  ;;  %17399 = vmatpush3.bf16.msra.mxu1 %v22630_v31  ;;  %v10069_v52 = vrot.slane %v24814_v23, 7  ;;  %v24815_v60 = vld [vmem:[#allocation6_spill] sm:$0xff]  ;;  %v10131_v31 = vmul.f32 %v10120_v25, %v24752_v36 }
 0xdfd   : > { %17401 = vmatprep.subr.bf16.mxu1 %v17400_v39  ;;  %v10070_v35 = vrot.slane %v24815_v60, 7 }
 0xdfe   : > { %v10118_v50 = vsel %vm5267_vm4, %v10068_v26, %v10069_v52  ;;  %v10073_v26 = vrot.slane %v24820_v10, 7 }
 0xdff   : > { %16400 = vmatmul.mubr.msk.f32.gmra.mrb[24].mxu1 %vm919_vm0, %v10129_v21  ;;  %v10117_v9 = vsel %vm5267_vm4, %v10069_v52, %v10070_v35  ;;  %v10072_v21 = vrot.slane %v24817_v16, 7  ;;  %v10116_v5 = vsel %vm5267_vm4, %v10070_v35, %v10071_v12  ;;  %v10074_v52 = vrot.slane %v24821_v48, 7 }
 0xe00   : > { %16402 = vmatprep.mubr.msk.f32.mxu1 %vm919_vm0, %v10130_v6  ;;  %17403 = vmatpush3.bf16.msra.mxu1 %v17400_v39  ;;  %v24818_v39 = vld [vmem:[#allocation67_spill] sm:$0xff]  ;;  %v24819_v6 = vld [vmem:[#allocation70_spill] sm:$0xff] }
 0xe01   : > { %17405 = vmatprep.subr.bf16.mxu1 %v22810_v38  ;;  %v10133_v25 = vmul.f32 %v10118_v50, %v24818_v39  ;;  %v10134_v36 = vmul.f32 %v10117_v9, %v24819_v6  ;;  %v10114_v9 = vsel %vm5267_vm4, %v10072_v21, %v10073_v26  ;;  %v24823_v6 = vld [vmem:[#allocation24_spill] sm:$0xff]  ;;  %v24824_v39 = vld [vmem:[#allocation9_spill] sm:$0xff] }
 0xe02   : > { %v10075_v35 = vrot.slane %v24823_v6, 7 }
 0xe03   : > { %16403 = vmatmul.mubr.msk.f32.gmra.mrb[26].mxu1 %vm919_vm0, %v10131_v31  ;;  %v10115_v31 = vsel %vm5267_vm4, %v10071_v12, %v10072_v21  ;;  %v10076_v12 = vrot.slane %v24824_v39, 7 }
 0xe04   : > { %16405 = vmatprep.mubr.msk.f32.mxu1 %vm919_vm0, %v10132_v22  ;;  %v10135_v22 = vmul.f32 %v10116_v5, %v24822_v17  ;;  %v10136_v50 = vmul.f32 %v10115_v31, %v24755_v45  ;;  %v10112_v31 = vsel %vm5267_vm4, %v10074_v52, %v10075_v35  ;;  %v24825_v45 = vld [vmem:[#allocation25_spill] sm:$0xff]  ;;  %v24826_v17 = vld [vmem:[#allocation10_spill] sm:$0xff] }
 0xe05   : > { %v10077_v21 = vrot.slane %v24825_v45, 7 }
 0xe07   : > { %16406 = vmatmul.mubr.msk.f32.gmra.mrb[28].mxu1 %vm919_vm0, %v10133_v25  ;;  %v10113_v25 = vsel %vm5267_vm4, %v10073_v26, %v10074_v52  ;;  %v10078_v26 = vrot.slane %v24826_v17, 7 }
 0xe08   : > { %16408 = vmatprep.mubr.msk.f32.mxu1 %vm919_vm0, %v10134_v36  ;;  %v10137_v36 = vmul.f32 %v10114_v9, %v24756_v51  ;;  %v10138_v5 = vmul.f32 %v10113_v25, %v24757_v18  ;;  %v10110_v25 = vsel %vm5267_vm4, %v10076_v12, %v10077_v21  ;;  %v24827_v18 = vld [vmem:[#allocation26_spill] sm:$0xff]  ;;  %v24828_v51 = vld [vmem:[#allocation11_spill] sm:$0xff] }
 0xe09   : > { %v10079_v52 = vrot.slane %v24827_v18, 7 }
 0xe0b   : > { %16409 = vmatmul.mubr.msk.f32.gmra.mrb[30].mxu1 %vm919_vm0, %v10135_v22  ;;  %v10111_v22 = vsel %vm5267_vm4, %v10075_v35, %v10076_v12  ;;  %v10080_v35 = vrot.slane %v24828_v51, 7 }
 0xe0c   : > { %16411 = vmatprep.mubr.msk.f32.mxu1 %vm919_vm0, %v10136_v50  ;;  %v10139_v50 = vmul.f32 %v10112_v31, %v24621_v28  ;;  %v10140_v9 = vmul.f32 %v10111_v22, %v24622_v29  ;;  %v10108_v22 = vsel %vm5267_vm4, %v10078_v26, %v10079_v52  ;;  %v24830_v29 = vld [vmem:[#allocation27_spill] sm:$0xff]  ;;  %v24831_v28 = vld [vmem:[#allocation13_spill] sm:$0xff] }
 0xe0d   : > { %v10081_v12 = vrot.slane %v24830_v29, 7 }
 0xe0f   : > { %16412 = vmatmul.mubr.msk.f32.gmra.mrb[32].mxu1 %vm919_vm0, %v10137_v36  ;;  %v10109_v36 = vsel %vm5267_vm4, %v10077_v21, %v10078_v26  ;;  %v10082_v21 = vrot.slane %v24831_v28, 7 }
 0xe10   : > { %16414 = vmatprep.mubr.msk.f32.mxu1 %vm919_vm0, %v10138_v5  ;;  %v10141_v5 = vmul.f32 %v10110_v25, %v24829_v24  ;;  %v10142_v31 = vmul.f32 %v10109_v36, %v24626_v30  ;;  %v10106_v36 = vsel %vm5267_vm4, %v10080_v35, %v10081_v12  ;;  %v24833_v30 = vld [vmem:[#allocation28_spill] sm:$0xff]  ;;  %v24834_v24 = vld [vmem:[#allocation15_spill] sm:$0xff] }
 0xe11   : > { %v10083_v26 = vrot.slane %v24833_v30, 7 }
 0xe13   : > { %16415 = vmatmul.mubr.msk.f32.gmra.mrb[34].mxu1 %vm919_vm0, %v10139_v50  ;;  %v10107_v50 = vsel %vm5267_vm4, %v10079_v52, %v10080_v35  ;;  %v10084_v52 = vrot.slane %v24834_v24, 7 }
 0xe14   : > { %16417 = vmatprep.mubr.msk.f32.mxu1 %vm919_vm0, %v10140_v9  ;;  %v10143_v9 = vmul.f32 %v10108_v22, %v24832_v63  ;;  %v10144_v25 = vmul.f32 %v10107_v50, %v24758_v42  ;;  %v10104_v50 = vsel %vm5267_vm4, %v10082_v21, %v10083_v26  ;;  %v24837_v42 = vld [vmem:[#allocation29_spill] sm:$0xff] }
 0xe15   : > { %v10085_v35 = vrot.slane %v24837_v42, 7  ;;  %v24838_v63 = vld [vmem:[#allocation17_spill] sm:$0xff] }
 0xe17   : > { %16418 = vmatmul.mubr.msk.f32.gmra.mrb[36].mxu1 %vm919_vm0, %v10141_v5  ;;  %v10105_v5 = vsel %vm5267_vm4, %v10081_v12, %v10082_v21  ;;  %v10086_v12 = vrot.slane %v24838_v63, 7 }
 0xe18   : > { %16420 = vmatprep.mubr.msk.f32.mxu1 %vm919_vm0, %v10142_v31  ;;  %v10145_v31 = vmul.f32 %v10106_v36, %v24835_v55  ;;  %v10146_v22 = vmul.f32 %v10105_v5, %v24836_v0  ;;  %v10102_v5 = vsel %vm5267_vm4, %v10084_v52, %v10085_v35  ;;  %v24840_v0 = vld [vmem:[#allocation30_spill] sm:$0xff]  ;;  %v24841_v55 = vld [vmem:[#allocation19_spill] sm:$0xff] }
 0xe19   : > { %v10087_v21 = vrot.slane %v24840_v0, 7 }
 0xe1b   : > { %16421 = vmatmul.mubr.msk.f32.gmra.mrb[38].mxu1 %vm919_vm0, %v10143_v9  ;;  %v10103_v9 = vsel %vm5267_vm4, %v10083_v26, %v10084_v52  ;;  %v10088_v26 = vrot.slane %v24841_v55, 7 }
 0xe1c   : > { %16423 = vmatprep.mubr.msk.f32.mxu1 %vm919_vm0, %v10144_v25  ;;  %v10147_v25 = vmul.f32 %v10104_v50, %v24839_v3  ;;  %v10148_v36 = vmul.f32 %v10103_v9, %v24760_v2  ;;  %v10100_v9 = vsel %vm5267_vm4, %v10086_v12, %v10087_v21  ;;  %v24842_v2 = vld [vmem:[#allocation31_spill] sm:$0xff]  ;;  %v24843_v3 = vld [vmem:[#allocation21_spill] sm:$0xff] }
 0xe1d   : > { %v10089_v52 = vrot.slane %v24842_v2, 7 }
 0xe1f   : > { %16424 = vmatmul.mubr.msk.f32.gmra.mrb[40].mxu1 %vm919_vm0, %v10145_v31  ;;  %v10101_v31 = vsel %vm5267_vm4, %v10085_v35, %v10086_v12  ;;  %v10090_v35 = vrot.slane %v24843_v3, 7 }
 0xe20   : > { %16426 = vmatprep.mubr.msk.f32.mxu1 %vm919_vm0, %v10146_v22  ;;  %v10149_v22 = vmul.f32 %v10102_v5, %v24761_v54  ;;  %v10150_v50 = vmul.f32 %v10101_v31, %v24762_v8  ;;  %v10098_v31 = vsel %vm5267_vm4, %v10088_v26, %v10089_v52  ;;  %v24844_v8 = vld [vmem:[#allocation137_spill] sm:$0xff]  ;;  %v24845_v54 = vld [vmem:[#allocation132_spill] sm:$0xff] }
 0xe21   : > { %v10091_v12 = vrot.slane %v24844_v8, 7 }
 0xe23   : > { %16427 = vmatmul.mubr.msk.f32.gmra.mrb[42].mxu1 %vm919_vm0, %v10147_v25  ;;  %v10099_v25 = vsel %vm5267_vm4, %v10087_v21, %v10088_v26  ;;  %v10092_v21 = vrot.slane %v24845_v54, 7 }
 0xe24   : > { %16429 = vmatprep.mubr.msk.f32.mxu1 %vm919_vm0, %v10148_v36  ;;  %v10151_v36 = vmul.f32 %v10100_v9, %v24641_v27  ;;  %v10152_v5 = vmul.f32 %v10099_v25, %v24642_v14  ;;  %v10096_v25 = vsel %vm5267_vm4, %v10090_v35, %v10091_v12  ;;  %v24847_v14 = vld [vmem:[#allocation105_spill] sm:$0xff] }
 0xe25   : > { %v10095_v26 = vsel %vm5267_vm4, %v10091_v12, %v10092_v21  ;;  %v13641_v12 = vld [vmem:[%s23934_s19 + $0xb0] sm:$0xff] }
 0xe26   : > { %v10156_v27 = vmul.f32 %v10095_v26, %v24847_v14  ;;  %v10159_v26 = vrot.slane %v24801_v46, 1 }
 0xe27   : > { %16430 = vmatmul.mubr.msk.f32.gmra.mrb[44].mxu1 %vm919_vm0, %v10149_v22  ;;  %v10097_v22 = vsel %vm5267_vm4, %v10089_v52, %v10090_v35  ;;  %v24849_v35 = vld [vmem:[#allocation106_spill] sm:$0xff] }
 0xe28   : > { %16432 = vmatprep.mubr.msk.f32.mxu1 %vm919_vm0, %v10150_v50  ;;  %v10153_v50 = vmul.f32 %v10098_v31, %v24558_v59  ;;  %v10154_v9 = vmul.f32 %v10097_v22, %v24559_v1  ;;  %v13711_v1 = vld [vmem:[%s23934_s19 + $0xe0] sm:$0xff] }
 0xe2b   : > { %16433 = vmatmul.mubr.msk.f32.gmra.mrb[46].mxu1 %vm919_vm0, %v10151_v36  ;;  %v24846_v36 = vld [vmem:[#allocation104_spill] sm:$0xff] }
 0xe2c   : > { %16435 = vmatprep.mubr.msk.f32.mxu1 %vm919_vm0, %v10152_v5  ;;  %v10155_v52 = vmul.f32 %v10096_v25, %v24846_v36  ;;  %v24848_v5 = vrot.slane %v24798_v61, 7  ;;  %v10164_v36 = vrot.slane %v24813_v32, 1 }
 0xe2e   : > { %v10094_v31 = vsel %vm5267_vm4, %v10092_v21, %v24848_v5 }
 0xe2f   : > { %16436 = vmatmul.mubr.msk.f32.gmra.mrb[48].mxu1 %vm919_vm0, %v10153_v50  ;;  %v10157_v22 = vmul.f32 %v10094_v31, %v24849_v35  ;;  %v13642_v50 = vld [vmem:[%s23934_s19 + $0xb8] sm:$0xff]  ;;  %v10161_v31 = vrot.slane %v24808_v62, 1 }
 0xe30   : > { %16438 = vmatprep.mubr.msk.f32.mxu1 %vm919_vm0, %v10154_v9  ;;  %v17408_v21 = vpack.c.bf16 %v13642_v50, %v13641_v12  ;;  %v13676_v9 = vld [vmem:[%s23934_s19 + $0xc8] sm:$0xff] }
 0xe31   : > { %v24850_v12 = vld [vmem:[#allocation107_spill] sm:$0xff] }
 0xe33   : > { %16439 = vmatmul.mubr.msk.f32.gmra.mrb[50].mxu1 %vm919_vm0, %v10155_v52  ;;  %v10160_v52 = vrot.slane %v24805_v44, 1 }
 0xe34   : > { %16441 = vmatprep.mubr.msk.f32.mxu1 %vm919_vm0, %v10156_v27  ;;  %v13675_v27 = vld [vmem:[%s23934_s19 + $0xc0] sm:$0xff] }
 0xe35   : > { %v17412_v25 = vpack.c.bf16 %v13676_v9, %v13675_v27  ;;  %v13677_v27 = vld [vmem:[%s23934_s19 + $0xd0] sm:$0xff]  ;;  %v13678_v9 = vld [vmem:[%s23934_s19 + $0xd8] sm:$0xff] }
 0xe37   : > { %16442 = vmatmul.mubr.msk.f32.gmra.mrb[52].mxu1 %vm919_vm0, %v10157_v22  ;;  %v10219_v22 = vsel %vm5524_vm3, %v10159_v26, %v10160_v52 }
 0xe38   : > { %16452 = vmatprep.mubr.msk.f32.mxu1 %vm919_vm0, %v24800_v19 }
 0xe3b   : > { %16453 = vmatmul.mubr.msk.f32.vlgmr.msra.gmra.mrb[22].mxu1 %vm919_vm0, %v24801_v46 }
 0xe3c   : > { %16455 = vmatprep.mubr.msk.f32.mxu1 %vm919_vm0, %v24805_v44  ;;  %17407 = vmatpush3.bf16.msra.mxu1 %v22810_v38  ;;  %v24310_v38 = vrot.slane %v24800_v19, 1 }
 0xe3d   : > { %17409 = vmatprep.subr.bf16.mxu1 %v17408_v21 }
 0xe3e   : > { %v10220_v5 = vsel %vm5524_vm3, %v24310_v38, %v10159_v26  ;;  %v10218_v38 = vsel %vm5524_vm3, %v10160_v52, %v10161_v31  ;;  %v10163_v26 = vrot.slane %v24812_v11, 1  ;;  %v13712_v52 = vld [vmem:[%s23934_s19 + $0xe8] sm:$0xff] }
 0xe3f   : > { %16456 = vmatmul.mubr.msk.f32.gmra.mrb[24].mxu1 %vm919_vm0, %v24808_v62  ;;  %v10222_v50 = vmul.f32 %v10220_v5, %v24850_v12  ;;  %v10223_v5 = vmul.f32 %v10219_v22, %v24768_v41  ;;  %v17416_v12 = vpack.c.bf16 %v13678_v9, %v13677_v27  ;;  %v10224_v35 = vmul.f32 %v10218_v38, %v24771_v7 }
 0xe40   : > { %16458 = vmatprep.mubr.msk.f32.mxu1 %vm919_vm0, %v24809_v53  ;;  %17411 = vmatpush3.bf16.msra.mxu1 %v17408_v21  ;;  %v10162_v21 = vrot.slane %v24809_v53, 1  ;;  %v10165_v38 = vrot.slane %v24814_v23, 1  ;;  %v10215_v9 = vsel %vm5524_vm3, %v10163_v26, %v10164_v36 }
 0xe41   : > { %17413 = vmatprep.subr.bf16.mxu1 %v17412_v25 }
 0xe42   : > { %v10217_v14 = vsel %vm5524_vm3, %v10161_v31, %v10162_v21  ;;  %v10216_v22 = vsel %vm5524_vm3, %v10162_v21, %v10163_v26  ;;  %v10214_v21 = vsel %vm5524_vm3, %v10164_v36, %v10165_v38  ;;  %v10168_v26 = vrot.slane %v24817_v16, 1 }
 0xe43   : > { %16459 = vmatmul.mubr.msk.f32.gmra.mrb[26].mxu1 %vm919_vm0, %v24812_v11  ;;  %v10225_v31 = vmul.f32 %v10217_v14, %v24772_v4  ;;  %v10226_v27 = vmul.f32 %v10216_v22, %v24773_v13  ;;  %v10228_v14 = vmul.f32 %v10214_v21, %v24775_v20 }
 0xe44   : > { %16461 = vmatprep.mubr.msk.f32.mxu1 %vm919_vm0, %v24813_v32 }
 0xe47   : > { %16462 = vmatmul.mubr.msk.f32.gmra.mrb[28].mxu1 %vm919_vm0, %v24814_v23 }
 0xe48   : > { %16464 = vmatprep.mubr.msk.f32.mxu1 %vm919_vm0, %v24815_v60 }
 0xe4b   : > { %16465 = vmatmul.mubr.msk.f32.gmra.mrb[30].mxu1 %vm919_vm0, %v24816_v49 }
 0xe4c   : > { %16467 = vmatprep.mubr.msk.f32.mxu1 %vm919_vm0, %v24817_v16 }
 0xe4f   : > { %16468 = vmatmul.mubr.msk.f32.gmra.mrb[32].mxu1 %vm919_vm0, %v24820_v10 }
 0xe50   : > { %16470 = vmatprep.mubr.msk.f32.mxu1 %vm919_vm0, %v24821_v48 }
 0xe53   : > { %16471 = vmatmul.mubr.msk.f32.gmra.mrb[34].mxu1 %vm919_vm0, %v24823_v6 }
 0xe54   : > { %16473 = vmatprep.mubr.msk.f32.mxu1 %vm919_vm0, %v24824_v39 }
 0xe57   : > { %16474 = vmatmul.mubr.msk.f32.gmra.mrb[36].mxu1 %vm919_vm0, %v24825_v45 }
 0xe58   : > { %16476 = vmatprep.mubr.msk.f32.mxu1 %vm919_vm0, %v24826_v17 }
 0xe5b   : > { %16477 = vmatmul.mubr.msk.f32.gmra.mrb[38].mxu1 %vm919_vm0, %v24827_v18 }
 0xe5c   : > { %16479 = vmatprep.mubr.msk.f32.mxu1 %vm919_vm0, %v24828_v51 }
 0xe5f   : > { %16480 = vmatmul.mubr.msk.f32.gmra.mrb[40].mxu1 %vm919_vm0, %v24830_v29 }
 0xe60   : > { %16482 = vmatprep.mubr.msk.f32.mxu1 %vm919_vm0, %v24831_v28 }
 0xe63   : > { %16483 = vmatmul.mubr.msk.f32.gmra.mrb[42].mxu1 %vm919_vm0, %v24833_v30 }
 0xe64   : > { %16485 = vmatprep.mubr.msk.f32.mxu1 %vm919_vm0, %v24834_v24 }
 0xe67   : > { %16486 = vmatmul.mubr.msk.f32.gmra.mrb[44].mxu1 %vm919_vm0, %v24837_v42 }
 0xe68   : > { %16488 = vmatprep.mubr.msk.f32.mxu1 %vm919_vm0, %v24838_v63 }
 0xe6b   : > { %16489 = vmatmul.mubr.msk.f32.gmra.mrb[46].mxu1 %vm919_vm0, %v24840_v0 }
 0xe6c   : > { %16491 = vmatprep.mubr.msk.f32.mxu1 %vm919_vm0, %v24841_v55 }
 0xe6f   : > { %16492 = vmatmul.mubr.msk.f32.gmra.mrb[48].mxu1 %vm919_vm0, %v24842_v2 }
 0xe70   : > { %16494 = vmatprep.mubr.msk.f32.mxu1 %vm919_vm0, %v24843_v3 }
 0xe73   : > { %16495 = vmatmul.mubr.msk.f32.gmra.mrb[50].mxu1 %vm919_vm0, %v24844_v8 }
 0xe74   : > { %16497 = vmatprep.mubr.msk.f32.mxu1 %vm919_vm0, %v24845_v54 }
 0xe77   : > { %16498 = vmatmul.mubr.msk.f32.gmra.mrb[52].mxu1 %vm919_vm0, %v24798_v61 }
 0xe78   : > { %16508 = vmatprep.mubr.msk.f32.mxu1 %vm919_vm0, %v10222_v50  ;;  %v23066_v50 = vpack.c.bf16 %v13712_v52, %v13711_v1  ;;  %v10227_v1 = vmul.f32 %v10215_v9, %v24774_v37  ;;  %v10169_v52 = vrot.slane %v24820_v10, 1  ;;  %v10171_v9 = vrot.slane %v24823_v6, 1 }
 0xe7b   : > { %16509 = vmatmul.mubr.msk.f32.vlgmr.msra.gmra.mrb[22].mxu1 %vm919_vm0, %v10223_v5  ;;  %v10166_v5 = vrot.slane %v24815_v60, 1 }
 0xe7c   : > { %16511 = vmatprep.mubr.msk.f32.mxu1 %vm919_vm0, %v10224_v35  ;;  %17415 = vmatpush3.bf16.msra.mxu1 %v17412_v25  ;;  %v10167_v35 = vrot.slane %v24816_v49, 1 }
 0xe7d   : > { %17417 = vmatprep.subr.bf16.mxu1 %v17416_v12  ;;  %v10213_v25 = vsel %vm5524_vm3, %v10165_v38, %v10166_v5  ;;  %v10170_v38 = vrot.slane %v24821_v48, 1 }
 0xe7e   : > { %v10212_v36 = vsel %vm5524_vm3, %v10166_v5, %v10167_v35 }
 0xe7f   : > { %16512 = vmatmul.mubr.msk.f32.gmra.mrb[24].mxu1 %vm919_vm0, %v10225_v31  ;;  %v10230_v22 = vmul.f32 %v10212_v36, %v24777_v33  ;;  %v10211_v31 = vsel %vm5524_vm3, %v10167_v35, %v10168_v26  ;;  %v10172_v35 = vrot.slane %v24824_v39, 1 }
 0xe80   : > { %16514 = vmatprep.mubr.msk.f32.mxu1 %vm919_vm0, %v10226_v27  ;;  %17419 = vmatpush3.bf16.msra.mxu1 %v17416_v12  ;;  %v10229_v12 = vmul.f32 %v10213_v25, %v24776_v57  ;;  %v10210_v27 = vsel %vm5524_vm3, %v10168_v26, %v10169_v52  ;;  %v10231_v5 = vmul.f32 %v10211_v31, %v24778_v40  ;;  %v10173_v25 = vrot.slane %v24825_v45, 1 }
 0xe81   : > { %17421 = vmatprep.subr.bf16.mxu1 %v23066_v50  ;;  %v10232_v21 = vmul.f32 %v10210_v27, %v24779_v47  ;;  %v10175_v31 = vrot.slane %v24827_v18, 1 }
 0xe83   : > { %16515 = vmatmul.mubr.msk.f32.gmra.mrb[26].mxu1 %vm919_vm0, %v10227_v1  ;;  %v10209_v1 = vsel %vm5524_vm3, %v10169_v52, %v10170_v38  ;;  %v10174_v52 = vrot.slane %v24826_v17, 1 }
 0xe84   : > { %16517 = vmatprep.mubr.msk.f32.mxu1 %vm919_vm0, %v10228_v14  ;;  %v10208_v14 = vsel %vm5524_vm3, %v10170_v38, %v10171_v9  ;;  %v10233_v26 = vmul.f32 %v10209_v1, %v24780_v34  ;;  %v10177_v1 = vrot.slane %v24830_v29, 1 }
 0xe85   : > { %v10234_v36 = vmul.f32 %v10208_v14, %v24781_v56  ;;  %v24880_v56 = vld [vmem:[#allocation51_spill] sm:$0xff] }
 0xe87   : > { %16518 = vmatmul.mubr.msk.f32.gmra.mrb[28].mxu1 %vm919_vm0, %v10229_v12  ;;  %v10207_v12 = vsel %vm5524_vm3, %v10171_v9, %v10172_v35  ;;  %v10176_v9 = vrot.slane %v24828_v51, 1 }
 0xe88   : > { %16520 = vmatprep.mubr.msk.f32.mxu1 %vm919_vm0, %v10230_v22  ;;  %v10206_v22 = vsel %vm5524_vm3, %v10172_v35, %v10173_v25  ;;  %v10235_v38 = vmul.f32 %v10207_v12, %v24782_v58  ;;  %v24851_v35 = vld [vmem:[#allocation115_spill] sm:$0xff] }
 0xe89   : > { %v10236_v27 = vmul.f32 %v10206_v22, %v24783_v15  ;;  %v10203_v12 = vsel %vm5524_vm3, %v10175_v31, %v10176_v9  ;;  %v10202_v22 = vsel %vm5524_vm3, %v10176_v9, %v10177_v1  ;;  %v24854_v15 = vld [vmem:[#allocation118_spill] sm:$0xff]  ;;  %v10181_v9 = vrot.slane %v24837_v42, 1 }
 0xe8b   : > { %16521 = vmatmul.mubr.msk.f32.gmra.mrb[30].mxu1 %vm919_vm0, %v10231_v5  ;;  %v10205_v5 = vsel %vm5524_vm3, %v10173_v25, %v10174_v52  ;;  %v10178_v25 = vrot.slane %v24831_v28, 1 }
 0xe8c   : > { %16523 = vmatprep.mubr.msk.f32.mxu1 %vm919_vm0, %v10232_v21  ;;  %v10204_v21 = vsel %vm5524_vm3, %v10174_v52, %v10175_v31  ;;  %v10237_v14 = vmul.f32 %v10205_v5, %v24851_v35  ;;  %v10179_v52 = vrot.slane %v24833_v30, 1  ;;  %v10240_v5 = vmul.f32 %v10202_v22, %v24854_v15  ;;  %v24856_v35 = vld [vmem:[#allocation120_spill] sm:$0xff]  ;;  %v24857_v15 = vld [vmem:[#allocation121_spill] sm:$0xff] }
 0xe8d   : > { %v10180_v31 = vrot.slane %v24834_v24, 1 }
 0xe8f   : > { %16524 = vmatmul.mubr.msk.f32.gmra.mrb[32].mxu1 %vm919_vm0, %v10233_v26  ;;  %v24852_v26 = vld [vmem:[#allocation116_spill] sm:$0xff]  ;;  %v10199_v22 = vsel %vm5524_vm3, %v10179_v52, %v10180_v31 }
 0xe90   : > { %16526 = vmatprep.mubr.msk.f32.mxu1 %vm919_vm0, %v10234_v36  ;;  %v10238_v36 = vmul.f32 %v10204_v21, %v24852_v26  ;;  %v10201_v21 = vsel %vm5524_vm3, %v10177_v1, %v10178_v25  ;;  %v24855_v26 = vld [vmem:[#allocation119_spill] sm:$0xff]  ;;  %v10182_v1 = vrot.slane %v24838_v63, 1 }
 0xe93   : > { %16527 = vmatmul.mubr.msk.f32.gmra.mrb[34].mxu1 %vm919_vm0, %v10235_v38  ;;  %v24853_v38 = vld [vmem:[#allocation117_spill] sm:$0xff] }
 0xe94   : > { %16529 = vmatprep.mubr.msk.f32.mxu1 %vm919_vm0, %v10236_v27  ;;  %v10239_v27 = vmul.f32 %v10203_v12, %v24853_v38  ;;  %v24858_v38 = vld [vmem:[#allocation122_spill] sm:$0xff] }
 0xe97   : > { %16530 = vmatmul.mubr.msk.f32.gmra.mrb[36].mxu1 %vm919_vm0, %v10237_v14  ;;  %v10200_v14 = vsel %vm5524_vm3, %v10178_v25, %v10179_v52  ;;  %v10183_v25 = vrot.slane %v24840_v0, 1  ;;  %v10184_v52 = vrot.slane %v24841_v55, 1 }
 0xe98   : > { %16532 = vmatprep.mubr.msk.f32.mxu1 %vm919_vm0, %v10238_v36  ;;  %v10241_v36 = vmul.f32 %v10201_v21, %v24855_v26  ;;  %v10242_v12 = vmul.f32 %v10200_v14, %v24856_v35  ;;  %v10197_v14 = vsel %vm5524_vm3, %v10181_v9, %v10182_v1  ;;  %v24859_v35 = vld [vmem:[#allocation123_spill] sm:$0xff]  ;;  %v24860_v26 = vld [vmem:[#allocation124_spill] sm:$0xff] }
 0xe9b   : > { %16533 = vmatmul.mubr.msk.f32.gmra.mrb[38].mxu1 %vm919_vm0, %v10239_v27  ;;  %v10198_v27 = vsel %vm5524_vm3, %v10180_v31, %v10181_v9  ;;  %v10185_v31 = vrot.slane %v24842_v2, 1  ;;  %v10186_v9 = vrot.slane %v24843_v3, 1 }
 0xe9c   : > { %16535 = vmatprep.mubr.msk.f32.mxu1 %vm919_vm0, %v10240_v5  ;;  %v10243_v5 = vmul.f32 %v10199_v22, %v24857_v15  ;;  %v10244_v21 = vmul.f32 %v10198_v27, %v24858_v38  ;;  %v10195_v27 = vsel %vm5524_vm3, %v10183_v25, %v10184_v52  ;;  %v24861_v38 = vld [vmem:[#allocation125_spill] sm:$0xff]  ;;  %v24862_v15 = vld [vmem:[#allocation126_spill] sm:$0xff] }
 0xe9f   : > { %16536 = vmatmul.mubr.msk.f32.gmra.mrb[40].mxu1 %vm919_vm0, %v10241_v36  ;;  %v10196_v36 = vsel %vm5524_vm3, %v10182_v1, %v10183_v25  ;;  %v10187_v1 = vrot.slane %v24844_v8, 1  ;;  %v10188_v25 = vrot.slane %v24845_v54, 1 }
 0xea0   : > { %16538 = vmatprep.mubr.msk.f32.mxu1 %vm919_vm0, %v10242_v12  ;;  %v10245_v12 = vmul.f32 %v10197_v14, %v24859_v35  ;;  %v10246_v22 = vmul.f32 %v10196_v36, %v24860_v26  ;;  %v10193_v36 = vsel %vm5524_vm3, %v10185_v31, %v10186_v9  ;;  %v24863_v26 = vld [vmem:[#allocation47_spill] sm:$0xff] }
 0xea1   : > { %v23185_v35 = vmul.f32 %v24805_v44, %v24863_v26  ;;  %v24867_v44 = vld [vmem:[#allocation128_spill] sm:$0xff] }
 0xea3   : > { %16539 = vmatmul.mubr.msk.f32.gmra.mrb[42].mxu1 %vm919_vm0, %v10243_v5  ;;  %v10194_v5 = vsel %vm5524_vm3, %v10184_v52, %v10185_v31  ;;  %v10192_v52 = vsel %vm5524_vm3, %v10186_v9, %v10187_v1  ;;  %v24865_v31 = vld [vmem:[#allocation127_spill] sm:$0xff]  ;;  %v24868_v9 = vld [vmem:[#allocation52_spill] sm:$0xff] }
 0xea4   : > { %16541 = vmatprep.mubr.msk.f32.mxu1 %vm919_vm0, %v10244_v21  ;;  %v10247_v21 = vmul.f32 %v10195_v27, %v24861_v38  ;;  %v10248_v14 = vmul.f32 %v10194_v5, %v24862_v15  ;;  %v10249_v5 = vmul.f32 %v10193_v36, %v24865_v31  ;;  %v24866_v15 = vld [vmem:[#allocation49_spill] sm:$0xff]  ;;  %v10250_v26 = vmul.f32 %v10192_v52, %v24867_v44  ;;  %v24873_v44 = vld [vmem:[#allocation58_spill] sm:$0xff] }
 0xea5   : > { %v23199_v38 = vmul.f32 %v24808_v62, %v24866_v15  ;;  %v23206_v58 = vmul.f32 %v24809_v53, %v24868_v9  ;;  %v24869_v15 = vld [vmem:[#allocation129_spill] sm:$0xff] }
 0xea6   : > { %v24871_v53 = vld [vmem:[#allocation41_spill] sm:$0xff] }
 0xea7   : > { %16542 = vmatmul.mubr.msk.f32.gmra.mrb[44].mxu1 %vm919_vm0, %v10245_v12  ;;  %v10189_v12 = vrot.slane %v24798_v61, 1  ;;  %v11361_v52 = vrot.slane %v23199_v38, 7 }
 0xea8   : > { %16544 = vmatprep.mubr.msk.f32.mxu1 %vm919_vm0, %v10246_v22  ;;  %v24864_v22 = vld [vmem:[#allocation46_spill] sm:$0xff] }
 0xea9   : > { %v23194_v27 = vmul.f32 %v24801_v46, %v24864_v22  ;;  %v10190_v46 = vsel %vm5524_vm3, %v10188_v25, %v10189_v12 }
 0xeaa   : > { %v10252_v9 = vmul.f32 %v10190_v46, %v24871_v53  ;;  %v24874_v46 = vld [vmem:[#allocation42_spill] sm:$0xff]  ;;  %v24875_v53 = vld [vmem:[#allocation59_spill] sm:$0xff] }
 0xeab   : > { %16545 = vmatmul.mubr.msk.f32.gmra.mrb[46].mxu1 %vm919_vm0, %v10247_v21  ;;  %v10191_v21 = vsel %vm5524_vm3, %v10187_v1, %v10188_v25  ;;  %v24314_v36 = vrot.slane %v23194_v27, 7  ;;  %v24870_v1 = vld [vmem:[#allocation55_spill] sm:$0xff] }
 0xeac   : > { %16547 = vmatprep.mubr.msk.f32.mxu1 %vm919_vm0, %v10248_v14  ;;  %v11360_v14 = vrot.slane %v23185_v35, 7  ;;  %v10251_v62 = vmul.f32 %v10191_v21, %v24869_v15  ;;  %v23218_v22 = vmul.f32 %v24812_v11, %v24870_v1  ;;  %v11362_v11 = vrot.slane %v23206_v58, 7  ;;  %v24879_v15 = vld [vmem:[#allocation63_spill] sm:$0xff] }
 0xead   : > { %v23263_v31 = vmul.f32 %v24816_v49, %v24879_v15  ;;  %v24882_v15 = vld [vmem:[#allocation57_spill] sm:$0xff] }
 0xeae   : > { %v11423_v21 = vsel %vm5267_vm4, %v24314_v36, %v11360_v14  ;;  %v13713_v36 = vld [vmem:[%s23934_s19 + $0xf0] sm:$0xff] }
 0xeaf   : > { %16548 = vmatmul.mubr.msk.f32.gmra.mrb[48].mxu1 %vm919_vm0, %v10249_v5  ;;  %v24872_v5 = vrot.slane %v24800_v19, 1 }
 0xeb0   : > { %16550 = vmatprep.mubr.msk.f32.mxu1 %vm919_vm0, %v10250_v26  ;;  %v23227_v26 = vmul.f32 %v24813_v32, %v24873_v44  ;;  %v11422_v32 = vsel %vm5267_vm4, %v11360_v14, %v11361_v52  ;;  %v24876_v44 = vld [vmem:[#allocation44_spill] sm:$0xff] }
 0xeb1   : > { %v10221_v25 = vsel %vm5524_vm3, %v10189_v12, %v24872_v5  ;;  %v23239_v12 = vmul.f32 %v24814_v23, %v24875_v53  ;;  %v11363_v5 = vrot.slane %v23218_v22, 7  ;;  %v11421_v23 = vsel %vm5267_vm4, %v11361_v52, %v11362_v11  ;;  %v24878_v53 = vld [vmem:[#allocation48_spill] sm:$0xff]  ;;  %v13747_v52 = vld [vmem:[%s23934_s19 + $0x100] sm:$0xff] }
 0xeb2   : > { %v10253_v1 = vmul.f32 %v10221_v25, %v24874_v46  ;;  %v24877_v25 = vld [vmem:[#allocation61_spill] sm:$0xff]  ;;  %v11364_v14 = vrot.slane %v23227_v26, 7  ;;  %v11426_v34 = vmul.f32 %v11421_v23, %v24880_v56  ;;  %v24884_v23 = vld [vmem:[#allocation60_spill] sm:$0xff] }
 0xeb3   : > { %16551 = vmatmul.mubr.msk.f32.gmra.mrb[50].mxu1 %vm919_vm0, %v10251_v62  ;;  %v11424_v62 = vmul.f32 %v11423_v21, %v24876_v44  ;;  %v23253_v46 = vmul.f32 %v24815_v60, %v24877_v25  ;;  %v11425_v21 = vmul.f32 %v11422_v32, %v24878_v53  ;;  %v11420_v60 = vsel %vm5267_vm4, %v11362_v11, %v11363_v5  ;;  %v13748_v32 = vld [vmem:[%s23934_s19 + $0x108] sm:$0xff]  ;;  %v24883_v25 = vld [vmem:[#allocation66_spill] sm:$0xff] }
 0xeb4   : > { %16553 = vmatprep.mubr.msk.f32.mxu1 %vm919_vm0, %v10252_v9  ;;  %v13714_v9 = vld [vmem:[%s23934_s19 + $0xf8] sm:$0xff]  ;;  %v11419_v56 = vsel %vm5267_vm4, %v11363_v5, %v11364_v14  ;;  %v11427_v11 = vmul.f32 %v11420_v60, %v24882_v15 }
 0xeb5   : > { %v17424_v44 = vpack.c.bf16 %v13714_v9, %v13713_v36  ;;  %v24881_v36 = vld [vmem:[#allocation65_spill] sm:$0xff]  ;;  %v11366_v49 = vrot.slane %v23253_v46, 7  ;;  %v23286_v9 = vpack.c.bf16 %v13748_v32, %v13747_v52  ;;  %v11428_v53 = vmul.f32 %v11419_v56, %v24884_v23 }
 0xeb7   : > { %16554 = vmatmul.mubr.msk.f32.gmra.mrb[52].mxu1 %vm919_vm0, %v10253_v1  ;;  %v11365_v1 = vrot.slane %v23239_v12, 7 }
 0xeb8   : > { %16564 = vmatprep.mubr.msk.f32.mxu1 %vm919_vm0, %v11424_v62  ;;  %v23277_v62 = vmul.f32 %v24817_v16, %v24881_v36  ;;  %v23290_v16 = vmul.f32 %v24820_v10, %v24883_v25  ;;  %v24885_v36 = vld [vmem:[#allocation68_spill] sm:$0xff]  ;;  %v24886_v10 = vld [vmem:[#allocation62_spill] sm:$0xff] }
 0xeb9   : > { %v11418_v5 = vsel %vm5267_vm4, %v11364_v14, %v11365_v1  ;;  %v24887_v14 = vld [vmem:[#allocation69_spill] sm:$0xff] }
 0xeba   : > { %v11368_v60 = vrot.slane %v23277_v62, 7  ;;  %v11429_v52 = vmul.f32 %v11418_v5, %v24886_v10  ;;  %v23309_v32 = vmul.f32 %v24823_v6, %v24887_v14  ;;  %v24890_v6 = vld [vmem:[#allocation67_spill] sm:$0xff]  ;;  %v24891_v5 = vld [vmem:[#allocation73_spill] sm:$0xff] }
 0xebb   : > { %16565 = vmatmul.mubr.msk.f32.vlgmr.msra.gmra.mrb[22].mxu1 %vm919_vm0, %v11425_v21  ;;  %v11367_v21 = vrot.slane %v23263_v31, 7 }
 0xebc   : > { %16567 = vmatprep.mubr.msk.f32.mxu1 %vm919_vm0, %v11426_v34  ;;  %17423 = vmatpush3.bf16.msra.mxu1 %v23066_v50  ;;  %v23298_v34 = vmul.f32 %v24821_v48, %v24885_v36  ;;  %v11417_v50 = vsel %vm5267_vm4, %v11365_v1, %v11366_v49  ;;  %v24888_v48 = vld [vmem:[#allocation64_spill] sm:$0xff]  ;;  %v11369_v1 = vrot.slane %v23290_v16, 7  ;;  %v24892_v36 = vld [vmem:[#allocation70_spill] sm:$0xff]  ;;  %v11371_v10 = vrot.slane %v23309_v32, 7 }
 0xebd   : > { %17425 = vmatprep.subr.bf16.mxu1 %v17424_v44  ;;  %v11430_v56 = vmul.f32 %v11417_v50, %v24888_v48  ;;  %v11416_v15 = vsel %vm5267_vm4, %v11366_v49, %v11367_v21  ;;  %v23327_v49 = vmul.f32 %v24825_v45, %v24891_v5  ;;  %v24894_v45 = vld [vmem:[#allocation72_spill] sm:$0xff] }
 0xebe   : > { %v11370_v23 = vrot.slane %v23298_v34, 7 }
 0xebf   : > { %16568 = vmatmul.mubr.msk.f32.gmra.mrb[24].mxu1 %vm919_vm0, %v11427_v11  ;;  %v24889_v11 = vld [vmem:[#allocation71_spill] sm:$0xff] }
 0xec0   : > { %16570 = vmatprep.mubr.msk.f32.mxu1 %vm919_vm0, %v11428_v53  ;;  %17427 = vmatpush3.bf16.msra.mxu1 %v17424_v44  ;;  %v23317_v25 = vmul.f32 %v24824_v39, %v24889_v11  ;;  %v11415_v44 = vsel %vm5267_vm4, %v11367_v21, %v11368_v60  ;;  %v11431_v53 = vmul.f32 %v11416_v15, %v24890_v6  ;;  %v24895_v15 = vld [vmem:[#allocation76_spill] sm:$0xff]  ;;  %v24896_v11 = vld [vmem:[#allocation74_spill] sm:$0xff]  ;;  %v11373_v6 = vrot.slane %v23327_v49, 7 }
 0xec1   : > { %17429 = vmatprep.subr.bf16.mxu1 %v23286_v9  ;;  %v11432_v50 = vmul.f32 %v11415_v44, %v24892_v36  ;;  %v11414_v39 = vsel %vm5267_vm4, %v11368_v60, %v11369_v1  ;;  %v11413_v14 = vsel %vm5267_vm4, %v11369_v1, %v11370_v23  ;;  %v23345_v60 = vmul.f32 %v24827_v18, %v24895_v15  ;;  %v24898_v18 = vld [vmem:[#allocation77_spill] sm:$0xff] }
 0xec2   : > { %v11372_v48 = vrot.slane %v23317_v25, 7  ;;  %v11434_v44 = vmul.f32 %v11413_v14, %v24896_v11 }
 0xec3   : > { %16571 = vmatmul.mubr.msk.f32.gmra.mrb[26].mxu1 %vm919_vm0, %v11429_v52  ;;  %v24893_v52 = vld [vmem:[#allocation75_spill] sm:$0xff] }
 0xec4   : > { %16573 = vmatprep.mubr.msk.f32.mxu1 %vm919_vm0, %v11430_v56  ;;  %v23335_v21 = vmul.f32 %v24826_v17, %v24893_v52  ;;  %v11433_v56 = vmul.f32 %v11414_v39, %v24894_v45  ;;  %v11412_v17 = vsel %vm5267_vm4, %v11370_v23, %v11371_v10  ;;  %v11411_v5 = vsel %vm5267_vm4, %v11371_v10, %v11372_v48  ;;  %v24899_v39 = vld [vmem:[#allocation79_spill] sm:$0xff]  ;;  %v24900_v52 = vld [vmem:[#allocation80_spill] sm:$0xff] }
 0xec5   : > { %v23363_v23 = vmul.f32 %v24830_v29, %v24899_v39  ;;  %v11436_v14 = vmul.f32 %v11411_v5, %v24900_v52  ;;  %v11375_v45 = vrot.slane %v23345_v60, 7  ;;  %v24902_v29 = vld [vmem:[#allocation82_spill] sm:$0xff] }
 0xec6   : > { %v11374_v36 = vrot.slane %v23335_v21, 7 }
 0xec7   : > { %16574 = vmatmul.mubr.msk.f32.gmra.mrb[28].mxu1 %vm919_vm0, %v11431_v53  ;;  %v24897_v53 = vld [vmem:[#allocation78_spill] sm:$0xff] }
 0xec8   : > { %16576 = vmatprep.mubr.msk.f32.mxu1 %vm919_vm0, %v11432_v50  ;;  %v23353_v1 = vmul.f32 %v24828_v51, %v24897_v53  ;;  %v11435_v50 = vmul.f32 %v11412_v17, %v24898_v18  ;;  %v11410_v51 = vsel %vm5267_vm4, %v11372_v48, %v11373_v6  ;;  %v11409_v15 = vsel %vm5267_vm4, %v11373_v6, %v11374_v36  ;;  %v24903_v17 = vld [vmem:[#allocation83_spill] sm:$0xff]  ;;  %v24904_v53 = vld [vmem:[#allocation84_spill] sm:$0xff] }
 0xec9   : > { %v23381_v48 = vmul.f32 %v24833_v30, %v24903_v17  ;;  %v11438_v5 = vmul.f32 %v11409_v15, %v24904_v53  ;;  %v11377_v18 = vrot.slane %v23363_v23, 7  ;;  %v24906_v30 = vld [vmem:[#allocation87_spill] sm:$0xff] }
 0xeca   : > { %v11376_v11 = vrot.slane %v23353_v1, 7 }
 0xecb   : > { %16577 = vmatmul.mubr.msk.f32.gmra.mrb[30].mxu1 %vm919_vm0, %v11433_v56  ;;  %v24901_v56 = vld [vmem:[#allocation81_spill] sm:$0xff] }
 0xecc   : > { %16579 = vmatprep.mubr.msk.f32.mxu1 %vm919_vm0, %v11434_v44  ;;  %v23371_v10 = vmul.f32 %v24831_v28, %v24901_v56  ;;  %v11437_v44 = vmul.f32 %v11410_v51, %v24902_v29  ;;  %v11408_v28 = vsel %vm5267_vm4, %v11374_v36, %v11375_v45  ;;  %v11407_v39 = vsel %vm5267_vm4, %v11375_v45, %v11376_v11  ;;  %v24907_v51 = vld [vmem:[#allocation86_spill] sm:$0xff]  ;;  %v24908_v56 = vld [vmem:[#allocation89_spill] sm:$0xff] }
 0xecd   : > { %v23399_v36 = vmul.f32 %v24837_v42, %v24907_v51  ;;  %v11440_v15 = vmul.f32 %v11407_v39, %v24908_v56  ;;  %v11379_v29 = vrot.slane %v23381_v48, 7  ;;  %v24910_v42 = vld [vmem:[#allocation90_spill] sm:$0xff] }
 0xece   : > { %v11378_v52 = vrot.slane %v23371_v10, 7 }
 0xecf   : > { %16580 = vmatmul.mubr.msk.f32.gmra.mrb[32].mxu1 %vm919_vm0, %v11435_v50  ;;  %v24905_v50 = vld [vmem:[#allocation85_spill] sm:$0xff] }
 0xed0   : > { %16582 = vmatprep.mubr.msk.f32.mxu1 %vm919_vm0, %v11436_v14  ;;  %v23389_v6 = vmul.f32 %v24834_v24, %v24905_v50  ;;  %v11439_v14 = vmul.f32 %v11408_v28, %v24906_v30  ;;  %v11406_v24 = vsel %vm5267_vm4, %v11376_v11, %v11377_v18  ;;  %v11405_v17 = vsel %vm5267_vm4, %v11377_v18, %v11378_v52  ;;  %v24911_v28 = vld [vmem:[#allocation35_spill] sm:$0xff] }
 0xed1   : > { %v23417_v11 = vmul.f32 %v24840_v0, %v24911_v28  ;;  %v24912_v50 = vld [vmem:[#allocation91_spill] sm:$0xff]  ;;  %v11381_v30 = vrot.slane %v23399_v36, 7  ;;  %v24914_v0 = vld [vmem:[#allocation92_spill] sm:$0xff] }
 0xed2   : > { %v11380_v53 = vrot.slane %v23389_v6, 7  ;;  %v11442_v39 = vmul.f32 %v11405_v17, %v24912_v50 }
 0xed3   : > { %16583 = vmatmul.mubr.msk.f32.gmra.mrb[34].mxu1 %vm919_vm0, %v11437_v44  ;;  %v24909_v44 = vld [vmem:[#allocation88_spill] sm:$0xff] }
 0xed4   : > { %16585 = vmatprep.mubr.msk.f32.mxu1 %vm919_vm0, %v11438_v5  ;;  %v23407_v45 = vmul.f32 %v24838_v63, %v24909_v44  ;;  %v11441_v5 = vmul.f32 %v11406_v24, %v24910_v42  ;;  %v11404_v63 = vsel %vm5267_vm4, %v11378_v52, %v11379_v29  ;;  %v11403_v51 = vsel %vm5267_vm4, %v11379_v29, %v11380_v53  ;;  %v24915_v24 = vld [vmem:[#allocation37_spill] sm:$0xff]  ;;  %v24916_v44 = vld [vmem:[#allocation95_spill] sm:$0xff] }
 0xed5   : > { %v23435_v52 = vmul.f32 %v24842_v2, %v24915_v24  ;;  %v11444_v17 = vmul.f32 %v11403_v51, %v24916_v44  ;;  %v11383_v42 = vrot.slane %v23417_v11, 7  ;;  %v24918_v2 = vld [vmem:[#allocation96_spill] sm:$0xff] }
 0xed6   : > { %v11382_v56 = vrot.slane %v23407_v45, 7 }
 0xed7   : > { %16586 = vmatmul.mubr.msk.f32.gmra.mrb[36].mxu1 %vm919_vm0, %v11439_v14  ;;  %v24913_v14 = vld [vmem:[#allocation34_spill] sm:$0xff] }
 0xed8   : > { %16588 = vmatprep.mubr.msk.f32.mxu1 %vm919_vm0, %v11440_v15  ;;  %v23425_v18 = vmul.f32 %v24841_v55, %v24913_v14  ;;  %v11443_v15 = vmul.f32 %v11404_v63, %v24914_v0  ;;  %v11402_v55 = vsel %vm5267_vm4, %v11380_v53, %v11381_v30  ;;  %v11401_v28 = vsel %vm5267_vm4, %v11381_v30, %v11382_v56  ;;  %v24919_v63 = vld [vmem:[#allocation39_spill] sm:$0xff]  ;;  %v24920_v14 = vld [vmem:[#allocation97_spill] sm:$0xff] }
 0xed9   : > { %v23453_v53 = vmul.f32 %v24844_v8, %v24919_v63  ;;  %v11446_v51 = vmul.f32 %v11401_v28, %v24920_v14  ;;  %v11385_v0 = vrot.slane %v23435_v52, 7  ;;  %v24922_v8 = vld [vmem:[#allocation98_spill] sm:$0xff]  ;;  %v24926_v14 = vld [vmem:[#allocation100_spill] sm:$0xff] }
 0xeda   : > { %v11384_v50 = vrot.slane %v23425_v18, 7  ;;  %v24925_v63 = vld [vmem:[#allocation102_spill] sm:$0xff] }
 0xedb   : > { %16589 = vmatmul.mubr.msk.f32.gmra.mrb[38].mxu1 %vm919_vm0, %v11441_v5  ;;  %v24917_v5 = vld [vmem:[#allocation36_spill] sm:$0xff] }
 0xedc   : > { %16591 = vmatprep.mubr.msk.f32.mxu1 %vm919_vm0, %v11442_v39  ;;  %v23443_v29 = vmul.f32 %v24843_v3, %v24917_v5  ;;  %v11445_v39 = vmul.f32 %v11402_v55, %v24918_v2  ;;  %v11400_v3 = vsel %vm5267_vm4, %v11382_v56, %v11383_v42  ;;  %v11399_v24 = vsel %vm5267_vm4, %v11383_v42, %v11384_v50  ;;  %v24923_v55 = vld [vmem:[#allocation43_spill] sm:$0xff] }
 0xedd   : > { %v23471_v56 = vmul.f32 %v24798_v61, %v24923_v55  ;;  %v24924_v5 = vld [vmem:[#allocation99_spill] sm:$0xff]  ;;  %v11387_v2 = vrot.slane %v23453_v53, 7  ;;  %v23484_v61 = vmul.f32 %v24800_v19, %v24925_v63 }
 0xede   : > { %v11386_v44 = vrot.slane %v23443_v29, 7  ;;  %v11448_v28 = vmul.f32 %v11399_v24, %v24924_v5 }
 0xedf   : > { %16592 = vmatmul.mubr.msk.f32.gmra.mrb[40].mxu1 %vm919_vm0, %v11443_v15  ;;  %v24921_v15 = vld [vmem:[#allocation38_spill] sm:$0xff]  ;;  %v11389_v24 = vrot.slane %v23471_v56, 7  ;;  %v11390_v19 = vrot.slane %v23484_v61, 7 }
 0xee0   : > { %16594 = vmatprep.mubr.msk.f32.mxu1 %vm919_vm0, %v11444_v17  ;;  %v23461_v30 = vmul.f32 %v24845_v54, %v24921_v15  ;;  %v11447_v17 = vmul.f32 %v11400_v3, %v24922_v8  ;;  %v11398_v54 = vsel %vm5267_vm4, %v11384_v50, %v11385_v0  ;;  %v11397_v42 = vsel %vm5267_vm4, %v11385_v0, %v11386_v44  ;;  %v24927_v3 = vld [vmem:[#allocation101_spill] sm:$0xff] }
 0xee1   : > { %v11450_v15 = vmul.f32 %v11397_v42, %v24927_v3  ;;  %v11396_v50 = vsel %vm5267_vm4, %v11386_v44, %v11387_v2  ;;  %v11393_v44 = vsel %vm5267_vm4, %v11389_v24, %v11390_v19  ;;  %v13750_v3 = vld [vmem:[%s23934_s19 + $0x118] sm:$0xff] }
 0xee2   : > { %v11451_v8 = vmul.f32 %v11396_v50, %v24558_v59  ;;  %v24931_v59 = vrot.slane %v23194_v27, 7  ;;  %v11457_v50 = vrot.slane %v23199_v38, 1 }
 0xee3   : > { %16595 = vmatmul.mubr.msk.f32.gmra.mrb[42].mxu1 %vm919_vm0, %v11445_v39  ;;  %v11388_v39 = vrot.slane %v23461_v30, 7 }
 0xee4   : > { %16597 = vmatprep.mubr.msk.f32.mxu1 %vm919_vm0, %v11446_v51  ;;  %v11449_v51 = vmul.f32 %v11398_v54, %v24926_v14  ;;  %v11392_v63 = vsel %vm5267_vm4, %v11390_v19, %v24931_v59  ;;  %v24933_v19 = vld [vmem:[#allocation107_spill] sm:$0xff]  ;;  %v11465_v59 = vrot.slane %v23290_v16, 1 }
 0xee5   : > { %v11395_v0 = vsel %vm5267_vm4, %v11387_v2, %v11388_v39  ;;  %v11394_v5 = vsel %vm5267_vm4, %v11388_v39, %v11389_v24  ;;  %v24930_v2 = vld [vmem:[#allocation105_spill] sm:$0xff]  ;;  %v24932_v39 = vld [vmem:[#allocation106_spill] sm:$0xff]  ;;  %v11458_v24 = vrot.slane %v23206_v58, 1 }
 0xee6   : > { %v11454_v42 = vmul.f32 %v11393_v44, %v24930_v2  ;;  %v11455_v14 = vmul.f32 %v11392_v63, %v24932_v39  ;;  %v11463_v2 = vrot.slane %v23263_v31, 1  ;;  %v11466_v63 = vrot.slane %v23298_v34, 1 }
 0xee7   : > { %16598 = vmatmul.mubr.msk.f32.gmra.mrb[44].mxu1 %vm919_vm0, %v11447_v17  ;;  %v24928_v17 = vld [vmem:[#allocation103_spill] sm:$0xff]  ;;  %v11467_v39 = vrot.slane %v23309_v32, 1 }
 0xee8   : > { %16600 = vmatprep.mubr.msk.f32.mxu1 %vm919_vm0, %v11448_v28  ;;  %v11452_v55 = vmul.f32 %v11395_v0, %v24928_v17  ;;  %v24929_v28 = vld [vmem:[#allocation104_spill] sm:$0xff] }
 0xee9   : > { %v11453_v54 = vmul.f32 %v11394_v5, %v24929_v28  ;;  %v11461_v5 = vrot.slane %v23239_v12, 1 }
 0xeeb   : > { %16601 = vmatmul.mubr.msk.f32.gmra.mrb[46].mxu1 %vm919_vm0, %v11449_v51  ;;  %v13749_v51 = vld [vmem:[%s23934_s19 + $0x110] sm:$0xff] }
 0xeec   : > { %16603 = vmatprep.mubr.msk.f32.mxu1 %vm919_vm0, %v11450_v15  ;;  %v17432_v15 = vpack.c.bf16 %v13750_v3, %v13749_v51  ;;  %v11469_v51 = vrot.slane %v23327_v49, 1  ;;  %v11470_v3 = vrot.slane %v23335_v21, 1 }
 0xeef   : > { %16604 = vmatmul.mubr.msk.f32.gmra.mrb[48].mxu1 %vm919_vm0, %v11451_v8  ;;  %v11459_v8 = vrot.slane %v23218_v22, 1 }
 0xef0   : > { %16606 = vmatprep.mubr.msk.f32.mxu1 %vm919_vm0, %v11452_v55 }
 0xef1   : > { %v11516_v55 = vsel %vm5524_vm3, %v11458_v24, %v11459_v8 }
 0xef2   : > { %v11522_v44 = vmul.f32 %v11516_v55, %v24771_v7  ;;  %v11474_v55 = vrot.slane %v23371_v10, 1 }
 0xef3   : > { %16607 = vmatmul.mubr.msk.f32.gmra.mrb[50].mxu1 %vm919_vm0, %v11453_v54  ;;  %v11462_v54 = vrot.slane %v23253_v46, 1 }
 0xef4   : > { %16609 = vmatprep.mubr.msk.f32.mxu1 %vm919_vm0, %v11454_v42  ;;  %v11464_v42 = vrot.slane %v23277_v62, 1 }
 0xef5   : > { %v11513_v7 = vsel %vm5524_vm3, %v11461_v5, %v11462_v54 }
 0xef7   : > { %16610 = vmatmul.mubr.msk.f32.gmra.mrb[52].mxu1 %vm919_vm0, %v11455_v14  ;;  %v11468_v14 = vrot.slane %v23317_v25, 1 }
 0xef8   : > { %16620 = vmatprep.mubr.msk.f32.mxu1 %vm919_vm0, %v23185_v35 }
 0xefb   : > { %16621 = vmatmul.mubr.msk.f32.vlgmr.msra.gmra.mrb[22].mxu1 %vm919_vm0, %v23199_v38  ;;  %v11517_v38 = vsel %vm5524_vm3, %v11457_v50, %v11458_v24  ;;  %v24935_v24 = vld [vmem:[#allocation56_spill] sm:$0xff] }
 0xefc   : > { %16623 = vmatprep.mubr.msk.f32.mxu1 %vm919_vm0, %v23206_v58  ;;  %17431 = vmatpush3.bf16.msra.mxu1 %v23286_v9  ;;  %v11456_v9 = vrot.slane %v23185_v35, 1  ;;  %v11460_v58 = vrot.slane %v23227_v26, 1  ;;  %v23759_v35 = vld [vmem:[%s23935_s20] ss:$0 sm:$0xff] }
 0xefd   : > { %17433 = vmatprep.subr.bf16.mxu1 %v17432_v15 }
 0xefe   : > { %v11518_v0 = vsel %vm5524_vm3, %v11456_v9, %v11457_v50  ;;  %v11515_v28 = vsel %vm5524_vm3, %v11459_v8, %v11460_v58  ;;  %v11473_v8 = vrot.slane %v23363_v23, 1 }
 0xeff   : > { %16624 = vmatmul.mubr.msk.f32.gmra.mrb[24].mxu1 %vm919_vm0, %v23218_v22  ;;  %v11520_v17 = vmul.f32 %v11518_v0, %v24933_v19  ;;  %v11521_v22 = vmul.f32 %v11517_v38, %v24768_v41  ;;  %v11472_v0 = vrot.slane %v23353_v1, 1  ;;  %v24937_v19 = vld [vmem:[#allocation45_spill] sm:$0xff] }
 0xf00   : > { %16626 = vmatprep.mubr.msk.f32.mxu1 %vm919_vm0, %v23227_v26  ;;  %17435 = vmatpush3.bf16.msra.mxu1 %v17432_v15  ;;  %v11514_v26 = vsel %vm5524_vm3, %v11460_v58, %v11461_v5  ;;  %v11471_v15 = vrot.slane %v23345_v60, 1  ;;  %v11475_v5 = vrot.slane %v23381_v48, 1 }
 0xf01   : > { %v11524_v41 = vmul.f32 %v11514_v26, %v24773_v13  ;;  %v11511_v13 = vsel %vm5524_vm3, %v11463_v2, %v11464_v42  ;;  %v11476_v26 = vrot.slane %v23389_v6, 1 }
 0xf02   : > { %v11503_v58 = vsel %vm5524_vm3, %v11471_v15, %v11472_v0 }
 0xf03   : > { %16627 = vmatmul.mubr.msk.f32.gmra.mrb[26].mxu1 %vm919_vm0, %v23239_v12  ;;  %v11523_v12 = vmul.f32 %v11515_v28, %v24772_v4 }
 0xf04   : > { %16629 = vmatprep.mubr.msk.f32.mxu1 %vm919_vm0, %v23253_v46  ;;  %v11512_v46 = vsel %vm5524_vm3, %v11462_v54, %v11463_v2  ;;  %v11501_v54 = vsel %vm5524_vm3, %v11473_v8, %v11474_v55  ;;  %v11477_v2 = vrot.slane %v23399_v36, 1 }
 0xf05   : > { %v11526_v4 = vmul.f32 %v11512_v46, %v24775_v20  ;;  %v11509_v20 = vsel %vm5524_vm3, %v11465_v59, %v11466_v63  ;;  %v11478_v46 = vrot.slane %v23407_v45, 1 }
 0xf07   : > { %16630 = vmatmul.mubr.msk.f32.gmra.mrb[28].mxu1 %vm919_vm0, %v23263_v31  ;;  %v11525_v31 = vmul.f32 %v11513_v7, %v24774_v37 }
 0xf08   : > { %16632 = vmatprep.mubr.msk.f32.mxu1 %vm919_vm0, %v23277_v62  ;;  %v11510_v62 = vsel %vm5524_vm3, %v11464_v42, %v11465_v59  ;;  %v11499_v42 = vsel %vm5524_vm3, %v11475_v5, %v11476_v26  ;;  %v11479_v59 = vrot.slane %v23417_v11, 1 }
 0xf09   : > { %v11528_v37 = vmul.f32 %v11510_v62, %v24777_v33  ;;  %v11507_v33 = vsel %vm5524_vm3, %v11467_v39, %v11468_v14  ;;  %v11480_v62 = vrot.slane %v23425_v18, 1 }
 0xf0b   : > { %16633 = vmatmul.mubr.msk.f32.gmra.mrb[30].mxu1 %vm919_vm0, %v23290_v16  ;;  %v11527_v16 = vmul.f32 %v11511_v13, %v24776_v57 }
 0xf0c   : > { %16635 = vmatprep.mubr.msk.f32.mxu1 %vm919_vm0, %v23298_v34  ;;  %v11508_v34 = vsel %vm5524_vm3, %v11466_v63, %v11467_v39  ;;  %v11497_v63 = vsel %vm5524_vm3, %v11477_v2, %v11478_v46  ;;  %v11481_v39 = vrot.slane %v23435_v52, 1 }
 0xf0d   : > { %v11530_v57 = vmul.f32 %v11508_v34, %v24779_v47  ;;  %v11505_v47 = vsel %vm5524_vm3, %v11469_v51, %v11470_v3  ;;  %v11482_v34 = vrot.slane %v23443_v29, 1 }
 0xf0f   : > { %16636 = vmatmul.mubr.msk.f32.gmra.mrb[32].mxu1 %vm919_vm0, %v23309_v32  ;;  %v11529_v32 = vmul.f32 %v11509_v20, %v24778_v40 }
 0xf10   : > { %16638 = vmatprep.mubr.msk.f32.mxu1 %vm919_vm0, %v23317_v25  ;;  %v11506_v25 = vsel %vm5524_vm3, %v11468_v14, %v11469_v51  ;;  %v11495_v14 = vsel %vm5524_vm3, %v11479_v59, %v11480_v62  ;;  %v11483_v51 = vrot.slane %v23453_v53, 1 }
 0xf11   : > { %v11532_v40 = vmul.f32 %v11506_v25, %v24935_v24  ;;  %v11484_v25 = vrot.slane %v23461_v30, 1 }
 0xf13   : > { %16639 = vmatmul.mubr.msk.f32.gmra.mrb[34].mxu1 %vm919_vm0, %v23327_v49  ;;  %v24934_v49 = vld [vmem:[#allocation53_spill] sm:$0xff] }
 0xf14   : > { %16641 = vmatprep.mubr.msk.f32.mxu1 %vm919_vm0, %v23335_v21  ;;  %v11531_v50 = vmul.f32 %v11507_v33, %v24934_v49  ;;  %v11504_v21 = vsel %vm5524_vm3, %v11470_v3, %v11471_v15  ;;  %v11493_v3 = vsel %vm5524_vm3, %v11481_v39, %v11482_v34  ;;  %v11485_v15 = vrot.slane %v23471_v56, 1 }
 0xf17   : > { %16642 = vmatmul.mubr.msk.f32.gmra.mrb[36].mxu1 %vm919_vm0, %v23345_v60  ;;  %v24936_v60 = vld [vmem:[#allocation54_spill] sm:$0xff] }
 0xf18   : > { %16644 = vmatprep.mubr.msk.f32.mxu1 %vm919_vm0, %v23353_v1  ;;  %v11533_v38 = vmul.f32 %v11505_v47, %v24936_v60  ;;  %v11502_v1 = vsel %vm5524_vm3, %v11472_v0, %v11473_v8  ;;  %v11486_v47 = vrot.slane %v23484_v61, 1  ;;  %v11487_v0 = vrot.slane %v23194_v27, 1  ;;  %v24951_v8 = vld [vmem:[#allocation128_spill] sm:$0xff] }
 0xf1b   : > { %16645 = vmatmul.mubr.msk.f32.gmra.mrb[38].mxu1 %vm919_vm0, %v23363_v23  ;;  %v24938_v23 = vld [vmem:[#allocation115_spill] sm:$0xff] }
 0xf1c   : > { %16647 = vmatprep.mubr.msk.f32.mxu1 %vm919_vm0, %v23371_v10  ;;  %v11500_v10 = vsel %vm5524_vm3, %v11474_v55, %v11475_v5  ;;  %v11519_v55 = vsel %vm5524_vm3, %v11487_v0, %v11456_v9 }
 0xf1f   : > { %16648 = vmatmul.mubr.msk.f32.gmra.mrb[40].mxu1 %vm919_vm0, %v23381_v48  ;;  %v24940_v48 = vld [vmem:[#allocation117_spill] sm:$0xff] }
 0xf20   : > { %16650 = vmatprep.mubr.msk.f32.mxu1 %vm919_vm0, %v23389_v6  ;;  %v11498_v6 = vsel %vm5524_vm3, %v11476_v26, %v11477_v2 }
 0xf23   : > { %16651 = vmatmul.mubr.msk.f32.gmra.mrb[42].mxu1 %vm919_vm0, %v23399_v36  ;;  %v24942_v36 = vld [vmem:[#allocation119_spill] sm:$0xff] }
 0xf24   : > { %16653 = vmatprep.mubr.msk.f32.mxu1 %vm919_vm0, %v23407_v45  ;;  %v11496_v45 = vsel %vm5524_vm3, %v11478_v46, %v11479_v59 }
 0xf27   : > { %16654 = vmatmul.mubr.msk.f32.gmra.mrb[44].mxu1 %vm919_vm0, %v23417_v11  ;;  %v24944_v11 = vld [vmem:[#allocation121_spill] sm:$0xff] }
 0xf28   : > { %16656 = vmatprep.mubr.msk.f32.mxu1 %vm919_vm0, %v23425_v18  ;;  %v11494_v18 = vsel %vm5524_vm3, %v11480_v62, %v11481_v39 }
 0xf2b   : > { %16657 = vmatmul.mubr.msk.f32.gmra.mrb[46].mxu1 %vm919_vm0, %v23435_v52  ;;  %v24946_v52 = vld [vmem:[#allocation123_spill] sm:$0xff] }
 0xf2c   : > { %16659 = vmatprep.mubr.msk.f32.mxu1 %vm919_vm0, %v23443_v29  ;;  %v11492_v29 = vsel %vm5524_vm3, %v11482_v34, %v11483_v51 }
 0xf2f   : > { %16660 = vmatmul.mubr.msk.f32.gmra.mrb[48].mxu1 %vm919_vm0, %v23453_v53  ;;  %v24948_v53 = vld [vmem:[#allocation125_spill] sm:$0xff] }
 0xf30   : > { %16662 = vmatprep.mubr.msk.f32.mxu1 %vm919_vm0, %v23461_v30  ;;  %v11545_v49 = vmul.f32 %v11493_v3, %v24948_v53  ;;  %v11490_v30 = vsel %vm5524_vm3, %v11484_v25, %v11485_v15 }
 0xf31   : > { %v11548_v60 = vmul.f32 %v11490_v30, %v24951_v8 }
 0xf33   : > { %16663 = vmatmul.mubr.msk.f32.gmra.mrb[50].mxu1 %vm919_vm0, %v23471_v56  ;;  %v24950_v56 = vld [vmem:[#allocation127_spill] sm:$0xff] }
 0xf34   : > { %16665 = vmatprep.mubr.msk.f32.mxu1 %vm919_vm0, %v23484_v61 }
 0xf37   : > { %16666 = vmatmul.mubr.msk.f32.gmra.mrb[52].mxu1 %vm919_vm0, %v23194_v27 }
 0xf38   : > { %16676 = vmatprep.mubr.msk.f32.mxu1 %vm919_vm0, %v11520_v17  ;;  %v11534_v17 = vmul.f32 %v11504_v21, %v24937_v19  ;;  %v11488_v19 = vsel %vm5524_vm3, %v11486_v47, %v11487_v0 }
 0xf3b   : > { %16677 = vmatmul.mubr.msk.f32.vlgmr.msra.gmra.mrb[22].mxu1 %vm919_vm0, %v11521_v22  ;;  %v11535_v22 = vmul.f32 %v11503_v58, %v24938_v23  ;;  %v24953_v58 = vld [vmem:[#allocation41_spill] sm:$0xff]  ;;  %v23752_v23 = vld [vmem:[%s23936_s21] sm:$0xff] }
 0xf3c   : > { %16679 = vmatprep.mubr.msk.f32.mxu1 %vm919_vm0, %v11522_v44  ;;  %v24939_v44 = vld [vmem:[#allocation116_spill] sm:$0xff]  ;;  %v11550_v27 = vmul.f32 %v11488_v19, %v24953_v58  ;;  %14937 = vmatprep.mubr.msk.f32.mxu0 %vm919_vm0, %v23752_v23 }
 0xf3d   : > { %v11536_v28 = vmul.f32 %v11502_v1, %v24939_v44  ;;  %v24954_v1 = vld [vmem:[#allocation42_spill] sm:$0xff] }
 0xf3e   : > { %v11551_v5 = vmul.f32 %v11519_v55, %v24954_v1 }
 0xf3f   : > { %16680 = vmatmul.mubr.msk.f32.gmra.mrb[24].mxu1 %vm919_vm0, %v11523_v12  ;;  %v11537_v12 = vmul.f32 %v11501_v54, %v24940_v48 }
 0xf40   : > { %16682 = vmatprep.mubr.msk.f32.mxu1 %vm919_vm0, %v11524_v41  ;;  %v24941_v41 = vld [vmem:[#allocation118_spill] sm:$0xff] }
 0xf41   : > { %v11538_v7 = vmul.f32 %v11500_v10, %v24941_v41 }
 0xf43   : > { %16683 = vmatmul.mubr.msk.f32.gmra.mrb[26].mxu1 %vm919_vm0, %v11525_v31  ;;  %v11539_v31 = vmul.f32 %v11499_v42, %v24942_v36 }
 0xf44   : > { %16685 = vmatprep.mubr.msk.f32.mxu1 %vm919_vm0, %v11526_v4  ;;  %v24943_v4 = vld [vmem:[#allocation120_spill] sm:$0xff] }
 0xf45   : > { %v11540_v13 = vmul.f32 %v11498_v6, %v24943_v4 }
 0xf47   : > { %16686 = vmatmul.mubr.msk.f32.gmra.mrb[28].mxu1 %vm919_vm0, %v11527_v16  ;;  %v11541_v16 = vmul.f32 %v11497_v63, %v24944_v11 }
 0xf48   : > { %16688 = vmatprep.mubr.msk.f32.mxu1 %vm919_vm0, %v11528_v37  ;;  %v24945_v37 = vld [vmem:[#allocation122_spill] sm:$0xff] }
 0xf49   : > { %v11542_v20 = vmul.f32 %v11496_v45, %v24945_v37 }
 0xf4b   : > { %16689 = vmatmul.mubr.msk.f32.gmra.mrb[30].mxu1 %vm919_vm0, %v11529_v32  ;;  %v11543_v32 = vmul.f32 %v11495_v14, %v24946_v52 }
 0xf4c   : > { %16691 = vmatprep.mubr.msk.f32.mxu1 %vm919_vm0, %v11530_v57  ;;  %v24947_v57 = vld [vmem:[#allocation124_spill] sm:$0xff] }
 0xf4d   : > { %v11544_v33 = vmul.f32 %v11494_v18, %v24947_v57 }
 0xf4f   : > { %16692 = vmatmul.mubr.msk.f32.gmra.mrb[32].mxu1 %vm919_vm0, %v11531_v50  ;;  %v24949_v50 = vld [vmem:[#allocation126_spill] sm:$0xff] }
 0xf50   : > { %16694 = vmatprep.mubr.msk.f32.mxu1 %vm919_vm0, %v11532_v40  ;;  %v11546_v24 = vmul.f32 %v11492_v29, %v24949_v50  ;;  %v11491_v40 = vsel %vm5524_vm3, %v11483_v51, %v11484_v25 }
 0xf51   : > { %v11547_v21 = vmul.f32 %v11491_v40, %v24950_v56 }
 0xf53   : > { %16695 = vmatmul.mubr.msk.f32.gmra.mrb[34].mxu1 %vm919_vm0, %v11533_v38  ;;  %v11489_v38 = vsel %vm5524_vm3, %v11485_v15, %v11486_v47 }
 0xf54   : > { %16697 = vmatprep.mubr.msk.f32.mxu1 %vm919_vm0, %v11534_v17  ;;  %v24952_v17 = vld [vmem:[#allocation129_spill] sm:$0xff] }
 0xf55   : > { %v11549_v61 = vmul.f32 %v11489_v38, %v24952_v17 }
 0xf57   : > { %16698 = vmatmul.mubr.msk.f32.gmra.mrb[36].mxu1 %vm919_vm0, %v11535_v22 }
 0xf58   : > { %16700 = vmatprep.mubr.msk.f32.mxu1 %vm919_vm0, %v11536_v28 }
 0xf5b   : > { %16701 = vmatmul.mubr.msk.f32.gmra.mrb[38].mxu1 %vm919_vm0, %v11537_v12 }
 0xf5c   : > { %16703 = vmatprep.mubr.msk.f32.mxu1 %vm919_vm0, %v11538_v7 }
 0xf5f   : > { %16704 = vmatmul.mubr.msk.f32.gmra.mrb[40].mxu1 %vm919_vm0, %v11539_v31 }
 0xf60   : > { %16706 = vmatprep.mubr.msk.f32.mxu1 %vm919_vm0, %v11540_v13 }
 0xf63   : > { %16707 = vmatmul.mubr.msk.f32.gmra.mrb[42].mxu1 %vm919_vm0, %v11541_v16 }
 0xf64   : > { %16709 = vmatprep.mubr.msk.f32.mxu1 %vm919_vm0, %v11542_v20 }
 0xf67   : > { %16710 = vmatmul.mubr.msk.f32.gmra.mrb[44].mxu1 %vm919_vm0, %v11543_v32 }
 0xf68   : > { %16712 = vmatprep.mubr.msk.f32.mxu1 %vm919_vm0, %v11544_v33 }
 0xf6b   : > { %16713 = vmatmul.mubr.msk.f32.gmra.mrb[46].mxu1 %vm919_vm0, %v11545_v49 }
 0xf6c   : > { %16715 = vmatprep.mubr.msk.f32.mxu1 %vm919_vm0, %v11546_v24 }
 0xf6f   : > { %16716 = vmatmul.mubr.msk.f32.gmra.mrb[48].mxu1 %vm919_vm0, %v11547_v21 }
 0xf70   : > { %16718 = vmatprep.mubr.msk.f32.mxu1 %vm919_vm0, %v11548_v60 }
 0xf73   : > { %16719 = vmatmul.mubr.msk.f32.gmra.mrb[50].mxu1 %vm919_vm0, %v11549_v61 }
 0xf74   : > { %16721 = vmatprep.mubr.msk.f32.mxu1 %vm919_vm0, %v11550_v27 }
 0xf77   : > { %16722 = vmatmul.mubr.msk.f32.gmra.mrb[52].mxu1 %vm919_vm0, %v11551_v5 }
0x100e   : > { %v16678_v9 = vpop.f32.mrb[22].mxu1 }
0x100f   : > { %v12634_v22 = vadd.f32 %v16678_v9, %v23759_v35  ;;  %v12435_v44 = vpop.f32.mrb[23].mxu1 }
0x1010   : > { %v12633_v28 = vadd.f32 %v23759_v35, %v12435_v44 }
0x1011   : > { %v12666_v54 = vmax.f32 %v12634_v22, 0.0 }
0x1012   : > { %v12665_v26 = vmax.f32 %v12633_v28, 0.0  ;;  %v16681_v10 = vpop.f32.mrb[24].mxu1 }
0x1013   : > { %v23763_v2 = vmin.f32 %v12666_v54, 6.0  ;;  %v12636_v48 = vadd.f32 %v16681_v10, %v23759_v35  ;;  %v12445_v12 = vpop.f32.mrb[25].mxu1 }
0x1014   : > { %v23766_v41 = vmin.f32 %v12665_v26, 6.0  ;;  %v12635_v7 = vadd.f32 %v23759_v35, %v12445_v12 }
0x1015   : > { %v12668_v42 = vmax.f32 %v12636_v48, 0.0 }
0x1016   : > { %v17439_v46 = vpack.c.bf16 %v23763_v2, %v23766_v41  ;;  %v12667_v6 = vmax.f32 %v12635_v7, 0.0  ;;  %v16684_v59 = vpop.f32.mrb[26].mxu1 }
0x1017   : > { %v23771_v36 = vmin.f32 %v12668_v42, 6.0  ;;  %v12638_v31 = vadd.f32 %v16684_v59, %v23759_v35  ;;  %v12455_v4 = vpop.f32.mrb[27].mxu1 }
0x1018   : > { %v23774_v13 = vmin.f32 %v12667_v6, 6.0  ;;  %v12637_v63 = vadd.f32 %v23759_v35, %v12455_v4 }
0x1019   : > { %v12670_v62 = vmax.f32 %v12638_v31, 0.0 }
0x101a   : > { %v17445_v45 = vpack.c.bf16 %v23771_v36, %v23774_v13  ;;  %v12669_v39 = vmax.f32 %v12637_v63, 0.0  ;;  %v16687_v11 = vpop.f32.mrb[28].mxu1 }
0x101b   : > { %v23779_v16 = vmin.f32 %v12670_v62, 6.0  ;;  %v12640_v37 = vadd.f32 %v16687_v11, %v23759_v35  ;;  %v12465_v20 = vpop.f32.mrb[29].mxu1 }
0x101c   : > { %v23782_v14 = vmin.f32 %v12669_v39, 6.0  ;;  %v12639_v34 = vadd.f32 %v23759_v35, %v12465_v20 }
0x101d   : > { %v12672_v18 = vmax.f32 %v12640_v37, 0.0 }
0x101e   : > { %v17451_v51 = vpack.c.bf16 %v23779_v16, %v23782_v14  ;;  %v12671_v52 = vmax.f32 %v12639_v34, 0.0  ;;  %v16690_v32 = vpop.f32.mrb[30].mxu1 }
0x101f   : > { %v23787_v57 = vmin.f32 %v12672_v18, 6.0  ;;  %v12642_v33 = vadd.f32 %v16690_v32, %v23759_v35  ;;  %v12475_v3 = vpop.f32.mrb[31].mxu1 }
0x1020   : > { %v23790_v25 = vmin.f32 %v12671_v52, 6.0  ;;  %v12641_v29 = vadd.f32 %v23759_v35, %v12475_v3 }
0x1021   : > { %v12674_v15 = vmax.f32 %v12642_v33, 0.0 }
0x1022   : > { %v17457_v53 = vpack.c.bf16 %v23787_v57, %v23790_v25  ;;  %v12673_v49 = vmax.f32 %v12641_v29, 0.0  ;;  %v16693_v50 = vpop.f32.mrb[32].mxu1  ;;  %v12908_v25 = vsub.s32 0, %v20155_v43 }
0x1023   : > { %v23795_v24 = vmin.f32 %v12674_v15, 6.0  ;;  %v12644_v40 = vadd.f32 %v16693_v50, %v23759_v35  ;;  %v12485_v30 = vpop.f32.mrb[33].mxu1 }
0x1024   : > { %v23798_v47 = vmin.f32 %v12673_v49, 6.0  ;;  %v12643_v0 = vadd.f32 %v23759_v35, %v12485_v30 }
0x1025   : > { %v12676_v56 = vmax.f32 %v12644_v40, 0.0 }
0x1026   : > { %v17463_v21 = vpack.c.bf16 %v23795_v24, %v23798_v47  ;;  %v12675_v8 = vmax.f32 %v12643_v0, 0.0  ;;  %v16696_v60 = vpop.f32.mrb[34].mxu1 }
0x1027   : > { %v23803_v38 = vmin.f32 %v12676_v56, 6.0  ;;  %v12646_v19 = vadd.f32 %v16696_v60, %v23759_v35  ;;  %v12495_v17 = vpop.f32.mrb[35].mxu1 }
0x1028   : > { %v23806_v61 = vmin.f32 %v12675_v8, 6.0  ;;  %v12645_v58 = vadd.f32 %v23759_v35, %v12495_v17 }
0x1029   : > { %v12678_v27 = vmax.f32 %v12646_v19, 0.0 }
0x102a   : > { %v17469_v55 = vpack.c.bf16 %v23803_v38, %v23806_v61  ;;  %v12677_v1 = vmax.f32 %v12645_v58, 0.0  ;;  %v16699_v5 = vpop.f32.mrb[36].mxu1 }
0x102b   : > { %v23811_v9 = vmin.f32 %v12678_v27, 6.0  ;;  %v12648_v22 = vadd.f32 %v16699_v5, %v23759_v35  ;;  %v12505_v44 = vpop.f32.mrb[37].mxu1 }
0x102c   : > { %v23814_v28 = vmin.f32 %v12677_v1, 6.0  ;;  %v12647_v54 = vadd.f32 %v23759_v35, %v12505_v44 }
0x102d   : > { %v12680_v26 = vmax.f32 %v12648_v22, 0.0 }
0x102e   : > { %v17475_v10 = vpack.c.bf16 %v23811_v9, %v23814_v28  ;;  %v12679_v48 = vmax.f32 %v12647_v54, 0.0  ;;  %v16702_v12 = vpop.f32.mrb[38].mxu1 }
0x102f   : > { %v23819_v7 = vmin.f32 %v12680_v26, 6.0  ;;  %v12650_v42 = vadd.f32 %v16702_v12, %v23759_v35  ;;  %v12515_v6 = vpop.f32.mrb[39].mxu1 }
0x1030   : > { %v23822_v59 = vmin.f32 %v12679_v48, 6.0  ;;  %v12649_v31 = vadd.f32 %v23759_v35, %v12515_v6 }
0x1031   : > { %v12682_v4 = vmax.f32 %v12650_v42, 0.0 }
0x1032   : > { %v17481_v63 = vpack.c.bf16 %v23819_v7, %v23822_v59  ;;  %v12681_v62 = vmax.f32 %v12649_v31, 0.0  ;;  %v16705_v39 = vpop.f32.mrb[40].mxu1 }
0x1033   : > { %v12714_v11 = vmin.f32 %v12682_v4, 6.0  ;;  %v12652_v37 = vadd.f32 %v16705_v39, %v23759_v35  ;;  %v12525_v20 = vpop.f32.mrb[41].mxu1 }
0x1034   : > { %v12713_v34 = vmin.f32 %v12681_v62, 6.0  ;;  %v12651_v18 = vadd.f32 %v23759_v35, %v12525_v20 }
0x1035   : > { %v12684_v52 = vmax.f32 %v12652_v37, 0.0 }
0x1036   : > { %v17436_v33 = vpack.c.bf16 %v12714_v11, %v12713_v34  ;;  %v12683_v3 = vmax.f32 %v12651_v18, 0.0  ;;  %v16708_v29 = vpop.f32.mrb[42].mxu1 }
0x1037   : > { %v12716_v15 = vmin.f32 %v12684_v52, 6.0  ;;  %v12654_v49 = vadd.f32 %v16708_v29, %v23759_v35  ;;  %v12535_v50 = vpop.f32.mrb[43].mxu1 }
0x1038   : > { %v12715_v40 = vmin.f32 %v12683_v3, 6.0  ;;  %v12653_v30 = vadd.f32 %v23759_v35, %v12535_v50  ;;  %17438 = vmatprep.subr.msk.bf16.mxu0 %vm23831_vm5, %v17436_v33 }
0x1039   : > { %v12686_v0 = vmax.f32 %v12654_v49, 0.0  ;;  %17441 = vmatpush3.bf16.xpose.msk.msra.mxu0 %vm23831_vm5, %v17439_v46 }
0x103a   : > { %v17442_v56 = vpack.c.bf16 %v12716_v15, %v12715_v40  ;;  %v12685_v8 = vmax.f32 %v12653_v30, 0.0  ;;  %v16711_v60 = vpop.f32.mrb[44].mxu1 }
0x103b   : > { %v12718_v19 = vmin.f32 %v12686_v0, 6.0  ;;  %v12656_v17 = vadd.f32 %v16711_v60, %v23759_v35  ;;  %v12545_v58 = vpop.f32.mrb[45].mxu1 }
0x103c   : > { %v12717_v27 = vmin.f32 %v12685_v8, 6.0  ;;  %v12655_v1 = vadd.f32 %v23759_v35, %v12545_v58  ;;  %17444 = vmatprep.subr.msk.bf16.mxu0 %vm23831_vm5, %v17442_v56 }
0x103d   : > { %v12688_v5 = vmax.f32 %v12656_v17, 0.0 }
0x103e   : > { %v17448_v22 = vpack.c.bf16 %v12718_v19, %v12717_v27  ;;  %v12687_v44 = vmax.f32 %v12655_v1, 0.0  ;;  %v16714_v2 = vpop.f32.mrb[46].mxu1 }
0x103f   : > { %v12720_v41 = vmin.f32 %v12688_v5, 6.0  ;;  %v12658_v46 = vadd.f32 %v16714_v2, %v23759_v35  ;;  %v12555_v54 = vpop.f32.mrb[47].mxu1 }
0x1040   : > { %v12719_v26 = vmin.f32 %v12687_v44, 6.0  ;;  %v12657_v48 = vadd.f32 %v23759_v35, %v12555_v54 }
0x1041   : > { %v12690_v12 = vmax.f32 %v12658_v46, 0.0  ;;  %17447 = vmatpush3.bf16.xpose.msk.msra.mxu0 %vm23831_vm5, %v17445_v45 }
0x1042   : > { %v17454_v42 = vpack.c.bf16 %v12720_v41, %v12719_v26  ;;  %v12689_v6 = vmax.f32 %v12657_v48, 0.0  ;;  %v16717_v31 = vpop.f32.mrb[48].mxu1  ;;  %17450 = vmatprep.subr.msk.bf16.mxu0 %vm23831_vm5, %v17448_v22 }
0x1043   : > { %v12722_v4 = vmin.f32 %v12690_v12, 6.0  ;;  %v12660_v62 = vadd.f32 %v16717_v31, %v23759_v35  ;;  %v12565_v39 = vpop.f32.mrb[49].mxu1 }
0x1044   : > { %v12721_v11 = vmin.f32 %v12689_v6, 6.0  ;;  %v12659_v37 = vadd.f32 %v23759_v35, %v12565_v39 }
0x1045   : > { %v12692_v20 = vmax.f32 %v12660_v62, 0.0 }
0x1046   : > { %v17460_v34 = vpack.c.bf16 %v12722_v4, %v12721_v11  ;;  %v12691_v18 = vmax.f32 %v12659_v37, 0.0  ;;  %v16720_v36 = vpop.f32.mrb[50].mxu1 }
0x1047   : > { %v12724_v13 = vmin.f32 %v12692_v20, 6.0  ;;  %v12662_v45 = vadd.f32 %v16720_v36, %v23759_v35  ;;  %v12575_v52 = vpop.f32.mrb[51].mxu1 }
0x1048   : > { %v12723_v33 = vmin.f32 %v12691_v18, 6.0  ;;  %v12661_v3 = vadd.f32 %v23759_v35, %v12575_v52 }
0x1049   : > { %v12694_v29 = vmax.f32 %v12662_v45, 0.0  ;;  %17453 = vmatpush3.bf16.xpose.msk.msra.mxu0 %vm23831_vm5, %v17451_v51 }
0x104a   : > { %v17466_v15 = vpack.c.bf16 %v12724_v13, %v12723_v33  ;;  %v12693_v49 = vmax.f32 %v12661_v3, 0.0  ;;  %v16723_v50 = vpop.f32.mrb[52].mxu1  ;;  %17456 = vmatprep.subr.msk.bf16.mxu0 %vm23831_vm5, %v17454_v42 }
0x104b   : > { %v12726_v40 = vmin.f32 %v12694_v29, 6.0  ;;  %v12664_v30 = vadd.f32 %v16723_v50, %v23759_v35  ;;  %v12585_v0 = vpop.f32.mrb[53].mxu1 }
0x104c   : > { %v12725_v56 = vmin.f32 %v12693_v49, 6.0  ;;  %v12663_v8 = vadd.f32 %v23759_v35, %v12585_v0  ;;  %v18423_v35 = vmov 1966171168  }
0x104d   : > { %v12696_v60 = vmax.f32 %v12664_v30, 0.0  ;;  %v12916_v57 = vunpack.c.l.s4 %v18423_v35 }
0x104e   : > { %v17472_v19 = vpack.c.bf16 %v12726_v40, %v12725_v56  ;;  %v12695_v17 = vmax.f32 %v12663_v8, 0.0 }
0x104f   : > { %v12728_v16 = vmin.f32 %v12696_v60, 6.0  ;;  %v12917_v24 = vunpack.c.0.s8 %v12916_v57 }
0x1050   : > { %v12727_v14 = vmin.f32 %v12695_v17, 6.0 }
0x1051   : > { %17459 = vmatpush3.bf16.xpose.msk.msra.mxu0 %vm23831_vm5, %v17457_v53  ;;  %v12904_v53 = vpop.permute.xlu1 %12903  ;;  %v12920_v9 = vsub.s32 %v12917_v24, %v20155_v43 }
0x1052   : > { %v17478_v51 = vpack.c.bf16 %v12728_v16, %v12727_v14  ;;  %17462 = vmatprep.subr.msk.bf16.mxu0 %vm23831_vm5, %v17460_v34  ;;  %v12909_v47 = vrot.slane %v12904_v53, %v12908_v25 }
0x1059   : > { %17465 = vmatpush3.bf16.xpose.msk.msra.mxu0 %vm23831_vm5, %v17463_v21 }
0x105a   : > { %17468 = vmatprep.subr.msk.bf16.mxu0 %vm23831_vm5, %v17466_v15 }
0x1061   : > { %17471 = vmatpush3.bf16.xpose.msk.msra.mxu0 %vm23831_vm5, %v17469_v55 }
0x1062   : > { %17474 = vmatprep.subr.msk.bf16.mxu0 %vm23831_vm5, %v17472_v19 }
0x1069   : > { %17477 = vmatpush3.bf16.xpose.msk.msra.mxu0 %vm23831_vm5, %v17475_v10 }
0x106a   : > { %17480 = vmatprep.subr.msk.bf16.mxu0 %vm23831_vm5, %v17478_v51 }
0x1071   : > { %17483 = vmatpush3.bf16.xpose.msk.msra.mxu0 %vm23831_vm5, %v17481_v63 }
0x1078   : > { %14938 = vmatmul.mubr.msk.f32.vlgmr.msra.gmra.mrb[134].mxu0 %vm919_vm0, %v23752_v23  ;;  %v24957_v23 = vlaneseq }
0x107a   : > { %vm12932_vm6 = vcmp.lt.s32.totalorder %v24957_v23, 256 }
0x114b   : > { %v12895_v21 = vpop.f32.mrb[134].mxu0 }
0x114c   : > { %v12910_v38 = vadd.f32 %v12909_v47, %v12895_v21  ;;  %v12897_v61 = vpop.f32.mrb[135].mxu0 }
0x114d   : > { %v12911_v55 = vadd.f32 %v12909_v47, %v12897_v61 }
0x114f   : > { %v12914_v28 = vcombine.low %v12910_v38, %v12911_v55 }
0x1151   : > { %v12921_v10 = vrot.slane %v12914_v28, %v12920_v9 }
0x1153   : > { %v12928_v7 = vrot.slane %v12921_v10, %v12920_v9 }
0x1155   : > { %12934 = vst.msk [vmem:[%s770_s2] sm:$0x3] %vm12932_vm6, %v12928_v7 }
0x1156 PF: > { %s35_s24 = sadd.s32 1, %s18416_s24  }
0x1157   : > { %p32_p4 = scmp.ge.s32.totalorder %s35_s24, 4  }
0x1159   :  { %34 = sbr.rel (!%p32_p4) target bundleno = 9 (0x9), region = 183 }

</bundles_post_ra>
